<compile_context>
chip_gen: v7x
topology: tpu7x:2x2x1
jax: 0.10.0
libtpu: 0.0.40
codegen_flags: <defaults>
</compile_context>

<pallas_src>
import functools

import jax
import jax.numpy as jnp
from jax import lax
from jax.experimental import pallas as pl
from jax.experimental.pallas import tpu as pltpu

EPS_LN = 1e-5
EPS_NORM = 1e-12


# --------------------------------------------------------------------------- #
# Tiling / compiler-param helpers
# --------------------------------------------------------------------------- #
def _row_tile(n, cap=1024):
    """Return (tile, padded_n): whole array if small, else a fixed 8-multiple tile."""
    if n <= cap:
        return n, n
    t = cap  # cap is a multiple of 8
    return t, ((n + t - 1) // t) * t


def _pad_rows(a, n_pad):
    n = a.shape[0]
    if n_pad == n:
        return a
    pad = jnp.zeros((n_pad - n,) + a.shape[1:], a.dtype)
    return jnp.concatenate([a, pad], axis=0)


def _cparams(block_bytes):
    """1-D parallel grid + an explicit scoped-VMEM limit sized from the block math."""
    limit = int(block_bytes) * 2 + (8 << 20)     # double buffering + headroom
    limit = max(limit, 24 << 20)
    limit = min(limit, 60 << 20)                 # stay under v7x's 64 MiB VMEM
    return pltpu.CompilerParams(dimension_semantics=("parallel",),
                                vmem_limit_bytes=limit)


def _gru_batch_tile(b2, T, D):
    """(tile, padded_b2) for the stacked GRU batch, from a VMEM budget."""
    per_row = (T * D * 2) * 2 + T * 3 * D * 4 + D * 4 * 2 + 8 * 3 * D * 4 * 2
    budget = 24 << 20                            # safe under 32 MiB default & v7x/2
    cap = max(8, (budget // per_row) // 8 * 8)
    if b2 >= 16:                                 # keep >= 2 grid steps for 2 TCs (v7x)
        cap = min(cap, max(8, (b2 // 2) // 8 * 8))
    if b2 <= cap:
        return b2, b2
    tb = cap
    return tb, ((b2 + tb - 1) // tb) * tb


# --------------------------------------------------------------------------- #
# Shared math helpers (traced inside kernels)
# --------------------------------------------------------------------------- #
def _l2norm(v):
    ss = jnp.sum(v * v, axis=-1, keepdims=True)
    return v * lax.rsqrt(jnp.maximum(ss, EPS_NORM * EPS_NORM))


def _route(x, nb, routing_iter):
    x = x.astype(jnp.float32)
    nb = nb.astype(jnp.float32)
    xn = _l2norm(x)
    nbn = _l2norm(nb)
    u = xn
    for _ in range(routing_iter):
        s = jnp.sum(u[:, None, :] * nbn, axis=-1)            # (TN, S)
        a = jax.nn.softmax(s, axis=-1)
        u = _l2norm(xn + jnp.sum(a[:, :, None] * nbn, axis=1))
    return u


def _layernorm(x, g, b):
    mu = jnp.mean(x, axis=-1, keepdims=True)
    xc = x - mu
    var = jnp.mean(xc * xc, axis=-1, keepdims=True)
    return xc * lax.rsqrt(var + EPS_LN) * g + b


# --------------------------------------------------------------------------- #
# Neighbor routing aggregation
# --------------------------------------------------------------------------- #
def _routing_kernel(x_ref, nb_ref, o_ref, *, routing_iter):
    o_ref[...] = _route(x_ref[...], nb_ref[...], routing_iter).astype(o_ref.dtype)


def neighbor_routing_agg(x, nb, routing_iter):
    N, D = x.shape
    S = nb.shape[1]
    tn, n_pad = _row_tile(N)
    xp = _pad_rows(x.astype(jnp.float32), n_pad)
    nbp = _pad_rows(nb.astype(jnp.float32), n_pad)
    block_bytes = tn * D * 4 * (S + 3)
    out = pl.pallas_call(
        functools.partial(_routing_kernel, routing_iter=routing_iter),
        out_shape=jax.ShapeDtypeStruct((n_pad, D), jnp.float32),
        grid=(n_pad // tn,),
        in_specs=[
            pl.BlockSpec((tn, D), lambda i: (i, 0)),
            pl.BlockSpec((tn, S, D), lambda i: (i, 0, 0)),
        ],
        out_specs=pl.BlockSpec((tn, D), lambda i: (i, 0)),
        compiler_params=_cparams(block_bytes),
    )(xp, nbp)
    return out[:N]


def _routing_sum_ln_kernel(x_ref, nb_ref, acc_ref, g_ref, b_ref, o_ref, *, routing_iter):
    u = _route(x_ref[...], nb_ref[...], routing_iter)
    s = acc_ref[...].astype(jnp.float32) + u
    o_ref[...] = _layernorm(s, g_ref[...], b_ref[...]).astype(o_ref.dtype)


def neighbor_routing_sum_ln(x, nb, acc, gamma, beta, routing_iter):
    """Last hop: routing + accumulated hop-sum + LN1, all in one kernel."""
    N, D = x.shape
    S = nb.shape[1]
    tn, n_pad = _row_tile(N)
    xp = _pad_rows(x.astype(jnp.float32), n_pad)
    nbp = _pad_rows(nb.astype(jnp.float32), n_pad)
    accp = _pad_rows(acc.astype(jnp.float32), n_pad)
    block_bytes = tn * D * 4 * (S + 4)
    out = pl.pallas_call(
        functools.partial(_routing_sum_ln_kernel, routing_iter=routing_iter),
        out_shape=jax.ShapeDtypeStruct((n_pad, D), jnp.float32),
        grid=(n_pad // tn,),
        in_specs=[
            pl.BlockSpec((tn, D), lambda i: (i, 0)),
            pl.BlockSpec((tn, S, D), lambda i: (i, 0, 0)),
            pl.BlockSpec((tn, D), lambda i: (i, 0)),
            pl.BlockSpec((1, D), lambda i: (0, 0)),
            pl.BlockSpec((1, D), lambda i: (0, 0)),
        ],
        out_specs=pl.BlockSpec((tn, D), lambda i: (i, 0)),
        compiler_params=_cparams(block_bytes),
    )(xp, nbp, accp, gamma.reshape(1, D), beta.reshape(1, D))
    return out[:N]


# --------------------------------------------------------------------------- #
# Standalone LayerNorm (only used for the hop == 0 edge case)
# --------------------------------------------------------------------------- #
def _ln_kernel(x_ref, g_ref, b_ref, o_ref):
    o_ref[...] = _layernorm(x_ref[...].astype(jnp.float32), g_ref[...], b_ref[...])


def layernorm_pallas(x2d, gamma, beta):
    M, D = x2d.shape
    tm, m_pad = _row_tile(M)
    xp = _pad_rows(x2d.astype(jnp.float32), m_pad)
    out = pl.pallas_call(
        _ln_kernel,
        out_shape=jax.ShapeDtypeStruct((m_pad, D), jnp.float32),
        grid=(m_pad // tm,),
        in_specs=[
            pl.BlockSpec((tm, D), lambda i: (i, 0)),
            pl.BlockSpec((1, D), lambda i: (0, 0)),
            pl.BlockSpec((1, D), lambda i: (0, 0)),
        ],
        out_specs=pl.BlockSpec((tm, D), lambda i: (i, 0)),
        compiler_params=_cparams(tm * D * 4 * 2),
    )(xp, gamma.reshape(1, D), beta.reshape(1, D))
    return out[:M]


# --------------------------------------------------------------------------- #
# trans MLP -> softmax (1/tau folded into w2,b2) -> anchor matmul -> LN2 fused
# --------------------------------------------------------------------------- #
def _trans_pop_ln_kernel(x_ref, w1_ref, b1_ref, w2_ref, b2_ref, anc_ref,
                         g_ref, bln_ref, o_ref):
    x = x_ref[...]
    h = jnp.dot(x, w1_ref[...], preferred_element_type=jnp.float32) + b1_ref[...]
    h = jnp.where(h > 0, h, 0.01 * h)         # LeakyReLU(negative_slope=0.01)
    logits = jnp.dot(h, w2_ref[...], preferred_element_type=jnp.float32) + b2_ref[...]
    p = jax.nn.softmax(logits, axis=-1)       # softmax over K (PyTorch dim=1)
    y = jnp.dot(p, anc_ref[...], preferred_element_type=jnp.float32)
    o_ref[...] = _layernorm(y, g_ref[...], bln_ref[...])


def trans_pop_ln_pallas(item_vectors, w1, b1, w2, b2, anchors_emb, ln2_g, ln2_b, tau):
    N, D = item_vectors.shape
    K = w2.shape[1]
    inv_tau = 1.0 / jnp.asarray(tau, jnp.float32)
    w2s = (w2 * inv_tau).astype(jnp.float32)          # fold 1/tau into the weights
    b2s = (b2 * inv_tau).astype(jnp.float32)
    tn, n_pad = _row_tile(N)
    xp = _pad_rows(item_vectors.astype(jnp.float32), n_pad)
    block_bytes = tn * D * 4 * 3 + tn * K * 4 + D * D * 4 + D * K * 4 + K * D * 4
    out = pl.pallas_call(
        _trans_pop_ln_kernel,
        out_shape=jax.ShapeDtypeStruct((n_pad, D), jnp.float32),
        grid=(n_pad // tn,),
        in_specs=[
            pl.BlockSpec((tn, D), lambda i: (i, 0)),
            pl.BlockSpec((D, D), lambda i: (0, 0)),
            pl.BlockSpec((1, D), lambda i: (0, 0)),
            pl.BlockSpec((D, K), lambda i: (0, 0)),
            pl.BlockSpec((1, K), lambda i: (0, 0)),
            pl.BlockSpec((K, D), lambda i: (0, 0)),
            pl.BlockSpec((1, D), lambda i: (0, 0)),
            pl.BlockSpec((1, D), lambda i: (0, 0)),
        ],
        out_specs=pl.BlockSpec((tn, D), lambda i: (i, 0)),
        compiler_params=_cparams(block_bytes),
    )(xp, w1, b1.reshape(1, D), w2s, b2s.reshape(1, K),
      anchors_emb, ln2_g.reshape(1, D), ln2_b.reshape(1, D))
    return out[:N]


# --------------------------------------------------------------------------- #
# GRU (PyTorch r/z/n gates), both branches stacked on batch, emits only ht
# --------------------------------------------------------------------------- #
def _gru_ht_kernel(x_ref, wi_ref, wh_ref, bi_ref, bh_ref, len_ref, g_ref, bln_ref,
                   ht_ref, xg_ref, *, branch_rows):
    T, tb, D = x_ref.shape

    wi = wi_ref[...]
    bi = bi_ref[...]

    # --- chunked input-gate projection straight into the VMEM scratch ---------
    tc = 1
    for c in range(min(T, 8), 0, -1):
        if T % c == 0:
            tc = c
            break
    n_chunks = T // tc

    def proj(c, carry):
        t0 = pl.multiple_of(c * tc, tc)
        xc = x_ref[pl.ds(t0, tc)]                               # (tc, tb, D) bf16
        xg = jnp.dot(xc.reshape(tc * tb, D), wi,
                     preferred_element_type=jnp.float32) + bi
        xg_ref[pl.ds(t0, tc)] = xg.reshape(tc, tb, 3 * D)
        return carry

    lax.fori_loop(0, n_chunks, proj, 0)

    wh = wh_ref[...]
    bh = bh_ref[...]
    lens = len_ref[...]                                         # (tb, 1) int32

    # Per-row LN gamma/beta: first `branch_rows` rows use LN3, the rest LN4.
    rows = pl.program_id(0) * tb + lax.broadcasted_iota(jnp.int32, (tb, 1), 0)
    is_pop = rows >= branch_rows
    g = g_ref[...]
    b = bln_ref[...]
    g_rows = jnp.where(is_pop, g[1:2, :], g[0:1, :])
    b_rows = jnp.where(is_pop, b[1:2, :], b[0:1, :])

    def step(t, carry):
        h, ht_acc = carry
        xg = xg_ref[t]                                          # (tb, 3D) f32
        hg = jnp.dot(h.astype(jnp.bfloat16), wh,
                     preferred_element_type=jnp.float32) + bh
        # TODO(synk): for production D % 128 == 0 these gate slices are lane-aligned;
        #             at the demo D=32 they imply masked-lane selects (tiny cost here).
        r = jax.nn.sigmoid(xg[:, :D] + hg[:, :D])
        z = jax.nn.sigmoid(xg[:, D:2 * D] + hg[:, D:2 * D])
        n = jnp.tanh(xg[:, 2 * D:] + r * hg[:, 2 * D:])
        hn = (1.0 - z) * n + z * h
        ht_acc = jnp.where(t == lens - 1, hn, ht_acc)           # keep only t == len-1
        return hn, ht_acc

    h0 = jnp.zeros((tb, D), jnp.float32)
    _, ht = lax.fori_loop(0, T, step, (h0, h0), unroll=T <= 16)
    ht_ref[...] = _layernorm(ht, g_rows, b_rows)                # LN3/LN4 on ht only


def gru_ht_pallas(inp_item_tbd, inp_pop_tbd, lengths, gp, ln3_g, ln3_b, ln4_g, ln4_b):
    """Both branches share GRU weights -> stack on batch, emit only ht per row."""
    T, B, D = inp_item_tbd.shape
    x = jnp.concatenate([inp_item_tbd, inp_pop_tbd], axis=1)    # (T, 2B, D) bf16
    B2 = 2 * B
    tb, b2_pad = _gru_batch_tile(B2, T, D)
    if b2_pad != B2:
        x = jnp.concatenate([x, jnp.zeros((T, b2_pad - B2, D), x.dtype)], axis=1)

    lens2 = jnp.concatenate([lengths, lengths]).astype(jnp.int32)
    if b2_pad != B2:
        lens2 = jnp.concatenate([lens2, jnp.ones((b2_pad - B2,), jnp.int32)])
    lens2 = lens2.reshape(b2_pad, 1)

    wi = jnp.concatenate([gp['wir'], gp['wiz'], gp['win']], axis=1).astype(jnp.bfloat16)
    wh = jnp.concatenate([gp['whr'], gp['whz'], gp['whn']], axis=1).astype(jnp.bfloat16)
    bi = jnp.concatenate([gp['bir'], gp['biz'], gp['bin']], axis=1).astype(jnp.float32)
    bh = jnp.concatenate([gp['bhr'], gp['bhz'], gp['bhn']], axis=1).astype(jnp.float32)

    g2 = jnp.stack([ln3_g, ln4_g], axis=0).astype(jnp.float32)   # (2, D)
    b2r = jnp.stack([ln3_b, ln4_b], axis=0).astype(jnp.float32)

    per_tile = (T * tb * D * 2) * 2 + T * tb * 3 * D * 4 + tb * D * 4 * 2 \
        + 2 * D * 3 * D * 2 + 4 * 3 * D * 4

    ht_all = pl.pallas_call(
        functools.partial(_gru_ht_kernel, branch_rows=B),
        out_shape=jax.ShapeDtypeStruct((b2_pad, D), jnp.float32),
        grid=(b2_pad // tb,),
        in_specs=[
            pl.BlockSpec((T, tb, D), lambda b: (0, b, 0)),
            pl.BlockSpec((D, 3 * D), lambda b: (0, 0)),
            pl.BlockSpec((D, 3 * D), lambda b: (0, 0)),
            pl.BlockSpec((1, 3 * D), lambda b: (0, 0)),
            pl.BlockSpec((1, 3 * D), lambda b: (0, 0)),
            pl.BlockSpec((tb, 1), lambda b: (b, 0)),
            pl.BlockSpec((2, D), lambda b: (0, 0)),
            pl.BlockSpec((2, D), lambda b: (0, 0)),
        ],
        out_specs=pl.BlockSpec((tb, D), lambda b: (b, 0)),
        scratch_shapes=[pltpu.VMEM((T, tb, 3 * D), jnp.float32)],
        compiler_params=_cparams(per_tile),
    )(x, wi, wh, bi, bh, lens2, g2, b2r)

    return ht_all[:B], ht_all[B:B2]


# --------------------------------------------------------------------------- #
# Final scores: bf16 item tables, in-kernel last-dim contraction, lane-dense out
# --------------------------------------------------------------------------- #
def _scores_kernel(a_ref, ht_ref, htp_ref, iv_ref, ipv_ref, s_ref, si_ref, sp_ref):
    dn = (((1,), (1,)), ((), ()))                  # contract over hidden (last dims)
    si = lax.dot_general(ht_ref[...], iv_ref[...], dn, preferred_element_type=jnp.float32)
    sp = lax.dot_general(htp_ref[...], ipv_ref[...], dn, preferred_element_type=jnp.float32)
    si_ref[...] = si
    sp_ref[...] = sp
    s_ref[...] = a_ref[0] * si + a_ref[1] * sp


def scores_pallas(ht, ht_pop, item_vecs_bf, item_pop_vecs_bf, a1, a2):
    B, D = ht.shape
    N = item_vecs_bf.shape[0]
    n_pad = ((N + 127) // 128) * 128
    iv = _pad_rows(item_vecs_bf, n_pad)
    ipv = _pad_rows(item_pop_vecs_bf, n_pad)

    tn = n_pad
    if n_pad >= 256:                               # keep >= 2 grid steps when possible
        for cand in (1024, 512, 256, 128):
            if n_pad % cand == 0 and n_pad // cand >= 2:
                tn = cand
                break

    a_sig = jax.nn.sigmoid(jnp.concatenate([a1, a2]).astype(jnp.float32))
    ht_b = ht.astype(jnp.bfloat16)
    htp_b = ht_pop.astype(jnp.bfloat16)

    block_bytes = 2 * tn * D * 2 + 3 * B * tn * 4 + 2 * B * D * 2
    gs = pltpu.PrefetchScalarGridSpec(
        num_scalar_prefetch=1,
        grid=(n_pad // tn,),
        in_specs=[
            pl.BlockSpec((B, D), lambda j, a: (0, 0)),
            pl.BlockSpec((B, D), lambda j, a: (0, 0)),
            pl.BlockSpec((tn, D), lambda j, a: (j, 0)),
            pl.BlockSpec((tn, D), lambda j, a: (j, 0)),
        ],
        out_specs=[pl.BlockSpec((B, tn), lambda j, a: (0, j)) for _ in range(3)],
    )
    s, si, sp = pl.pallas_call(
        _scores_kernel,
        out_shape=tuple(jax.ShapeDtypeStruct((B, n_pad), jnp.float32) for _ in range(3)),
        grid_spec=gs,
        compiler_params=_cparams(block_bytes),
    )(a_sig, ht_b, htp_b, iv, ipv)
    return s[:, :N], si[:, :N], sp[:, :N]


# --------------------------------------------------------------------------- #
# Full NRPOP forward
# --------------------------------------------------------------------------- #
def nrpop_forward(params, inp_sess, lengths, tau, *, hop, routing_iter):
    D = params['emb'].shape[1]

    x = params['emb'][1:]                                 # item_embeddings.weight[1:]
    x_nb_idx = params['adj_items'][1:] - 1                # neighbor ids -> rows of x

    if hop == 0:
        item_vectors = layernorm_pallas(x, params['ln1_g'], params['ln1_b'])
    else:
        prev = x
        acc = x                                           # running sum of hop outputs
        for i in range(hop):
            nb = prev[x_nb_idx]                           # gather (glue): (N-1, S, D)
            if i < hop - 1:
                routed = neighbor_routing_agg(prev, nb, routing_iter)
                acc = acc + routed
                prev = routed
            else:                                         # last hop: fuse sum + LN1
                item_vectors = neighbor_routing_sum_ln(
                    prev, nb, acc, params['ln1_g'], params['ln1_b'], routing_iter)

    anchors_emb = item_vectors[params['anchors'] - 1]     # (K, D)
    item_pop_vec = trans_pop_ln_pallas(item_vectors, params['w1'], params['b1'],
                                       params['w2'], params['b2'], anchors_emb,
                                       params['ln2_g'], params['ln2_b'], tau)

    # bf16 item tables feed both the session gathers and the final score matmuls.
    iv_bf = item_vectors.astype(jnp.bfloat16)
    ipv_bf = item_pop_vec.astype(jnp.bfloat16)
    pad = jnp.zeros((1, D), jnp.bfloat16)
    iv_full = jnp.concatenate([pad, iv_bf], axis=0)
    ipv_full = jnp.concatenate([pad, ipv_bf], axis=0)

    # Time-major gathers (no transposes); dropout == identity at inference.
    sess_t = inp_sess.T                                   # (T, B)
    inp_emb_t = iv_full[sess_t]                           # (T, B, D) bf16
    inp_pop_t = ipv_full[sess_t]

    ht, ht_pop = gru_ht_pallas(inp_emb_t, inp_pop_t, lengths, params['gru'],
                               params['ln3_g'], params['ln3_b'],
                               params['ln4_g'], params['ln4_b'])

    return scores_pallas(ht, ht_pop, iv_bf, ipv_bf, params['a1'], params['a2'])


# --------------------------------------------------------------------------- #
# Deterministic parameter / input construction
# --------------------------------------------------------------------------- #
def init_params(key, n_items, hidden, sample_num, anchor_num):
    ks = jax.random.split(key, 20)
    D, K = hidden, anchor_num

    emb = jax.random.normal(ks[0], (n_items, D), jnp.float32) * 0.1
    emb = emb.at[0].set(0.0)                              # padding_idx=0

    adj_items = jax.random.randint(ks[1], (n_items, sample_num), 1, n_items, jnp.int32)
    anchors = jax.random.permutation(ks[2], n_items - 1)[:K].astype(jnp.int32) + 1

    gru = {}
    names = ['wir', 'wiz', 'win', 'whr', 'whz', 'whn']
    for i, n in enumerate(names):
        gru[n] = jax.random.normal(ks[3 + i], (D, D), jnp.float32) * 0.1
    bnames = ['bir', 'biz', 'bin', 'bhr', 'bhz', 'bhn']
    for i, n in enumerate(bnames):
        gru[n] = jax.random.normal(ks[9 + i], (1, D), jnp.float32) * 0.05

    return dict(
        emb=emb, adj_items=adj_items, anchors=anchors, gru=gru,
        w1=jax.random.normal(ks[15], (D, D), jnp.float32) * 0.1,
        b1=jnp.zeros((D,), jnp.float32),
        w2=jax.random.normal(ks[16], (D, K), jnp.float32) * 0.1,
        b2=jnp.zeros((K,), jnp.float32),
        a1=jax.random.normal(ks[17], (1,), jnp.float32),
        a2=jax.random.normal(ks[18], (1,), jnp.float32),
        ln1_g=jnp.ones((D,), jnp.float32), ln1_b=jnp.zeros((D,), jnp.float32),
        ln2_g=jnp.ones((D,), jnp.float32), ln2_b=jnp.zeros((D,), jnp.float32),
        ln3_g=jnp.ones((D,), jnp.float32), ln3_b=jnp.zeros((D,), jnp.float32),
        ln4_g=jnp.ones((D,), jnp.float32), ln4_b=jnp.zeros((D,), jnp.float32),
    )


if __name__ == "__main__":
    n_items = 65          # 64 real items + padding item 0
    hidden = 32
    sample_num = 4
    anchor_num = 8
    hop = 2
    routing_iter = 3
    batch, seq = 2, 8
    tau = 0.5

    key = jax.random.PRNGKey(0)
    kp, ki = jax.random.split(key)
    params = init_params(kp, n_items, hidden, sample_num, anchor_num)

    inp_sess = jax.random.randint(ki, (batch, seq), 0, n_items, jnp.int32)
    lengths = jnp.array([seq, seq - 3], jnp.int32)

    scores, scores_item, scores_pop = nrpop_forward(
        params, inp_sess, lengths, tau, hop=hop, routing_iter=routing_iter)

    jax.block_until_ready((scores, scores_item, scores_pop))
    assert scores.shape == (batch, n_items - 1)
    assert scores_item.shape == (batch, n_items - 1)
    assert scores_pop.shape == (batch, n_items - 1)
    print("KERNEL_OK")
</pallas_src>

<mosaic_0001>
module attributes {stable_mosaic.version = 11 : i64} {
  func.func @_routing_kernel(%arg0: i32, %arg1: memref<64x32xf32, #tpu.memory_space<vmem>>, %arg2: memref<64x4x32xf32, #tpu.memory_space<vmem>>, %arg3: memref<64x32xf32, #tpu.memory_space<vmem>>) attributes {dimension_semantics = [#tpu.dimension_semantics<parallel>], iteration_bounds = array<i64: 1>, scalar_prefetch = 0 : i64, scratch_operands = 0 : i64, tpu.core_type = #tpu.core_type<tc>, window_params = [{transform_indices = @transform_0, window_bounds = array<i64: 64, 32>}, {transform_indices = @transform_1, window_bounds = array<i64: 64, 4, 32>}, {transform_indices = @transform_2, window_bounds = array<i64: 64, 32>}]} {
    %c0 = arith.constant 0 : index
    %c0_0 = arith.constant 0 : index
    %0 = vector.load %arg1[%c0, %c0_0] : memref<64x32xf32, #tpu.memory_space<vmem>>, vector<64x32xf32>
    %c0_1 = arith.constant 0 : index
    %c0_2 = arith.constant 0 : index
    %c0_3 = arith.constant 0 : index
    %1 = vector.load %arg2[%c0_1, %c0_2, %c0_3] : memref<64x4x32xf32, #tpu.memory_space<vmem>>, vector<64x4x32xf32>
    %2 = arith.mulf %0, %0 : vector<64x32xf32>
    %cst = arith.constant dense<0.000000e+00> : vector<64xf32>
    %3 = vector.multi_reduction <add>, %2, %cst [1] : vector<64x32xf32> to vector<64xf32>
    %4 = vector.shape_cast %3 : vector<64xf32> to vector<64x1xf32>
    %cst_4 = arith.constant 1.000000e-24 : f32
    %5 = vector.broadcast %cst_4 : f32 to vector<64x1xf32>
    %6 = arith.maximumf %4, %5 : vector<64x1xf32>
    %7 = math.rsqrt %6 : vector<64x1xf32>
    %8 = vector.broadcast %7 : vector<64x1xf32> to vector<64x32xf32>
    %9 = arith.mulf %0, %8 : vector<64x32xf32>
    %10 = arith.mulf %1, %1 : vector<64x4x32xf32>
    %cst_5 = arith.constant dense<0.000000e+00> : vector<64x4xf32>
    %11 = vector.multi_reduction <add>, %10, %cst_5 [2] : vector<64x4x32xf32> to vector<64x4xf32>
    %12 = vector.shape_cast %11 : vector<64x4xf32> to vector<64x4x1xf32>
    %cst_6 = arith.constant 1.000000e-24 : f32
    %13 = vector.broadcast %cst_6 : f32 to vector<64x4x1xf32>
    %14 = arith.maximumf %12, %13 : vector<64x4x1xf32>
    %15 = math.rsqrt %14 : vector<64x4x1xf32>
    %16 = vector.broadcast %15 : vector<64x4x1xf32> to vector<64x4x32xf32>
    %17 = arith.mulf %1, %16 : vector<64x4x32xf32>
    %18 = vector.shape_cast %9 : vector<64x32xf32> to vector<64x1x32xf32>
    %19 = vector.broadcast %18 : vector<64x1x32xf32> to vector<64x4x32xf32>
    %20 = arith.mulf %19, %17 : vector<64x4x32xf32>
    %cst_7 = arith.constant dense<0.000000e+00> : vector<64x4xf32>
    %21 = vector.multi_reduction <add>, %20, %cst_7 [2] : vector<64x4x32xf32> to vector<64x4xf32>
    %cst_8 = arith.constant dense<0xFF800000> : vector<64xf32>
    %22 = vector.multi_reduction <maximumf>, %21, %cst_8 [1] : vector<64x4xf32> to vector<64xf32>
    %cst_9 = arith.constant 0xFF800000 : f32
    %23 = vector.broadcast %cst_9 : f32 to vector<64xf32>
    %24 = arith.maximumf %23, %22 : vector<64xf32>
    %25 = vector.shape_cast %24 : vector<64xf32> to vector<64x1xf32>
    %26 = vector.broadcast %25 : vector<64x1xf32> to vector<64x4xf32>
    %27 = arith.subf %21, %26 : vector<64x4xf32>
    %28 = math.exp %27 : vector<64x4xf32>
    %cst_10 = arith.constant dense<0.000000e+00> : vector<64xf32>
    %29 = vector.multi_reduction <add>, %28, %cst_10 [1] : vector<64x4xf32> to vector<64xf32>
    %30 = vector.shape_cast %29 : vector<64xf32> to vector<64x1xf32>
    %31 = vector.broadcast %30 : vector<64x1xf32> to vector<64x4xf32>
    %32 = arith.divf %28, %31 : vector<64x4xf32>
    %33 = vector.shape_cast %32 : vector<64x4xf32> to vector<64x4x1xf32>
    %34 = vector.broadcast %33 : vector<64x4x1xf32> to vector<64x4x32xf32>
    %35 = arith.mulf %34, %17 : vector<64x4x32xf32>
    %cst_11 = arith.constant dense<0.000000e+00> : vector<64x32xf32>
    %36 = vector.multi_reduction <add>, %35, %cst_11 [1] : vector<64x4x32xf32> to vector<64x32xf32>
    %37 = arith.addf %9, %36 : vector<64x32xf32>
    %38 = arith.mulf %37, %37 : vector<64x32xf32>
    %cst_12 = arith.constant dense<0.000000e+00> : vector<64xf32>
    %39 = vector.multi_reduction <add>, %38, %cst_12 [1] : vector<64x32xf32> to vector<64xf32>
    %40 = vector.shape_cast %39 : vector<64xf32> to vector<64x1xf32>
    %cst_13 = arith.constant 1.000000e-24 : f32
    %41 = vector.broadcast %cst_13 : f32 to vector<64x1xf32>
    %42 = arith.maximumf %40, %41 : vector<64x1xf32>
    %43 = math.rsqrt %42 : vector<64x1xf32>
    %44 = vector.broadcast %43 : vector<64x1xf32> to vector<64x32xf32>
    %45 = arith.mulf %37, %44 : vector<64x32xf32>
    %46 = vector.shape_cast %45 : vector<64x32xf32> to vector<64x1x32xf32>
    %47 = vector.broadcast %46 : vector<64x1x32xf32> to vector<64x4x32xf32>
    %48 = arith.mulf %47, %17 : vector<64x4x32xf32>
    %cst_14 = arith.constant dense<0.000000e+00> : vector<64x4xf32>
    %49 = vector.multi_reduction <add>, %48, %cst_14 [2] : vector<64x4x32xf32> to vector<64x4xf32>
    %cst_15 = arith.constant dense<0xFF800000> : vector<64xf32>
    %50 = vector.multi_reduction <maximumf>, %49, %cst_15 [1] : vector<64x4xf32> to vector<64xf32>
    %cst_16 = arith.constant 0xFF800000 : f32
    %51 = vector.broadcast %cst_16 : f32 to vector<64xf32>
    %52 = arith.maximumf %51, %50 : vector<64xf32>
    %53 = vector.shape_cast %52 : vector<64xf32> to vector<64x1xf32>
    %54 = vector.broadcast %53 : vector<64x1xf32> to vector<64x4xf32>
    %55 = arith.subf %49, %54 : vector<64x4xf32>
    %56 = math.exp %55 : vector<64x4xf32>
    %cst_17 = arith.constant dense<0.000000e+00> : vector<64xf32>
    %57 = vector.multi_reduction <add>, %56, %cst_17 [1] : vector<64x4xf32> to vector<64xf32>
    %58 = vector.shape_cast %57 : vector<64xf32> to vector<64x1xf32>
    %59 = vector.broadcast %58 : vector<64x1xf32> to vector<64x4xf32>
    %60 = arith.divf %56, %59 : vector<64x4xf32>
    %61 = vector.shape_cast %60 : vector<64x4xf32> to vector<64x4x1xf32>
    %62 = vector.broadcast %61 : vector<64x4x1xf32> to vector<64x4x32xf32>
    %63 = arith.mulf %62, %17 : vector<64x4x32xf32>
    %cst_18 = arith.constant dense<0.000000e+00> : vector<64x32xf32>
    %64 = vector.multi_reduction <add>, %63, %cst_18 [1] : vector<64x4x32xf32> to vector<64x32xf32>
    %65 = arith.addf %9, %64 : vector<64x32xf32>
    %66 = arith.mulf %65, %65 : vector<64x32xf32>
    %cst_19 = arith.constant dense<0.000000e+00> : vector<64xf32>
    %67 = vector.multi_reduction <add>, %66, %cst_19 [1] : vector<64x32xf32> to vector<64xf32>
    %68 = vector.shape_cast %67 : vector<64xf32> to vector<64x1xf32>
    %cst_20 = arith.constant 1.000000e-24 : f32
    %69 = vector.broadcast %cst_20 : f32 to vector<64x1xf32>
    %70 = arith.maximumf %68, %69 : vector<64x1xf32>
    %71 = math.rsqrt %70 : vector<64x1xf32>
    %72 = vector.broadcast %71 : vector<64x1xf32> to vector<64x32xf32>
    %73 = arith.mulf %65, %72 : vector<64x32xf32>
    %74 = vector.shape_cast %73 : vector<64x32xf32> to vector<64x1x32xf32>
    %75 = vector.broadcast %74 : vector<64x1x32xf32> to vector<64x4x32xf32>
    %76 = arith.mulf %75, %17 : vector<64x4x32xf32>
    %cst_21 = arith.constant dense<0.000000e+00> : vector<64x4xf32>
    %77 = vector.multi_reduction <add>, %76, %cst_21 [2] : vector<64x4x32xf32> to vector<64x4xf32>
    %cst_22 = arith.constant dense<0xFF800000> : vector<64xf32>
    %78 = vector.multi_reduction <maximumf>, %77, %cst_22 [1] : vector<64x4xf32> to vector<64xf32>
    %cst_23 = arith.constant 0xFF800000 : f32
    %79 = vector.broadcast %cst_23 : f32 to vector<64xf32>
    %80 = arith.maximumf %79, %78 : vector<64xf32>
    %81 = vector.shape_cast %80 : vector<64xf32> to vector<64x1xf32>
    %82 = vector.broadcast %81 : vector<64x1xf32> to vector<64x4xf32>
    %83 = arith.subf %77, %82 : vector<64x4xf32>
    %84 = math.exp %83 : vector<64x4xf32>
    %cst_24 = arith.constant dense<0.000000e+00> : vector<64xf32>
    %85 = vector.multi_reduction <add>, %84, %cst_24 [1] : vector<64x4xf32> to vector<64xf32>
    %86 = vector.shape_cast %85 : vector<64xf32> to vector<64x1xf32>
    %87 = vector.broadcast %86 : vector<64x1xf32> to vector<64x4xf32>
    %88 = arith.divf %84, %87 : vector<64x4xf32>
    %89 = vector.shape_cast %88 : vector<64x4xf32> to vector<64x4x1xf32>
    %90 = vector.broadcast %89 : vector<64x4x1xf32> to vector<64x4x32xf32>
    %91 = arith.mulf %90, %17 : vector<64x4x32xf32>
    %cst_25 = arith.constant dense<0.000000e+00> : vector<64x32xf32>
    %92 = vector.multi_reduction <add>, %91, %cst_25 [1] : vector<64x4x32xf32> to vector<64x32xf32>
    %93 = arith.addf %9, %92 : vector<64x32xf32>
    %94 = arith.mulf %93, %93 : vector<64x32xf32>
    %cst_26 = arith.constant dense<0.000000e+00> : vector<64xf32>
    %95 = vector.multi_reduction <add>, %94, %cst_26 [1] : vector<64x32xf32> to vector<64xf32>
    %96 = vector.shape_cast %95 : vector<64xf32> to vector<64x1xf32>
    %cst_27 = arith.constant 1.000000e-24 : f32
    %97 = vector.broadcast %cst_27 : f32 to vector<64x1xf32>
    %98 = arith.maximumf %96, %97 : vector<64x1xf32>
    %99 = math.rsqrt %98 : vector<64x1xf32>
    %100 = vector.broadcast %99 : vector<64x1xf32> to vector<64x32xf32>
    %101 = arith.mulf %93, %100 : vector<64x32xf32>
    %c0_28 = arith.constant 0 : index
    %c0_29 = arith.constant 0 : index
    %102 = vector.load %arg3[%c0_28, %c0_29] : memref<64x32xf32, #tpu.memory_space<vmem>>, vector<64x32xf32>
    tpu.vector_store %arg3[%c0_28, %c0_29], %101 {strides = array<i32>} : memref<64x32xf32, #tpu.memory_space<vmem>>, vector<64x32xf32>,
    return
  }
  func.func @transform_0(%arg0: i32) -> (i32, i32) {
    %c0_i32 = arith.constant 0 : i32
    %c0_i32_0 = arith.constant 0 : i32
    return %arg0, %c0_i32 : i32, i32
  }
  func.func @transform_1(%arg0: i32) -> (i32, i32, i32) {
    %c0_i32 = arith.constant 0 : i32
    %c0_i32_0 = arith.constant 0 : i32
    %c0_i32_1 = arith.constant 0 : i32
    return %arg0, %c0_i32, %c0_i32_0 : i32, i32, i32
  }
  func.func @transform_2(%arg0: i32) -> (i32, i32) {
    %c0_i32 = arith.constant 0 : i32
    %c0_i32_0 = arith.constant 0 : i32
    return %arg0, %c0_i32 : i32, i32
  }
}

</mosaic_0001>

<bundles_post_ra>
// kernel: tpu_custom_call.1
= control target key start
LH: loop header
LB: loop body
LE: loop exit
PB: predicated region body
PF: predicated region fallthrough
CT: control target
= control target key end

     0   :  { %vm91_vm0 = vcmask 261120   ;;  %vm204_vm1 = vcmask 257024   ;;  %vm1887_vm2 = vcmask 1041409   ;;  %vm1889_vm3 = vcmask 1042434   ;;  %s19335_s0 = inlined_call_operand.vmem [shape: f32[64,32], index: 0, kind: input, shape index: {}]   ;;  %s19336_s1 = inlined_call_operand.vmem [shape: f32[64,4,32], index: 1, kind: input, shape index: {}]   ;;  %s19337_s2 = inlined_call_operand.vmem [shape: f32[64,32], index: 2, kind: output, shape index: {}]  }
   0x1   :  { %v13587_v0 = vld [vmem:[%s19335_s0 + $0x10] sm:$0xff]  ;;  %v13592_v1 = vld [vmem:[%s19335_s0] sm:$0xff]  ;;  %v13597_v2 = vld [vmem:[%s19335_s0 + $0x18] sm:$0xff]  ;;  %vm1891_vm4 = vcmask 1043459   ;;  %vm1893_vm5 = vcmask 1044484   ;;  %vm1895_vm6 = vcmask 1045509  }
   0x2   :  { %v85_v3 = vmul.f32 %v13587_v0, %v13587_v0  ;;  %v83_v4 = vmul.f32 %v13592_v1, %v13592_v1  ;;  %v86_v5 = vmul.f32 %v13597_v2, %v13597_v2  ;;  %v13608_v6 = vld [vmem:[%s19335_s0 + $0x8] sm:$0xff]  ;;  %v15_v9 = vld [vmem:[%s19335_s0 + $0x20] sm:$0xff]  ;;  %v18_v16 = vld [vmem:[%s19335_s0 + $0x38] sm:$0xff]  ;;  %vm1897_vm7 = vcmask 1046534  }
   0x3   :  { %v84_v7 = vmul.f32 %v13608_v6, %v13608_v6  ;;  %v16_v8 = vld [vmem:[%s19335_s0 + $0x28] sm:$0xff]  ;;  %v87_v15 = vmul.f32 %v15_v9, %v15_v9  ;;  %v17_v17 = vld [vmem:[%s19335_s0 + $0x30] sm:$0xff]  ;;  %v90_v20 = vmul.f32 %v18_v16, %v18_v16  ;;  %v13633_v22 = vld [vmem:[%s19336_s1 + $0x4] sm:$0xf]  ;;  %vm1899_vm8 = vcmask 1047559  }
   0x4   :  { %v98_v10 = vsel %vm91_vm0, %v85_v3, 0.0  ;;  %v92_v11 = vsel %vm91_vm0, %v83_v4, 0.0  ;;  %v101_v12 = vsel %vm91_vm0, %v86_v5, 0.0  ;;  %v88_v14 = vmul.f32 %v16_v8, %v16_v8  ;;  %v13638_v23 = vld [vmem:[%s19336_s1] sm:$0xf] }
   0x5   :  { %99 = vadd.xlane.f32.xlu1 %v98_v10  ;;  %93 = vadd.xlane.f32.xlu0 %v92_v11  ;;  %v95_v13 = vsel %vm91_vm0, %v84_v7, 0.0  ;;  %v104_v19 = vsel %vm91_vm0, %v87_v15, 0.0  ;;  %v89_v21 = vmul.f32 %v17_v17, %v17_v17  ;;  %v113_v24 = vsel %vm91_vm0, %v90_v20, 0.0  ;;  %v13649_v28 = vld [vmem:[%s19336_s1 + $0xc] sm:$0xf] }
   0x6   :  { %v107_v18 = vsel %vm91_vm0, %v88_v14, 0.0  ;;  %v141_v26 = vmul.f32 %v13633_v22, %v13633_v22  ;;  %v140_v27 = vmul.f32 %v13638_v23, %v13638_v23  ;;  %v13654_v29 = vld [vmem:[%s19336_s1 + $0x8] sm:$0xf]  ;;  %v143_v32 = vmul.f32 %v13649_v28, %v13649_v28  ;;  %v13665_v34 = vld [vmem:[%s19336_s1 + $0x14] sm:$0xf] }
   0x7   :  { %v110_v25 = vsel %vm91_vm0, %v89_v21, 0.0  ;;  %v142_v33 = vmul.f32 %v13654_v29, %v13654_v29  ;;  %v13670_v35 = vld [vmem:[%s19336_s1 + $0x10] sm:$0xf]  ;;  %v145_v38 = vmul.f32 %v13665_v34, %v13665_v34  ;;  %v13681_v40 = vld [vmem:[%s19336_s1 + $0x1c] sm:$0xf]  ;;  %vm1958_vm9 = vcmask 31744  }
   0x8   :  { %v208_v30 = vsel %vm204_vm1, %v141_v26, 0.0  ;;  %v205_v31 = vsel %vm204_vm1, %v140_v27, 0.0  ;;  %v214_v36 = vsel %vm204_vm1, %v143_v32, 0.0  ;;  %v144_v39 = vmul.f32 %v13670_v35, %v13670_v35  ;;  %v13686_v41 = vld [vmem:[%s19336_s1 + $0x18] sm:$0xf] }
   0x9   :  { %102 = vadd.xlane.f32.xlu1 %v101_v12  ;;  %96 = vadd.xlane.f32.xlu0 %v95_v13  ;;  %v211_v37 = vsel %vm204_vm1, %v142_v33, 0.0  ;;  %v220_v42 = vsel %vm204_vm1, %v145_v38, 0.0  ;;  %v147_v44 = vmul.f32 %v13681_v40, %v13681_v40  ;;  %v146_v45 = vmul.f32 %v13686_v41, %v13686_v41  ;;  %v13697_v46 = vld [vmem:[%s19336_s1 + $0x24] sm:$0xf]  ;;  %v13702_v47 = vld [vmem:[%s19336_s1 + $0x20] sm:$0xf] }
   0xa   :  { %v217_v43 = vsel %vm204_vm1, %v144_v39, 0.0  ;;  %v149_v50 = vmul.f32 %v13697_v46, %v13697_v46  ;;  %v148_v51 = vmul.f32 %v13702_v47, %v13702_v47  ;;  %v13713_v52 = vld [vmem:[%s19336_s1 + $0x2c] sm:$0xf]  ;;  %v13718_v53 = vld [vmem:[%s19336_s1 + $0x28] sm:$0xf] }
   0xb   :  { %v226_v48 = vsel %vm204_vm1, %v147_v44, 0.0  ;;  %v223_v49 = vsel %vm204_vm1, %v146_v45, 0.0  ;;  %v151_v56 = vmul.f32 %v13713_v52, %v13713_v52  ;;  %v150_v57 = vmul.f32 %v13718_v53, %v13718_v53  ;;  %v13729_v58 = vld [vmem:[%s19336_s1 + $0x34] sm:$0xf]  ;;  %v13734_v59 = vld [vmem:[%s19336_s1 + $0x30] sm:$0xf] }
   0xc   :  { %v232_v54 = vsel %vm204_vm1, %v149_v50, 0.0  ;;  %v229_v55 = vsel %vm204_vm1, %v148_v51, 0.0  ;;  %v153_v62 = vmul.f32 %v13729_v58, %v13729_v58  ;;  %v152_v63 = vmul.f32 %v13734_v59, %v13734_v59  ;;  %v13745_v3 = vld [vmem:[%s19336_s1 + $0x3c] sm:$0xf]  ;;  %v13750_v4 = vld [vmem:[%s19336_s1 + $0x38] sm:$0xf] }
   0xd   :  { %108 = vadd.xlane.f32.xlu1 %v107_v18  ;;  %105 = vadd.xlane.f32.xlu0 %v104_v19  ;;  %v238_v60 = vsel %vm204_vm1, %v151_v56, 0.0  ;;  %v235_v61 = vsel %vm204_vm1, %v150_v57, 0.0  ;;  %v155_v8 = vmul.f32 %v13745_v3, %v13745_v3  ;;  %v154_v9 = vmul.f32 %v13750_v4, %v13750_v4  ;;  %v13761_v10 = vld [vmem:[%s19336_s1 + $0x44] sm:$0xf]  ;;  %v13766_v11 = vld [vmem:[%s19336_s1 + $0x40] sm:$0xf] }
   0xe   :  { %v244_v5 = vsel %vm204_vm1, %v153_v62, 0.0  ;;  %v241_v7 = vsel %vm204_vm1, %v152_v63, 0.0  ;;  %v157_v14 = vmul.f32 %v13761_v10, %v13761_v10  ;;  %v156_v15 = vmul.f32 %v13766_v11, %v13766_v11  ;;  %v13777_v16 = vld [vmem:[%s19336_s1 + $0x4c] sm:$0xf]  ;;  %v13782_v17 = vld [vmem:[%s19336_s1 + $0x48] sm:$0xf] }
   0xf   :  { %v250_v12 = vsel %vm204_vm1, %v155_v8, 0.0  ;;  %v247_v13 = vsel %vm204_vm1, %v154_v9, 0.0  ;;  %v159_v20 = vmul.f32 %v13777_v16, %v13777_v16  ;;  %v158_v21 = vmul.f32 %v13782_v17, %v13782_v17  ;;  %v13809_v32 = vld [vmem:[%s19336_s1 + $0x5c] sm:$0xf]  ;;  %v13814_v33 = vld [vmem:[%s19336_s1 + $0x58] sm:$0xf] }
  0x10   :  { %v256_v18 = vsel %vm204_vm1, %v157_v14, 0.0  ;;  %v253_v19 = vsel %vm204_vm1, %v156_v15, 0.0  ;;  %v163_v38 = vmul.f32 %v13809_v32, %v13809_v32  ;;  %v162_v39 = vmul.f32 %v13814_v33, %v13814_v33  ;;  %v13841_v50 = vld [vmem:[%s19336_s1 + $0x6c] sm:$0xf]  ;;  %v13846_v51 = vld [vmem:[%s19336_s1 + $0x68] sm:$0xf] }
  0x11   :  { %114 = vadd.xlane.f32.xlu1 %v113_v24  ;;  %111 = vadd.xlane.f32.xlu0 %v110_v25  ;;  %v13793_v24 = vld [vmem:[%s19336_s1 + $0x54] sm:$0xf]  ;;  %v13798_v25 = vld [vmem:[%s19336_s1 + $0x50] sm:$0xf]  ;;  %v262_v26 = vsel %vm204_vm1, %v159_v20, 0.0  ;;  %v259_v27 = vsel %vm204_vm1, %v158_v21, 0.0  ;;  %v167_v56 = vmul.f32 %v13841_v50, %v13841_v50  ;;  %v166_v57 = vmul.f32 %v13846_v51, %v13846_v51 }
  0x12   :  { %v274_v44 = vsel %vm204_vm1, %v163_v38, 0.0  ;;  %v271_v45 = vsel %vm204_vm1, %v162_v39, 0.0  ;;  %v50_v8 = vld [vmem:[%s19336_s1 + $0x7c] sm:$0xf]  ;;  %v49_v9 = vld [vmem:[%s19336_s1 + $0x78] sm:$0xf] }
  0x13   :  { %v286_v62 = vsel %vm204_vm1, %v167_v56, 0.0  ;;  %v283_v63 = vsel %vm204_vm1, %v166_v57, 0.0  ;;  %v171_v14 = vmul.f32 %v50_v8, %v50_v8  ;;  %v170_v15 = vmul.f32 %v49_v9, %v49_v9  ;;  %v58_v56 = vld [vmem:[%s19336_s1 + $0x9c] sm:$0xf]  ;;  %v57_v57 = vld [vmem:[%s19336_s1 + $0x98] sm:$0xf] }
  0x15   :  { %209 = vadd.xlane.f32.xlu1 %v208_v30  ;;  %206 = vadd.xlane.f32.xlu0 %v205_v31  ;;  %v161_v30 = vmul.f32 %v13793_v24, %v13793_v24  ;;  %v160_v31 = vmul.f32 %v13798_v25, %v13798_v25  ;;  %v298_v20 = vsel %vm204_vm1, %v171_v14, 0.0  ;;  %v295_v21 = vsel %vm204_vm1, %v170_v15, 0.0  ;;  %v62_v14 = vld [vmem:[%s19336_s1 + $0xac] sm:$0xf]  ;;  %v61_v15 = vld [vmem:[%s19336_s1 + $0xa8] sm:$0xf] }
  0x19   :  { %215 = vadd.xlane.f32.xlu1 %v214_v36  ;;  %212 = vadd.xlane.f32.xlu0 %v211_v37  ;;  %v268_v36 = vsel %vm204_vm1, %v161_v30, 0.0  ;;  %v265_v37 = vsel %vm204_vm1, %v160_v31, 0.0  ;;  %v54_v30 = vld [vmem:[%s19336_s1 + $0x8c] sm:$0xf]  ;;  %v53_v31 = vld [vmem:[%s19336_s1 + $0x88] sm:$0xf] }
  0x1a   :  { %v175_v38 = vmul.f32 %v54_v30, %v54_v30  ;;  %v174_v39 = vmul.f32 %v53_v31, %v53_v31 }
  0x1d   :  { %221 = vadd.xlane.f32.xlu1 %v220_v42  ;;  %218 = vadd.xlane.f32.xlu0 %v217_v43  ;;  %v13825_v42 = vld [vmem:[%s19336_s1 + $0x64] sm:$0xf]  ;;  %v13830_v43 = vld [vmem:[%s19336_s1 + $0x60] sm:$0xf] }
  0x21   :  { %227 = vadd.xlane.f32.xlu1 %v226_v48  ;;  %224 = vadd.xlane.f32.xlu0 %v223_v49  ;;  %v165_v48 = vmul.f32 %v13825_v42, %v13825_v42  ;;  %v164_v49 = vmul.f32 %v13830_v43, %v13830_v43 }
  0x25   :  { %233 = vadd.xlane.f32.xlu1 %v232_v54  ;;  %230 = vadd.xlane.f32.xlu0 %v229_v55  ;;  %v280_v54 = vsel %vm204_vm1, %v165_v48, 0.0  ;;  %v277_v55 = vsel %vm204_vm1, %v164_v49, 0.0  ;;  %v310_v48 = vsel %vm204_vm1, %v175_v38, 0.0  ;;  %v307_v49 = vsel %vm204_vm1, %v174_v39, 0.0  ;;  %v66_v38 = vld [vmem:[%s19336_s1 + $0xbc] sm:$0xf] }
  0x26   :  { %v65_v39 = vld [vmem:[%s19336_s1 + $0xb8] sm:$0xf] }
  0x29   :  { %239 = vadd.xlane.f32.xlu1 %v238_v60  ;;  %236 = vadd.xlane.f32.xlu0 %v235_v61  ;;  %v48_v60 = vld [vmem:[%s19336_s1 + $0x74] sm:$0xf]  ;;  %v47_v61 = vld [vmem:[%s19336_s1 + $0x70] sm:$0xf] }
  0x2d   :  { %245 = vadd.xlane.f32.xlu1 %v244_v5  ;;  %242 = vadd.xlane.f32.xlu0 %v241_v7  ;;  %v169_v5 = vmul.f32 %v48_v60, %v48_v60  ;;  %v168_v7 = vmul.f32 %v47_v61, %v47_v61 }
  0x31   :  { %251 = vadd.xlane.f32.xlu1 %v250_v12  ;;  %248 = vadd.xlane.f32.xlu0 %v247_v13  ;;  %v292_v12 = vsel %vm204_vm1, %v169_v5, 0.0  ;;  %v289_v13 = vsel %vm204_vm1, %v168_v7, 0.0  ;;  %v60_v5 = vld [vmem:[%s19336_s1 + $0xa4] sm:$0xf]  ;;  %v59_v7 = vld [vmem:[%s19336_s1 + $0xa0] sm:$0xf] }
  0x35   :  { %257 = vadd.xlane.f32.xlu1 %v256_v18  ;;  %254 = vadd.xlane.f32.xlu0 %v253_v19  ;;  %v52_v18 = vld [vmem:[%s19336_s1 + $0x84] sm:$0xf]  ;;  %v51_v19 = vld [vmem:[%s19336_s1 + $0x80] sm:$0xf] }
  0x39   :  { %263 = vadd.xlane.f32.xlu1 %v262_v26  ;;  %260 = vadd.xlane.f32.xlu0 %v259_v27  ;;  %v173_v26 = vmul.f32 %v52_v18, %v52_v18  ;;  %v172_v27 = vmul.f32 %v51_v19, %v51_v19 }
  0x3d   :  { %269 = vadd.xlane.f32.xlu1 %v268_v36  ;;  %266 = vadd.xlane.f32.xlu0 %v265_v37  ;;  %v304_v36 = vsel %vm204_vm1, %v173_v26, 0.0  ;;  %v301_v37 = vsel %vm204_vm1, %v172_v27, 0.0  ;;  %v64_v26 = vld [vmem:[%s19336_s1 + $0xb4] sm:$0xf]  ;;  %v63_v27 = vld [vmem:[%s19336_s1 + $0xb0] sm:$0xf] }
  0x41   :  { %275 = vadd.xlane.f32.xlu1 %v274_v44  ;;  %272 = vadd.xlane.f32.xlu0 %v271_v45  ;;  %v56_v44 = vld [vmem:[%s19336_s1 + $0x94] sm:$0xf]  ;;  %v55_v45 = vld [vmem:[%s19336_s1 + $0x90] sm:$0xf] }
  0x45   :  { %281 = vadd.xlane.f32.xlu1 %v280_v54  ;;  %278 = vadd.xlane.f32.xlu0 %v277_v55  ;;  %v177_v54 = vmul.f32 %v56_v44, %v56_v44  ;;  %v176_v55 = vmul.f32 %v55_v45, %v55_v45 }
  0x47   :  { %v316_v60 = vsel %vm204_vm1, %v177_v54, 0.0  ;;  %v313_v61 = vsel %vm204_vm1, %v176_v55, 0.0  ;;  %v68_v54 = vld [vmem:[%s19336_s1 + $0xc4] sm:$0xf]  ;;  %v67_v55 = vld [vmem:[%s19336_s1 + $0xc0] sm:$0xf] }
  0x49   :  { %287 = vadd.xlane.f32.xlu1 %v286_v62  ;;  %284 = vadd.xlane.f32.xlu0 %v283_v63  ;;  %v179_v62 = vmul.f32 %v58_v56, %v58_v56  ;;  %v178_v63 = vmul.f32 %v57_v57, %v57_v57 }
  0x4b   :  { %v322_v8 = vsel %vm204_vm1, %v179_v62, 0.0  ;;  %v319_v9 = vsel %vm204_vm1, %v178_v63, 0.0  ;;  %v70_v62 = vld [vmem:[%s19336_s1 + $0xcc] sm:$0xf]  ;;  %v69_v63 = vld [vmem:[%s19336_s1 + $0xc8] sm:$0xf] }
  0x4d   :  { %293 = vadd.xlane.f32.xlu1 %v292_v12  ;;  %290 = vadd.xlane.f32.xlu0 %v289_v13  ;;  %v181_v12 = vmul.f32 %v60_v5, %v60_v5  ;;  %v180_v13 = vmul.f32 %v59_v7, %v59_v7 }
  0x4f   :  { %v328_v18 = vsel %vm204_vm1, %v181_v12, 0.0  ;;  %v325_v19 = vsel %vm204_vm1, %v180_v13, 0.0  ;;  %v72_v12 = vld [vmem:[%s19336_s1 + $0xd4] sm:$0xf]  ;;  %v71_v13 = vld [vmem:[%s19336_s1 + $0xd0] sm:$0xf] }
  0x51   :  { %299 = vadd.xlane.f32.xlu1 %v298_v20  ;;  %296 = vadd.xlane.f32.xlu0 %v295_v21  ;;  %v183_v20 = vmul.f32 %v62_v14, %v62_v14  ;;  %v182_v21 = vmul.f32 %v61_v15, %v61_v15 }
  0x53   :  { %v334_v30 = vsel %vm204_vm1, %v183_v20, 0.0  ;;  %v331_v31 = vsel %vm204_vm1, %v182_v21, 0.0  ;;  %v74_v20 = vld [vmem:[%s19336_s1 + $0xdc] sm:$0xf]  ;;  %v73_v21 = vld [vmem:[%s19336_s1 + $0xd8] sm:$0xf] }
  0x55   :  { %305 = vadd.xlane.f32.xlu1 %v304_v36  ;;  %302 = vadd.xlane.f32.xlu0 %v301_v37  ;;  %v185_v36 = vmul.f32 %v64_v26, %v64_v26  ;;  %v184_v37 = vmul.f32 %v63_v27, %v63_v27 }
  0x57   :  { %v340_v44 = vsel %vm204_vm1, %v185_v36, 0.0  ;;  %v337_v45 = vsel %vm204_vm1, %v184_v37, 0.0  ;;  %v76_v36 = vld [vmem:[%s19336_s1 + $0xe4] sm:$0xf]  ;;  %v75_v37 = vld [vmem:[%s19336_s1 + $0xe0] sm:$0xf] }
  0x59   :  { %311 = vadd.xlane.f32.xlu1 %v310_v48  ;;  %308 = vadd.xlane.f32.xlu0 %v307_v49  ;;  %v187_v48 = vmul.f32 %v66_v38, %v66_v38  ;;  %v186_v49 = vmul.f32 %v65_v39, %v65_v39 }
  0x5b   :  { %v346_v56 = vsel %vm204_vm1, %v187_v48, 0.0  ;;  %v343_v57 = vsel %vm204_vm1, %v186_v49, 0.0  ;;  %v78_v48 = vld [vmem:[%s19336_s1 + $0xec] sm:$0xf]  ;;  %v77_v49 = vld [vmem:[%s19336_s1 + $0xe8] sm:$0xf] }
  0x5d   :  { %317 = vadd.xlane.f32.xlu1 %v316_v60  ;;  %314 = vadd.xlane.f32.xlu0 %v313_v61  ;;  %v189_v60 = vmul.f32 %v68_v54, %v68_v54  ;;  %v188_v61 = vmul.f32 %v67_v55, %v67_v55 }
  0x5f   :  { %v352_v5 = vsel %vm204_vm1, %v189_v60, 0.0  ;;  %v349_v7 = vsel %vm204_vm1, %v188_v61, 0.0  ;;  %v80_v60 = vld [vmem:[%s19336_s1 + $0xf4] sm:$0xf]  ;;  %v79_v61 = vld [vmem:[%s19336_s1 + $0xf0] sm:$0xf] }
  0x61   :  { %323 = vadd.xlane.f32.xlu1 %v322_v8  ;;  %320 = vadd.xlane.f32.xlu0 %v319_v9  ;;  %v191_v8 = vmul.f32 %v70_v62, %v70_v62  ;;  %v190_v9 = vmul.f32 %v69_v63, %v69_v63 }
  0x63   :  { %v358_v14 = vsel %vm204_vm1, %v191_v8, 0.0  ;;  %v355_v15 = vsel %vm204_vm1, %v190_v9, 0.0  ;;  %v82_v8 = vld [vmem:[%s19336_s1 + $0xfc] sm:$0xf]  ;;  %v81_v9 = vld [vmem:[%s19336_s1 + $0xf8] sm:$0xf] }
  0x65   :  { %329 = vadd.xlane.f32.xlu1 %v328_v18  ;;  %326 = vadd.xlane.f32.xlu0 %v325_v19  ;;  %v193_v18 = vmul.f32 %v72_v12, %v72_v12  ;;  %v192_v19 = vmul.f32 %v71_v13, %v71_v13 }
  0x67   :  { %v364_v26 = vsel %vm204_vm1, %v193_v18, 0.0  ;;  %v361_v27 = vsel %vm204_vm1, %v192_v19, 0.0 }
  0x69   :  { %335 = vadd.xlane.f32.xlu1 %v334_v30  ;;  %332 = vadd.xlane.f32.xlu0 %v331_v31  ;;  %v195_v30 = vmul.f32 %v74_v20, %v74_v20  ;;  %v194_v31 = vmul.f32 %v73_v21, %v73_v21 }
  0x6b   :  { %v370_v38 = vsel %vm204_vm1, %v195_v30, 0.0  ;;  %v367_v39 = vsel %vm204_vm1, %v194_v31, 0.0 }
  0x6d   :  { %341 = vadd.xlane.f32.xlu1 %v340_v44  ;;  %338 = vadd.xlane.f32.xlu0 %v337_v45  ;;  %v197_v44 = vmul.f32 %v76_v36, %v76_v36  ;;  %v196_v45 = vmul.f32 %v75_v37, %v75_v37  ;;  %v13567_v37 = vmov 1966171168  }
  0x6f   :  { %v376_v54 = vsel %vm204_vm1, %v197_v44, 0.0  ;;  %v373_v55 = vsel %vm204_vm1, %v196_v45, 0.0 }
  0x71   :  { %347 = vadd.xlane.f32.xlu1 %v346_v56  ;;  %344 = vadd.xlane.f32.xlu0 %v343_v57  ;;  %v199_v56 = vmul.f32 %v78_v48, %v78_v48  ;;  %v198_v57 = vmul.f32 %v77_v49, %v77_v49 }
  0x73   :  { %v382_v62 = vsel %vm204_vm1, %v199_v56, 0.0  ;;  %v379_v63 = vsel %vm204_vm1, %v198_v57, 0.0 }
  0x75   :  { %353 = vadd.xlane.f32.xlu1 %v352_v5  ;;  %350 = vadd.xlane.f32.xlu0 %v349_v7  ;;  %v201_v5 = vmul.f32 %v80_v60, %v80_v60  ;;  %v200_v7 = vmul.f32 %v79_v61, %v79_v61 }
  0x77   :  { %v388_v12 = vsel %vm204_vm1, %v201_v5, 0.0  ;;  %v385_v13 = vsel %vm204_vm1, %v200_v7, 0.0 }
  0x79   :  { %359 = vadd.xlane.f32.xlu1 %v358_v14  ;;  %356 = vadd.xlane.f32.xlu0 %v355_v15  ;;  %v203_v14 = vmul.f32 %v82_v8, %v82_v8  ;;  %v202_v15 = vmul.f32 %v81_v9, %v81_v9 }
  0x7b   :  { %v394_v18 = vsel %vm204_vm1, %v203_v14, 0.0  ;;  %v391_v19 = vsel %vm204_vm1, %v202_v15, 0.0 }
  0x7d   :  { %365 = vadd.xlane.f32.xlu1 %v364_v26  ;;  %362 = vadd.xlane.f32.xlu0 %v361_v27 }
  0x81   :  { %371 = vadd.xlane.f32.xlu1 %v370_v38  ;;  %368 = vadd.xlane.f32.xlu0 %v367_v39  ;;  %v599_v38 = vunpack.c.l.s4 %v13567_v37  ;;  %v19338_v39 = vlaneseq }
  0x83   :  { %v600_v48 = vunpack.c.0.s8 %v599_v38  ;;  %v14011_v49 = vshrl.u32 %v19338_v39, 7 }
  0x85   :  { %377 = vadd.xlane.f32.xlu1 %v376_v54  ;;  %374 = vadd.xlane.f32.xlu0 %v373_v55  ;;  %v14017_v61 = vsub.s32 %v600_v48, %v14011_v49 }
  0x87   :  { %19728 = vst [vmem:[#allocation3_spill] sm:$0xff] %v14017_v61 }
  0x89   :  { %383 = vadd.xlane.f32.xlu1 %v382_v62  ;;  %380 = vadd.xlane.f32.xlu0 %v379_v63 }
  0x8d   :  { %389 = vadd.xlane.f32.xlu1 %v388_v12  ;;  %386 = vadd.xlane.f32.xlu0 %v385_v13 }
  0x91   :  { %395 = vadd.xlane.f32.xlu1 %v394_v18  ;;  %392 = vadd.xlane.f32.xlu0 %v391_v19 }
  0x92   :  { %v100_v20 = vpop.xlane.xlu1 %99  ;;  %v94_v21 = vpop.xlane.xlu0 %93 }
  0x93   :  { %v116_v26 = vmax.f32 %v94_v21, 1e-24  ;;  %v118_v12 = vmax.f32 %v100_v20, 1e-24 }
  0x95   :  { %12567 = vrsqrt.f32 %v116_v26 }
  0x96   :  { %v14000_v27 = vpop.xlane.xlu1 %102  ;;  %v97_v30 = vpop.xlane.xlu0 %96 }
  0x97   :  { %v117_v54 = vmax.f32 %v97_v30, 1e-24  ;;  %v14032_v30 = vsub.s32 0, %v14011_v49 }
  0x99   :  { %12569 = vrsqrt.f32 %v117_v54 }
  0x9a   :  { %v14002_v31 = vpop.xlane.xlu1 %108  ;;  %v14004_v36 = vpop.xlane.xlu0 %105 }
  0x9e   :  { %v14006_v44 = vpop.xlane.xlu1 %114  ;;  %v14008_v45 = vpop.xlane.xlu0 %111 }
  0x9f   :  { %v12568_v55 = vpop.eup %12567 }
  0xa0   :  { %v14014_v56 = vmul.f32 %v12568_v55, %v13592_v1 }
  0xa2   :  { %19727 = vst [vmem:[#allocation2_spill] sm:$0xff] %v14014_v56  ;;  %v210_v57 = vpop.xlane.xlu1 %209  ;;  %v207_v60 = vpop.xlane.xlu0 %206  ;;  %v604_v5 = vrot.slane %v14014_v56, %v14017_v61 }
  0xa3   :  { %v398_v62 = vmax.f32 %v210_v57, 1e-24  ;;  %v397_v63 = vmax.f32 %v207_v60, 1e-24  ;;  %v12570_v15 = vpop.eup %12569 }
  0xa4   :  { %v612_v9 = vcombine.high %v604_v5, %v604_v5  ;;  %v14025_v18 = vrot.slane %v604_v5, %v14017_v61  ;;  %v14035_v38 = vmul.f32 %v12570_v15, %v13608_v6 }
  0xa5   :  { %12571 = vrsqrt.f32 %v398_v62 }
  0xa6   :  { %12573 = vrsqrt.f32 %v397_v63  ;;  %v216_v7 = vpop.xlane.xlu1 %215  ;;  %v213_v8 = vpop.xlane.xlu0 %212  ;;  %v14022_v14 = vrot.slane %v612_v9, %v14017_v61  ;;  %19729 = vst [vmem:[#allocation4_spill] sm:$0xff] %v14035_v38  ;;  %v992_v60 = vrot.slane %v14025_v18, %v14032_v30 }
  0xa7   :  { %12575 = vrsqrt.f32 %v118_v12  ;;  %v400_v19 = vmax.f32 %v216_v7, 1e-24  ;;  %v399_v54 = vmax.f32 %v213_v8, 1e-24 }
  0xa8   :  { %v996_v55 = vrot.slane %v14022_v14, %v14032_v30 }
  0xa9   :  { %12577 = vrsqrt.f32 %v400_v19  ;;  %v597_v19 = vcombine.high %v14014_v56, %v14014_v56 }
  0xaa   :  { %v222_v13 = vpop.xlane.xlu1 %221  ;;  %v219_v1 = vpop.xlane.xlu0 %218  ;;  %12579 = vrsqrt.f32 %v399_v54 }
  0xab   :  { %v402_v6 = vmax.f32 %v222_v13, 1e-24  ;;  %v401_v8 = vmax.f32 %v219_v1, 1e-24 }
  0xae   :  { %v14027_v21 = vpop.xlane.xlu1 %227  ;;  %v14029_v26 = vpop.xlane.xlu0 %224 }
  0xaf   :  { %v12572_v37 = vpop.eup %12571 }
  0xb0   :  { %v12574_v20 = vpop.eup %12573  ;;  %v14038_v48 = vmul.f32 %v12572_v37, %v13633_v22 }
  0xb1   :  { %v14043_v57 = vmul.f32 %v12574_v20, %v13638_v23  ;;  %v653_v23 = vrot.slane %v14035_v38, %v14017_v61  ;;  %v12576_v20 = vpop.eup %12575 }
  0xb2   :  { %19730 = vst [vmem:[#allocation5_spill] sm:$0xff] %v14038_v48  ;;  %v234_v62 = vpop.xlane.xlu1 %233  ;;  %v231_v63 = vpop.xlane.xlu0 %230  ;;  %v1310_v5 = vmul.f32 %v996_v55, %v14038_v48 }
  0xb3   :  { %19731 = vst [vmem:[#allocation6_spill] sm:$0xff] %v14043_v57  ;;  %v406_v7 = vmax.f32 %v234_v62, 1e-24  ;;  %v405_v9 = vmax.f32 %v231_v63, 1e-24  ;;  %v1309_v22 = vmul.f32 %v992_v60, %v14043_v57  ;;  %v661_v55 = vcombine.high %v653_v23, %v653_v23 }
  0xb4   :  { %v1376_v12 = vsel %vm204_vm1, %v1310_v5, 0.0  ;;  %v611_v60 = vrot.slane %v597_v19, %v14017_v61  ;;  %v14057_v62 = vmul.f32 %v12576_v20, %v13587_v0  ;;  %v119_v63 = vmax.f32 %v14000_v27, 1e-24 }
  0xb5   :  { %12581 = vrsqrt.f32 %v406_v7  ;;  %1377 = vadd.xlane.f32.xlu1 %v1376_v12  ;;  %v1373_v15 = vsel %vm204_vm1, %v1309_v22, 0.0  ;;  %v644_v22 = vcombine.high %v14022_v14, %v14022_v14  ;;  %v14068_v0 = vrot.slane %v653_v23, %v14017_v61 }
  0xb6   :  { %12583 = vrsqrt.f32 %v405_v9  ;;  %1374 = vadd.xlane.f32.xlu0 %v1373_v15  ;;  %v240_v13 = vpop.xlane.xlu1 %239  ;;  %v237_v37 = vpop.xlane.xlu0 %236  ;;  %19732 = vst [vmem:[#allocation7_spill] sm:$0xff] %v14057_v62  ;;  %v14065_v15 = vrot.slane %v661_v55, %v14017_v61  ;;  %v613_v27 = vcombine.high %v611_v60, %v611_v60  ;;  %v646_v14 = vcombine.high %v14035_v38, %v14035_v38 }
  0xb7   :  { %12585 = vrsqrt.f32 %v402_v6  ;;  %v408_v54 = vmax.f32 %v240_v13, 1e-24  ;;  %v407_v1 = vmax.f32 %v237_v37, 1e-24  ;;  %v642_v6 = vcombine.high %v14025_v18, %v14025_v18 }
  0xb8   :  { %12587 = vrsqrt.f32 %v401_v8  ;;  %v12578_v8 = vpop.eup %12577  ;;  %v14076_v18 = vrot.slane %v14057_v62, %v14017_v61  ;;  %v1004_v23 = vrot.slane %v644_v22, %v14032_v30 }
  0xb9   :  { %12589 = vrsqrt.f32 %v408_v54  ;;  %v12580_v19 = vpop.eup %12579  ;;  %v403_v54 = vmax.f32 %v14029_v26, 1e-24 }
  0xba   :  { %v246_v5 = vpop.xlane.xlu1 %245  ;;  %v243_v7 = vpop.xlane.xlu0 %242  ;;  %12591 = vrsqrt.f32 %v407_v1  ;;  %v1000_v1 = vrot.slane %v642_v6, %v14032_v30  ;;  %v14090_v38 = vmul.f32 %v12580_v19, %v13654_v29  ;;  %v660_v29 = vrot.slane %v646_v14, %v14017_v61 }
  0xbb   :  { %v410_v9 = vmax.f32 %v246_v5, 1e-24  ;;  %v409_v12 = vmax.f32 %v243_v7, 1e-24  ;;  %12593 = vrsqrt.f32 %v119_v63  ;;  %v14082_v63 = vmul.f32 %v12578_v8, %v13649_v28 }
  0xbc   :  { %v1028_v7 = vrot.slane %v14065_v15, %v14032_v30  ;;  %19735 = vst [vmem:[#allocation10_spill] sm:$0xff] %v14090_v38  ;;  %v14098_v28 = vrot.slane %v613_v27, %v14017_v61  ;;  %v693_v27 = vcombine.high %v14065_v15, %v14065_v15 }
  0xbd   :  { %12595 = vrsqrt.f32 %v410_v9  ;;  %19733 = vst [vmem:[#allocation8_spill] sm:$0xff] %v14082_v63  ;;  %v1024_v9 = vrot.slane %v14068_v0, %v14032_v30 }
  0xbe   :  { %v14070_v13 = vpop.xlane.xlu1 %251  ;;  %v249_v37 = vpop.xlane.xlu0 %248  ;;  %12597 = vrsqrt.f32 %v409_v12 }
  0xbf   :  { %v12582_v20 = vpop.eup %12581  ;;  %12599 = vrsqrt.f32 %v403_v54  ;;  %v1311_v54 = vmul.f32 %v1000_v1, %v14090_v38 }
  0xc0   :  { %v12584_v55 = vpop.eup %12583  ;;  %v14085_v5 = vmul.f32 %v12582_v20, %v13697_v46  ;;  %v404_v46 = vmax.f32 %v14027_v21, 1e-24  ;;  %v14103_v20 = vrot.slane %v611_v60, %v14017_v61  ;;  %v411_v21 = vmax.f32 %v249_v37, 1e-24 }
  0xc1   :  { %v12586_v39 = vpop.eup %12585  ;;  %v14093_v26 = vmul.f32 %v12584_v55, %v13702_v47  ;;  %v691_v37 = vcombine.high %v14068_v0, %v14068_v0 }
  0xc2   :  { %19734 = vst [vmem:[#allocation9_spill] sm:$0xff] %v14085_v5  ;;  %v12588_v22 = vpop.eup %12587  ;;  %v258_v6 = vpop.xlane.xlu1 %257  ;;  %v1318_v12 = vmul.f32 %v1028_v7, %v14085_v5  ;;  %v14110_v56 = vmul.f32 %v12586_v39, %v13665_v34  ;;  %v1312_v7 = vmul.f32 %v1004_v23, %v14082_v63  ;;  %v1012_v39 = vrot.slane %v14098_v28, %v14032_v30 }
  0xc3   :  { %19736 = vst [vmem:[#allocation11_spill] sm:$0xff] %v14093_v26  ;;  %v255_v8 = vpop.xlane.xlu0 %254  ;;  %v414_v47 = vmax.f32 %v258_v6, 1e-24  ;;  %v1317_v19 = vmul.f32 %v1024_v9, %v14093_v26  ;;  %v12590_v55 = vpop.eup %12589  ;;  %v14115_v60 = vmul.f32 %v12588_v22, %v13670_v35  ;;  %v662_v23 = vcombine.high %v660_v29, %v660_v29 }
  0xc4   :  { %19737 = vst [vmem:[#allocation12_spill] sm:$0xff] %v14110_v56  ;;  %v1400_v48 = vsel %vm204_vm1, %v1318_v12, 0.0  ;;  %v12592_v9 = vpop.eup %12591  ;;  %v121_v35 = vmax.f32 %v14002_v31, 1e-24  ;;  %v412_v22 = vmax.f32 %v14070_v13, 1e-24  ;;  %v1008_v1 = vrot.slane %v14103_v20, %v14032_v30 }
  0xc5   :  { %19738 = vst [vmem:[#allocation13_spill] sm:$0xff] %v14115_v60  ;;  %12601 = vrsqrt.f32 %v414_v47  ;;  %1401 = vadd.xlane.f32.xlu1 %v1400_v48  ;;  %v1397_v14 = vsel %vm204_vm1, %v1317_v19, 0.0  ;;  %v14125_v48 = vmul.f32 %v12590_v55, %v13713_v52  ;;  %v413_v6 = vmax.f32 %v255_v8, 1e-24 }
  0xc6   :  { %12603 = vrsqrt.f32 %v404_v46  ;;  %1398 = vadd.xlane.f32.xlu0 %v1397_v14  ;;  %v264_v15 = vpop.xlane.xlu1 %263  ;;  %v14130_v46 = vpop.eup %12593  ;;  %v1382_v12 = vsel %vm204_vm1, %v1312_v7, 0.0  ;;  %v1314_v47 = vmul.f32 %v1012_v39, %v14110_v56  ;;  %v14135_v19 = vmul.f32 %v12592_v9, %v13718_v53 }
  0xc7   :  { %v261_v34 = vpop.xlane.xlu0 %260  ;;  %19739 = vst [vmem:[#allocation14_spill] sm:$0xff] %v14125_v48  ;;  %12605 = vrsqrt.f32 %v411_v21  ;;  %v12596_v0 = vpop.eup %12595  ;;  %v1379_v52 = vsel %vm204_vm1, %v1311_v54, 0.0  ;;  %v1313_v31 = vmul.f32 %v1008_v1, %v14115_v60  ;;  %v1036_v13 = vrot.slane %v693_v27, %v14032_v30 }
  0xc8   :  { %19740 = vst [vmem:[#allocation15_spill] sm:$0xff] %v14135_v19  ;;  %v12598_v55 = vpop.eup %12597  ;;  %v1032_v8 = vrot.slane %v691_v37, %v14032_v30  ;;  %v14142_v7 = vrot.slane %v662_v23, %v14017_v61  ;;  %v710_v53 = vcombine.high %v14076_v18, %v14076_v18  ;;  %12607 = vrsqrt.f32 %v412_v22 }
  0xc9   :  { %1383 = vadd.xlane.f32.xlu1 %v1382_v12  ;;  %v416_v9 = vmax.f32 %v264_v15, 1e-24  ;;  %v1320_v54 = vmul.f32 %v1036_v13, %v14125_v48  ;;  %v14148_v39 = vrot.slane %v660_v29, %v14017_v61  ;;  %v14151_v27 = vmul.f32 %v12596_v0, %v13729_v58  ;;  %v12600_v12 = vpop.eup %12599 }
  0xca   :  { %1380 = vadd.xlane.f32.xlu0 %v1379_v52  ;;  %v270_v14 = vpop.xlane.xlu1 %269  ;;  %12609 = vrsqrt.f32 %v413_v6  ;;  %v415_v1 = vmax.f32 %v261_v34, 1e-24  ;;  %v1388_v37 = vsel %vm204_vm1, %v1314_v47, 0.0  ;;  %v14155_v23 = vmul.f32 %v12598_v55, %v13734_v59 }
  0xcb   :  { %v267_v21 = vpop.xlane.xlu0 %266  ;;  %19741 = vst [vmem:[#allocation16_spill] sm:$0xff] %v14151_v27  ;;  %12611 = vrsqrt.f32 %v121_v35  ;;  %v1385_v15 = vsel %vm204_vm1, %v1313_v31, 0.0  ;;  %v1319_v22 = vmul.f32 %v1032_v8, %v14135_v19  ;;  %v418_v52 = vmax.f32 %v270_v14, 1e-24 }
  0xcc   :  { %19742 = vst [vmem:[#allocation17_spill] sm:$0xff] %v14155_v23  ;;  %v1044_v58 = vrot.slane %v14142_v7, %v14032_v30  ;;  %v14162_v34 = vrot.slane %v710_v53, %v14017_v61  ;;  %v695_v35 = vcombine.high %v14057_v62, %v14057_v62  ;;  %12613 = vrsqrt.f32 %v416_v9  ;;  %v13535_v62 = vld [vmem:[%s19336_s1 + $0x8c] sm:$0xf] }
  0xcd   :  { %1389 = vadd.xlane.f32.xlu1 %v1388_v37  ;;  %v1406_v6 = vsel %vm204_vm1, %v1320_v54, 0.0  ;;  %v1040_v47 = vrot.slane %v14148_v39, %v14032_v30  ;;  %v643_v0 = vcombine.high %v14103_v20, %v14103_v20  ;;  %12615 = vrsqrt.f32 %v415_v1 }
  0xce   :  { %1386 = vadd.xlane.f32.xlu0 %v1385_v15  ;;  %v276_v29 = vpop.xlane.xlu1 %275  ;;  %v417_v14 = vmax.f32 %v267_v21, 1e-24  ;;  %v1322_v8 = vmul.f32 %v1044_v58, %v14151_v27  ;;  %v14176_v53 = vmul.f32 %v12600_v12, %v13686_v41  ;;  %v1403_v9 = vsel %vm204_vm1, %v1319_v22, 0.0 }
  0xcf   :  { %v273_v13 = vpop.xlane.xlu0 %272  ;;  %v12602_v59 = vpop.eup %12601  ;;  %v1321_v54 = vmul.f32 %v1040_v47, %v14155_v23  ;;  %v645_v37 = vcombine.high %v14098_v28, %v14098_v28  ;;  %v120_v15 = vmax.f32 %v14004_v36, 1e-24  ;;  %12617 = vrsqrt.f32 %v418_v52 }
  0xd0   :  { %v12604_v31 = vpop.eup %12603  ;;  %v14172_v55 = vmul.f32 %v12602_v59, %v13761_v10  ;;  %19744 = vst [vmem:[#allocation19_spill] sm:$0xff] %v14176_v53  ;;  %v1060_v1 = vrot.slane %v14162_v34, %v14032_v30  ;;  %v14186_v41 = vrot.slane %v695_v35, %v14017_v61  ;;  %v420_v22 = vmax.f32 %v276_v29, 1e-24 }
  0xd1   :  { %1407 = vadd.xlane.f32.xlu1 %v1406_v6  ;;  %v12606_v20 = vpop.eup %12605  ;;  %v14189_v12 = vmul.f32 %v12604_v31, %v13681_v40  ;;  %v1016_v58 = vrot.slane %v643_v0, %v14032_v30  ;;  %v692_v28 = vcombine.high %v14148_v39, %v14148_v39  ;;  %12619 = vrsqrt.f32 %v417_v14 }
  0xd2   :  { %19743 = vst [vmem:[#allocation18_spill] sm:$0xff] %v14172_v55  ;;  %1404 = vadd.xlane.f32.xlu0 %v1403_v9  ;;  %v282_v10 = vpop.xlane.xlu1 %281  ;;  %v419_v36 = vmax.f32 %v273_v13, 1e-24  ;;  %v1412_v52 = vsel %vm204_vm1, %v1322_v8, 0.0  ;;  %v1326_v59 = vmul.f32 %v1060_v1, %v14172_v55  ;;  %v12608_v6 = vpop.eup %12607  ;;  %v14197_v47 = vmul.f32 %v12606_v20, %v13750_v4 }
  0xd3   :  { %v279_v21 = vpop.xlane.xlu0 %278  ;;  %19745 = vst [vmem:[#allocation20_spill] sm:$0xff] %v14189_v12  ;;  %v1409_v40 = vsel %vm204_vm1, %v1321_v54, 0.0  ;;  %v1315_v29 = vmul.f32 %v1016_v58, %v14176_v53  ;;  %v1020_v35 = vrot.slane %v645_v37, %v14032_v30  ;;  %v14204_v39 = vmul.f32 %v14130_v46, %v13597_v2 }
  0xd4   :  { %19746 = vst [vmem:[#allocation21_spill] sm:$0xff] %v14197_v47  ;;  %v12610_v0 = vpop.eup %12609  ;;  %12621 = vrsqrt.f32 %v120_v15  ;;  %v694_v4 = vcombine.high %v14142_v7, %v14142_v7  ;;  %v718_v14 = vrot.slane %v14076_v18, %v14017_v61  ;;  %v422_v9 = vmax.f32 %v282_v10, 1e-24 }
  0xd5   :  { %1413 = vadd.xlane.f32.xlu1 %v1412_v52  ;;  %19747 = vst [vmem:[#allocation22_spill] sm:$0xff] %v14204_v39  ;;  %v14210_v8 = vpop.eup %12611  ;;  %12623 = vrsqrt.f32 %v420_v22  ;;  %v1316_v54 = vmul.f32 %v1020_v35, %v14189_v12  ;;  %v1048_v37 = vrot.slane %v692_v28, %v14032_v30  ;;  %v14215_v2 = vmul.f32 %v12608_v6, %v13745_v3 }
  0xd6   :  { %1410 = vadd.xlane.f32.xlu0 %v1409_v40  ;;  %v288_v13 = vpop.xlane.xlu1 %287  ;;  %12625 = vrsqrt.f32 %v419_v36  ;;  %v421_v46 = vmax.f32 %v279_v21, 1e-24  ;;  %v1424_v20 = vsel %vm204_vm1, %v1326_v59, 0.0  ;;  %v12614_v15 = vpop.eup %12613  ;;  %v14219_v7 = vmul.f32 %v12610_v0, %v13766_v11 }
  0xd7   :  { %v285_v31 = vpop.xlane.xlu0 %284  ;;  %19748 = vst [vmem:[#allocation23_spill] sm:$0xff] %v14215_v2  ;;  %v1391_v18 = vsel %vm204_vm1, %v1315_v29, 0.0  ;;  %v1323_v10 = vmul.f32 %v1048_v37, %v14197_v47  ;;  %v711_v1 = vcombine.high %v14186_v41, %v14186_v41  ;;  %v12616_v22 = vpop.eup %12615  ;;  %v424_v58 = vmax.f32 %v288_v13, 1e-24 }
  0xd8   :  { %19749 = vst [vmem:[#allocation24_spill] sm:$0xff] %v14219_v7  ;;  %v1052_v21 = vrot.slane %v694_v4, %v14032_v30  ;;  %v1056_v36 = vrot.slane %v718_v14, %v14032_v30  ;;  %v742_v11 = vcombine.high %v14162_v34, %v14162_v34  ;;  %12627 = vrsqrt.f32 %v422_v9 }
  0xd9   :  { %1425 = vadd.xlane.f32.xlu1 %v1424_v20  ;;  %v1394_v52 = vsel %vm204_vm1, %v1316_v54, 0.0  ;;  %v740_v59 = vcombine.high %v718_v14, %v718_v14  ;;  %v751_v6 = vrot.slane %v14204_v39, %v14017_v61  ;;  %v12618_v40 = vpop.eup %12617  ;;  %v14233_v29 = vmul.f32 %v12614_v15, %v13777_v16 }
  0xda   :  { %1392 = vadd.xlane.f32.xlu0 %v1391_v18  ;;  %v294_v3 = vpop.xlane.xlu1 %293  ;;  %12629 = vrsqrt.f32 %v421_v46  ;;  %v423_v35 = vmax.f32 %v285_v31, 1e-24  ;;  %v1324_v0 = vmul.f32 %v1052_v21, %v14215_v2  ;;  %v14237_v13 = vmul.f32 %v12616_v22, %v13782_v17 }
  0xdb   :  { %v291_v28 = vpop.xlane.xlu0 %290  ;;  %19750 = vst [vmem:[#allocation25_spill] sm:$0xff] %v14233_v29  ;;  %v1415_v34 = vsel %vm204_vm1, %v1323_v10, 0.0  ;;  %v1325_v4 = vmul.f32 %v1056_v36, %v14219_v7  ;;  %v739_v14 = vrot.slane %v711_v1, %v14017_v61  ;;  %v12620_v9 = vpop.eup %12619  ;;  %12631 = vrsqrt.f32 %v424_v58 }
  0xdc   :  { %19751 = vst [vmem:[#allocation26_spill] sm:$0xff] %v14237_v13  ;;  %v1068_v37 = vrot.slane %v742_v11, %v14032_v30  ;;  %v725_v31 = vrot.slane %v14186_v41, %v14017_v61  ;;  %v14246_v17 = vmul.f32 %v12618_v40, %v13793_v24  ;;  %v426_v46 = vmax.f32 %v294_v3, 1e-24 }
  0xdd   :  { %1395 = vadd.xlane.f32.xlu1 %v1394_v52  ;;  %v1064_v20 = vrot.slane %v740_v59, %v14032_v30  ;;  %v759_v15 = vcombine.high %v751_v6, %v751_v6  ;;  %12633 = vrsqrt.f32 %v423_v35  ;;  %v425_v10 = vmax.f32 %v291_v28, 1e-24 }
  0xde   :  { %1416 = vadd.xlane.f32.xlu0 %v1415_v34  ;;  %v300_v54 = vpop.xlane.xlu1 %299  ;;  %19752 = vst [vmem:[#allocation27_spill] sm:$0xff] %v14246_v17  ;;  %v12622_v18 = vpop.eup %12621  ;;  %v1418_v1 = vsel %vm204_vm1, %v1324_v0, 0.0  ;;  %v1328_v22 = vmul.f32 %v1068_v37, %v14233_v29  ;;  %v14252_v21 = vmul.f32 %v12620_v9, %v13798_v25  ;;  %v1421_v41 = vsel %vm204_vm1, %v1325_v4, 0.0 }
  0xdf   :  { %v297_v16 = vpop.xlane.xlu0 %296  ;;  %v12624_v58 = vpop.eup %12623  ;;  %v1327_v24 = vmul.f32 %v1064_v20, %v14237_v13  ;;  %v1076_v3 = vrot.slane %v739_v14, %v14032_v30  ;;  %v1072_v28 = vrot.slane %v725_v31, %v14032_v30  ;;  %v743_v59 = vcombine.high %v739_v14, %v739_v14 }
  0xe0   :  { %19753 = vst [vmem:[#allocation28_spill] sm:$0xff] %v14252_v21  ;;  %v12626_v36 = vpop.eup %12625  ;;  %v741_v40 = vcombine.high %v725_v31, %v725_v31  ;;  %v744_v35 = vcombine.high %v14204_v39, %v14204_v39  ;;  %12635 = vrsqrt.f32 %v426_v46  ;;  %v428_v25 = vmax.f32 %v300_v54, 1e-24 }
  0xe1   :  { %1419 = vadd.xlane.f32.xlu1 %v1418_v1  ;;  %v1330_v0 = vmul.f32 %v1076_v3, %v14246_v17  ;;  %v781_v34 = vrot.slane %v759_v15, %v14017_v61  ;;  %v14263_v4 = vmul.f32 %v12624_v58, %v13809_v32  ;;  %12637 = vrsqrt.f32 %v425_v10 }
  0xe2   :  { %1422 = vadd.xlane.f32.xlu0 %v1421_v41  ;;  %v306_v11 = vpop.xlane.xlu1 %305  ;;  %v427_v9 = vmax.f32 %v297_v16, 1e-24  ;;  %v1430_v37 = vsel %vm204_vm1, %v1328_v22, 0.0  ;;  %v12628_v20 = vpop.eup %12627  ;;  %v122_v14 = vmax.f32 %v14008_v45, 1e-24  ;;  %v14268_v31 = vmul.f32 %v12626_v36, %v13814_v33 }
  0xe3   :  { %v303_v52 = vpop.xlane.xlu0 %302  ;;  %19754 = vst [vmem:[#allocation29_spill] sm:$0xff] %v14263_v4  ;;  %v1427_v54 = vsel %vm204_vm1, %v1327_v24, 0.0  ;;  %v1329_v46 = vmul.f32 %v1072_v28, %v14252_v21  ;;  %v430_v15 = vmax.f32 %v306_v11, 1e-24  ;;  %v1084_v16 = vrot.slane %v743_v59, %v14032_v30 }
  0xe4   :  { %19755 = vst [vmem:[#allocation30_spill] sm:$0xff] %v14268_v31  ;;  %v12630_v1 = vpop.eup %12629  ;;  %v767_v10 = vrot.slane %v751_v6, %v14017_v61  ;;  %v758_v22 = vrot.slane %v744_v35, %v14017_v61  ;;  %12639 = vrsqrt.f32 %v428_v25  ;;  %v1436_v33 = vsel %vm204_vm1, %v1330_v0, 0.0  ;;  %v13527_v6 = vld [vmem:[%s19335_s0 + $0x20] sm:$0xff] }
  0xe5   :  { %1431 = vadd.xlane.f32.xlu1 %v1430_v37  ;;  %v1080_v45 = vrot.slane %v741_v40, %v14032_v30  ;;  %v791_v41 = vcombine.high %v781_v34, %v781_v34  ;;  %v12632_v24 = vpop.eup %12631  ;;  %v14278_v3 = vmul.f32 %v12628_v20, %v13825_v42  ;;  %12641 = vrsqrt.f32 %v427_v9 }
  0xe6   :  { %1428 = vadd.xlane.f32.xlu0 %v1427_v54  ;;  %v312_v32 = vpop.xlane.xlu1 %311  ;;  %v429_v36 = vmax.f32 %v303_v52, 1e-24  ;;  %v1332_v11 = vmul.f32 %v1084_v16, %v14263_v4  ;;  %v14284_v28 = vmul.f32 %v13527_v6, %v12622_v18  ;;  %v14287_v59 = vmul.f32 %v12630_v1, %v13830_v43 }
  0xe7   :  { %v309_v58 = vpop.xlane.xlu0 %308  ;;  %19756 = vst [vmem:[#allocation31_spill] sm:$0xff] %v14278_v3  ;;  %v1433_v40 = vsel %vm204_vm1, %v1329_v46, 0.0  ;;  %v1331_v35 = vmul.f32 %v1080_v45, %v14268_v31  ;;  %v12634_v42 = vpop.eup %12633  ;;  %12643 = vrsqrt.f32 %v430_v15  ;;  %v1092_v0 = vrot.slane %v781_v34, %v14032_v30 }
  0xe8   :  { %19757 = vst [vmem:[#allocation32_spill] sm:$0xff] %v14284_v28  ;;  %19758 = vst [vmem:[#allocation33_spill] sm:$0xff] %v14287_v59  ;;  %v789_v9 = vcombine.high %v767_v10, %v767_v10  ;;  %v760_v37 = vcombine.high %v758_v22, %v758_v22  ;;  %v14293_v18 = vmul.f32 %v12632_v24, %v13841_v50  ;;  %v432_v20 = vmax.f32 %v312_v32, 1e-24 }
  0xe9   :  { %1437 = vadd.xlane.f32.xlu1 %v1436_v33  ;;  %v1088_v43 = vrot.slane %v767_v10, %v14032_v30  ;;  %v1100_v54 = vrot.slane %v791_v41, %v14032_v30  ;;  %12645 = vrsqrt.f32 %v429_v36  ;;  %v431_v46 = vmax.f32 %v309_v58, 1e-24 }
  0xea   :  { %1434 = vadd.xlane.f32.xlu0 %v1433_v40  ;;  %v318_v52 = vpop.xlane.xlu1 %317  ;;  %19759 = vst [vmem:[#allocation34_spill] sm:$0xff] %v14293_v18  ;;  %v1442_v1 = vsel %vm204_vm1, %v1332_v11, 0.0  ;;  %v1334_v15 = vmul.f32 %v1092_v0, %v14278_v3  ;;  %v12636_v16 = vpop.eup %12635  ;;  %v14300_v33 = vmul.f32 %v12634_v42, %v13846_v51  ;;  %v1439_v34 = vsel %vm204_vm1, %v1331_v35, 0.0 }
  0xeb   :  { %v315_v25 = vpop.xlane.xlu0 %314  ;;  %v1333_v50 = vmul.f32 %v1088_v43, %v14287_v59  ;;  %v800_v32 = vrot.slane %v14284_v28, %v14017_v61  ;;  %v12638_v10 = vpop.eup %12637  ;;  %12647 = vrsqrt.f32 %v122_v14  ;;  %v1096_v41 = vrot.slane %v789_v9, %v14032_v30  ;;  %v13528_v14 = vld [vmem:[%s19336_s1 + $0x74] sm:$0xf] }
  0xec   :  { %19760 = vst [vmem:[#allocation35_spill] sm:$0xff] %v14300_v33  ;;  %v788_v24 = vrot.slane %v760_v37, %v14017_v61  ;;  %v774_v51 = vrot.slane %v758_v22, %v14017_v61  ;;  %12649 = vrsqrt.f32 %v432_v20  ;;  %v434_v36 = vmax.f32 %v318_v52, 1e-24  ;;  %v13529_v22 = vld [vmem:[%s19336_s1 + $0x70] sm:$0xf] }
  0xed   :  { %1443 = vadd.xlane.f32.xlu1 %v1442_v1  ;;  %v1336_v11 = vmul.f32 %v1100_v54, %v14293_v18  ;;  %v793_v6 = vcombine.high %v14284_v28, %v14284_v28  ;;  %v14315_v40 = vmul.f32 %v13528_v14, %v12636_v16  ;;  %12651 = vrsqrt.f32 %v431_v46 }
  0xee   :  { %1440 = vadd.xlane.f32.xlu0 %v1439_v34  ;;  %v324_v58 = vpop.xlane.xlu1 %323  ;;  %v433_v35 = vmax.f32 %v315_v25, 1e-24  ;;  %v1448_v42 = vsel %vm204_vm1, %v1334_v15, 0.0  ;;  %v12640_v0 = vpop.eup %12639  ;;  %v14321_v52 = vmul.f32 %v13529_v22, %v12638_v10  ;;  %v1445_v9 = vsel %vm204_vm1, %v1333_v50, 0.0 }
  0xef   :  { %v321_v45 = vpop.xlane.xlu0 %320  ;;  %19761 = vst [vmem:[#allocation36_spill] sm:$0xff] %v14315_v40  ;;  %v1335_v37 = vmul.f32 %v1096_v41, %v14300_v33  ;;  %v808_v20 = vcombine.high %v800_v32, %v800_v32  ;;  %v12642_v43 = vpop.eup %12641  ;;  %v436_v54 = vmax.f32 %v324_v58, 1e-24  ;;  %v1108_v1 = vrot.slane %v788_v24, %v14032_v30  ;;  %v13530_v58 = vld [vmem:[%s19336_s1 + $0x7c] sm:$0xf] }
  0xf0   :  { %19762 = vst [vmem:[#allocation37_spill] sm:$0xff] %v14321_v52  ;;  %v1104_v15 = vrot.slane %v774_v51, %v14032_v30  ;;  %v792_v16 = vcombine.high %v788_v24, %v788_v24  ;;  %12653 = vrsqrt.f32 %v434_v36  ;;  %v1454_v34 = vsel %vm204_vm1, %v1336_v11, 0.0  ;;  %v13531_v24 = vld [vmem:[%s19336_s1 + $0x78] sm:$0xf] }
  0xf1   :  { %1449 = vadd.xlane.f32.xlu1 %v1448_v42  ;;  %v790_v10 = vcombine.high %v774_v51, %v774_v51  ;;  %v14329_v14 = vrot.slane %v793_v6, %v14017_v61  ;;  %v12644_v50 = vpop.eup %12643  ;;  %v14334_v41 = vmul.f32 %v13530_v58, %v12640_v0  ;;  %12655 = vrsqrt.f32 %v433_v35 }
  0xf2   :  { %1446 = vadd.xlane.f32.xlu0 %v1445_v9  ;;  %v330_v46 = vpop.xlane.xlu1 %329  ;;  %v435_v42 = vmax.f32 %v321_v45, 1e-24  ;;  %v1338_v22 = vmul.f32 %v1108_v1, %v14315_v40  ;;  %v14340_v36 = vmul.f32 %v13531_v24, %v12642_v43  ;;  %v1451_v51 = vsel %vm204_vm1, %v1335_v37, 0.0  ;;  %v13532_v43 = vld [vmem:[%s19336_s1 + $0x84] sm:$0xf] }
  0xf3   :  { %v327_v25 = vpop.xlane.xlu0 %326  ;;  %19763 = vst [vmem:[#allocation38_spill] sm:$0xff] %v14334_v41  ;;  %v1337_v11 = vmul.f32 %v1104_v15, %v14321_v52  ;;  %v830_v6 = vrot.slane %v808_v20, %v14017_v61  ;;  %v12646_v9 = vpop.eup %12645  ;;  %12657 = vrsqrt.f32 %v436_v54  ;;  %v1116_v0 = vrot.slane %v792_v16, %v14032_v30 }
  0xf4   :  { %19764 = vst [vmem:[#allocation39_spill] sm:$0xff] %v14340_v36  ;;  %v816_v1 = vrot.slane %v800_v32, %v14017_v61  ;;  %v438_v37 = vmax.f32 %v330_v46, 1e-24  ;;  %v1112_v15 = vrot.slane %v790_v10, %v14032_v30  ;;  %v809_v20 = vcombine.high %v14329_v14, %v14329_v14 }
  0xf5   :  { %1455 = vadd.xlane.f32.xlu1 %v1454_v34  ;;  %v14350_v34 = vmul.f32 %v13532_v43, %v12644_v50  ;;  %v14355_v54 = vpop.eup %12647  ;;  %12659 = vrsqrt.f32 %v435_v42  ;;  %v437_v58 = vmax.f32 %v327_v25, 1e-24  ;;  %v1460_v16 = vsel %vm204_vm1, %v1338_v22, 0.0  ;;  %v13533_v50 = vld [vmem:[%s19336_s1 + $0x80] sm:$0xf]  ;;  %v13534_v25 = vld [vmem:[%s19335_s0 + $0x28] sm:$0xff] }
  0xf6   :  { %1452 = vadd.xlane.f32.xlu0 %v1451_v51  ;;  %v336_v35 = vpop.xlane.xlu1 %335  ;;  %v1340_v32 = vmul.f32 %v1116_v0, %v14334_v41  ;;  %v12650_v24 = vpop.eup %12649  ;;  %v14362_v51 = vmul.f32 %v13533_v50, %v12646_v9  ;;  %v1457_v46 = vsel %vm204_vm1, %v1337_v11, 0.0  ;;  %v1339_v10 = vmul.f32 %v1112_v15, %v14340_v36 }
  0xf7   :  { %v333_v45 = vpop.xlane.xlu0 %332  ;;  %19765 = vst [vmem:[#allocation40_spill] sm:$0xff] %v14350_v34  ;;  %v1124_v43 = vrot.slane %v830_v6, %v14032_v30  ;;  %v12652_v42 = vpop.eup %12651  ;;  %v14371_v22 = vmul.f32 %v13534_v25, %v14210_v8  ;;  %v1120_v9 = vrot.slane %v816_v1, %v14032_v30  ;;  %v838_v50 = vcombine.high %v816_v1, %v816_v1 }
  0xf8   :  { %19766 = vst [vmem:[#allocation41_spill] sm:$0xff] %v14362_v51  ;;  %12661 = vrsqrt.f32 %v438_v37  ;;  %v440_v11 = vmax.f32 %v336_v35, 1e-24  ;;  %v837_v39 = vrot.slane %v809_v20, %v14017_v61  ;;  %v14379_v41 = vmul.f32 %v13535_v62, %v12650_v24  ;;  %v13536_v35 = vld [vmem:[%s19336_s1 + $0x88] sm:$0xf] }
  0xf9   :  { %1461 = vadd.xlane.f32.xlu1 %v1460_v16  ;;  %19767 = vst [vmem:[#allocation42_spill] sm:$0xff] %v14371_v22  ;;  %v840_v16 = vcombine.high %v830_v6, %v830_v6  ;;  %v1342_v15 = vmul.f32 %v1124_v43, %v14350_v34  ;;  %12663 = vrsqrt.f32 %v437_v58  ;;  %v439_v8 = vmax.f32 %v333_v45, 1e-24 }
  0xfa   :  { %1458 = vadd.xlane.f32.xlu0 %v1457_v46  ;;  %v342_v0 = vpop.xlane.xlu1 %341  ;;  %19768 = vst [vmem:[#allocation43_spill] sm:$0xff] %v14379_v41  ;;  %v1466_v46 = vsel %vm204_vm1, %v1340_v32, 0.0  ;;  %v12654_v25 = vpop.eup %12653  ;;  %v123_v6 = vmax.f32 %v14006_v44, 1e-24  ;;  %v14386_v1 = vmul.f32 %v13536_v35, %v12652_v42  ;;  %v1463_v37 = vsel %vm204_vm1, %v1339_v10, 0.0 }
  0xfb   :  { %v339_v28 = vpop.xlane.xlu0 %338  ;;  %v1341_v20 = vmul.f32 %v1120_v9, %v14362_v51  ;;  %v12656_v62 = vpop.eup %12655  ;;  %v442_v24 = vmax.f32 %v342_v0, 1e-24  ;;  %v1132_v32 = vrot.slane %v840_v16, %v14032_v30  ;;  %v823_v44 = vrot.slane %v14329_v14, %v14017_v61  ;;  %v13537_v0 = vld [vmem:[%s19336_s1 + $0x94] sm:$0xf] }
  0xfc   :  { %19769 = vst [vmem:[#allocation44_spill] sm:$0xff] %v14386_v1  ;;  %v849_v43 = vrot.slane %v14371_v22, %v14017_v61  ;;  %12665 = vrsqrt.f32 %v440_v11  ;;  %v1472_v42 = vsel %vm204_vm1, %v1342_v15, 0.0  ;;  %v1128_v10 = vrot.slane %v838_v50, %v14032_v30  ;;  %v13538_v11 = vld [vmem:[%s19336_s1 + $0x90] sm:$0xf] }
  0xfd   :  { %1467 = vadd.xlane.f32.xlu1 %v1466_v46  ;;  %v841_v46 = vcombine.high %v837_v39, %v837_v39  ;;  %v12658_v9 = vpop.eup %12657  ;;  %v14400_v35 = vmul.f32 %v13537_v0, %v12654_v25  ;;  %12667 = vrsqrt.f32 %v439_v8  ;;  %v441_v16 = vmax.f32 %v339_v28, 1e-24 }
  0xfe   :  { %1464 = vadd.xlane.f32.xlu0 %v1463_v37  ;;  %v348_v45 = vpop.xlane.xlu1 %347  ;;  %v1344_v14 = vmul.f32 %v1132_v32, %v14379_v41  ;;  %v14406_v37 = vmul.f32 %v13538_v11, %v12656_v62  ;;  %v1469_v50 = vsel %vm204_vm1, %v1341_v20, 0.0  ;;  %v1343_v15 = vmul.f32 %v1128_v10, %v14386_v1  ;;  %v13539_v62 = vld [vmem:[%s19336_s1 + $0x9c] sm:$0xf]  ;;  %v13540_v1 = vld [vmem:[%s19336_s1 + $0x98] sm:$0xf] }
  0xff   :  { %v345_v58 = vpop.xlane.xlu0 %344  ;;  %19770 = vst [vmem:[#allocation45_spill] sm:$0xff] %v14400_v35  ;;  %v842_v34 = vcombine.high %v14371_v22, %v14371_v22  ;;  %v12660_v25 = vpop.eup %12659  ;;  %12669 = vrsqrt.f32 %v442_v24  ;;  %v1140_v32 = vrot.slane %v837_v39, %v14032_v30  ;;  %v1136_v0 = vrot.slane %v823_v44, %v14032_v30 }
 0x100   :  { %19771 = vst [vmem:[#allocation46_spill] sm:$0xff] %v14406_v37  ;;  %v857_v41 = vcombine.high %v849_v43, %v849_v43  ;;  %v14417_v20 = vmul.f32 %v13539_v62, %v12658_v9  ;;  %v1148_v10 = vrot.slane %v841_v46, %v14032_v30  ;;  %v839_v11 = vcombine.high %v823_v44, %v823_v44 }
 0x101   :  { %1473 = vadd.xlane.f32.xlu1 %v1472_v42  ;;  %v444_v42 = vmax.f32 %v348_v45, 1e-24  ;;  %12671 = vrsqrt.f32 %v441_v16  ;;  %v443_v24 = vmax.f32 %v345_v58, 1e-24  ;;  %v1346_v22 = vmul.f32 %v1140_v32, %v14400_v35  ;;  %v13541_v58 = vld [vmem:[%s19335_s0 + $0x30] sm:$0xff] }
 0x102   :  { %1470 = vadd.xlane.f32.xlu0 %v1469_v50  ;;  %v354_v28 = vpop.xlane.xlu1 %353  ;;  %19772 = vst [vmem:[#allocation47_spill] sm:$0xff] %v14417_v20  ;;  %v1478_v50 = vsel %vm204_vm1, %v1344_v14, 0.0  ;;  %v12662_v39 = vpop.eup %12661  ;;  %v14425_v51 = vmul.f32 %v13540_v1, %v12660_v25  ;;  %v1475_v9 = vsel %vm204_vm1, %v1343_v15, 0.0  ;;  %v1345_v45 = vmul.f32 %v1136_v0, %v14406_v37  ;;  %v13542_v0 = vld [vmem:[%s19336_s1 + $0xa4] sm:$0xf] }
 0x103   :  { %v351_v8 = vpop.xlane.xlu0 %350  ;;  %v856_v44 = vrot.slane %v842_v34, %v14017_v61  ;;  %v12664_v46 = vpop.eup %12663  ;;  %12673 = vrsqrt.f32 %v123_v6  ;;  %v14434_v16 = vmul.f32 %v13541_v58, %v14355_v54  ;;  %v879_v25 = vrot.slane %v857_v41, %v14017_v61  ;;  %v13543_v41 = vld [vmem:[%s19336_s1 + $0xa0] sm:$0xf] }
 0x104   :  { %19773 = vst [vmem:[#allocation48_spill] sm:$0xff] %v14425_v51  ;;  %v865_v15 = vrot.slane %v849_v43, %v14017_v61  ;;  %12675 = vrsqrt.f32 %v444_v42  ;;  %v446_v32 = vmax.f32 %v354_v28, 1e-24  ;;  %v1348_v34 = vmul.f32 %v1148_v10, %v14417_v20 }
 0x105   :  { %1479 = vadd.xlane.f32.xlu1 %v1478_v50  ;;  %19774 = vst [vmem:[#allocation49_spill] sm:$0xff] %v14434_v16  ;;  %v1144_v6 = vrot.slane %v839_v11, %v14032_v30  ;;  %v14443_v62 = vmul.f32 %v13542_v0, %v12662_v39  ;;  %12677 = vrsqrt.f32 %v443_v24  ;;  %v445_v54 = vmax.f32 %v351_v8, 1e-24 }
 0x106   :  { %1476 = vadd.xlane.f32.xlu0 %v1475_v9  ;;  %v360_v14 = vpop.xlane.xlu1 %359  ;;  %v1484_v50 = vsel %vm204_vm1, %v1346_v22, 0.0  ;;  %v12666_v9 = vpop.eup %12665  ;;  %v14449_v43 = vmul.f32 %v13543_v41, %v12664_v46  ;;  %v1481_v28 = vsel %vm204_vm1, %v1345_v45, 0.0  ;;  %v858_v10 = vcombine.high %v856_v44, %v856_v44 }
 0x107   :  { %v357_v1 = vpop.xlane.xlu0 %356  ;;  %19775 = vst [vmem:[#allocation50_spill] sm:$0xff] %v14443_v62  ;;  %v1347_v42 = vmul.f32 %v1144_v6, %v14425_v51  ;;  %v12668_v11 = vpop.eup %12667  ;;  %v448_v39 = vmax.f32 %v360_v14, 1e-24  ;;  %v1156_v22 = vrot.slane %v879_v25, %v14032_v30  ;;  %v1152_v58 = vrot.slane %v865_v15, %v14032_v30  ;;  %v13544_v14 = vld [vmem:[%s19336_s1 + $0xac] sm:$0xf] }
 0x108   :  { %19776 = vst [vmem:[#allocation51_spill] sm:$0xff] %v14449_v43  ;;  %v889_v0 = vcombine.high %v879_v25, %v879_v25  ;;  %12679 = vrsqrt.f32 %v446_v32  ;;  %v1490_v46 = vsel %vm204_vm1, %v1348_v34, 0.0  ;;  %v887_v41 = vcombine.high %v865_v15, %v865_v15  ;;  %v13545_v25 = vld [vmem:[%s19336_s1 + $0xa8] sm:$0xf] }
 0x109   :  { %1485 = vadd.xlane.f32.xlu1 %v1484_v50  ;;  %v14458_v45 = vrot.slane %v14434_v16, %v14017_v61  ;;  %v12670_v6 = vpop.eup %12669  ;;  %v14463_v50 = vmul.f32 %v13544_v14, %v12666_v9  ;;  %12681 = vrsqrt.f32 %v445_v54  ;;  %v1350_v20 = vmul.f32 %v1156_v22, %v14443_v62 }
 0x10a   :  { %1482 = vadd.xlane.f32.xlu0 %v1481_v28  ;;  %v366_v24 = vpop.xlane.xlu1 %365  ;;  %v447_v28 = vmax.f32 %v357_v1, 1e-24  ;;  %v14469_v15 = vmul.f32 %v13545_v25, %v12668_v11  ;;  %v1487_v32 = vsel %vm204_vm1, %v1347_v42, 0.0  ;;  %v1349_v34 = vmul.f32 %v1152_v58, %v14449_v43  ;;  %v13546_v11 = vld [vmem:[%s19336_s1 + $0xb4] sm:$0xf] }
 0x10b   :  { %v363_v8 = vpop.xlane.xlu0 %362  ;;  %19777 = vst [vmem:[#allocation52_spill] sm:$0xff] %v14463_v50  ;;  %v886_v51 = vrot.slane %v858_v10, %v14017_v61  ;;  %v12672_v35 = vpop.eup %12671  ;;  %12683 = vrsqrt.f32 %v448_v39  ;;  %v1164_v9 = vrot.slane %v889_v0, %v14032_v30  ;;  %v872_v22 = vrot.slane %v856_v44, %v14017_v61 }
 0x10c   :  { %19778 = vst [vmem:[#allocation53_spill] sm:$0xff] %v14469_v15  ;;  %v450_v42 = vmax.f32 %v366_v24, 1e-24  ;;  %v1160_v58 = vrot.slane %v887_v41, %v14032_v30  ;;  %v906_v10 = vcombine.high %v14458_v45, %v14458_v45  ;;  %12685 = vrsqrt.f32 %v447_v28 }
 0x10d   :  { %1491 = vadd.xlane.f32.xlu1 %v1490_v46  ;;  %v14479_v46 = vmul.f32 %v13546_v11, %v12670_v6  ;;  %v12674_v39 = vpop.eup %12673  ;;  %v449_v14 = vmax.f32 %v363_v8, 1e-24  ;;  %v1496_v25 = vsel %vm204_vm1, %v1350_v20, 0.0  ;;  %v1352_v0 = vmul.f32 %v1164_v9, %v14463_v50 }
 0x10e   :  { %1488 = vadd.xlane.f32.xlu0 %v1487_v32  ;;  %v372_v54 = vpop.xlane.xlu1 %371  ;;  %v12676_v44 = vpop.eup %12675  ;;  %v13547_v32 = vld [vmem:[%s19336_s1 + $0xb0] sm:$0xf]  ;;  %v1493_v24 = vsel %vm204_vm1, %v1349_v34, 0.0  ;;  %v1351_v41 = vmul.f32 %v1160_v58, %v14469_v15  ;;  %v1172_v11 = vrot.slane %v886_v51, %v14032_v30  ;;  %v1168_v9 = vrot.slane %v872_v22, %v14032_v30  ;;  %v13548_v58 = vld [vmem:[%s19336_s1 + $0xbc] sm:$0xf] }
 0x10f   :  { %v369_v1 = vpop.xlane.xlu0 %368  ;;  %19779 = vst [vmem:[#allocation54_spill] sm:$0xff] %v14479_v46  ;;  %v14489_v6 = vmul.f32 %v13547_v32, %v12672_v35  ;;  %v12678_v28 = vpop.eup %12677  ;;  %v890_v50 = vcombine.high %v886_v51, %v886_v51  ;;  %v888_v62 = vcombine.high %v872_v22, %v872_v22  ;;  %v891_v43 = vcombine.high %v14434_v16, %v14434_v16 }
 0x110   :  { %12687 = vrsqrt.f32 %v450_v42  ;;  %v452_v35 = vmax.f32 %v372_v54, 1e-24  ;;  %v928_v34 = vrot.slane %v906_v10, %v14017_v61  ;;  %v14502_v32 = vmul.f32 %v13548_v58, %v12676_v44  ;;  %v13549_v42 = vld [vmem:[%s19336_s1 + $0xb8] sm:$0xf] }
 0x111   :  { %19780 = vst [vmem:[#allocation55_spill] sm:$0xff] %v14489_v6  ;;  %1497 = vadd.xlane.f32.xlu1 %v1496_v25  ;;  %v1354_v25 = vmul.f32 %v1172_v11, %v14479_v46  ;;  %12689 = vrsqrt.f32 %v449_v14  ;;  %v1502_v51 = vsel %vm204_vm1, %v1352_v0, 0.0  ;;  %v14508_v54 = vmul.f32 %v13549_v42, %v12678_v28 }
 0x112   :  { %1494 = vadd.xlane.f32.xlu0 %v1493_v24  ;;  %v378_v8 = vpop.xlane.xlu1 %377  ;;  %19781 = vst [vmem:[#allocation56_spill] sm:$0xff] %v14502_v32  ;;  %v451_v24 = vmax.f32 %v369_v1, 1e-24  ;;  %v12680_v22 = vpop.eup %12679  ;;  %v1499_v10 = vsel %vm204_vm1, %v1351_v41, 0.0  ;;  %v1353_v11 = vmul.f32 %v1168_v9, %v14489_v6  ;;  %v1180_v1 = vrot.slane %v890_v50, %v14032_v30  ;;  %v13550_v9 = vld [vmem:[%s19336_s1 + $0xc4] sm:$0xf] }
 0x113   :  { %v375_v20 = vpop.xlane.xlu0 %374  ;;  %19782 = vst [vmem:[#allocation57_spill] sm:$0xff] %v14508_v54  ;;  %v12682_v16 = vpop.eup %12681  ;;  %v1176_v14 = vrot.slane %v888_v62, %v14032_v30  ;;  %v914_v0 = vrot.slane %v14458_v45, %v14017_v61  ;;  %v905_v46 = vrot.slane %v891_v43, %v14017_v61  ;;  %12691 = vrsqrt.f32 %v452_v35  ;;  %v13551_v43 = vld [vmem:[%s19335_s0 + $0x38] sm:$0xff] }
 0x114   :  { %v454_v28 = vmax.f32 %v378_v8, 1e-24  ;;  %v938_v41 = vcombine.high %v928_v34, %v928_v34  ;;  %12693 = vrsqrt.f32 %v451_v24  ;;  %v453_v50 = vmax.f32 %v375_v20, 1e-24  ;;  %v13552_v8 = vld [vmem:[%s19336_s1 + $0xc0] sm:$0xf] }
 0x115   :  { %1503 = vadd.xlane.f32.xlu1 %v1502_v51  ;;  %v1508_v51 = vsel %vm204_vm1, %v1354_v25, 0.0  ;;  %v12684_v42 = vpop.eup %12683  ;;  %v1356_v62 = vmul.f32 %v1180_v1, %v14502_v32  ;;  %v14527_v45 = vmul.f32 %v13551_v43, %v12674_v39  ;;  %v14532_v35 = vmul.f32 %v13552_v8, %v12682_v16  ;;  %v13553_v32 = vld [vmem:[%s19336_s1 + $0xcc] sm:$0xf] }
 0x116   :  { %1500 = vadd.xlane.f32.xlu0 %v1499_v10  ;;  %v384_v44 = vpop.xlane.xlu1 %383  ;;  %v14521_v10 = vmul.f32 %v13550_v9, %v12680_v22  ;;  %v1505_v25 = vsel %vm204_vm1, %v1353_v11, 0.0  ;;  %v1355_v24 = vmul.f32 %v1176_v14, %v14508_v54  ;;  %v12686_v20 = vpop.eup %12685  ;;  %v1188_v1 = vrot.slane %v928_v34, %v14032_v30 }
 0x117   :  { %v381_v58 = vpop.xlane.xlu0 %380  ;;  %19784 = vst [vmem:[#allocation59_spill] sm:$0xff] %v14527_v45  ;;  %19785 = vst [vmem:[#allocation60_spill] sm:$0xff] %v14532_v35  ;;  %v1184_v9 = vrot.slane %v914_v0, %v14032_v30  ;;  %v936_v39 = vcombine.high %v914_v0, %v914_v0  ;;  %v907_v43 = vcombine.high %v905_v46, %v905_v46  ;;  %12695 = vrsqrt.f32 %v454_v28  ;;  %v13554_v0 = vld [vmem:[%s19336_s1 + $0xc8] sm:$0xf] }
 0x118   :  { %19783 = vst [vmem:[#allocation58_spill] sm:$0xff] %v14521_v10  ;;  %v14541_v16 = vmul.f32 %v13553_v32, %v12684_v42  ;;  %v1196_v14 = vrot.slane %v938_v41, %v14032_v30  ;;  %12697 = vrsqrt.f32 %v453_v50  ;;  %v455_v8 = vmax.f32 %v381_v58, 1e-24 }
 0x119   :  { %1509 = vadd.xlane.f32.xlu1 %v1508_v51  ;;  %v456_v51 = vmax.f32 %v384_v44, 1e-24  ;;  %v1358_v34 = vmul.f32 %v1188_v1, %v14521_v10  ;;  %v14549_v6 = vmul.f32 %v13554_v0, %v12686_v20  ;;  %v1511_v32 = vsel %vm204_vm1, %v1355_v24, 0.0  ;;  %v13555_v24 = vld [vmem:[%s19336_s1 + $0xd4] sm:$0xf] }
 0x11a   :  { %1506 = vadd.xlane.f32.xlu0 %v1505_v25  ;;  %v390_v22 = vpop.xlane.xlu1 %389  ;;  %19786 = vst [vmem:[#allocation61_spill] sm:$0xff] %v14541_v16  ;;  %v1514_v25 = vsel %vm204_vm1, %v1356_v62, 0.0  ;;  %v12688_v54 = vpop.eup %12687  ;;  %v1357_v44 = vmul.f32 %v1184_v9, %v14532_v35  ;;  %v921_v28 = vrot.slane %v905_v46, %v14017_v61  ;;  %v935_v58 = vrot.slane %v907_v43, %v14017_v61 }
 0x11b   :  { %v387_v11 = vpop.xlane.xlu0 %386  ;;  %19787 = vst [vmem:[#allocation62_spill] sm:$0xff] %v14549_v6  ;;  %v12690_v41 = vpop.eup %12689  ;;  %v947_v42 = vrot.slane %v14527_v45, %v14017_v61  ;;  %12699 = vrsqrt.f32 %v456_v51  ;;  %v458_v50 = vmax.f32 %v390_v22, 1e-24  ;;  %v1360_v62 = vmul.f32 %v1196_v14, %v14541_v16  ;;  %v13556_v22 = vld [vmem:[%s19336_s1 + $0xd0] sm:$0xf] }
 0x11c   :  { %v1192_v20 = vrot.slane %v936_v39, %v14032_v30  ;;  %v14562_v1 = vmul.f32 %v13555_v24, %v12688_v54  ;;  %12701 = vrsqrt.f32 %v455_v8  ;;  %v457_v46 = vmax.f32 %v387_v11, 1e-24 }
 0x11d   :  { %1515 = vadd.xlane.f32.xlu1 %v1514_v25  ;;  %v1520_v43 = vsel %vm204_vm1, %v1358_v34, 0.0  ;;  %v12692_v25 = vpop.eup %12691  ;;  %v14568_v51 = vmul.f32 %v13556_v22, %v12690_v41  ;;  %v1517_v39 = vsel %vm204_vm1, %v1357_v44, 0.0  ;;  %v1200_v54 = vrot.slane %v921_v28, %v14032_v30  ;;  %v13557_v44 = vld [vmem:[%s19336_s1 + $0xdc] sm:$0xf] }
 0x11e   :  { %1512 = vadd.xlane.f32.xlu0 %v1511_v32  ;;  %19788 = vst [vmem:[#allocation63_spill] sm:$0xff] %v14562_v1  ;;  %v396_v9 = vpop.xlane.xlu1 %395  ;;  %v1359_v0 = vmul.f32 %v1192_v20, %v14549_v6  ;;  %v12694_v8 = vpop.eup %12693  ;;  %v1204_v11 = vrot.slane %v935_v58, %v14032_v30  ;;  %v939_v34 = vcombine.high %v935_v58, %v935_v58  ;;  %12703 = vrsqrt.f32 %v458_v50 }
 0x11f   :  { %19789 = vst [vmem:[#allocation64_spill] sm:$0xff] %v14568_v51  ;;  %v393_v14 = vpop.xlane.xlu0 %392  ;;  %v955_v32 = vcombine.high %v947_v42, %v947_v42  ;;  %v940_v24 = vcombine.high %v14527_v45, %v14527_v45  ;;  %v460_v41 = vmax.f32 %v396_v9, 1e-24  ;;  %v1526_v22 = vsel %vm204_vm1, %v1360_v62, 0.0  ;;  %v13558_v45 = vld [vmem:[%s19336_s1 + $0xd8] sm:$0xf] }
 0x120   :  { %v14580_v20 = vmul.f32 %v13557_v44, %v12692_v25  ;;  %12705 = vrsqrt.f32 %v457_v46  ;;  %v1362_v16 = vmul.f32 %v1204_v11, %v14562_v1  ;;  %v14586_v50 = vmul.f32 %v13558_v45, %v12694_v8  ;;  %v13559_v45 = vld [vmem:[%s19336_s1 + $0xe4] sm:$0xf] }
 0x121   :  { %1521 = vadd.xlane.f32.xlu1 %v1520_v43  ;;  %v937_v43 = vcombine.high %v921_v28, %v921_v28  ;;  %v12696_v58 = vpop.eup %12695  ;;  %v1523_v28 = vsel %vm204_vm1, %v1359_v0, 0.0  ;;  %v1361_v62 = vmul.f32 %v1200_v54, %v14568_v51  ;;  %v1212_v25 = vrot.slane %v939_v34, %v14032_v30 }
 0x122   :  { %1518 = vadd.xlane.f32.xlu0 %v1517_v39  ;;  %19790 = vst [vmem:[#allocation65_spill] sm:$0xff] %v14580_v20  ;;  %v459_v39 = vmax.f32 %v393_v14, 1e-24  ;;  %19791 = vst [vmem:[#allocation66_spill] sm:$0xff] %v14586_v50  ;;  %v12698_v9 = vpop.eup %12697  ;;  %v977_v46 = vrot.slane %v955_v32, %v14017_v61  ;;  %v954_v14 = vrot.slane %v940_v24, %v14017_v61  ;;  %12707 = vrsqrt.f32 %v460_v41  ;;  %v13560_v32 = vld [vmem:[%s19336_s1 + $0xe0] sm:$0xf] }
 0x123   :  { %v1208_v11 = vrot.slane %v937_v43, %v14032_v30  ;;  %v963_v44 = vrot.slane %v947_v42, %v14017_v61  ;;  %v14598_v0 = vmul.f32 %v13559_v45, %v12696_v58  ;;  %v1532_v54 = vsel %vm204_vm1, %v1362_v16, 0.0 }
 0x124   :  { %12709 = vrsqrt.f32 %v459_v39  ;;  %v1364_v8 = vmul.f32 %v1212_v25, %v14580_v20  ;;  %v14605_v24 = vmul.f32 %v13560_v32, %v12698_v9  ;;  %v1529_v42 = vsel %vm204_vm1, %v1361_v62, 0.0  ;;  %v13561_v25 = vld [vmem:[%s19336_s1 + $0xec] sm:$0xf] }
 0x125   :  { %1527 = vadd.xlane.f32.xlu1 %v1526_v22  ;;  %19792 = vst [vmem:[#allocation67_spill] sm:$0xff] %v14598_v0  ;;  %v12700_v34 = vpop.eup %12699  ;;  %v1363_v41 = vmul.f32 %v1208_v11, %v14586_v50  ;;  %v1220_v43 = vrot.slane %v977_v46, %v14032_v30  ;;  %v987_v39 = vcombine.high %v977_v46, %v977_v46 }
 0x126   :  { %1524 = vadd.xlane.f32.xlu0 %v1523_v28  ;;  %19793 = vst [vmem:[#allocation68_spill] sm:$0xff] %v14605_v24  ;;  %v12702_v22 = vpop.eup %12701  ;;  %v956_v16 = vcombine.high %v954_v14, %v954_v14  ;;  %v1216_v58 = vrot.slane %v963_v44, %v14032_v30  ;;  %v985_v28 = vcombine.high %v963_v44, %v963_v44  ;;  %v1538_v45 = vsel %vm204_vm1, %v1364_v8, 0.0 }
 0x127   :  { %v14614_v9 = vmul.f32 %v13561_v25, %v12700_v34  ;;  %v1366_v62 = vmul.f32 %v1220_v43, %v14598_v0  ;;  %v1535_v44 = vsel %vm204_vm1, %v1363_v41, 0.0  ;;  %v1228_v34 = vrot.slane %v987_v39, %v14032_v30  ;;  %v13564_v39 = vld [vmem:[%s19336_s1 + $0xf0] sm:$0xf] }
 0x128   :  { %v12704_v11 = vpop.eup %12703  ;;  %v1365_v32 = vmul.f32 %v1216_v58, %v14605_v24  ;;  %v984_v8 = vrot.slane %v956_v16, %v14017_v61  ;;  %v1224_v43 = vrot.slane %v985_v28, %v14032_v30  ;;  %v970_v25 = vrot.slane %v954_v14, %v14017_v61  ;;  %v13565_v61 = vld [vmem:[%s19336_s1 + $0xfc] sm:$0xf] }
 0x129   :  { %1533 = vadd.xlane.f32.xlu1 %v1532_v54  ;;  %19794 = vst [vmem:[#allocation69_spill] sm:$0xff] %v14614_v9  ;;  %v13562_v54 = vld [vmem:[%s19336_s1 + $0xe8] sm:$0xf]  ;;  %v1544_v41 = vsel %vm204_vm1, %v1366_v62, 0.0  ;;  %v1368_v58 = vmul.f32 %v1228_v34, %v14614_v9 }
 0x12a   :  { %1530 = vadd.xlane.f32.xlu0 %v1529_v42  ;;  %v14621_v46 = vmul.f32 %v13562_v54, %v12702_v22  ;;  %v12706_v42 = vpop.eup %12705  ;;  %v13563_v22 = vld [vmem:[%s19336_s1 + $0xf4] sm:$0xf]  ;;  %v1541_v14 = vsel %vm204_vm1, %v1365_v32, 0.0  ;;  %v1232_v62 = vrot.slane %v970_v25, %v14032_v30  ;;  %v986_v34 = vcombine.high %v970_v25, %v970_v25 }
 0x12b   :  { %v14632_v54 = vmul.f32 %v13563_v22, %v12704_v11  ;;  %v14639_v16 = vmul.f32 %v13564_v39, %v12706_v42  ;;  %v1236_v11 = vrot.slane %v984_v8, %v14032_v30  ;;  %v988_v22 = vcombine.high %v984_v8, %v984_v8 }
 0x12c   :  { %19795 = vst [vmem:[#allocation70_spill] sm:$0xff] %v14621_v46  ;;  %v1367_v28 = vmul.f32 %v1224_v43, %v14621_v46  ;;  %v1550_v42 = vsel %vm204_vm1, %v1368_v58, 0.0  ;;  %v13566_v43 = vld [vmem:[%s19336_s1 + $0xf8] sm:$0xf] }
 0x12d   :  { %1539 = vadd.xlane.f32.xlu1 %v1538_v45  ;;  %19796 = vst [vmem:[#allocation71_spill] sm:$0xff] %v14632_v54  ;;  %v12708_v45 = vpop.eup %12707  ;;  %19797 = vst [vmem:[#allocation72_spill] sm:$0xff] %v14639_v16  ;;  %v1370_v32 = vmul.f32 %v1236_v11, %v14632_v54  ;;  %v1369_v25 = vmul.f32 %v1232_v62, %v14639_v16  ;;  %v1244_v39 = vrot.slane %v988_v22, %v14032_v30 }
 0x12e   :  { %1536 = vadd.xlane.f32.xlu0 %v1535_v44  ;;  %v12710_v44 = vpop.eup %12709  ;;  %v14648_v9 = vmul.f32 %v13565_v61, %v12708_v45  ;;  %v1547_v8 = vsel %vm204_vm1, %v1367_v28, 0.0  ;;  %v1240_v61 = vrot.slane %v986_v34, %v14032_v30 }
 0x12f   :  { %v1556_v58 = vsel %vm204_vm1, %v1370_v32, 0.0 }
 0x130   :  { %19798 = vst [vmem:[#allocation73_spill] sm:$0xff] %v14648_v9  ;;  %v1372_v45 = vmul.f32 %v1244_v39, %v14648_v9 }
 0x131   :  { %1545 = vadd.xlane.f32.xlu1 %v1544_v41  ;;  %v14655_v41 = vmul.f32 %v13566_v43, %v12710_v44  ;;  %v19800_v43 = vlaneseq }
 0x132   :  { %1542 = vadd.xlane.f32.xlu0 %v1541_v14  ;;  %v1553_v14 = vsel %vm204_vm1, %v1369_v25, 0.0  ;;  %v1562_v11 = vsel %vm204_vm1, %v1372_v45, 0.0 }
 0x133   :  { %19799 = vst [vmem:[#allocation74_spill] sm:$0xff] %v14655_v41  ;;  %v1371_v44 = vmul.f32 %v1240_v61, %v14655_v41 }
 0x135   :  { %1551 = vadd.xlane.f32.xlu1 %v1550_v42  ;;  %v1559_v28 = vsel %vm204_vm1, %v1371_v44, 0.0 }
 0x136   :  { %1548 = vadd.xlane.f32.xlu0 %v1547_v8  ;;  %v1630_v8 = vand.u32 127, %v19800_v43 }
 0x138   :  { %v14683_v61 = vsub.s32 %v1630_v8, %v14011_v49 }
 0x139   :  { %1557 = vadd.xlane.f32.xlu1 %v1556_v58 }
 0x13a   :  { %1554 = vadd.xlane.f32.xlu0 %v1553_v14  ;;  %19801 = vst [vmem:[#allocation75_spill] sm:$0xff] %v14683_v61 }
 0x13d   :  { %1563 = vadd.xlane.f32.xlu1 %v1562_v11 }
 0x13e   :  { %1560 = vadd.xlane.f32.xlu0 %v1559_v28 }
 0x142   :  { %v14667_v62 = vpop.xlane.xlu1 %1377 }
 0x143   :  { %v14669_v22 = vpop.xlane.xlu0 %1374  ;;  %v1638_v14 = vrot.slane %v14667_v62, %v14683_v61 }
 0x144   :  { %v1634_v44 = vrot.slane %v14669_v22, %v14683_v61 }
 0x146   :  { %v1888_v8 = vsel %vm1887_vm2, %v1638_v14, %v1634_v44 }
 0x152   :  { %v14671_v34 = vpop.xlane.xlu1 %1401 }
 0x153   :  { %v14673_v42 = vpop.xlane.xlu0 %1398  ;;  %v1670_v9 = vrot.slane %v14671_v34, %v14683_v61 }
 0x154   :  { %v1666_v41 = vrot.slane %v14673_v42, %v14683_v61 }
 0x156   :  { %v14675_v32 = vpop.xlane.xlu1 %1383  ;;  %v1901_v24 = vsel %vm1887_vm2, %v1670_v9, %v1666_v41 }
 0x157   :  { %v14678_v25 = vpop.xlane.xlu0 %1380  ;;  %v1646_v54 = vrot.slane %v14675_v32, %v14683_v61 }
 0x158   :  { %v1642_v28 = vrot.slane %v14678_v25, %v14683_v61 }
 0x15a   :  { %v14680_v39 = vpop.xlane.xlu1 %1389  ;;  %v1890_v46 = vsel %vm1889_vm3, %v1642_v28, %v1888_v8 }
 0x15b   :  { %v14685_v58 = vpop.xlane.xlu0 %1386  ;;  %v1654_v20 = vrot.slane %v14680_v39, %v14683_v61  ;;  %v1892_v50 = vsel %vm1891_vm4, %v1646_v54, %v1890_v46 }
 0x15c   :  { %v1650_v0 = vrot.slane %v14685_v58, %v14683_v61 }
 0x15e   :  { %v14687_v45 = vpop.xlane.xlu1 %1407  ;;  %v1894_v1 = vsel %vm1893_vm5, %v1650_v0, %v1892_v50 }
 0x15f   :  { %v14693_v11 = vpop.xlane.xlu0 %1404  ;;  %v1678_v28 = vrot.slane %v14687_v45, %v14683_v61 }
 0x160   :  { %v1674_v14 = vrot.slane %v14693_v11, %v14683_v61 }
 0x162   :  { %v14697_v43 = vpop.xlane.xlu1 %1413  ;;  %v1902_v51 = vsel %vm1889_vm3, %v1674_v14, %v1901_v24  ;;  %v1896_v24 = vsel %vm1895_vm6, %v1654_v20, %v1894_v1 }
 0x163   :  { %v14706_v16 = vpop.xlane.xlu0 %1410  ;;  %v1686_v46 = vrot.slane %v14697_v43, %v14683_v61  ;;  %v1903_v54 = vsel %vm1891_vm4, %v1678_v28, %v1902_v51 }
 0x164   :  { %v1682_v6 = vrot.slane %v14706_v16, %v14683_v61 }
 0x166   :  { %v14713_v44 = vpop.xlane.xlu1 %1425  ;;  %v1904_v14 = vsel %vm1893_vm5, %v1682_v6, %v1903_v54 }
 0x167   :  { %v14721_v8 = vpop.xlane.xlu0 %1392  ;;  %v1905_v1 = vsel %vm1895_vm6, %v1686_v46, %v1904_v14 }
 0x168   :  { %v1658_v9 = vrot.slane %v14721_v8, %v14683_v61 }
 0x16a   :  { %v14729_v41 = vpop.xlane.xlu1 %1395  ;;  %v1898_v35 = vsel %vm1897_vm7, %v1658_v9, %v1896_v24 }
 0x16b   :  { %v1662_v50 = vrot.slane %v14729_v41, %v14683_v61  ;;  %v14736_v0 = vpop.xlane.xlu0 %1416 }
 0x16c   :  { %v1690_v10 = vrot.slane %v14736_v0, %v14683_v61 }
 0x16d   :  { %v1900_v15 = vsel %vm1899_vm8, %v1662_v50, %v1898_v35 }
 0x16e   :  { %v14744_v37 = vpop.xlane.xlu1 %1419  ;;  %v1959_v51 = vsel %vm1958_vm9, %v1900_v15, -inf  ;;  %v1906_v6 = vsel %vm1897_vm7, %v1690_v10, %v1905_v1  ;;  %v1702_v15 = vrot.slane %v14713_v44, %v14683_v61 }
 0x16f   :  { %v1694_v28 = vrot.slane %v14744_v37, %v14683_v61  ;;  %v14749_v36 = vpop.xlane.xlu0 %1422  ;;  %1960 = vmax.xlane.f32.xlu0 %v1959_v51 }
 0x170   :  { %v1698_v20 = vrot.slane %v14749_v36, %v14683_v61 }
 0x171   :  { %v1907_v9 = vsel %vm1899_vm8, %v1694_v28, %v1906_v6 }
 0x172   :  { %v14756_v35 = vpop.xlane.xlu1 %1431  ;;  %v1962_v54 = vsel %vm1958_vm9, %v1907_v9, -inf  ;;  %v1908_v10 = vsel %vm1887_vm2, %v1702_v15, %v1698_v20 }
 0x173   :  { %v14761_v50 = vpop.xlane.xlu0 %1428  ;;  %1963 = vmax.xlane.f32.xlu1 %v1962_v54  ;;  %v1710_v24 = vrot.slane %v14756_v35, %v14683_v61 }
 0x174   :  { %v1706_v46 = vrot.slane %v14761_v50, %v14683_v61 }
 0x176   :  { %v1909_v14 = vsel %vm1889_vm3, %v1706_v46, %v1908_v10  ;;  %v14769_v51 = vpop.xlane.xlu1 %1437 }
 0x177   :  { %v14771_v28 = vpop.xlane.xlu0 %1434  ;;  %v1718_v6 = vrot.slane %v14769_v51, %v14683_v61  ;;  %v1910_v9 = vsel %vm1891_vm4, %v1710_v24, %v1909_v14 }
 0x178   :  { %v1714_v1 = vrot.slane %v14771_v28, %v14683_v61 }
 0x17a   :  { %v1911_v54 = vsel %vm1893_vm5, %v1714_v1, %v1910_v9  ;;  %v14779_v20 = vpop.xlane.xlu1 %1443 }
 0x17b   :  { %v1726_v15 = vrot.slane %v14779_v20, %v14683_v61  ;;  %v14783_v46 = vpop.xlane.xlu0 %1440  ;;  %v1912_v40 = vsel %vm1895_vm6, %v1718_v6, %v1911_v54 }
 0x17c   :  { %v1722_v10 = vrot.slane %v14783_v46, %v14683_v61 }
 0x17e   :  { %v14788_v52 = vpop.xlane.xlu1 %1449  ;;  %v1913_v18 = vsel %vm1897_vm7, %v1722_v10, %v1912_v40 }
 0x17f   :  { %v14791_v33 = vpop.xlane.xlu0 %1446  ;;  %v1914_v24 = vsel %vm1899_vm8, %v1726_v15, %v1913_v18  ;;  %v1734_v1 = vrot.slane %v14788_v52, %v14683_v61 }
 0x180   :  { %v1965_v14 = vsel %vm1958_vm9, %v1914_v24, -inf  ;;  %v1730_v9 = vrot.slane %v14791_v33, %v14683_v61 }
 0x181   :  { %1966 = vmax.xlane.f32.xlu0 %v1965_v14 }
 0x182   :  { %v14799_v3 = vpop.xlane.xlu1 %1455  ;;  %v1915_v54 = vsel %vm1887_vm2, %v1734_v1, %v1730_v9 }
 0x183   :  { %v14801_v6 = vpop.xlane.xlu0 %1452  ;;  %v1742_v18 = vrot.slane %v14799_v3, %v14683_v61 }
 0x184   :  { %v1738_v40 = vrot.slane %v14801_v6, %v14683_v61 }
 0x186   :  { %v1916_v15 = vsel %vm1889_vm3, %v1738_v40, %v1915_v54  ;;  %v14809_v10 = vpop.xlane.xlu1 %1461 }
 0x187   :  { %v14811_v24 = vpop.xlane.xlu0 %1458  ;;  %v1750_v59 = vrot.slane %v14809_v10, %v14683_v61  ;;  %v1917_v4 = vsel %vm1891_vm4, %v1742_v18, %v1916_v15 }
 0x188   :  { %v1746_v14 = vrot.slane %v14811_v24, %v14683_v61 }
 0x18a   :  { %v1918_v31 = vsel %vm1893_vm5, %v1746_v14, %v1917_v4  ;;  %v14819_v1 = vpop.xlane.xlu1 %1467 }
 0x18b   :  { %v1758_v9 = vrot.slane %v14819_v1, %v14683_v61  ;;  %v14823_v40 = vpop.xlane.xlu0 %1464  ;;  %v1919_v17 = vsel %vm1895_vm6, %v1750_v59, %v1918_v31  ;;  %v13568_v59 = vmov 0  }
 0x18c   :  { %v1754_v54 = vrot.slane %v14823_v40, %v14683_v61  ;;  %12566 = vset.pattern.permute.xlu1 %v13568_v59  ;;  %12565 = vset.pattern.permute.xlu0 %v13568_v59 }
 0x18e   :  { %v14828_v21 = vpop.xlane.xlu1 %1473  ;;  %v1920_v29 = vsel %vm1897_vm7, %v1754_v54, %v1919_v17 }
 0x18f   :  { %v14831_v13 = vpop.xlane.xlu0 %1470  ;;  %v1921_v4 = vsel %vm1899_vm8, %v1758_v9, %v1920_v29  ;;  %v1766_v15 = vrot.slane %v14828_v21, %v14683_v61 }
 0x190   :  { %v1968_v18 = vsel %vm1958_vm9, %v1921_v4, -inf  ;;  %v1762_v14 = vrot.slane %v14831_v13, %v14683_v61 }
 0x191   :  { %1969 = vmax.xlane.f32.xlu1 %v1968_v18 }
 0x192   :  { %v14839_v55 = vpop.xlane.xlu1 %1479  ;;  %v1922_v29 = vsel %vm1887_vm2, %v1766_v15, %v1762_v14 }
 0x193   :  { %v14841_v31 = vpop.xlane.xlu0 %1476  ;;  %v1774_v9 = vrot.slane %v14839_v55, %v14683_v61 }
 0x194   :  { %v1770_v17 = vrot.slane %v14841_v31, %v14683_v61 }
 0x196   :  { %v1923_v54 = vsel %vm1889_vm3, %v1770_v17, %v1922_v29  ;;  %v14849_v4 = vpop.xlane.xlu1 %1485 }
 0x197   :  { %v14851_v18 = vpop.xlane.xlu0 %1482  ;;  %v1782_v59 = vrot.slane %v14849_v4, %v14683_v61  ;;  %v1924_v2 = vsel %vm1891_vm4, %v1774_v9, %v1923_v54 }
 0x198   :  { %v1778_v7 = vrot.slane %v14851_v18, %v14683_v61 }
 0x19a   :  { %v1925_v47 = vsel %vm1893_vm5, %v1778_v7, %v1924_v2  ;;  %v14859_v15 = vpop.xlane.xlu1 %1491 }
 0x19b   :  { %v1790_v14 = vrot.slane %v14859_v15, %v14683_v61  ;;  %v14863_v17 = vpop.xlane.xlu0 %1488  ;;  %v1926_v27 = vsel %vm1895_vm6, %v1782_v59, %v1925_v47 }
 0x19c   :  { %19802 = vst [vmem:[#allocation76_spill] sm:$0xff] %v14863_v17  ;;  %v1786_v29 = vrot.slane %v14863_v17, %v14683_v61 }
 0x19e   :  { %v14868_v23 = vpop.xlane.xlu1 %1497  ;;  %v1927_v48 = vsel %vm1897_vm7, %v1786_v29, %v1926_v27 }
 0x19f   :  { %v14871_v19 = vpop.xlane.xlu0 %1494  ;;  %v1928_v2 = vsel %vm1899_vm8, %v1790_v14, %v1927_v48  ;;  %v1798_v9 = vrot.slane %v14868_v23, %v14683_v61 }
 0x1a0   :  { %19803 = vst [vmem:[#allocation77_spill] sm:$0xff] %v14871_v19  ;;  %v1971_v7 = vsel %vm1958_vm9, %v1928_v2, -inf  ;;  %v1794_v54 = vrot.slane %v14871_v19, %v14683_v61 }
 0x1a1   :  { %1972 = vmax.xlane.f32.xlu0 %v1971_v7 }
 0x1a2   :  { %v14879_v5 = vpop.xlane.xlu1 %1503  ;;  %v1929_v59 = vsel %vm1887_vm2, %v1798_v9, %v1794_v54 }
 0x1a3   :  { %v14881_v47 = vpop.xlane.xlu0 %1500  ;;  %v1806_v48 = vrot.slane %v14879_v5, %v14683_v61 }
 0x1a4   :  { %19804 = vst [vmem:[#allocation78_spill] sm:$0xff] %v14881_v47  ;;  %v1802_v27 = vrot.slane %v14881_v47, %v14683_v61 }
 0x1a6   :  { %v1930_v14 = vsel %vm1889_vm3, %v1802_v27, %v1929_v59  ;;  %v14889_v29 = vpop.xlane.xlu1 %1509 }
 0x1a7   :  { %v14891_v2 = vpop.xlane.xlu0 %1506  ;;  %v1814_v26 = vrot.slane %v14889_v29, %v14683_v61  ;;  %v1931_v53 = vsel %vm1891_vm4, %v1806_v48, %v1930_v14 }
 0x1a8   :  { %19805 = vst [vmem:[#allocation79_spill] sm:$0xff] %v14891_v2  ;;  %v1810_v7 = vrot.slane %v14891_v2, %v14683_v61 }
 0x1aa   :  { %v1932_v12 = vsel %vm1893_vm5, %v1810_v7, %v1931_v53  ;;  %v14899_v9 = vpop.xlane.xlu1 %1515 }
 0x1ab   :  { %v1822_v54 = vrot.slane %v14899_v9, %v14683_v61  ;;  %v14903_v27 = vpop.xlane.xlu0 %1512  ;;  %v1933_v60 = vsel %vm1895_vm6, %v1814_v26, %v1932_v12 }
 0x1ac   :  { %19806 = vst [vmem:[#allocation80_spill] sm:$0xff] %v14903_v27  ;;  %v1818_v59 = vrot.slane %v14903_v27, %v14683_v61 }
 0x1ae   :  { %v14908_v56 = vpop.xlane.xlu1 %1521  ;;  %v1934_v38 = vsel %vm1897_vm7, %v1818_v59, %v1933_v60 }
 0x1af   :  { %19807 = vst [vmem:[#allocation81_spill] sm:$0xff] %v14908_v56  ;;  %v14911_v63 = vpop.xlane.xlu0 %1518  ;;  %v1935_v53 = vsel %vm1899_vm8, %v1822_v54, %v1934_v38  ;;  %v1830_v14 = vrot.slane %v14908_v56, %v14683_v61 }
 0x1b0   :  { %19808 = vst [vmem:[#allocation82_spill] sm:$0xff] %v14911_v63  ;;  %v1974_v48 = vsel %vm1958_vm9, %v1935_v53, -inf  ;;  %v1826_v7 = vrot.slane %v14911_v63, %v14683_v61 }
 0x1b1   :  { %1975 = vmax.xlane.f32.xlu1 %v1974_v48 }
 0x1b2   :  { %v14919_v57 = vpop.xlane.xlu1 %1527  ;;  %v1936_v12 = vsel %vm1887_vm2, %v1830_v14, %v1826_v7 }
 0x1b3   :  { %19809 = vst [vmem:[#allocation83_spill] sm:$0xff] %v14919_v57  ;;  %v14921_v26 = vpop.xlane.xlu0 %1524  ;;  %v1838_v38 = vrot.slane %v14919_v57, %v14683_v61 }
 0x1b4   :  { %19810 = vst [vmem:[#allocation84_spill] sm:$0xff] %v14921_v26  ;;  %v1834_v60 = vrot.slane %v14921_v26, %v14683_v61 }
 0x1b6   :  { %v1937_v54 = vsel %vm1889_vm3, %v1834_v60, %v1936_v12  ;;  %v14929_v59 = vpop.xlane.xlu1 %1533 }
 0x1b7   :  { %19811 = vst [vmem:[#allocation85_spill] sm:$0xff] %v14929_v59  ;;  %v14931_v53 = vpop.xlane.xlu0 %1530  ;;  %v1846_v63 = vrot.slane %v14929_v59, %v14683_v61  ;;  %v1938_v27 = vsel %vm1891_vm4, %v1838_v38, %v1937_v54 }
 0x1b8   :  { %19812 = vst [vmem:[#allocation86_spill] sm:$0xff] %v14931_v53  ;;  %v1842_v48 = vrot.slane %v14931_v53, %v14683_v61 }
 0x1ba   :  { %v1939_v26 = vsel %vm1893_vm5, %v1842_v48, %v1938_v27  ;;  %v14939_v14 = vpop.xlane.xlu1 %1539 }
 0x1bb   :  { %19813 = vst [vmem:[#allocation87_spill] sm:$0xff] %v14939_v14  ;;  %v1854_v7 = vrot.slane %v14939_v14, %v14683_v61  ;;  %v14943_v60 = vpop.xlane.xlu0 %1536  ;;  %v1940_v2 = vsel %vm1895_vm6, %v1846_v63, %v1939_v26 }
 0x1bc   :  { %19814 = vst [vmem:[#allocation88_spill] sm:$0xff] %v14943_v60  ;;  %v1850_v12 = vrot.slane %v14943_v60, %v14683_v61 }
 0x1be   :  { %v14948_v53 = vpop.xlane.xlu1 %1545  ;;  %v1941_v47 = vsel %vm1897_vm7, %v1850_v12, %v1940_v2 }
 0x1bf   :  { %19815 = vst [vmem:[#allocation89_spill] sm:$0xff] %v14948_v53  ;;  %v14951_v59 = vpop.xlane.xlu0 %1542  ;;  %v1942_v27 = vsel %vm1899_vm8, %v1854_v7, %v1941_v47  ;;  %v1862_v54 = vrot.slane %v14948_v53, %v14683_v61 }
 0x1c0   :  { %19816 = vst [vmem:[#allocation90_spill] sm:$0xff] %v14951_v59  ;;  %v1977_v38 = vsel %vm1958_vm9, %v1942_v27, -inf  ;;  %v1858_v48 = vrot.slane %v14951_v59, %v14683_v61 }
 0x1c1   :  { %1978 = vmax.xlane.f32.xlu0 %v1977_v38 }
 0x1c2   :  { %v14959_v60 = vpop.xlane.xlu1 %1551  ;;  %v1943_v26 = vsel %vm1887_vm2, %v1862_v54, %v1858_v48 }
 0x1c3   :  { %19817 = vst [vmem:[#allocation91_spill] sm:$0xff] %v14959_v60  ;;  %v14961_v63 = vpop.xlane.xlu0 %1548  ;;  %v1870_v47 = vrot.slane %v14959_v60, %v14683_v61 }
 0x1c4   :  { %19818 = vst [vmem:[#allocation92_spill] sm:$0xff] %v14961_v63  ;;  %v1866_v2 = vrot.slane %v14961_v63, %v14683_v61 }
 0x1c6   :  { %v1944_v7 = vsel %vm1889_vm3, %v1866_v2, %v1943_v26  ;;  %v14969_v12 = vpop.xlane.xlu1 %1557 }
 0x1c7   :  { %19819 = vst [vmem:[#allocation93_spill] sm:$0xff] %v14969_v12  ;;  %v14971_v27 = vpop.xlane.xlu0 %1554  ;;  %v1878_v59 = vrot.slane %v14969_v12, %v14683_v61  ;;  %v1945_v53 = vsel %vm1891_vm4, %v1870_v47, %v1944_v7  ;;  %v14995_v7 = vsub.s32 2, %v14011_v49 }
 0x1c8   :  { %19820 = vst [vmem:[#allocation94_spill] sm:$0xff] %v14971_v27  ;;  %v1874_v38 = vrot.slane %v14971_v27, %v14683_v61 }
 0x1c9   :  { %19824 = vst [vmem:[#allocation98_spill] sm:$0xff] %v14995_v7 }
 0x1ca   :  { %v1946_v63 = vsel %vm1893_vm5, %v1874_v38, %v1945_v53  ;;  %v14979_v54 = vpop.xlane.xlu1 %1563  ;;  %v14992_v53 = vsub.s32 1, %v14011_v49  ;;  %v14998_v38 = vsub.s32 3, %v14011_v49 }
 0x1cb   :  { %19821 = vst [vmem:[#allocation95_spill] sm:$0xff] %v14979_v54  ;;  %v1886_v48 = vrot.slane %v14979_v54, %v14683_v61  ;;  %v14983_v2 = vpop.xlane.xlu0 %1560  ;;  %v1947_v60 = vsel %vm1895_vm6, %v1878_v59, %v1946_v63  ;;  %v15004_v63 = vsub.s32 4, %v14011_v49 }
 0x1cc   :  { %19822 = vst [vmem:[#allocation96_spill] sm:$0xff] %v14983_v2  ;;  %v1882_v26 = vrot.slane %v14983_v2, %v14683_v61  ;;  %19823 = vst [vmem:[#allocation97_spill] sm:$0xff] %v14992_v53 }
 0x1cd   :  { %19825 = vst [vmem:[#allocation99_spill] sm:$0xff] %v14998_v38  ;;  %19826 = vst [vmem:[#allocation100_spill] sm:$0xff] %v15004_v63 }
 0x1ce   :  { %v1948_v27 = vsel %vm1897_vm7, %v1882_v26, %v1947_v60 }
 0x1cf   :  { %v1949_v12 = vsel %vm1899_vm8, %v1886_v48, %v1948_v27 }
 0x1d0   :  { %v1980_v47 = vsel %vm1958_vm9, %v1949_v12, -inf }
 0x1d1   :  { %1981 = vmax.xlane.f32.xlu1 %v1980_v47 }
 0x1fc   :  { %v1961_v54 = vpop.xlane.xlu0 %1960 }
 0x1fd   :  { %v1994_v61 = vrot.slane %v1961_v54, %v14032_v30  ;;  %v1998_v59 = vrot.slane %v1961_v54, %v14992_v53  ;;  %v2002_v60 = vrot.slane %v1961_v54, %v14995_v7  ;;  %v2006_v12 = vrot.slane %v1961_v54, %v14998_v38 }
 0x1fe   :  { %v2010_v57 = vrot.slane %v1961_v54, %v15004_v63 }
 0x1ff   :  { %v2311_v27 = vsub.f32 %v14669_v22, %v1994_v61  ;;  %v2312_v48 = vsub.f32 %v14667_v62, %v1998_v59  ;;  %v2313_v26 = vsub.f32 %v14678_v25, %v2002_v60  ;;  %v2314_v17 = vsub.f32 %v14675_v32, %v2006_v12 }
 0x200   :  { %v15010_v47 = vpop.xlane.xlu1 %1963  ;;  %v15019_v62 = vsub.s32 5, %v14011_v49  ;;  %v2315_v61 = vsub.f32 %v14685_v58, %v2010_v57 }
 0x201   :  { %v2375_v2 = vmul.f32 1.442695, %v2311_v27  ;;  %v2377_v14 = vmul.f32 1.442695, %v2312_v48  ;;  %v2030_v19 = vrot.slane %v15010_v47, %v14992_v53  ;;  %v2379_v56 = vmul.f32 1.442695, %v2313_v26 }
 0x202   :  { %v2038_v22 = vrot.slane %v15010_v47, %v14998_v38  ;;  %19827 = vst [vmem:[#allocation101_spill] sm:$0xff] %v15019_v62  ;;  %v2381_v59 = vmul.f32 1.442695, %v2314_v17  ;;  %v2046_v60 = vrot.slane %v15010_v47, %v15019_v62  ;;  %v2014_v12 = vrot.slane %v1961_v54, %v15019_v62 }
 0x203   :  { %12711 = vpow2.f32 %v2375_v2  ;;  %v2320_v25 = vsub.f32 %v14671_v34, %v2030_v19  ;;  %v15031_v27 = vsub.s32 7, %v14011_v49  ;;  %v2383_v19 = vmul.f32 1.442695, %v2315_v61 }
 0x204   :  { %12713 = vpow2.f32 %v2377_v14  ;;  %v2322_v32 = vsub.f32 %v14687_v45, %v2038_v22  ;;  %v15027_v14 = vsub.s32 6, %v14011_v49  ;;  %v2316_v17 = vsub.f32 %v14680_v39, %v2014_v12 }
 0x205   :  { %12715 = vpow2.f32 %v2379_v56  ;;  %v2393_v2 = vmul.f32 1.442695, %v2320_v25  ;;  %19829 = vst [vmem:[#allocation103_spill] sm:$0xff] %v15031_v27  ;;  %v2054_v57 = vrot.slane %v15010_v47, %v15031_v27  ;;  %v2324_v56 = vsub.f32 %v14697_v43, %v2046_v60 }
 0x206   :  { %19828 = vst [vmem:[#allocation102_spill] sm:$0xff] %v15027_v14  ;;  %12717 = vpow2.f32 %v2381_v59  ;;  %v2397_v34 = vmul.f32 1.442695, %v2322_v32  ;;  %v2018_v45 = vrot.slane %v1961_v54, %v15027_v14  ;;  %v2022_v25 = vrot.slane %v1961_v54, %v15031_v27 }
 0x207   :  { %12719 = vpow2.f32 %v2393_v2  ;;  %v2326_v49 = vsub.f32 %v14744_v37, %v2054_v57  ;;  %v2401_v43 = vmul.f32 1.442695, %v2324_v56  ;;  %v2385_v61 = vmul.f32 1.442695, %v2316_v17 }
 0x208   :  { %12721 = vpow2.f32 %v2383_v19  ;;  %v2317_v39 = vsub.f32 %v14721_v8, %v2018_v45  ;;  %v2318_v12 = vsub.f32 %v14729_v41, %v2022_v25  ;;  %v2026_v8 = vrot.slane %v15010_v47, %v14032_v30 }
 0x209   :  { %12723 = vpow2.f32 %v2397_v34  ;;  %v2405_v60 = vmul.f32 1.442695, %v2326_v49  ;;  %v2034_v45 = vrot.slane %v15010_v47, %v14995_v7  ;;  %v2042_v25 = vrot.slane %v15010_v47, %v15004_v63 }
 0x20a   :  { %12725 = vpow2.f32 %v2401_v43  ;;  %v2387_v54 = vmul.f32 1.442695, %v2317_v39  ;;  %v2389_v41 = vmul.f32 1.442695, %v2318_v12  ;;  %v2319_v17 = vsub.f32 %v14673_v42, %v2026_v8 }
 0x20b   :  { %12727 = vpow2.f32 %v2385_v61  ;;  %v2321_v39 = vsub.f32 %v14693_v11, %v2034_v45  ;;  %v2050_v11 = vrot.slane %v15010_v47, %v15027_v14 }
 0x20c   :  { %12729 = vpow2.f32 %v2405_v60  ;;  %v2391_v42 = vmul.f32 1.442695, %v2319_v17 }
 0x20d   :  { %v15036_v58 = vpop.eup %12711  ;;  %12731 = vpow2.f32 %v2387_v54  ;;  %v2323_v54 = vsub.f32 %v14706_v16, %v2042_v25  ;;  %v2395_v8 = vmul.f32 1.442695, %v2321_v39  ;;  %v2325_v47 = vsub.f32 %v14736_v0, %v2050_v11 }
 0x20e   :  { %v15040_v48 = vpop.eup %12713  ;;  %v15042_v26 = vpop.xlane.xlu0 %1966  ;;  %2568 = vperm.xlu0 %12565, %v15036_v58  }
 0x20f   :  { %2571 = vperm.xlu1 %12566, %v15040_v48   ;;  %v2062_v22 = vrot.slane %v15042_v26, %v14992_v53  ;;  %v15051_v59 = vpop.eup %12715  ;;  %v2070_v32 = vrot.slane %v15042_v26, %v14998_v38  ;;  %v2078_v57 = vrot.slane %v15042_v26, %v15019_v62  ;;  %v2086_v43 = vrot.slane %v15042_v26, %v15031_v27 }
 0x210   :  { %v15057_v2 = vpop.eup %12717  ;;  %v2399_v16 = vmul.f32 1.442695, %v2323_v54  ;;  %v2058_v45 = vrot.slane %v15042_v26, %v14032_v30  ;;  %v2403_v0 = vmul.f32 1.442695, %v2325_v47  ;;  %v2066_v25 = vrot.slane %v15042_v26, %v14995_v7 }
 0x211   :  { %v2328_v37 = vsub.f32 %v14713_v44, %v2062_v22  ;;  %v15062_v19 = vpop.eup %12719  ;;  %v2330_v44 = vsub.f32 %v14756_v35, %v2070_v32  ;;  %v2332_v35 = vsub.f32 %v14769_v51, %v2078_v57  ;;  %v2074_v11 = vrot.slane %v15042_v26, %v15004_v63 }
 0x212   :  { %2595 = vperm.xlu0 %12565, %v15062_v19   ;;  %v15069_v34 = vpop.eup %12721  ;;  %v2327_v39 = vsub.f32 %v14749_v36, %v2058_v45  ;;  %v2329_v36 = vsub.f32 %v14761_v50, %v2066_v25  ;;  %v2082_v50 = vrot.slane %v15042_v26, %v15027_v14 }
 0x213   :  { %2574 = vperm.xlu1 %12566, %v15051_v59   ;;  %v2409_v56 = vmul.f32 1.442695, %v2328_v37  ;;  %v15074_v49 = vpop.eup %12723  ;;  %v2413_v22 = vmul.f32 1.442695, %v2330_v44  ;;  %v2334_v37 = vsub.f32 %v14779_v20, %v2086_v43  ;;  %v2417_v51 = vmul.f32 1.442695, %v2332_v35 }
 0x214   :  { %v15084_v61 = vpop.eup %12725  ;;  %v2407_v54 = vmul.f32 1.442695, %v2327_v39  ;;  %v2411_v45 = vmul.f32 1.442695, %v2329_v36  ;;  %v2333_v26 = vsub.f32 %v14783_v46, %v2082_v50 }
 0x215   :  { %12733 = vpow2.f32 %v2409_v56  ;;  %v15088_v32 = vpop.eup %12727  ;;  %v2421_v20 = vmul.f32 1.442695, %v2334_v37 }
 0x216   :  { %2601 = vperm.xlu0 %12565, %v15074_v49   ;;  %12735 = vpow2.f32 %v2389_v41  ;;  %v15098_v57 = vpop.eup %12729  ;;  %v2419_v46 = vmul.f32 1.442695, %v2333_v26 }
 0x217   :  { %2577 = vperm.xlu1 %12566, %v15057_v2   ;;  %12737 = vpow2.f32 %v2413_v22  ;;  %v15100_v44 = vpop.eup %12731 }
 0x218   :  { %12739 = vpow2.f32 %v2391_v42 }
 0x219   :  { %12741 = vpow2.f32 %v2417_v51 }
 0x21a   :  { %2607 = vperm.xlu0 %12565, %v15084_v61   ;;  %12743 = vpow2.f32 %v2395_v8 }
 0x21b   :  { %2580 = vperm.xlu1 %12566, %v15069_v34   ;;  %12745 = vpow2.f32 %v2421_v20 }
 0x21c   :  { %12747 = vpow2.f32 %v2399_v16  ;;  %v2331_v16 = vsub.f32 %v14771_v28, %v2074_v11 }
 0x21e   :  { %v15086_v60 = vpop.xlane.xlu1 %1969  ;;  %2613 = vperm.xlu0 %12565, %v15098_v57   ;;  %v2415_v28 = vmul.f32 1.442695, %v2331_v16 }
 0x21f   :  { %v2094_v12 = vrot.slane %v15086_v60, %v14992_v53  ;;  %2583 = vperm.xlu1 %12566, %v15088_v32   ;;  %v2102_v56 = vrot.slane %v15086_v60, %v14998_v38  ;;  %v15110_v17 = vpop.eup %12733  ;;  %v2110_v35 = vrot.slane %v15086_v60, %v15019_v62  ;;  %v2118_v51 = vrot.slane %v15086_v60, %v15031_v27 }
 0x220   :  { %v15112_v43 = vpop.eup %12735  ;;  %v2090_v25 = vrot.slane %v15086_v60, %v14032_v30  ;;  %v2098_v11 = vrot.slane %v15086_v60, %v14995_v7  ;;  %v2106_v50 = vrot.slane %v15086_v60, %v15004_v63 }
 0x221   :  { %v2336_v41 = vsub.f32 %v14788_v52, %v2094_v12  ;;  %v2338_v52 = vsub.f32 %v14799_v3, %v2102_v56  ;;  %v15122_v42 = vpop.eup %12737  ;;  %v2340_v3 = vsub.f32 %v14809_v10, %v2110_v35  ;;  %v2342_v10 = vsub.f32 %v14819_v1, %v2118_v51 }
 0x222   :  { %2619 = vperm.xlu0 %12565, %v15110_v17   ;;  %v15124_v37 = vpop.eup %12739  ;;  %v2335_v36 = vsub.f32 %v14791_v33, %v2090_v25  ;;  %v2337_v33 = vsub.f32 %v14801_v6, %v2098_v11  ;;  %v2114_v6 = vrot.slane %v15086_v60, %v15027_v14 }
 0x223   :  { %2586 = vperm.xlu1 %12566, %v15100_v44   ;;  %v2425_v22 = vmul.f32 1.442695, %v2336_v41  ;;  %v2429_v12 = vmul.f32 1.442695, %v2338_v52  ;;  %v15134_v8 = vpop.eup %12741  ;;  %v2433_v41 = vmul.f32 1.442695, %v2340_v3 }
 0x224   :  { %v15138_v56 = vpop.eup %12743  ;;  %v2437_v1 = vmul.f32 1.442695, %v2342_v10  ;;  %v2423_v16 = vmul.f32 1.442695, %v2335_v36  ;;  %v2427_v25 = vmul.f32 1.442695, %v2337_v33  ;;  %v2341_v60 = vsub.f32 %v14823_v40, %v2114_v6 }
 0x225   :  { %12749 = vpow2.f32 %v2425_v22  ;;  %v15148_v35 = vpop.eup %12745 }
 0x226   :  { %2625 = vperm.xlu0 %12565, %v15122_v42   ;;  %12751 = vpow2.f32 %v2403_v0  ;;  %v15150_v52 = vpop.eup %12747  ;;  %v2435_v40 = vmul.f32 1.442695, %v2341_v60 }
 0x227   :  { %2589 = vperm.xlu1 %12566, %v15112_v43   ;;  %12753 = vpow2.f32 %v2429_v12 }
 0x228   :  { %12755 = vpow2.f32 %v2407_v54 }
 0x229   :  { %12757 = vpow2.f32 %v2433_v41 }
 0x22a   :  { %2631 = vperm.xlu0 %12565, %v15134_v8   ;;  %12759 = vpow2.f32 %v2411_v45 }
 0x22b   :  { %2592 = vperm.xlu1 %12566, %v15124_v37   ;;  %12761 = vpow2.f32 %v2437_v1 }
 0x22c   :  { %12763 = vpow2.f32 %v2415_v28  ;;  %v2339_v28 = vsub.f32 %v14811_v24, %v2106_v50 }
 0x22e   :  { %v15136_v20 = vpop.xlane.xlu0 %1972  ;;  %2637 = vperm.xlu0 %12565, %v15148_v35   ;;  %v2431_v24 = vmul.f32 1.442695, %v2339_v28 }
 0x22f   :  { %v2126_v47 = vrot.slane %v15136_v20, %v14992_v53  ;;  %2598 = vperm.xlu1 %12566, %v15138_v56   ;;  %v2134_v22 = vrot.slane %v15136_v20, %v14998_v38  ;;  %v15160_v39 = vpop.eup %12749  ;;  %v2142_v3 = vrot.slane %v15136_v20, %v15019_v62  ;;  %v2150_v41 = vrot.slane %v15136_v20, %v15031_v27 }
 0x230   :  { %v15162_v51 = vpop.eup %12751  ;;  %v2122_v11 = vrot.slane %v15136_v20, %v14032_v30  ;;  %v2130_v50 = vrot.slane %v15136_v20, %v14995_v7  ;;  %v2138_v6 = vrot.slane %v15136_v20, %v15004_v63 }
 0x231   :  { %v2344_v0 = vsub.f32 %v14828_v21, %v2126_v47  ;;  %v2346_v21 = vsub.f32 %v14839_v55, %v2134_v22  ;;  %v15172_v54 = vpop.eup %12753  ;;  %v2348_v55 = vsub.f32 %v14849_v4, %v2142_v3  ;;  %v2350_v4 = vsub.f32 %v14859_v15, %v2150_v41 }
 0x232   :  { %2643 = vperm.xlu0 %12565, %v15160_v39   ;;  %v15174_v10 = vpop.eup %12755  ;;  %v2343_v33 = vsub.f32 %v14831_v13, %v2122_v11  ;;  %v2345_v13 = vsub.f32 %v14841_v31, %v2130_v50  ;;  %v2146_v31 = vrot.slane %v15136_v20, %v15027_v14  ;;  %v19839_v20 = vld [vmem:[#allocation76_spill] sm:$0xff] }
 0x233   :  { %2604 = vperm.xlu1 %12566, %v15150_v52   ;;  %v2441_v12 = vmul.f32 1.442695, %v2344_v0  ;;  %v2445_v47 = vmul.f32 1.442695, %v2346_v21  ;;  %v15184_v45 = vpop.eup %12757  ;;  %v2449_v0 = vmul.f32 1.442695, %v2348_v55 }
 0x234   :  { %19830 = vst [vmem:[#allocation104_spill] sm:$0xff] %v15184_v45  ;;  %v15188_v22 = vpop.eup %12759  ;;  %v2453_v15 = vmul.f32 1.442695, %v2350_v4  ;;  %v2439_v28 = vmul.f32 1.442695, %v2343_v33  ;;  %v2349_v33 = vsub.f32 %v19839_v20, %v2146_v31  ;;  %v19843_v31 = vld [vmem:[#allocation77_spill] sm:$0xff] }
 0x235   :  { %12765 = vpow2.f32 %v2441_v12  ;;  %v15198_v3 = vpop.eup %12761  ;;  %v2443_v11 = vmul.f32 1.442695, %v2345_v13  ;;  %v19842_v13 = vld [vmem:[#allocation83_spill] sm:$0xff] }
 0x236   :  { %2649 = vperm.xlu0 %12565, %v15172_v54   ;;  %12767 = vpow2.f32 %v2419_v46  ;;  %19831 = vst [vmem:[#allocation105_spill] sm:$0xff] %v15198_v3  ;;  %v15200_v21 = vpop.eup %12763 }
 0x237   :  { %2610 = vperm.xlu1 %12566, %v15162_v51   ;;  %12769 = vpow2.f32 %v2445_v47 }
 0x238   :  { %12771 = vpow2.f32 %v2423_v16 }
 0x239   :  { %12773 = vpow2.f32 %v2449_v0 }
 0x23a   :  { %2655 = vperm.xlu0 %12565, %v15184_v45   ;;  %12775 = vpow2.f32 %v2427_v25 }
 0x23b   :  { %2616 = vperm.xlu1 %12566, %v15174_v10   ;;  %12777 = vpow2.f32 %v2453_v15 }
 0x23c   :  { %12779 = vpow2.f32 %v2431_v24  ;;  %v2347_v24 = vsub.f32 %v14851_v18, %v2138_v6 }
 0x23e   :  { %v15186_v1 = vpop.xlane.xlu1 %1975  ;;  %2661 = vperm.xlu0 %12565, %v15198_v3   ;;  %v2447_v18 = vmul.f32 1.442695, %v2347_v24 }
 0x23f   :  { %v2158_v26 = vrot.slane %v15186_v1, %v14992_v53  ;;  %2622 = vperm.xlu1 %12566, %v15188_v22   ;;  %v2166_v12 = vrot.slane %v15186_v1, %v14998_v38  ;;  %v15210_v36 = vpop.eup %12765  ;;  %v2174_v55 = vrot.slane %v15186_v1, %v15019_v62  ;;  %v2182_v0 = vrot.slane %v15186_v1, %v15031_v27 }
 0x240   :  { %19832 = vst [vmem:[#allocation106_spill] sm:$0xff] %v15210_v36  ;;  %v15212_v41 = vpop.eup %12767 }
 0x241   :  { %v2352_v46 = vsub.f32 %v14868_v23, %v2158_v26  ;;  %v2354_v23 = vsub.f32 %v14879_v5, %v2166_v12  ;;  %v15222_v16 = vpop.eup %12769  ;;  %v2356_v5 = vsub.f32 %v14889_v29, %v2174_v55  ;;  %v2358_v29 = vsub.f32 %v14899_v9, %v2182_v0 }
 0x242   :  { %2667 = vperm.xlu0 %12565, %v15210_v36   ;;  %19833 = vst [vmem:[#allocation107_spill] sm:$0xff] %v15222_v16  ;;  %v15224_v4 = vpop.eup %12771  ;;  %v2154_v0 = vrot.slane %v15186_v1, %v14032_v30 }
 0x243   :  { %2628 = vperm.xlu1 %12566, %v15200_v21   ;;  %v2457_v47 = vmul.f32 1.442695, %v2352_v46  ;;  %v2461_v26 = vmul.f32 1.442695, %v2354_v23  ;;  %v15234_v25 = vpop.eup %12773  ;;  %v2465_v46 = vmul.f32 1.442695, %v2356_v5 }
 0x244   :  { %19834 = vst [vmem:[#allocation108_spill] sm:$0xff] %v15234_v25  ;;  %v15238_v12 = vpop.eup %12775  ;;  %v2469_v9 = vmul.f32 1.442695, %v2358_v29  ;;  %v2351_v24 = vsub.f32 %v19843_v31, %v2154_v0 }
 0x245   :  { %12781 = vpow2.f32 %v2457_v47  ;;  %19835 = vst [vmem:[#allocation109_spill] sm:$0xff] %v15238_v12  ;;  %v15248_v55 = vpop.eup %12777 }
 0x246   :  { %2673 = vperm.xlu0 %12565, %v15222_v16   ;;  %12783 = vpow2.f32 %v2435_v40  ;;  %19836 = vst [vmem:[#allocation110_spill] sm:$0xff] %v15248_v55  ;;  %v15250_v23 = vpop.eup %12779  ;;  %v19838_v40 = vld [vmem:[#allocation81_spill] sm:$0xff] }
 0x247   :  { %2634 = vperm.xlu1 %12566, %v15212_v41   ;;  %12785 = vpow2.f32 %v2461_v26  ;;  %19837 = vst [vmem:[#allocation111_spill] sm:$0xff] %v15250_v23 }
 0x248   :  { %12787 = vpow2.f32 %v2439_v28 }
 0x249   :  { %12789 = vpow2.f32 %v2465_v46  ;;  %v2451_v46 = vmul.f32 1.442695, %v2349_v33  ;;  %v2170_v33 = vrot.slane %v15186_v1, %v15004_v63 }
 0x24a   :  { %2679 = vperm.xlu0 %12565, %v15234_v25   ;;  %12791 = vpow2.f32 %v2443_v11 }
 0x24b   :  { %2640 = vperm.xlu1 %12566, %v15224_v4   ;;  %12793 = vpow2.f32 %v2469_v9 }
 0x24c   :  { %12795 = vpow2.f32 %v2447_v18  ;;  %v19847_v18 = vld [vmem:[#allocation78_spill] sm:$0xff] }
 0x24e   :  { %v15236_v15 = vpop.xlane.xlu0 %1978  ;;  %2685 = vperm.xlu0 %12565, %v15248_v55  }
 0x24f   :  { %v2190_v60 = vrot.slane %v15236_v15, %v14992_v53  ;;  %2646 = vperm.xlu1 %12566, %v15238_v12   ;;  %v2198_v47 = vrot.slane %v15236_v15, %v14998_v38  ;;  %v15260_v5 = vpop.eup %12781  ;;  %v2206_v6 = vrot.slane %v15236_v15, %v15019_v62  ;;  %v2214_v9 = vrot.slane %v15236_v15, %v15031_v27 }
 0x250   :  { %19840 = vst [vmem:[#allocation81_spill] sm:$0xff] %v15260_v5  ;;  %v15262_v26 = vpop.eup %12783 }
 0x251   :  { %v2360_v50 = vsub.f32 %v19838_v40, %v2190_v60  ;;  %19841 = vst [vmem:[#allocation76_spill] sm:$0xff] %v15262_v26  ;;  %v2362_v28 = vsub.f32 %v19842_v13, %v2198_v47  ;;  %v2162_v60 = vrot.slane %v15186_v1, %v14995_v7  ;;  %v15272_v11 = vpop.eup %12785  ;;  %v19846_v47 = vld [vmem:[#allocation85_spill] sm:$0xff]  ;;  %v2455_v13 = vmul.f32 1.442695, %v2351_v24  ;;  %v19851_v24 = vld [vmem:[#allocation79_spill] sm:$0xff] }
 0x252   :  { %2691 = vperm.xlu0 %12565, %v15260_v5   ;;  %19844 = vst [vmem:[#allocation83_spill] sm:$0xff] %v15272_v11  ;;  %v15274_v40 = vpop.eup %12787 }
 0x253   :  { %2652 = vperm.xlu1 %12566, %v15250_v23   ;;  %v2473_v29 = vmul.f32 1.442695, %v2360_v50  ;;  %19845 = vst [vmem:[#allocation77_spill] sm:$0xff] %v15274_v40  ;;  %v2364_v50 = vsub.f32 %v19846_v47, %v2206_v6  ;;  %v2477_v20 = vmul.f32 1.442695, %v2362_v28  ;;  %v2353_v0 = vsub.f32 %v19847_v18, %v2162_v60  ;;  %v15284_v31 = vpop.eup %12789  ;;  %v19850_v6 = vld [vmem:[#allocation87_spill] sm:$0xff] }
 0x254   :  { %19848 = vst [vmem:[#allocation85_spill] sm:$0xff] %v15284_v31  ;;  %v2178_v60 = vrot.slane %v15186_v1, %v15027_v14  ;;  %v2355_v47 = vsub.f32 %v19851_v24, %v2170_v33  ;;  %v19855_v1 = vld [vmem:[#allocation80_spill] sm:$0xff] }
 0x255   :  { %12797 = vpow2.f32 %v2473_v29  ;;  %v2366_v29 = vsub.f32 %v19850_v6, %v2214_v9  ;;  %v2481_v28 = vmul.f32 1.442695, %v2364_v50  ;;  %v2459_v18 = vmul.f32 1.442695, %v2353_v0 }
 0x256   :  { %2697 = vperm.xlu0 %12565, %v15272_v11   ;;  %12799 = vpow2.f32 %v2451_v46  ;;  %v15288_v11 = vpop.eup %12791  ;;  %v2463_v33 = vmul.f32 1.442695, %v2355_v47  ;;  %v2186_v0 = vrot.slane %v15236_v15, %v14032_v30  ;;  %v2194_v47 = vrot.slane %v15236_v15, %v14995_v7 }
 0x257   :  { %2658 = vperm.xlu1 %12566, %v15262_v26   ;;  %19849 = vst [vmem:[#allocation78_spill] sm:$0xff] %v15288_v11  ;;  %12801 = vpow2.f32 %v2477_v20  ;;  %v15298_v55 = vpop.eup %12793  ;;  %v2485_v9 = vmul.f32 1.442695, %v2366_v29  ;;  %v19854_v20 = vld [vmem:[#allocation89_spill] sm:$0xff] }
 0x258   :  { %12803 = vpow2.f32 %v2455_v13  ;;  %19852 = vst [vmem:[#allocation87_spill] sm:$0xff] %v15298_v55  ;;  %v15300_v25 = vpop.eup %12795 }
 0x259   :  { %19853 = vst [vmem:[#allocation79_spill] sm:$0xff] %v15300_v25  ;;  %12805 = vpow2.f32 %v2481_v28  ;;  %v19858_v28 = vld [vmem:[#allocation91_spill] sm:$0xff] }
 0x25a   :  { %2703 = vperm.xlu0 %12565, %v15284_v31   ;;  %v2357_v31 = vsub.f32 %v19855_v1, %v2178_v60  ;;  %12807 = vpow2.f32 %v2459_v18  ;;  %v19859_v18 = vld [vmem:[#allocation82_spill] sm:$0xff] }
 0x25b   :  { %2664 = vperm.xlu1 %12566, %v15274_v40   ;;  %12809 = vpow2.f32 %v2485_v9  ;;  %v2359_v1 = vsub.f32 %v19859_v18, %v2186_v0 }
 0x25c   :  { %12811 = vpow2.f32 %v2463_v33  ;;  %v2467_v60 = vmul.f32 1.442695, %v2357_v31  ;;  %v2202_v31 = vrot.slane %v15236_v15, %v15004_v63  ;;  %v19863_v33 = vld [vmem:[#allocation84_spill] sm:$0xff] }
 0x25d   :  { %v2361_v0 = vsub.f32 %v19863_v33, %v2194_v47  ;;  %v2471_v18 = vmul.f32 1.442695, %v2359_v1 }
 0x25e   :  { %v15286_v5 = vpop.xlane.xlu1 %1981  ;;  %2709 = vperm.xlu0 %12565, %v15298_v55  }
 0x25f   :  { %v2222_v46 = vrot.slane %v15286_v5, %v14992_v53  ;;  %2670 = vperm.xlu1 %12566, %v15288_v11   ;;  %v2230_v50 = vrot.slane %v15286_v5, %v14998_v38  ;;  %v15310_v13 = vpop.eup %12797  ;;  %v2238_v29 = vrot.slane %v15286_v5, %v15019_v62  ;;  %v2246_v9 = vrot.slane %v15286_v5, %v15031_v27 }
 0x260   :  { %19856 = vst [vmem:[#allocation89_spill] sm:$0xff] %v15310_v13  ;;  %v15312_v24 = vpop.eup %12799  ;;  %v2475_v47 = vmul.f32 1.442695, %v2361_v0  ;;  %v2226_v0 = vrot.slane %v15286_v5, %v14995_v7 }
 0x261   :  { %v2368_v6 = vsub.f32 %v19854_v20, %v2222_v46  ;;  %19857 = vst [vmem:[#allocation80_spill] sm:$0xff] %v15312_v24  ;;  %v2370_v46 = vsub.f32 %v19858_v28, %v2230_v50  ;;  %v15322_v55 = vpop.eup %12801  ;;  %v19862_v50 = vld [vmem:[#allocation93_spill] sm:$0xff] }
 0x262   :  { %2715 = vperm.xlu0 %12565, %v15310_v13   ;;  %19860 = vst [vmem:[#allocation91_spill] sm:$0xff] %v15322_v55 }
 0x263   :  { %2676 = vperm.xlu1 %12566, %v15300_v25   ;;  %v2489_v20 = vmul.f32 1.442695, %v2368_v6  ;;  %v15324_v25 = vpop.eup %12803  ;;  %v2372_v6 = vsub.f32 %v19862_v50, %v2238_v29  ;;  %v2493_v28 = vmul.f32 1.442695, %v2370_v46  ;;  %v2210_v46 = vrot.slane %v15236_v15, %v15027_v14 }
 0x264   :  { %19861 = vst [vmem:[#allocation82_spill] sm:$0xff] %v15324_v25  ;;  %v15334_v13 = vpop.eup %12805  ;;  %v2218_v15 = vrot.slane %v15286_v5, %v14032_v30 }
 0x265   :  { %12813 = vpow2.f32 %v2489_v20  ;;  %19864 = vst [vmem:[#allocation93_spill] sm:$0xff] %v15334_v13  ;;  %v2497_v29 = vmul.f32 1.442695, %v2372_v6  ;;  %v19867_v20 = vld [vmem:[#allocation86_spill] sm:$0xff] }
 0x266   :  { %2721 = vperm.xlu0 %12565, %v15322_v55   ;;  %12815 = vpow2.f32 %v2467_v60  ;;  %v19866_v55 = vld [vmem:[#allocation95_spill] sm:$0xff]  ;;  %v2363_v60 = vsub.f32 %v19867_v20, %v2202_v31 }
 0x267   :  { %2682 = vperm.xlu1 %12566, %v15312_v24   ;;  %v15336_v24 = vpop.eup %12807  ;;  %v2374_v11 = vsub.f32 %v19866_v55, %v2246_v9  ;;  %12817 = vpow2.f32 %v2493_v28  ;;  %v19870_v55 = vld [vmem:[#allocation88_spill] sm:$0xff] }
 0x268   :  { %19865 = vst [vmem:[#allocation84_spill] sm:$0xff] %v15336_v24  ;;  %12819 = vpow2.f32 %v2471_v18  ;;  %v15344_v1 = vpop.eup %12809  ;;  %v2365_v9 = vsub.f32 %v19870_v55, %v2210_v46  ;;  %v2479_v6 = vmul.f32 1.442695, %v2363_v60  ;;  %v19873_v18 = vld [vmem:[#allocation90_spill] sm:$0xff]  ;;  %v2234_v60 = vrot.slane %v15286_v5, %v15004_v63 }
 0x269   :  { %19868 = vst [vmem:[#allocation95_spill] sm:$0xff] %v15344_v1  ;;  %v15346_v50 = vpop.eup %12811  ;;  %12821 = vpow2.f32 %v2497_v29  ;;  %v2501_v33 = vmul.f32 1.442695, %v2374_v11  ;;  %v2367_v29 = vsub.f32 %v19873_v18, %v2218_v15  ;;  %v2242_v15 = vrot.slane %v15286_v5, %v15027_v14  ;;  %v19879_v18 = vld [vmem:[#allocation94_spill] sm:$0xff] }
 0x26a   :  { %2727 = vperm.xlu0 %12565, %v15334_v13   ;;  %19869 = vst [vmem:[#allocation86_spill] sm:$0xff] %v15346_v50  ;;  %12823 = vpow2.f32 %v2475_v47  ;;  %v2483_v11 = vmul.f32 1.442695, %v2365_v9  ;;  %v19876_v47 = vld [vmem:[#allocation92_spill] sm:$0xff] }
 0x26b   :  { %2688 = vperm.xlu1 %12566, %v15324_v25   ;;  %12825 = vpow2.f32 %v2501_v33  ;;  %v2369_v33 = vsub.f32 %v19876_v47, %v2226_v0  ;;  %v2487_v55 = vmul.f32 1.442695, %v2367_v29  ;;  %v19882_v0 = vld [vmem:[#allocation96_spill] sm:$0xff] }
 0x26c   :  { %12827 = vpow2.f32 %v2479_v6  ;;  %v2373_v29 = vsub.f32 %v19882_v0, %v2242_v15 }
 0x26d   :  { %12829 = vpow2.f32 %v2483_v11  ;;  %v2491_v11 = vmul.f32 1.442695, %v2369_v33 }
 0x26e   :  { %2733 = vperm.xlu0 %12565, %v15344_v1   ;;  %12831 = vpow2.f32 %v2487_v55  ;;  %v2499_v5 = vmul.f32 1.442695, %v2373_v29 }
 0x26f   :  { %2694 = vperm.xlu1 %12566, %v15336_v24   ;;  %v15353_v28 = vpop.eup %12813  ;;  %12833 = vpow2.f32 %v2491_v11 }
 0x270   :  { %19871 = vst [vmem:[#allocation88_spill] sm:$0xff] %v15353_v28  ;;  %v15355_v31 = vpop.eup %12815 }
 0x271   :  { %19872 = vst [vmem:[#allocation112_spill] sm:$0xff] %v15355_v31  ;;  %v15362_v46 = vpop.eup %12817 }
 0x272   :  { %2739 = vperm.xlu0 %12565, %v15353_v28   ;;  %19874 = vst [vmem:[#allocation90_spill] sm:$0xff] %v15362_v46  ;;  %v15364_v20 = vpop.eup %12819 }
 0x273   :  { %2700 = vperm.xlu1 %12566, %v15346_v50   ;;  %19875 = vst [vmem:[#allocation113_spill] sm:$0xff] %v15364_v20  ;;  %v15371_v9 = vpop.eup %12821 }
 0x274   :  { %19877 = vst [vmem:[#allocation92_spill] sm:$0xff] %v15371_v9  ;;  %v15373_v6 = vpop.eup %12823 }
 0x275   :  { %19878 = vst [vmem:[#allocation114_spill] sm:$0xff] %v15373_v6  ;;  %v15380_v28 = vpop.eup %12825 }
 0x276   :  { %2745 = vperm.xlu0 %12565, %v15362_v46   ;;  %v2371_v46 = vsub.f32 %v19879_v18, %v2234_v60  ;;  %19880 = vst [vmem:[#allocation94_spill] sm:$0xff] %v15380_v28  ;;  %v15382_v1 = vpop.eup %12827 }
 0x277   :  { %2706 = vperm.xlu1 %12566, %v15355_v31   ;;  %19881 = vst [vmem:[#allocation115_spill] sm:$0xff] %v15382_v1  ;;  %v19888_v31 = vld [vmem:[#allocation75_spill] sm:$0xff] }
 0x278   :  { %v2495_v47 = vmul.f32 1.442695, %v2371_v46 }
 0x27a   :  { %2751 = vperm.xlu0 %12565, %v15371_v9   ;;  %v15387_v9 = vpop.eup %12829  ;;  %12835 = vpow2.f32 %v2495_v47 }
 0x27b   :  { %2712 = vperm.xlu1 %12566, %v15364_v20   ;;  %19883 = vst [vmem:[#allocation96_spill] sm:$0xff] %v15387_v9  ;;  %v15390_v60 = vpop.eup %12831  ;;  %12837 = vpow2.f32 %v2499_v5 }
 0x27c   :  { %19884 = vst [vmem:[#allocation116_spill] sm:$0xff] %v15390_v60  ;;  %v15393_v55 = vpop.eup %12833 }
 0x27d   :  { %19885 = vst [vmem:[#allocation117_spill] sm:$0xff] %v15393_v55 }
 0x27e   :  { %2757 = vperm.xlu0 %12565, %v15380_v28  }
 0x27f   :  { %2718 = vperm.xlu1 %12566, %v15373_v6  }
 0x283   :  { %2724 = vperm.xlu1 %12566, %v15382_v1  }
 0x284   :  { %v15396_v11 = vpop.eup %12835 }
 0x285   :  { %19886 = vst [vmem:[#allocation118_spill] sm:$0xff] %v15396_v11  ;;  %v15399_v47 = vpop.eup %12837 }
 0x286   :  { %19887 = vst [vmem:[#allocation119_spill] sm:$0xff] %v15399_v47 }
 0x287   :  { %2730 = vperm.xlu1 %12566, %v15387_v9  }
 0x28b   :  { %2736 = vperm.xlu1 %12566, %v15390_v60  }
 0x28d   :  { %v2569_v18 = vpop.permute.xlu0 %2568 }
 0x28e   :  { %v2572_v33 = vpop.permute.xlu1 %2571  ;;  %v2762_v24 = vrot.slane %v2569_v18, %v19888_v31 }
 0x28f   :  { %2742 = vperm.xlu1 %12566, %v15393_v55  }
 0x291   :  { %v2596_v46 = vpop.permute.xlu0 %2595 }
 0x292   :  { %v2575_v15 = vpop.permute.xlu1 %2574 }
 0x293   :  { %2748 = vperm.xlu1 %12566, %v15396_v11   ;;  %v2766_v11 = vrot.slane %v2572_v33, %v19888_v31  ;;  %v2770_v16 = vrot.slane %v2575_v15, %v19888_v31 }
 0x295   :  { %v2602_v29 = vpop.permute.xlu0 %2601 }
 0x296   :  { %v2578_v0 = vpop.permute.xlu1 %2577 }
 0x297   :  { %2754 = vperm.xlu1 %12566, %v15399_v47   ;;  %v2798_v47 = vrot.slane %v2596_v46, %v19888_v31  ;;  %v2774_v36 = vrot.slane %v2578_v0, %v19888_v31  ;;  %v2806_v46 = vrot.slane %v2602_v29, %v19888_v31 }
 0x299   :  { %v2608_v5 = vpop.permute.xlu0 %2607 }
 0x29a   :  { %v2581_v28 = vpop.permute.xlu1 %2580 }
 0x29b   :  { %v2778_v3 = vrot.slane %v2581_v28, %v19888_v31 }
 0x29d   :  { %v2614_v9 = vpop.permute.xlu0 %2613 }
 0x29e   :  { %v2584_v60 = vpop.permute.xlu1 %2583  ;;  %v2822_v29 = vrot.slane %v2614_v9, %v19888_v31 }
 0x29f   :  { %v2782_v33 = vrot.slane %v2584_v60, %v19888_v31 }
 0x2a1   :  { %v2620_v13 = vpop.permute.xlu0 %2619 }
 0x2a2   :  { %v2587_v1 = vpop.permute.xlu1 %2586 }
 0x2a3   :  { %v2786_v12 = vrot.slane %v2587_v1, %v19888_v31 }
 0x2a5   :  { %v2626_v55 = vpop.permute.xlu0 %2625 }
 0x2a6   :  { %v2590_v6 = vpop.permute.xlu1 %2589 }
 0x2a7   :  { %v2790_v28 = vrot.slane %v2590_v6, %v19888_v31 }
 0x2a9   :  { %v2632_v25 = vpop.permute.xlu0 %2631 }
 0x2aa   :  { %v2593_v20 = vpop.permute.xlu1 %2592 }
 0x2ab   :  { %v2794_v50 = vrot.slane %v2593_v20, %v19888_v31  ;;  %v3015_v20 = vsel %vm1887_vm2, %v2766_v11, %v2762_v24  ;;  %v2814_v11 = vrot.slane %v2608_v5, %v19888_v31 }
 0x2ac   :  { %v3016_v15 = vsel %vm1889_vm3, %v2770_v16, %v3015_v20 }
 0x2ad   :  { %v3022_v23 = vsel %vm1887_vm2, %v2798_v47, %v2794_v50  ;;  %v2638_v45 = vpop.permute.xlu0 %2637 }
 0x2ae   :  { %v2599_v40 = vpop.permute.xlu1 %2598 }
 0x2af   :  { %v2802_v26 = vrot.slane %v2599_v40, %v19888_v31  ;;  %v3017_v40 = vsel %vm1891_vm4, %v2774_v36, %v3016_v15 }
 0x2b0   :  { %v3018_v24 = vsel %vm1893_vm5, %v2778_v3, %v3017_v40  ;;  %v2830_v40 = vrot.slane %v2620_v13, %v19888_v31  ;;  %v2846_v13 = vrot.slane %v2632_v25, %v19888_v31 }
 0x2b1   :  { %v3023_v18 = vsel %vm1889_vm3, %v2802_v26, %v3022_v23  ;;  %v3019_v23 = vsel %vm1895_vm6, %v2782_v33, %v3018_v24  ;;  %v2644_v16 = vpop.permute.xlu0 %2643 }
 0x2b2   :  { %v2605_v0 = vpop.permute.xlu1 %2604  ;;  %v3024_v60 = vsel %vm1891_vm4, %v2806_v46, %v3023_v18  ;;  %v3020_v1 = vsel %vm1897_vm7, %v2786_v12, %v3019_v23  ;;  %v2838_v23 = vrot.slane %v2626_v55, %v19888_v31  ;;  %v2862_v25 = vrot.slane %v2644_v16, %v19888_v31 }
 0x2b3   :  { %v2810_v50 = vrot.slane %v2605_v0, %v19888_v31  ;;  %v3021_v6 = vsel %vm1899_vm8, %v2790_v28, %v3020_v1 }
 0x2b4   :  { %v3079_v15 = vsel %vm1958_vm9, %v3021_v6, 0.0 }
 0x2b5   :  { %v3025_v26 = vsel %vm1893_vm5, %v2810_v50, %v3024_v60  ;;  %v2650_v20 = vpop.permute.xlu0 %2649 }
 0x2b6   :  { %v2611_v47 = vpop.permute.xlu1 %2610  ;;  %v3026_v3 = vsel %vm1895_vm6, %v2814_v11, %v3025_v26 }
 0x2b7   :  { %v2818_v36 = vrot.slane %v2611_v47, %v19888_v31 }
 0x2b9   :  { %v3027_v18 = vsel %vm1897_vm7, %v2818_v36, %v3026_v3  ;;  %v2656_v0 = vpop.permute.xlu0 %2655  ;;  %v2854_v3 = vrot.slane %v2638_v45, %v19888_v31 }
 0x2ba   :  { %v2617_v33 = vpop.permute.xlu1 %2616  ;;  %v3028_v46 = vsel %vm1899_vm8, %v2822_v29, %v3027_v18  ;;  %v2878_v16 = vrot.slane %v2656_v0, %v19888_v31 }
 0x2bb   :  { %3080 = vadd.xlane.f32.xlu1 %v3079_v15  ;;  %v3082_v5 = vsel %vm1958_vm9, %v3028_v46, 0.0  ;;  %v2826_v12 = vrot.slane %v2617_v33, %v19888_v31 }
 0x2bc   :  { %3083 = vadd.xlane.f32.xlu0 %v3082_v5 }
 0x2bd   :  { %v3029_v50 = vsel %vm1887_vm2, %v2830_v40, %v2826_v12  ;;  %v2662_v60 = vpop.permute.xlu0 %2661 }
 0x2be   :  { %v2623_v9 = vpop.permute.xlu1 %2622 }
 0x2bf   :  { %v2834_v28 = vrot.slane %v2623_v9, %v19888_v31 }
 0x2c1   :  { %v3030_v24 = vsel %vm1889_vm3, %v2834_v28, %v3029_v50  ;;  %v2668_v36 = vpop.permute.xlu0 %2667 }
 0x2c2   :  { %v2629_v26 = vpop.permute.xlu1 %2628  ;;  %v3031_v47 = vsel %vm1891_vm4, %v2838_v23, %v3030_v24  ;;  %v2870_v23 = vrot.slane %v2650_v20, %v19888_v31  ;;  %v2894_v0 = vrot.slane %v2668_v36, %v19888_v31 }
 0x2c3   :  { %v2842_v11 = vrot.slane %v2629_v26, %v19888_v31 }
 0x2c5   :  { %v3032_v1 = vsel %vm1893_vm5, %v2842_v11, %v3031_v47  ;;  %v2674_v33 = vpop.permute.xlu0 %2673 }
 0x2c6   :  { %v2635_v6 = vpop.permute.xlu1 %2634  ;;  %v3033_v18 = vsel %vm1895_vm6, %v2846_v13, %v3032_v1 }
 0x2c7   :  { %v2850_v29 = vrot.slane %v2635_v6, %v19888_v31 }
 0x2c9   :  { %v3034_v55 = vsel %vm1897_vm7, %v2850_v29, %v3033_v18  ;;  %v2680_v40 = vpop.permute.xlu0 %2679 }
 0x2ca   :  { %v2641_v15 = vpop.permute.xlu1 %2640  ;;  %v3035_v46 = vsel %vm1899_vm8, %v2854_v3, %v3034_v55  ;;  %v2886_v3 = vrot.slane %v2662_v60, %v19888_v31  ;;  %v2910_v36 = vrot.slane %v2680_v40, %v19888_v31 }
 0x2cb   :  { %v3085_v5 = vsel %vm1958_vm9, %v3035_v46, 0.0  ;;  %v2858_v12 = vrot.slane %v2641_v15, %v19888_v31 }
 0x2cc   :  { %3086 = vadd.xlane.f32.xlu0 %v3085_v5 }
 0x2cd   :  { %v3036_v45 = vsel %vm1887_vm2, %v2862_v25, %v2858_v12  ;;  %v2686_v24 = vpop.permute.xlu0 %2685 }
 0x2ce   :  { %v2647_v9 = vpop.permute.xlu1 %2646 }
 0x2cf   :  { %v2866_v28 = vrot.slane %v2647_v9, %v19888_v31 }
 0x2d1   :  { %v3037_v50 = vsel %vm1889_vm3, %v2866_v28, %v3036_v45  ;;  %v2692_v13 = vpop.permute.xlu0 %2691 }
 0x2d2   :  { %v2653_v26 = vpop.permute.xlu1 %2652  ;;  %v3038_v47 = vsel %vm1891_vm4, %v2870_v23, %v3037_v50  ;;  %v2902_v50 = vrot.slane %v2674_v33, %v19888_v31  ;;  %v2926_v40 = vrot.slane %v2692_v13, %v19888_v31 }
 0x2d3   :  { %v2874_v11 = vrot.slane %v2653_v26, %v19888_v31 }
 0x2d5   :  { %v3039_v1 = vsel %vm1893_vm5, %v2874_v11, %v3038_v47  ;;  %v2698_v55 = vpop.permute.xlu0 %2697 }
 0x2d6   :  { %v2659_v6 = vpop.permute.xlu1 %2658  ;;  %v3040_v18 = vsel %vm1895_vm6, %v2878_v16, %v3039_v1 }
 0x2d7   :  { %v2882_v29 = vrot.slane %v2659_v6, %v19888_v31 }
 0x2d9   :  { %v3041_v20 = vsel %vm1897_vm7, %v2882_v29, %v3040_v18  ;;  %v2704_v9 = vpop.permute.xlu0 %2703  ;;  %v2918_v29 = vrot.slane %v2686_v24, %v19888_v31 }
 0x2da   :  { %v2665_v15 = vpop.permute.xlu1 %2664  ;;  %v3042_v46 = vsel %vm1899_vm8, %v2886_v3, %v3041_v20 }
 0x2db   :  { %v3088_v5 = vsel %vm1958_vm9, %v3042_v46, 0.0  ;;  %v2890_v12 = vrot.slane %v2665_v15, %v19888_v31 }
 0x2dc   :  { %3089 = vadd.xlane.f32.xlu1 %v3088_v5 }
 0x2dd   :  { %v3043_v60 = vsel %vm1887_vm2, %v2894_v0, %v2890_v12  ;;  %v2710_v47 = vpop.permute.xlu0 %2709 }
 0x2de   :  { %v2671_v25 = vpop.permute.xlu1 %2670 }
 0x2df   :  { %v2898_v28 = vrot.slane %v2671_v25, %v19888_v31 }
 0x2e1   :  { %v3044_v45 = vsel %vm1889_vm3, %v2898_v28, %v3043_v60  ;;  %v2716_v15 = vpop.permute.xlu0 %2715  ;;  %v2934_v60 = vrot.slane %v2698_v55, %v19888_v31 }
 0x2e2   :  { %v2677_v23 = vpop.permute.xlu1 %2676  ;;  %v3045_v11 = vsel %vm1891_vm4, %v2902_v50, %v3044_v45 }
 0x2e3   :  { %v2906_v26 = vrot.slane %v2677_v23, %v19888_v31 }
 0x2e5   :  { %v3046_v1 = vsel %vm1893_vm5, %v2906_v26, %v3045_v11  ;;  %v2722_v25 = vpop.permute.xlu0 %2721  ;;  %v2942_v11 = vrot.slane %v2704_v9, %v19888_v31  ;;  %v2958_v9 = vrot.slane %v2716_v15, %v19888_v31 }
 0x2e6   :  { %v2683_v16 = vpop.permute.xlu1 %2682  ;;  %v3047_v3 = vsel %vm1895_vm6, %v2910_v36, %v3046_v1 }
 0x2e7   :  { %v2914_v6 = vrot.slane %v2683_v16, %v19888_v31  ;;  %v2950_v16 = vrot.slane %v2710_v47, %v19888_v31 }
 0x2e9   :  { %v3048_v18 = vsel %vm1897_vm7, %v2914_v6, %v3047_v3  ;;  %v2728_v1 = vpop.permute.xlu0 %2727 }
 0x2ea   :  { %v2689_v33 = vpop.permute.xlu1 %2688  ;;  %v3049_v20 = vsel %vm1899_vm8, %v2918_v29, %v3048_v18 }
 0x2eb   :  { %v3091_v46 = vsel %vm1958_vm9, %v3049_v20, 0.0  ;;  %v2922_v5 = vrot.slane %v2689_v33, %v19888_v31 }
 0x2ec   :  { %3092 = vadd.xlane.f32.xlu0 %v3091_v46 }
 0x2ed   :  { %v3050_v24 = vsel %vm1887_vm2, %v2926_v40, %v2922_v5  ;;  %v2734_v20 = vpop.permute.xlu0 %2733 }
 0x2ee   :  { %v2695_v12 = vpop.permute.xlu1 %2694 }
 0x2ef   :  { %v2930_v0 = vrot.slane %v2695_v12, %v19888_v31  ;;  %v2966_v12 = vrot.slane %v2722_v25, %v19888_v31 }
 0x2f1   :  { %v3051_v28 = vsel %vm1889_vm3, %v2930_v0, %v3050_v24  ;;  %v2740_v24 = vpop.permute.xlu0 %2739 }
 0x2f2   :  { %v2701_v45 = vpop.permute.xlu1 %2700  ;;  %v3052_v23 = vsel %vm1891_vm4, %v2934_v60, %v3051_v28 }
 0x2f3   :  { %v2938_v50 = vrot.slane %v2701_v45, %v19888_v31 }
 0x2f5   :  { %v3053_v26 = vsel %vm1893_vm5, %v2938_v50, %v3052_v23  ;;  %v2974_v50 = vrot.slane %v2728_v1, %v19888_v31  ;;  %v2990_v1 = vrot.slane %v2740_v24, %v19888_v31 }
 0x2f6   :  { %v2707_v13 = vpop.permute.xlu1 %2706  ;;  %v3054_v6 = vsel %vm1895_vm6, %v2942_v11, %v3053_v26  ;;  %v2982_v26 = vrot.slane %v2734_v20, %v19888_v31 }
 0x2f7   :  { %v2946_v36 = vrot.slane %v2707_v13, %v19888_v31  ;;  %v2746_v13 = vpop.permute.xlu0 %2745 }
 0x2f9   :  { %v3055_v29 = vsel %vm1897_vm7, %v2946_v36, %v3054_v6 }
 0x2fa   :  { %v2713_v55 = vpop.permute.xlu1 %2712  ;;  %v3056_v3 = vsel %vm1899_vm8, %v2950_v16, %v3055_v29 }
 0x2fb   :  { %v3094_v18 = vsel %vm1958_vm9, %v3056_v3, 0.0  ;;  %v2954_v33 = vrot.slane %v2713_v55, %v19888_v31  ;;  %v2752_v3 = vpop.permute.xlu0 %2751 }
 0x2fc   :  { %3095 = vadd.xlane.f32.xlu1 %v3094_v18 }
 0x2fd   :  { %v3057_v47 = vsel %vm1887_vm2, %v2958_v9, %v2954_v33  ;;  %v2998_v9 = vrot.slane %v2746_v13, %v19888_v31 }
 0x2fe   :  { %v2719_v46 = vpop.permute.xlu1 %2718 }
 0x2ff   :  { %v2962_v5 = vrot.slane %v2719_v46, %v19888_v31 }
 0x301   :  { %v3058_v40 = vsel %vm1889_vm3, %v2962_v5, %v3057_v47 }
 0x302   :  { %v2725_v0 = vpop.permute.xlu1 %2724  ;;  %v3059_v60 = vsel %vm1891_vm4, %v2966_v12, %v3058_v40  ;;  %v2758_v40 = vpop.permute.xlu0 %2757 }
 0x303   :  { %v2970_v28 = vrot.slane %v2725_v0, %v19888_v31  ;;  %v3006_v0 = vrot.slane %v2752_v3, %v19888_v31 }
 0x305   :  { %v3060_v45 = vsel %vm1893_vm5, %v2970_v28, %v3059_v60  ;;  %v3014_v60 = vrot.slane %v2758_v40, %v19888_v31 }
 0x306   :  { %v2731_v15 = vpop.permute.xlu1 %2730  ;;  %v3061_v11 = vsel %vm1895_vm6, %v2974_v50, %v3060_v45 }
 0x307   :  { %v2978_v23 = vrot.slane %v2731_v15, %v19888_v31 }
 0x309   :  { %v3062_v25 = vsel %vm1897_vm7, %v2978_v23, %v3061_v11 }
 0x30a   :  { %v2737_v36 = vpop.permute.xlu1 %2736  ;;  %v3063_v16 = vsel %vm1899_vm8, %v2982_v26, %v3062_v25 }
 0x30b   :  { %v3097_v6 = vsel %vm1958_vm9, %v3063_v16, 0.0  ;;  %v2986_v29 = vrot.slane %v2737_v36, %v19888_v31 }
 0x30c   :  { %3098 = vadd.xlane.f32.xlu0 %v3097_v6 }
 0x30d   :  { %v3064_v33 = vsel %vm1887_vm2, %v2990_v1, %v2986_v29 }
 0x30e   :  { %v2743_v55 = vpop.permute.xlu1 %2742 }
 0x30f   :  { %v2994_v18 = vrot.slane %v2743_v55, %v19888_v31 }
 0x311   :  { %v3065_v20 = vsel %vm1889_vm3, %v2994_v18, %v3064_v33 }
 0x312   :  { %v2749_v46 = vpop.permute.xlu1 %2748  ;;  %v3066_v47 = vsel %vm1891_vm4, %v2998_v9, %v3065_v20 }
 0x313   :  { %v3002_v5 = vrot.slane %v2749_v46, %v19888_v31 }
 0x315   :  { %v3067_v12 = vsel %vm1893_vm5, %v3002_v5, %v3066_v47 }
 0x316   :  { %v2755_v24 = vpop.permute.xlu1 %2754  ;;  %v3068_v45 = vsel %vm1895_vm6, %v3006_v0, %v3067_v12 }
 0x317   :  { %v3010_v28 = vrot.slane %v2755_v24, %v19888_v31 }
 0x319   :  { %v3069_v50 = vsel %vm1897_vm7, %v3010_v28, %v3068_v45 }
 0x31a   :  { %v3070_v15 = vsel %vm1899_vm8, %v3014_v60, %v3069_v50 }
 0x31b   :  { %v3100_v23 = vsel %vm1958_vm9, %v3070_v15, 0.0 }
 0x31c   :  { %3101 = vadd.xlane.f32.xlu1 %v3100_v23 }
 0x348   :  { %v3081_v26 = vpop.xlane.xlu1 %3080 }
 0x349   :  { %v3114_v11 = vrot.slane %v3081_v26, %v14032_v30  ;;  %v3118_v13 = vrot.slane %v3081_v26, %v14992_v53  ;;  %v3126_v25 = vrot.slane %v3081_v26, %v14998_v38  ;;  %v3122_v36 = vrot.slane %v3081_v26, %v14995_v7  ;;  %v3084_v1 = vpop.xlane.xlu0 %3083 }
 0x34a   :  { %v3134_v16 = vrot.slane %v3081_v26, %v15019_v62  ;;  %v3130_v6 = vrot.slane %v3081_v26, %v15004_v63  ;;  %v3142_v29 = vrot.slane %v3081_v26, %v15031_v27  ;;  %v3138_v55 = vrot.slane %v3081_v26, %v15027_v14 }
 0x34b   :  { %12839 = vrcp.f32 %v3114_v11  ;;  %v3150_v18 = vrot.slane %v3084_v1, %v14992_v53  ;;  %v3146_v9 = vrot.slane %v3084_v1, %v14032_v30  ;;  %v3158_v40 = vrot.slane %v3084_v1, %v14998_v38 }
 0x34c   :  { %12841 = vrcp.f32 %v3118_v13  ;;  %v3154_v0 = vrot.slane %v3084_v1, %v14995_v7  ;;  %v3162_v45 = vrot.slane %v3084_v1, %v15004_v63  ;;  %v3170_v11 = vrot.slane %v3084_v1, %v15027_v14 }
 0x34d   :  { %12843 = vrcp.f32 %v3126_v25 }
 0x34e   :  { %12845 = vrcp.f32 %v3122_v36 }
 0x34f   :  { %12847 = vrcp.f32 %v3134_v16 }
 0x350   :  { %12849 = vrcp.f32 %v3130_v6 }
 0x351   :  { %12851 = vrcp.f32 %v3142_v29 }
 0x352   :  { %12853 = vrcp.f32 %v3138_v55 }
 0x353   :  { %12855 = vrcp.f32 %v3150_v18 }
 0x354   :  { %12857 = vrcp.f32 %v3146_v9 }
 0x355   :  { %v12840_v3 = vpop.eup %12839  ;;  %12859 = vrcp.f32 %v3158_v40 }
 0x356   :  { %v12842_v33 = vpop.eup %12841  ;;  %v3432_v20 = vmul.f32 %v12840_v3, %v15036_v58  ;;  %12861 = vrcp.f32 %v3154_v0 }
 0x357   :  { %v12844_v46 = vpop.eup %12843  ;;  %v3434_v5 = vmul.f32 %v12842_v33, %v15040_v48  ;;  %v3166_v48 = vrot.slane %v3084_v1, %v15019_v62 }
 0x358   :  { %v12846_v47 = vpop.eup %12845  ;;  %3561 = vperm.xlu0 %12565, %v3432_v20   ;;  %v3438_v12 = vmul.f32 %v12844_v46, %v15057_v2 }
 0x359   :  { %3566 = vperm.xlu1 %12566, %v3434_v5   ;;  %v12848_v24 = vpop.eup %12847  ;;  %v3436_v58 = vmul.f32 %v12846_v47, %v15051_v59  ;;  %12863 = vrcp.f32 %v3166_v48  ;;  %v3174_v59 = vrot.slane %v3084_v1, %v15031_v27  ;;  %v3087_v23 = vpop.xlane.xlu0 %3086 }
 0x35a   :  { %v12850_v28 = vpop.eup %12849  ;;  %v3442_v60 = vmul.f32 %v12848_v24, %v15088_v32  ;;  %12865 = vrcp.f32 %v3162_v45  ;;  %v3178_v16 = vrot.slane %v3087_v23, %v14032_v30  ;;  %v3186_v55 = vrot.slane %v3087_v23, %v14995_v7 }
 0x35b   :  { %v12852_v50 = vpop.eup %12851  ;;  %v3440_v2 = vmul.f32 %v12850_v28, %v15069_v34  ;;  %12867 = vrcp.f32 %v3174_v59  ;;  %v3182_v34 = vrot.slane %v3087_v23, %v14992_v53  ;;  %v3194_v20 = vrot.slane %v3087_v23, %v15004_v63 }
 0x35c   :  { %3576 = vperm.xlu0 %12565, %v3438_v12   ;;  %v12854_v15 = vpop.eup %12853  ;;  %v3446_v26 = vmul.f32 %v12852_v50, %v15112_v43  ;;  %12869 = vrcp.f32 %v3170_v11  ;;  %v3202_v40 = vrot.slane %v3087_v23, %v15027_v14 }
 0x35d   :  { %3571 = vperm.xlu1 %12566, %v3436_v58   ;;  %v12856_v13 = vpop.eup %12855  ;;  %v3444_v32 = vmul.f32 %v12854_v15, %v15100_v44  ;;  %12871 = vrcp.f32 %v3182_v34  ;;  %v3190_v44 = vrot.slane %v3087_v23, %v14998_v38 }
 0x35e   :  { %v12858_v25 = vpop.eup %12857  ;;  %v3450_v36 = vmul.f32 %v12856_v13, %v15062_v19  ;;  %12873 = vrcp.f32 %v3178_v16 }
 0x35f   :  { %v12860_v6 = vpop.eup %12859  ;;  %v3448_v43 = vmul.f32 %v12858_v25, %v15124_v37  ;;  %12875 = vrcp.f32 %v3190_v44  ;;  %v3198_v37 = vrot.slane %v3087_v23, %v15019_v62 }
 0x360   :  { %3586 = vperm.xlu0 %12565, %v3442_v60   ;;  %v12862_v29 = vpop.eup %12861  ;;  %v3454_v1 = vmul.f32 %v12860_v6, %v15074_v49  ;;  %12877 = vrcp.f32 %v3186_v55  ;;  %v19889_v55 = vld [vmem:[#allocation109_spill] sm:$0xff] }
 0x361   :  { %3581 = vperm.xlu1 %12566, %v3440_v2   ;;  %v3452_v19 = vmul.f32 %v12862_v29, %v15138_v56  ;;  %12879 = vrcp.f32 %v3198_v37  ;;  %v3206_v56 = vrot.slane %v3087_v23, %v15031_v27 }
 0x362   :  { %12881 = vrcp.f32 %v3194_v20  ;;  %v19891_v20 = vld [vmem:[#allocation111_spill] sm:$0xff] }
 0x363   :  { %v12864_v3 = vpop.eup %12863  ;;  %12883 = vrcp.f32 %v3206_v56  ;;  %v19892_v56 = vld [vmem:[#allocation105_spill] sm:$0xff] }
 0x364   :  { %3596 = vperm.xlu0 %12565, %v3446_v26   ;;  %v12866_v18 = vpop.eup %12865  ;;  %v3458_v33 = vmul.f32 %v12864_v3, %v15084_v61  ;;  %12885 = vrcp.f32 %v3202_v40 }
 0x365   :  { %3591 = vperm.xlu1 %12566, %v3444_v32   ;;  %v12868_v9 = vpop.eup %12867  ;;  %v3456_v49 = vmul.f32 %v12866_v18, %v15150_v52 }
 0x366   :  { %v12870_v46 = vpop.eup %12869  ;;  %v3462_v47 = vmul.f32 %v12868_v9, %v15098_v57 }
 0x367   :  { %v12872_v12 = vpop.eup %12871  ;;  %v3460_v61 = vmul.f32 %v12870_v46, %v15162_v51 }
 0x368   :  { %3606 = vperm.xlu0 %12565, %v3450_v36   ;;  %v12874_v0 = vpop.eup %12873  ;;  %v3466_v24 = vmul.f32 %v12872_v12, %v15110_v17  ;;  %v19893_v12 = vld [vmem:[#allocation76_spill] sm:$0xff] }
 0x369   :  { %3601 = vperm.xlu1 %12566, %v3448_v43   ;;  %v3090_v5 = vpop.xlane.xlu1 %3089  ;;  %v12876_v28 = vpop.eup %12875  ;;  %v3464_v57 = vmul.f32 %v12874_v0, %v15174_v10 }
 0x36a   :  { %v3214_v52 = vrot.slane %v3090_v5, %v14992_v53  ;;  %v3210_v58 = vrot.slane %v3090_v5, %v14032_v30  ;;  %v12878_v48 = vpop.eup %12877  ;;  %v3222_v51 = vrot.slane %v3090_v5, %v14998_v38  ;;  %v3470_v60 = vmul.f32 %v12876_v28, %v15122_v42 }
 0x36b   :  { %v3218_v45 = vrot.slane %v3090_v5, %v14995_v7  ;;  %v12880_v50 = vpop.eup %12879  ;;  %v3468_v17 = vmul.f32 %v12878_v48, %v15188_v22  ;;  %v3230_v10 = vrot.slane %v3090_v5, %v15019_v62  ;;  %v3226_v59 = vrot.slane %v3090_v5, %v15004_v63  ;;  %v19895_v48 = vld [vmem:[#allocation77_spill] sm:$0xff] }
 0x36c   :  { %3616 = vperm.xlu0 %12565, %v3454_v1   ;;  %12887 = vrcp.f32 %v3214_v52  ;;  %v12882_v2 = vpop.eup %12881  ;;  %v3474_v15 = vmul.f32 %v12880_v50, %v15134_v8  ;;  %v3238_v22 = vrot.slane %v3090_v5, %v15031_v27  ;;  %v3234_v32 = vrot.slane %v3090_v5, %v15027_v14  ;;  %v19896_v50 = vld [vmem:[#allocation107_spill] sm:$0xff] }
 0x36d   :  { %3611 = vperm.xlu1 %12566, %v3452_v19   ;;  %12889 = vrcp.f32 %v3210_v58  ;;  %v12884_v23 = vpop.eup %12883  ;;  %v3472_v42 = vmul.f32 %v12882_v2, %v15200_v21  ;;  %v19890_v19 = vld [vmem:[#allocation104_spill] sm:$0xff] }
 0x36e   :  { %12891 = vrcp.f32 %v3222_v51  ;;  %v12886_v26 = vpop.eup %12885  ;;  %v3478_v13 = vmul.f32 %v12884_v23, %v15148_v35 }
 0x36f   :  { %12893 = vrcp.f32 %v3218_v45  ;;  %v3476_v8 = vmul.f32 %v12886_v26, %v15212_v41  ;;  %v19898_v26 = vld [vmem:[#allocation108_spill] sm:$0xff] }
 0x370   :  { %3626 = vperm.xlu0 %12565, %v3458_v33   ;;  %12895 = vrcp.f32 %v3230_v10 }
 0x371   :  { %3621 = vperm.xlu1 %12566, %v3456_v49   ;;  %12897 = vrcp.f32 %v3226_v59 }
 0x372   :  { %12899 = vrcp.f32 %v3238_v22 }
 0x373   :  { %12901 = vrcp.f32 %v3234_v32  ;;  %v19899_v32 = vld [vmem:[#allocation79_spill] sm:$0xff] }
 0x374   :  { %3636 = vperm.xlu0 %12565, %v3462_v47  }
 0x375   :  { %3631 = vperm.xlu1 %12566, %v3460_v61  }
 0x376   :  { %v12888_v25 = vpop.eup %12887 }
 0x377   :  { %v12890_v34 = vpop.eup %12889  ;;  %v3482_v36 = vmul.f32 %v12888_v25, %v15160_v39 }
 0x378   :  { %3646 = vperm.xlu0 %12565, %v3466_v24   ;;  %v12892_v6 = vpop.eup %12891  ;;  %v3480_v35 = vmul.f32 %v12890_v34, %v15224_v4  ;;  %v19894_v24 = vld [vmem:[#allocation106_spill] sm:$0xff] }
 0x379   :  { %3641 = vperm.xlu1 %12566, %v3464_v57   ;;  %v3093_v11 = vpop.xlane.xlu0 %3092  ;;  %v12894_v43 = vpop.eup %12893  ;;  %v3486_v29 = vmul.f32 %v12892_v6, %v15172_v54 }
 0x37a   :  { %v3246_v21 = vrot.slane %v3093_v11, %v14992_v53  ;;  %v3242_v16 = vrot.slane %v3093_v11, %v14032_v30  ;;  %v3254_v41 = vrot.slane %v3093_v11, %v14998_v38  ;;  %v3250_v44 = vrot.slane %v3093_v11, %v14995_v7  ;;  %v12896_v1 = vpop.eup %12895 }
 0x37b   :  { %v3484_v39 = vmul.f32 %v12894_v43, %v19889_v55  ;;  %v12898_v3 = vpop.eup %12897  ;;  %v3262_v4 = vrot.slane %v3093_v11, %v15019_v62  ;;  %v3490_v18 = vmul.f32 %v12896_v1, %v19890_v19  ;;  %v3258_v37 = vrot.slane %v3093_v11, %v15004_v63  ;;  %v19901_v43 = vld [vmem:[#allocation80_spill] sm:$0xff]  ;;  %v19902_v1 = vld [vmem:[#allocation81_spill] sm:$0xff] }
 0x37c   :  { %3656 = vperm.xlu0 %12565, %v3470_v60   ;;  %12903 = vrcp.f32 %v3246_v21  ;;  %v12900_v33 = vpop.eup %12899  ;;  %v3488_v54 = vmul.f32 %v12898_v3, %v19891_v20  ;;  %v3270_v49 = vrot.slane %v3093_v11, %v15031_v27  ;;  %v3266_v47 = vrot.slane %v3093_v11, %v15027_v14 }
 0x37d   :  { %3651 = vperm.xlu1 %12566, %v3468_v17   ;;  %12905 = vrcp.f32 %v3242_v16  ;;  %v12902_v9 = vpop.eup %12901  ;;  %v3494_v5 = vmul.f32 %v12900_v33, %v19892_v56  ;;  %v19904_v33 = vld [vmem:[#allocation83_spill] sm:$0xff] }
 0x37e   :  { %12907 = vrcp.f32 %v3254_v41  ;;  %v3492_v61 = vmul.f32 %v12902_v9, %v19893_v12 }
 0x37f   :  { %12909 = vrcp.f32 %v3250_v44 }
 0x380   :  { %3666 = vperm.xlu0 %12565, %v3474_v15   ;;  %12911 = vrcp.f32 %v3262_v4  ;;  %v19897_v15 = vld [vmem:[#allocation78_spill] sm:$0xff] }
 0x381   :  { %3661 = vperm.xlu1 %12566, %v3472_v42   ;;  %12913 = vrcp.f32 %v3258_v37  ;;  %v19903_v4 = vld [vmem:[#allocation82_spill] sm:$0xff] }
 0x382   :  { %12915 = vrcp.f32 %v3270_v49  ;;  %v19905_v49 = vld [vmem:[#allocation84_spill] sm:$0xff] }
 0x383   :  { %12917 = vrcp.f32 %v3266_v47  ;;  %v19906_v47 = vld [vmem:[#allocation85_spill] sm:$0xff] }
 0x384   :  { %3676 = vperm.xlu0 %12565, %v3478_v13  }
 0x385   :  { %3671 = vperm.xlu1 %12566, %v3476_v8  }
 0x386   :  { %v12904_v40 = vpop.eup %12903 }
 0x387   :  { %v12906_v0 = vpop.eup %12905  ;;  %v3498_v58 = vmul.f32 %v12904_v40, %v19894_v24 }
 0x388   :  { %3686 = vperm.xlu0 %12565, %v3482_v36   ;;  %v12908_v57 = vpop.eup %12907  ;;  %v3496_v51 = vmul.f32 %v12906_v0, %v19895_v48  ;;  %v19900_v36 = vld [vmem:[#allocation110_spill] sm:$0xff] }
 0x389   :  { %3681 = vperm.xlu1 %12566, %v3480_v35   ;;  %v3096_v46 = vpop.xlane.xlu1 %3095  ;;  %v12910_v60 = vpop.eup %12909  ;;  %v3502_v17 = vmul.f32 %v12908_v57, %v19896_v50  ;;  %v19907_v0 = vld [vmem:[#allocation86_spill] sm:$0xff]  ;;  %v19908_v57 = vld [vmem:[#allocation87_spill] sm:$0xff] }
 0x38a   :  { %v3278_v52 = vrot.slane %v3096_v46, %v14992_v53  ;;  %v3274_v28 = vrot.slane %v3096_v46, %v14032_v30  ;;  %v3286_v45 = vrot.slane %v3096_v46, %v14998_v38  ;;  %v3282_v2 = vrot.slane %v3096_v46, %v14995_v7  ;;  %v12912_v10 = vpop.eup %12911 }
 0x38b   :  { %v3500_v59 = vmul.f32 %v12910_v60, %v19897_v15  ;;  %v12914_v23 = vpop.eup %12913  ;;  %v3294_v42 = vrot.slane %v3096_v46, %v15019_v62  ;;  %v3506_v22 = vmul.f32 %v12912_v10, %v19898_v26  ;;  %v3290_v11 = vrot.slane %v3096_v46, %v15004_v63  ;;  %v19910_v10 = vld [vmem:[#allocation89_spill] sm:$0xff] }
 0x38c   :  { %3696 = vperm.xlu0 %12565, %v3486_v29   ;;  %12919 = vrcp.f32 %v3278_v52  ;;  %v12916_v13 = vpop.eup %12915  ;;  %v3504_v25 = vmul.f32 %v12914_v23, %v19899_v32  ;;  %v3302_v34 = vrot.slane %v3096_v46, %v15031_v27  ;;  %v3298_v6 = vrot.slane %v3096_v46, %v15027_v14 }
 0x38d   :  { %3691 = vperm.xlu1 %12566, %v3484_v39   ;;  %12921 = vrcp.f32 %v3274_v28  ;;  %v12918_v8 = vpop.eup %12917  ;;  %v3510_v16 = vmul.f32 %v12916_v13, %v19900_v36  ;;  %v19912_v13 = vld [vmem:[#allocation91_spill] sm:$0xff] }
 0x38e   :  { %12923 = vrcp.f32 %v3286_v45  ;;  %v3508_v41 = vmul.f32 %v12918_v8, %v19901_v43  ;;  %v19909_v45 = vld [vmem:[#allocation112_spill] sm:$0xff] }
 0x38f   :  { %12925 = vrcp.f32 %v3282_v2 }
 0x390   :  { %3706 = vperm.xlu0 %12565, %v3490_v18   ;;  %12927 = vrcp.f32 %v3294_v42  ;;  %v19911_v42 = vld [vmem:[#allocation113_spill] sm:$0xff] }
 0x391   :  { %3701 = vperm.xlu1 %12566, %v3488_v54   ;;  %12929 = vrcp.f32 %v3290_v11 }
 0x392   :  { %12931 = vrcp.f32 %v3302_v34  ;;  %v19913_v34 = vld [vmem:[#allocation114_spill] sm:$0xff] }
 0x393   :  { %12933 = vrcp.f32 %v3298_v6  ;;  %v19914_v6 = vld [vmem:[#allocation93_spill] sm:$0xff] }
 0x394   :  { %3716 = vperm.xlu0 %12565, %v3494_v5  }
 0x395   :  { %3711 = vperm.xlu1 %12566, %v3492_v61  }
 0x396   :  { %v12920_v35 = vpop.eup %12919 }
 0x397   :  { %v12922_v29 = vpop.eup %12921  ;;  %v3514_v55 = vmul.f32 %v12920_v35, %v19902_v1 }
 0x398   :  { %3726 = vperm.xlu0 %12565, %v3498_v58   ;;  %v12924_v3 = vpop.eup %12923  ;;  %v3512_v19 = vmul.f32 %v12922_v29, %v19903_v4  ;;  %v19915_v29 = vld [vmem:[#allocation115_spill] sm:$0xff] }
 0x399   :  { %3721 = vperm.xlu1 %12566, %v3496_v51   ;;  %v3099_v21 = vpop.xlane.xlu0 %3098  ;;  %v12926_v18 = vpop.eup %12925  ;;  %v3518_v20 = vmul.f32 %v12924_v3, %v19904_v33 }
 0x39a   :  { %v3310_v44 = vrot.slane %v3099_v21, %v14992_v53  ;;  %v3306_v39 = vrot.slane %v3099_v21, %v14032_v30  ;;  %v3318_v37 = vrot.slane %v3099_v21, %v14998_v38  ;;  %v3314_v54 = vrot.slane %v3099_v21, %v14995_v7  ;;  %v12928_v9 = vpop.eup %12927 }
 0x39b   :  { %v3516_v46 = vmul.f32 %v12926_v18, %v19905_v49  ;;  %v12930_v56 = vpop.eup %12929  ;;  %v3326_v5 = vrot.slane %v3099_v21, %v15019_v62  ;;  %v3522_v40 = vmul.f32 %v12928_v9, %v19906_v47  ;;  %v3322_v12 = vrot.slane %v3099_v21, %v15004_v63  ;;  %v19917_v18 = vld [vmem:[#allocation96_spill] sm:$0xff] }
 0x39c   :  { %3736 = vperm.xlu0 %12565, %v3502_v17   ;;  %12935 = vrcp.f32 %v3310_v44  ;;  %v12932_v61 = vpop.eup %12931  ;;  %v3520_v52 = vmul.f32 %v12930_v56, %v19907_v0  ;;  %v3334_v58 = vrot.slane %v3099_v21, %v15031_v27  ;;  %v3330_v51 = vrot.slane %v3099_v21, %v15027_v14  ;;  %v19919_v49 = vld [vmem:[#allocation116_spill] sm:$0xff] }
 0x39d   :  { %3731 = vperm.xlu1 %12566, %v3500_v59   ;;  %12937 = vrcp.f32 %v3306_v39  ;;  %v12934_v24 = vpop.eup %12933  ;;  %v3526_v48 = vmul.f32 %v12932_v61, %v19908_v57  ;;  %v19916_v39 = vld [vmem:[#allocation95_spill] sm:$0xff] }
 0x39e   :  { %12939 = vrcp.f32 %v3318_v37  ;;  %v3524_v50 = vmul.f32 %v12934_v24, %v19909_v45  ;;  %v19925_v45 = vld [vmem:[#allocation119_spill] sm:$0xff] }
 0x39f   :  { %12941 = vrcp.f32 %v3314_v54 }
 0x3a0   :  { %3746 = vperm.xlu0 %12565, %v3506_v22   ;;  %12943 = vrcp.f32 %v3326_v5  ;;  %v19920_v5 = vld [vmem:[#allocation90_spill] sm:$0xff] }
 0x3a1   :  { %3741 = vperm.xlu1 %12566, %v3504_v25   ;;  %12945 = vrcp.f32 %v3322_v12  ;;  %v19921_v12 = vld [vmem:[#allocation117_spill] sm:$0xff] }
 0x3a2   :  { %12947 = vrcp.f32 %v3334_v58 }
 0x3a3   :  { %12949 = vrcp.f32 %v3330_v51  ;;  %v19924_v51 = vld [vmem:[#allocation94_spill] sm:$0xff] }
 0x3a4   :  { %3756 = vperm.xlu0 %12565, %v3510_v16  }
 0x3a5   :  { %3751 = vperm.xlu1 %12566, %v3508_v41  }
 0x3a6   :  { %v12936_v60 = vpop.eup %12935 }
 0x3a7   :  { %v12938_v17 = vpop.eup %12937  ;;  %v3530_v15 = vmul.f32 %v12936_v60, %v19910_v10  ;;  %v19926_v10 = vld [vmem:[#allocation6_spill] sm:$0xff] }
 0x3a8   :  { %3766 = vperm.xlu0 %12565, %v3514_v55   ;;  %v12940_v23 = vpop.eup %12939  ;;  %v3528_v26 = vmul.f32 %v12938_v17, %v19911_v42 }
 0x3a9   :  { %3761 = vperm.xlu1 %12566, %v3512_v19   ;;  %v3102_v28 = vpop.xlane.xlu1 %3101  ;;  %v12942_v22 = vpop.eup %12941  ;;  %v3534_v32 = vmul.f32 %v12940_v23, %v19912_v13 }
 0x3aa   :  { %v3342_v2 = vrot.slane %v3102_v28, %v14992_v53  ;;  %v3338_v59 = vrot.slane %v3102_v28, %v14032_v30  ;;  %v3350_v11 = vrot.slane %v3102_v28, %v14998_v38  ;;  %v3346_v25 = vrot.slane %v3102_v28, %v14995_v7  ;;  %v12944_v8 = vpop.eup %12943 }
 0x3ab   :  { %v3532_v21 = vmul.f32 %v12942_v22, %v19913_v34  ;;  %v12946_v36 = vpop.eup %12945  ;;  %v3358_v16 = vrot.slane %v3102_v28, %v15019_v62  ;;  %v3538_v35 = vmul.f32 %v12944_v8, %v19914_v6  ;;  %v3354_v43 = vrot.slane %v3102_v28, %v15004_v63 }
 0x3ac   :  { %3776 = vperm.xlu0 %12565, %v3518_v20   ;;  %12951 = vrcp.f32 %v3342_v2  ;;  %v12948_v41 = vpop.eup %12947  ;;  %v3536_v44 = vmul.f32 %v12946_v36, %v19915_v29  ;;  %v3366_v55 = vrot.slane %v3102_v28, %v15031_v27  ;;  %v3362_v4 = vrot.slane %v3102_v28, %v15027_v14  ;;  %v19918_v20 = vld [vmem:[#allocation88_spill] sm:$0xff]  ;;  %v19923_v28 = vld [vmem:[#allocation118_spill] sm:$0xff] }
 0x3ad   :  { %3771 = vperm.xlu1 %12566, %v3516_v46   ;;  %12953 = vrcp.f32 %v3338_v59  ;;  %v12950_v1 = vpop.eup %12949  ;;  %v3542_v3 = vmul.f32 %v12948_v41, %v19916_v39  ;;  %v19927_v59 = vld [vmem:[#allocation5_spill] sm:$0xff]  ;;  %v19930_v39 = vld [vmem:[#allocation12_spill] sm:$0xff] }
 0x3ae   :  { %12955 = vrcp.f32 %v3350_v11  ;;  %v3540_v37 = vmul.f32 %v12950_v1, %v19917_v18  ;;  %v19931_v18 = vld [vmem:[#allocation13_spill] sm:$0xff] }
 0x3af   :  { %12957 = vrcp.f32 %v3346_v25  ;;  %v19928_v25 = vld [vmem:[#allocation8_spill] sm:$0xff] }
 0x3b0   :  { %3786 = vperm.xlu0 %12565, %v3522_v40   ;;  %12959 = vrcp.f32 %v3358_v16 }
 0x3b1   :  { %3781 = vperm.xlu1 %12566, %v3520_v52   ;;  %12961 = vrcp.f32 %v3354_v43  ;;  %v19922_v52 = vld [vmem:[#allocation92_spill] sm:$0xff] }
 0x3b2   :  { %12963 = vrcp.f32 %v3366_v55 }
 0x3b3   :  { %12965 = vrcp.f32 %v3362_v4 }
 0x3b4   :  { %3796 = vperm.xlu0 %12565, %v3526_v48  }
 0x3b5   :  { %3791 = vperm.xlu1 %12566, %v3524_v50  }
 0x3b6   :  { %v12952_v19 = vpop.eup %12951 }
 0x3b7   :  { %v12954_v33 = vpop.eup %12953  ;;  %v3546_v54 = vmul.f32 %v12952_v19, %v19918_v20 }
 0x3b8   :  { %3806 = vperm.xlu0 %12565, %v3530_v15   ;;  %v12956_v9 = vpop.eup %12955  ;;  %v3544_v46 = vmul.f32 %v12954_v33, %v19919_v49 }
 0x3b9   :  { %3801 = vperm.xlu1 %12566, %v3528_v26   ;;  %v12958_v56 = vpop.eup %12957  ;;  %v3550_v47 = vmul.f32 %v12956_v9, %v19920_v5 }
 0x3ba   :  { %v12960_v40 = vpop.eup %12959  ;;  %v3548_v61 = vmul.f32 %v12958_v56, %v19921_v12 }
 0x3bb   :  { %v12962_v0 = vpop.eup %12961  ;;  %v3554_v24 = vmul.f32 %v12960_v40, %v19922_v52 }
 0x3bc   :  { %3816 = vperm.xlu0 %12565, %v3534_v32   ;;  %v12964_v58 = vpop.eup %12963  ;;  %v3552_v57 = vmul.f32 %v12962_v0, %v19923_v28  ;;  %v19932_v0 = vld [vmem:[#allocation20_spill] sm:$0xff] }
 0x3bd   :  { %3811 = vperm.xlu1 %12566, %v3532_v21   ;;  %v12966_v48 = vpop.eup %12965  ;;  %v3558_v60 = vmul.f32 %v12964_v58, %v19924_v51  ;;  %v19929_v21 = vld [vmem:[#allocation10_spill] sm:$0xff] }
 0x3be   :  { %v3556_v50 = vmul.f32 %v12966_v48, %v19925_v45 }
 0x3c0   :  { %3826 = vperm.xlu0 %12565, %v3538_v35  }
 0x3c1   :  { %3821 = vperm.xlu1 %12566, %v3536_v44  }
 0x3c4   :  { %3836 = vperm.xlu0 %12565, %v3542_v3  }
 0x3c5   :  { %3831 = vperm.xlu1 %12566, %v3540_v37  }
 0x3c8   :  { %3846 = vperm.xlu0 %12565, %v3546_v54  }
 0x3c9   :  { %3841 = vperm.xlu1 %12566, %v3544_v46  }
 0x3cc   :  { %3856 = vperm.xlu0 %12565, %v3550_v47  }
 0x3cd   :  { %3851 = vperm.xlu1 %12566, %v3548_v61  }
 0x3d0   :  { %3866 = vperm.xlu0 %12565, %v3554_v24  }
 0x3d1   :  { %3861 = vperm.xlu1 %12566, %v3552_v57   ;;  %v19933_v57 = vld [vmem:[#allocation19_spill] sm:$0xff] }
 0x3d4   :  { %3876 = vperm.xlu0 %12565, %v3558_v60  }
 0x3d5   :  { %3871 = vperm.xlu1 %12566, %v3556_v50  }
 0x3d7   :  { %v3562_v17 = vpop.permute.xlu0 %3561 }
 0x3d8   :  { %v3567_v2 = vpop.permute.xlu1 %3566  ;;  %v3879_v15 = vmul.f32 %v3562_v17, %v19926_v10 }
 0x3d9   :  { %v3880_v23 = vmul.f32 %v3567_v2, %v19927_v59 }
 0x3da   :  { %v3943_v42 = vsel %vm204_vm1, %v3879_v15, 0.0 }
 0x3db   :  { %v3950_v26 = vsel %vm204_vm1, %v3880_v23, 0.0  ;;  %v3944_v22 = vrot.slane %v3943_v42, 4  ;;  %v3577_v11 = vpop.permute.xlu0 %3576 }
 0x3dc   :  { %v3951_v13 = vrot.slane %v3950_v26, 4  ;;  %v3572_v32 = vpop.permute.xlu1 %3571  ;;  %v3882_v8 = vmul.f32 %v3577_v11, %v19928_v25 }
 0x3dd   :  { %v3945_v34 = vadd.f32 %v3944_v22, %v3943_v42  ;;  %v3881_v36 = vmul.f32 %v3572_v32, %v19929_v21 }
 0x3de   :  { %v3952_v16 = vadd.f32 %v3951_v13, %v3950_v26  ;;  %v3964_v6 = vsel %vm204_vm1, %v3882_v8, 0.0 }
 0x3df   :  { %v3946_v35 = vrot.slane %v3945_v34, 2  ;;  %v3957_v43 = vsel %vm204_vm1, %v3881_v36, 0.0  ;;  %v3965_v41 = vrot.slane %v3964_v6, 4  ;;  %v3587_v29 = vpop.permute.xlu0 %3586  ;;  %v19934_v36 = vld [vmem:[#allocation11_spill] sm:$0xff] }
 0x3e0   :  { %v3953_v44 = vrot.slane %v3952_v16, 2  ;;  %v3958_v1 = vrot.slane %v3957_v43, 4  ;;  %v3582_v55 = vpop.permute.xlu1 %3581  ;;  %v3884_v3 = vmul.f32 %v3587_v29, %v19930_v39 }
 0x3e1   :  { %v3947_v4 = vadd.f32 %v3946_v35, %v3945_v34  ;;  %v3966_v19 = vadd.f32 %v3965_v41, %v3964_v6  ;;  %v3883_v37 = vmul.f32 %v3582_v55, %v19931_v18  ;;  %v19935_v41 = vld [vmem:[#allocation9_spill] sm:$0xff] }
 0x3e2   :  { %v3954_v33 = vadd.f32 %v3953_v44, %v3952_v16  ;;  %v3959_v20 = vadd.f32 %v3958_v1, %v3957_v43  ;;  %v3978_v54 = vsel %vm204_vm1, %v3884_v3, 0.0 }
 0x3e3   :  { %v3948_v9 = vrot.slane %v3947_v4, 1  ;;  %v3967_v49 = vrot.slane %v3966_v19, 2  ;;  %v3971_v46 = vsel %vm204_vm1, %v3883_v37, 0.0  ;;  %v3979_v56 = vrot.slane %v3978_v54, 4  ;;  %v3597_v5 = vpop.permute.xlu0 %3596 }
 0x3e4   :  { %v3955_v47 = vrot.slane %v3954_v33, 1  ;;  %v3960_v40 = vrot.slane %v3959_v20, 2  ;;  %v3972_v12 = vrot.slane %v3971_v46, 4  ;;  %v3592_v61 = vpop.permute.xlu1 %3591  ;;  %v3886_v52 = vmul.f32 %v3597_v5, %v19932_v0 }
 0x3e5   :  { %v3949_v24 = vadd.f32 %v3948_v9, %v3947_v4  ;;  %v3968_v58 = vadd.f32 %v3967_v49, %v3966_v19  ;;  %v3980_v28 = vadd.f32 %v3979_v56, %v3978_v54  ;;  %v3885_v48 = vmul.f32 %v3592_v61, %v19933_v57 }
 0x3e6   :  { %v3956_v51 = vadd.f32 %v3955_v47, %v3954_v33  ;;  %v3961_v60 = vadd.f32 %v3960_v40, %v3959_v20  ;;  %v3973_v45 = vadd.f32 %v3972_v12, %v3971_v46  ;;  %v3992_v50 = vsel %vm204_vm1, %v3886_v52, 0.0  ;;  %v19936_v52 = vld [vmem:[#allocation15_spill] sm:$0xff] }
 0x3e7   :  { %v3969_v17 = vrot.slane %v3968_v58, 1  ;;  %v3981_v2 = vrot.slane %v3980_v28, 2  ;;  %v3985_v15 = vsel %vm204_vm1, %v3885_v48, 0.0  ;;  %v3993_v23 = vrot.slane %v3992_v50, 4  ;;  %v3607_v42 = vpop.permute.xlu0 %3606 }
 0x3e8   :  { %v3962_v26 = vrot.slane %v3961_v60, 1  ;;  %v3974_v22 = vrot.slane %v3973_v45, 2  ;;  %v3986_v11 = vrot.slane %v3985_v15, 4  ;;  %v3602_v13 = vpop.permute.xlu1 %3601  ;;  %v3888_v29 = vmul.f32 %v3607_v42, %v19935_v41  ;;  %v19938_v42 = vld [vmem:[#allocation17_spill] sm:$0xff] }
 0x3e9   :  { %v3970_v32 = vadd.f32 %v3969_v17, %v3968_v58  ;;  %v3982_v8 = vadd.f32 %v3981_v2, %v3980_v28  ;;  %v3994_v34 = vadd.f32 %v3993_v23, %v3992_v50  ;;  %v3887_v16 = vmul.f32 %v3602_v13, %v19934_v36  ;;  %v19937_v58 = vld [vmem:[#allocation14_spill] sm:$0xff] }
 0x3ea   :  { %v3963_v6 = vadd.f32 %v3962_v26, %v3961_v60  ;;  %v3975_v35 = vadd.f32 %v3974_v22, %v3973_v45  ;;  %v3987_v43 = vadd.f32 %v3986_v11, %v3985_v15  ;;  %v4455_v44 = vsel %vm1887_vm2, %v3956_v51, %v3949_v24 }
 0x3eb   :  { %v3983_v1 = vrot.slane %v3982_v8, 1  ;;  %v3995_v55 = vrot.slane %v3994_v34, 2  ;;  %v3999_v3 = vsel %vm204_vm1, %v3887_v16, 0.0  ;;  %v3617_v4 = vpop.permute.xlu0 %3616  ;;  %v4006_v46 = vsel %vm204_vm1, %v3888_v29, 0.0  ;;  %v19939_v16 = vld [vmem:[#allocation16_spill] sm:$0xff] }
 0x3ec   :  { %v4456_v19 = vsel %vm1889_vm3, %v3963_v6, %v4455_v44  ;;  %v3976_v37 = vrot.slane %v3975_v35, 1  ;;  %v3988_v33 = vrot.slane %v3987_v43, 2  ;;  %v4000_v20 = vrot.slane %v3999_v3, 4  ;;  %v3612_v54 = vpop.permute.xlu1 %3611 }
 0x3ed   :  { %v4457_v9 = vsel %vm1891_vm4, %v3970_v32, %v4456_v19  ;;  %v3996_v49 = vadd.f32 %v3995_v55, %v3994_v34  ;;  %v4007_v40 = vrot.slane %v4006_v46, 4  ;;  %v3984_v12 = vadd.f32 %v3983_v1, %v3982_v8 }
 0x3ee   :  { %v3977_v56 = vadd.f32 %v3976_v37, %v3975_v35  ;;  %v3989_v5 = vadd.f32 %v3988_v33, %v3987_v43  ;;  %v4001_v47 = vadd.f32 %v4000_v20, %v3999_v3  ;;  %v3889_v24 = vmul.f32 %v3612_v54, %v19936_v52  ;;  %v19940_v37 = vld [vmem:[#allocation21_spill] sm:$0xff]  ;;  %v19941_v20 = vld [vmem:[#allocation23_spill] sm:$0xff] }
 0x3ef   :  { %v3997_v61 = vrot.slane %v3996_v49, 1  ;;  %v3890_v28 = vmul.f32 %v3617_v4, %v19937_v58  ;;  %v3627_v48 = vpop.permute.xlu0 %3626  ;;  %v4008_v50 = vadd.f32 %v4007_v40, %v4006_v46 }
 0x3f0   :  { %v4458_v51 = vsel %vm1893_vm5, %v3977_v56, %v4457_v9  ;;  %v3990_v60 = vrot.slane %v3989_v5, 1  ;;  %v4002_v45 = vrot.slane %v4001_v47, 2  ;;  %v3622_v17 = vpop.permute.xlu1 %3621  ;;  %v4013_v15 = vsel %vm204_vm1, %v3889_v24, 0.0 }
 0x3f1   :  { %v15684_v2 = vadd.f32 %v3997_v61, %v3996_v49  ;;  %v4020_v23 = vsel %vm204_vm1, %v3890_v28, 0.0  ;;  %v3891_v26 = vmul.f32 %v3622_v17, %v19938_v42  ;;  %v4009_v13 = vrot.slane %v4008_v50, 2 }
 0x3f2   :  { %v15689_v22 = vadd.f32 %v3990_v60, %v3989_v5  ;;  %v4003_v11 = vadd.f32 %v4002_v45, %v4001_v47  ;;  %v4014_v32 = vrot.slane %v4013_v15, 4  ;;  %v4021_v8 = vrot.slane %v4020_v23, 4 }
 0x3f3   :  { %v4027_v34 = vsel %vm204_vm1, %v3891_v26, 0.0  ;;  %v3892_v6 = vmul.f32 %v3627_v48, %v19939_v16  ;;  %v3637_v35 = vpop.permute.xlu0 %3636  ;;  %v15694_v43 = vsel %vm1895_vm6, %v3984_v12, %v4458_v51  ;;  %v4010_v44 = vadd.f32 %v4009_v13, %v4008_v50 }
 0x3f4   :  { %v4004_v29 = vrot.slane %v4003_v11, 1  ;;  %v4015_v1 = vadd.f32 %v4014_v32, %v4013_v15  ;;  %v4028_v55 = vrot.slane %v4027_v34, 4  ;;  %v3632_v3 = vpop.permute.xlu1 %3631  ;;  %v4022_v4 = vadd.f32 %v4021_v8, %v4020_v23  ;;  %v19942_v15 = vld [vmem:[#allocation24_spill] sm:$0xff] }
 0x3f5   :  { %v4034_v19 = vsel %vm204_vm1, %v3892_v6, 0.0  ;;  %v3893_v33 = vmul.f32 %v3632_v3, %v19940_v37  ;;  %v3894_v54 = vmul.f32 %v3637_v35, %v19941_v20  ;;  %v4011_v49 = vrot.slane %v4010_v44, 1 }
 0x3f6   :  { %v4005_v9 = vadd.f32 %v4004_v29, %v4003_v11  ;;  %v4016_v46 = vrot.slane %v4015_v1, 2  ;;  %v4029_v56 = vadd.f32 %v4028_v55, %v4027_v34  ;;  %v4023_v5 = vrot.slane %v4022_v4, 2 }
 0x3f7   :  { %v4035_v47 = vrot.slane %v4034_v19, 4  ;;  %v4041_v40 = vsel %vm204_vm1, %v3893_v33, 0.0  ;;  %v4048_v12 = vsel %vm204_vm1, %v3894_v54, 0.0  ;;  %v3647_v61 = vpop.permute.xlu0 %3646  ;;  %v4012_v24 = vadd.f32 %v4011_v49, %v4010_v44  ;;  %v19943_v49 = vld [vmem:[#allocation18_spill] sm:$0xff] }
 0x3f8   :  { %v4017_v28 = vadd.f32 %v4016_v46, %v4015_v1  ;;  %v4030_v48 = vrot.slane %v4029_v56, 2  ;;  %v4042_v51 = vrot.slane %v4041_v40, 4  ;;  %v3642_v60 = vpop.permute.xlu1 %3641  ;;  %v4024_v45 = vadd.f32 %v4023_v5, %v4022_v4 }
 0x3f9   :  { %v4036_v50 = vadd.f32 %v4035_v47, %v4034_v19  ;;  %v4049_v17 = vrot.slane %v4048_v12, 4  ;;  %v3895_v23 = vmul.f32 %v3642_v60, %v19942_v15  ;;  %v4462_v26 = vsel %vm1887_vm2, %v4012_v24, %v4005_v9 }
 0x3fa   :  { %v4018_v11 = vrot.slane %v4017_v28, 1  ;;  %v4031_v13 = vadd.f32 %v4030_v48, %v4029_v56  ;;  %v4043_v32 = vadd.f32 %v4042_v51, %v4041_v40  ;;  %v4025_v8 = vrot.slane %v4024_v45, 1 }
 0x3fb   :  { %v4037_v34 = vrot.slane %v4036_v50, 2  ;;  %v4050_v6 = vadd.f32 %v4049_v17, %v4048_v12  ;;  %v4055_v35 = vsel %vm204_vm1, %v3895_v23, 0.0  ;;  %v3657_v29 = vpop.permute.xlu0 %3656  ;;  %v3896_v46 = vmul.f32 %v3647_v61, %v19943_v49 }
 0x3fc   :  { %v4019_v44 = vadd.f32 %v4018_v11, %v4017_v28  ;;  %v4032_v1 = vrot.slane %v4031_v13, 1  ;;  %v4044_v55 = vrot.slane %v4043_v32, 2  ;;  %v4056_v3 = vrot.slane %v4055_v35, 4  ;;  %v3652_v4 = vpop.permute.xlu1 %3651  ;;  %v19944_v11 = vld [vmem:[#allocation26_spill] sm:$0xff] }
 0x3fd   :  { %v4026_v19 = vadd.f32 %v4025_v8, %v4024_v45  ;;  %v4038_v33 = vadd.f32 %v4037_v34, %v4036_v50  ;;  %v4051_v54 = vrot.slane %v4050_v6, 2  ;;  %v4062_v28 = vsel %vm204_vm1, %v3896_v46, 0.0 }
 0x3fe   :  { %v4463_v9 = vsel %vm1889_vm3, %v4019_v44, %v4462_v26  ;;  %v4033_v56 = vadd.f32 %v4032_v1, %v4031_v13  ;;  %v4045_v5 = vadd.f32 %v4044_v55, %v4043_v32  ;;  %v4057_v47 = vadd.f32 %v4056_v3, %v4055_v35  ;;  %v19945_v44 = vld [vmem:[#allocation2_spill] sm:$0xff]  ;;  %v19946_v3 = vld [vmem:[#allocation25_spill] sm:$0xff] }
 0x3ff   :  { %v4464_v40 = vsel %vm1891_vm4, %v4026_v19, %v4463_v9  ;;  %v4039_v12 = vrot.slane %v4038_v33, 1  ;;  %v4052_v24 = vadd.f32 %v4051_v54, %v4050_v6  ;;  %v3667_v48 = vpop.permute.xlu0 %3666  ;;  %v4063_v50 = vrot.slane %v4062_v28, 4  ;;  %v19947_v54 = vld [vmem:[#allocation28_spill] sm:$0xff] }
 0x400   :  { %v15709_v51 = vsel %vm1893_vm5, %v4033_v56, %v4464_v40  ;;  %v4046_v60 = vrot.slane %v4045_v5, 1  ;;  %v4058_v45 = vrot.slane %v4057_v47, 2  ;;  %v3662_v17 = vpop.permute.xlu1 %3661  ;;  %v4460_v26 = vsel %vm1897_vm7, %v15689_v22, %v15694_v43  ;;  %v19949_v40 = vld [vmem:[#allocation30_spill] sm:$0xff] }
 0x401   :  { %v15711_v61 = vadd.f32 %v4039_v12, %v4038_v33  ;;  %v4053_v23 = vrot.slane %v4052_v24, 1  ;;  %v3897_v13 = vmul.f32 %v3652_v4, %v19944_v11  ;;  %v4064_v34 = vadd.f32 %v4063_v50, %v4062_v28 }
 0x402   :  { %v15717_v32 = vadd.f32 %v4046_v60, %v4045_v5  ;;  %v4059_v8 = vadd.f32 %v4058_v45, %v4057_v47  ;;  %v4461_v6 = vsel %vm1899_vm8, %v15684_v2, %v4460_v26  ;;  %v3898_v19 = vmul.f32 %v3657_v29, %v19946_v3  ;;  %v19948_v5 = vld [vmem:[#allocation27_spill] sm:$0xff] }
 0x403   :  { %v15721_v35 = vadd.f32 %v4053_v23, %v4052_v24  ;;  %v15724_v1 = vadd.f32 %v4461_v6, %v19945_v44  ;;  %v4069_v55 = vsel %vm204_vm1, %v3897_v13, 0.0  ;;  %v3677_v33 = vpop.permute.xlu0 %3676  ;;  %v4065_v43 = vrot.slane %v4064_v34, 2 }
 0x404   :  { %v4060_v22 = vrot.slane %v4059_v8, 1  ;;  %v4070_v4 = vrot.slane %v4069_v55, 4  ;;  %v3899_v46 = vmul.f32 %v3662_v17, %v19947_v54  ;;  %v3672_v9 = vpop.permute.xlu1 %3671  ;;  %v4076_v2 = vsel %vm204_vm1, %v3898_v19, 0.0 }
 0x405   :  { %v4527_v56 = vmul.f32 %v15724_v1, %v15724_v1  ;;  %v3900_v47 = vmul.f32 %v3667_v48, %v19948_v5  ;;  %v3901_v12 = vmul.f32 %v3672_v9, %v19949_v40  ;;  %v4066_v28 = vadd.f32 %v4065_v43, %v4064_v34  ;;  %v19950_v34 = vld [vmem:[#allocation29_spill] sm:$0xff] }
 0x406   :  { %v4061_v24 = vadd.f32 %v4060_v22, %v4059_v8  ;;  %v4071_v60 = vadd.f32 %v4070_v4, %v4069_v55  ;;  %v4077_v29 = vrot.slane %v4076_v2, 4  ;;  %v4083_v50 = vsel %vm204_vm1, %v3899_v46, 0.0  ;;  %v19951_v22 = vld [vmem:[#allocation33_spill] sm:$0xff] }
 0x407   :  { %v4535_v45 = vsel %vm91_vm0, %v4527_v56, 0.0  ;;  %v4090_v17 = vsel %vm204_vm1, %v3900_v47, 0.0  ;;  %v4097_v23 = vsel %vm204_vm1, %v3901_v12, 0.0  ;;  %v3687_v26 = vpop.permute.xlu0 %3686  ;;  %v4067_v13 = vrot.slane %v4066_v28, 1 }
 0x408   :  { %4536 = vadd.xlane.f32.xlu1 %v4535_v45  ;;  %v4072_v6 = vrot.slane %v4071_v60, 2  ;;  %v4078_v19 = vadd.f32 %v4077_v29, %v4076_v2  ;;  %v4084_v48 = vrot.slane %v4083_v50, 4  ;;  %v3682_v44 = vpop.permute.xlu1 %3681  ;;  %v4091_v9 = vrot.slane %v4090_v17, 4 }
 0x409   :  { %v4098_v8 = vrot.slane %v4097_v23, 4  ;;  %v3902_v55 = vmul.f32 %v3677_v33, %v19950_v34  ;;  %v3903_v43 = vmul.f32 %v3682_v44, %v19951_v22  ;;  %v4068_v4 = vadd.f32 %v4067_v13, %v4066_v28 }
 0x40a   :  { %v4073_v56 = vadd.f32 %v4072_v6, %v4071_v60  ;;  %v4079_v46 = vrot.slane %v4078_v19, 2  ;;  %v4085_v14 = vadd.f32 %v4084_v48, %v4083_v50  ;;  %v4092_v47 = vadd.f32 %v4091_v9, %v4090_v17  ;;  %v19952_v17 = vld [vmem:[#allocation31_spill] sm:$0xff] }
 0x40b   :  { %v4099_v27 = vadd.f32 %v4098_v8, %v4097_v23  ;;  %v4104_v12 = vsel %vm204_vm1, %v3902_v55, 0.0  ;;  %v4111_v45 = vsel %vm204_vm1, %v3903_v43, 0.0  ;;  %v3697_v63 = vpop.permute.xlu0 %3696  ;;  %v4469_v2 = vsel %vm1887_vm2, %v4068_v4, %v4061_v24 }
 0x40c   :  { %v4074_v29 = vrot.slane %v4073_v56, 1  ;;  %v4080_v62 = vadd.f32 %v4079_v46, %v4078_v19  ;;  %v4086_v38 = vrot.slane %v4085_v14, 2  ;;  %v3692_v7 = vpop.permute.xlu1 %3691  ;;  %v4093_v33 = vrot.slane %v4092_v47, 2 }
 0x40d   :  { %v4100_v53 = vrot.slane %v4099_v27, 2  ;;  %v4105_v44 = vrot.slane %v4104_v12, 4  ;;  %v4112_v28 = vrot.slane %v4111_v45, 4  ;;  %v3904_v23 = vmul.f32 %v3687_v26, %v19952_v17 }
 0x40e   :  { %v4075_v60 = vadd.f32 %v4074_v29, %v4073_v56  ;;  %v4081_v13 = vrot.slane %v4080_v62, 1  ;;  %v4087_v50 = vadd.f32 %v4086_v38, %v4085_v14  ;;  %v4094_v6 = vadd.f32 %v4093_v33, %v4092_v47 }
 0x40f   :  { %v4101_v48 = vadd.f32 %v4100_v53, %v4099_v27  ;;  %v4106_v9 = vadd.f32 %v4105_v44, %v4104_v12  ;;  %v4113_v8 = vadd.f32 %v4112_v28, %v4111_v45  ;;  %v3707_v55 = vpop.permute.xlu0 %3706  ;;  %v4118_v4 = vsel %vm204_vm1, %v3904_v23, 0.0  ;;  %v19953_v44 = vld [vmem:[#allocation35_spill] sm:$0xff] }
 0x410   :  { %v4470_v24 = vsel %vm1889_vm3, %v4075_v60, %v4469_v2  ;;  %v4082_v43 = vadd.f32 %v4081_v13, %v4080_v62  ;;  %v4088_v19 = vrot.slane %v4087_v50, 1  ;;  %v3702_v46 = vpop.permute.xlu1 %3701  ;;  %v4095_v31 = vrot.slane %v4094_v6, 1 }
 0x411   :  { %v4102_v34 = vrot.slane %v4101_v48, 1  ;;  %v4107_v40 = vrot.slane %v4106_v9, 2  ;;  %v4114_v56 = vrot.slane %v4113_v8, 2  ;;  %v4119_v26 = vrot.slane %v4118_v4, 4 }
 0x412   :  { %v4471_v38 = vsel %vm1891_vm4, %v4082_v43, %v4470_v24  ;;  %v4089_v14 = vadd.f32 %v4088_v19, %v4087_v50  ;;  %v4466_v53 = vsel %vm1895_vm6, %v15711_v61, %v15709_v51  ;;  %v15750_v27 = vadd.f32 %v4095_v31, %v4094_v6  ;;  %v19954_v51 = vld [vmem:[#allocation34_spill] sm:$0xff] }
 0x413   :  { %v15752_v47 = vadd.f32 %v4102_v34, %v4101_v48  ;;  %v4108_v62 = vadd.f32 %v4107_v40, %v4106_v9  ;;  %v4115_v12 = vadd.f32 %v4114_v56, %v4113_v8  ;;  %v3717_v45 = vpop.permute.xlu0 %3716  ;;  %v4120_v29 = vadd.f32 %v4119_v26, %v4118_v4  ;;  %v19955_v34 = vld [vmem:[#allocation4_spill] sm:$0xff]  ;;  %v19956_v48 = vld [vmem:[#allocation37_spill] sm:$0xff] }
 0x414   :  { %v15755_v2 = vsel %vm1893_vm5, %v4089_v14, %v4471_v38  ;;  %v4467_v33 = vsel %vm1897_vm7, %v15717_v32, %v4466_v53  ;;  %v3905_v28 = vmul.f32 %v3692_v7, %v19953_v44  ;;  %v3712_v60 = vpop.permute.xlu1 %3711  ;;  %v3906_v61 = vmul.f32 %v3697_v63, %v19954_v51  ;;  %v19957_v26 = vld [vmem:[#allocation36_spill] sm:$0xff] }
 0x415   :  { %v4109_v13 = vrot.slane %v4108_v62, 1  ;;  %v4116_v50 = vrot.slane %v4115_v12, 1  ;;  %v4468_v31 = vsel %vm1899_vm8, %v15721_v35, %v4467_v33  ;;  %v4121_v40 = vrot.slane %v4120_v29, 2 }
 0x416   :  { %v15764_v23 = vadd.f32 %v4468_v31, %v19955_v34  ;;  %v4125_v6 = vsel %vm204_vm1, %v3905_v28, 0.0  ;;  %v3907_v9 = vmul.f32 %v3702_v46, %v19956_v48  ;;  %v4132_v24 = vsel %vm204_vm1, %v3906_v61, 0.0  ;;  %v19958_v46 = vld [vmem:[#allocation39_spill] sm:$0xff] }
 0x417   :  { %v15768_v8 = vadd.f32 %v4109_v13, %v4108_v62  ;;  %v4117_v32 = vadd.f32 %v4116_v50, %v4115_v12  ;;  %v4126_v7 = vrot.slane %v4125_v6, 4  ;;  %v3727_v43 = vpop.permute.xlu0 %3726  ;;  %v4122_v19 = vadd.f32 %v4121_v40, %v4120_v29  ;;  %v19959_v13 = vld [vmem:[#allocation38_spill] sm:$0xff] }
 0x418   :  { %v4528_v35 = vmul.f32 %v15764_v23, %v15764_v23  ;;  %v4133_v63 = vrot.slane %v4132_v24, 4  ;;  %v4139_v4 = vsel %vm204_vm1, %v3907_v9, 0.0  ;;  %v3722_v56 = vpop.permute.xlu1 %3721  ;;  %v3908_v53 = vmul.f32 %v3707_v55, %v19957_v26 }
 0x419   :  { %v4127_v38 = vadd.f32 %v4126_v7, %v4125_v6  ;;  %v4140_v14 = vrot.slane %v4139_v4, 4  ;;  %v3909_v62 = vmul.f32 %v3712_v60, %v19958_v46  ;;  %v4123_v33 = vrot.slane %v4122_v19, 1 }
 0x41a   :  { %v4538_v12 = vsel %vm91_vm0, %v4528_v35, 0.0  ;;  %v4134_v28 = vadd.f32 %v4133_v63, %v4132_v24  ;;  %v3910_v50 = vmul.f32 %v3717_v45, %v19959_v13  ;;  %v4146_v61 = vsel %vm204_vm1, %v3908_v53, 0.0  ;;  %v19960_v24 = vld [vmem:[#allocation41_spill] sm:$0xff] }
 0x41b   :  { %4539 = vadd.xlane.f32.xlu0 %v4538_v12  ;;  %v4128_v29 = vrot.slane %v4127_v38, 2  ;;  %v4141_v31 = vadd.f32 %v4140_v14, %v4139_v4  ;;  %v4153_v40 = vsel %vm204_vm1, %v3909_v62, 0.0  ;;  %v3737_v9 = vpop.permute.xlu0 %3736  ;;  %v4124_v6 = vadd.f32 %v4123_v33, %v4122_v19 }
 0x41c   :  { %v4135_v7 = vrot.slane %v4134_v28, 2  ;;  %v4147_v34 = vrot.slane %v4146_v61, 4  ;;  %v4154_v55 = vrot.slane %v4153_v40, 4  ;;  %v3732_v20 = vpop.permute.xlu1 %3731  ;;  %v4160_v35 = vsel %vm204_vm1, %v3910_v50, 0.0 }
 0x41d   :  { %v4129_v60 = vadd.f32 %v4128_v29, %v4127_v38  ;;  %v4142_v46 = vrot.slane %v4141_v31, 2  ;;  %v3911_v63 = vmul.f32 %v3722_v56, %v19960_v24  ;;  %v4476_v45 = vsel %vm1887_vm2, %v4124_v6, %v4117_v32  ;;  %v19961_v56 = vld [vmem:[#allocation40_spill] sm:$0xff] }
 0x41e   :  { %v4136_v12 = vadd.f32 %v4135_v7, %v4134_v28  ;;  %v4148_v4 = vadd.f32 %v4147_v34, %v4146_v61  ;;  %v4155_v14 = vadd.f32 %v4154_v55, %v4153_v40  ;;  %v4161_v62 = vrot.slane %v4160_v35, 4 }
 0x41f   :  { %v4130_v53 = vrot.slane %v4129_v60, 1  ;;  %v4143_v13 = vadd.f32 %v4142_v46, %v4141_v31  ;;  %v4167_v19 = vsel %vm204_vm1, %v3911_v63, 0.0  ;;  %v3747_v33 = vpop.permute.xlu0 %3746  ;;  %v3912_v51 = vmul.f32 %v3727_v43, %v19961_v56 }
 0x420   :  { %v4137_v37 = vrot.slane %v4136_v12, 1  ;;  %v4149_v0 = vrot.slane %v4148_v4, 2  ;;  %v4156_v57 = vrot.slane %v4155_v14, 2  ;;  %v4168_v38 = vrot.slane %v4167_v19, 4  ;;  %v3742_v29 = vpop.permute.xlu1 %3741 }
 0x421   :  { %v4131_v26 = vadd.f32 %v4130_v53, %v4129_v60  ;;  %v4144_v50 = vrot.slane %v4143_v13, 1  ;;  %v4162_v48 = vadd.f32 %v4161_v62, %v4160_v35  ;;  %v4174_v6 = vsel %vm204_vm1, %v3912_v51, 0.0 }
 0x422   :  { %v4138_v32 = vadd.f32 %v4137_v37, %v4136_v12  ;;  %v4150_v28 = vadd.f32 %v4149_v0, %v4148_v4  ;;  %v4157_v34 = vadd.f32 %v4156_v57, %v4155_v14  ;;  %v4169_v61 = vadd.f32 %v4168_v38, %v4167_v19  ;;  %v19962_v14 = vld [vmem:[#allocation44_spill] sm:$0xff]  ;;  %v19963_v38 = vld [vmem:[#allocation7_spill] sm:$0xff] }
 0x423   :  { %v4477_v46 = vsel %vm1889_vm3, %v4131_v26, %v4476_v45  ;;  %v4145_v31 = vadd.f32 %v4144_v50, %v4143_v13  ;;  %v4163_v40 = vrot.slane %v4162_v48, 2  ;;  %v3757_v7 = vpop.permute.xlu0 %3756  ;;  %v4175_v0 = vrot.slane %v4174_v6, 4 }
 0x424   :  { %v4478_v55 = vsel %vm1891_vm4, %v4138_v32, %v4477_v46  ;;  %v4151_v63 = vrot.slane %v4150_v28, 1  ;;  %v4158_v44 = vrot.slane %v4157_v34, 1  ;;  %v4170_v60 = vrot.slane %v4169_v61, 2  ;;  %v3752_v53 = vpop.permute.xlu1 %3751  ;;  %v19966_v46 = vld [vmem:[#allocation45_spill] sm:$0xff] }
 0x425   :  { %v15789_v35 = vsel %vm1893_vm5, %v4145_v31, %v4478_v55  ;;  %v4164_v37 = vadd.f32 %v4163_v40, %v4162_v48  ;;  %v4473_v57 = vsel %vm1895_vm6, %v15750_v27, %v15755_v2  ;;  %v4176_v12 = vadd.f32 %v4175_v0, %v4174_v6  ;;  %v19964_v27 = vld [vmem:[#allocation43_spill] sm:$0xff] }
 0x426   :  { %v15794_v43 = vadd.f32 %v4151_v63, %v4150_v28  ;;  %v15796_v26 = vadd.f32 %v4158_v44, %v4157_v34  ;;  %v4171_v51 = vadd.f32 %v4170_v60, %v4169_v61  ;;  %v4474_v13 = vsel %vm1897_vm7, %v15752_v47, %v4473_v57  ;;  %v19965_v44 = vld [vmem:[#allocation46_spill] sm:$0xff] }
 0x427   :  { %v4165_v45 = vrot.slane %v4164_v37, 1  ;;  %v4475_v4 = vsel %vm1899_vm8, %v15768_v8, %v4474_v13  ;;  %v3913_v48 = vmul.f32 %v3732_v20, %v19962_v14  ;;  %v3767_v62 = vpop.permute.xlu0 %3766  ;;  %v3914_v2 = vmul.f32 %v3737_v9, %v19964_v27 }
 0x428   :  { %v4172_v19 = vrot.slane %v4171_v51, 1  ;;  %v15804_v50 = vadd.f32 %v4475_v4, %v19963_v38  ;;  %v3915_v32 = vmul.f32 %v3742_v29, %v19965_v44  ;;  %v3762_v28 = vpop.permute.xlu1 %3761  ;;  %v4177_v47 = vrot.slane %v4176_v12, 2  ;;  %v19967_v4 = vld [vmem:[#allocation48_spill] sm:$0xff]  ;;  %v19969_v38 = vld [vmem:[#allocation51_spill] sm:$0xff] }
 0x429   :  { %v15808_v34 = vadd.f32 %v4165_v45, %v4164_v37  ;;  %v4181_v61 = vsel %vm204_vm1, %v3913_v48, 0.0  ;;  %v3916_v31 = vmul.f32 %v3747_v33, %v19966_v46  ;;  %v4188_v6 = vsel %vm204_vm1, %v3914_v2, 0.0 }
 0x42a   :  { %v4173_v8 = vadd.f32 %v4172_v19, %v4171_v51  ;;  %v4529_v20 = vmul.f32 %v15804_v50, %v15804_v50  ;;  %v4182_v40 = vrot.slane %v4181_v61, 4  ;;  %v4178_v55 = vadd.f32 %v4177_v47, %v4176_v12  ;;  %v19968_v19 = vld [vmem:[#allocation47_spill] sm:$0xff] }
 0x42b   :  { %v4189_v63 = vrot.slane %v4188_v6, 4  ;;  %v4195_v9 = vsel %vm204_vm1, %v3915_v32, 0.0  ;;  %v4202_v29 = vsel %vm204_vm1, %v3916_v31, 0.0  ;;  %v15817_v60 = vpop.permute.xlu0 %3776  ;;  %v3917_v48 = vmul.f32 %v3752_v53, %v19967_v4 }
 0x42c   :  { %v4541_v37 = vsel %vm91_vm0, %v4529_v20, 0.0  ;;  %v4183_v0 = vadd.f32 %v4182_v40, %v4181_v61  ;;  %v4196_v57 = vrot.slane %v4195_v9, 4  ;;  %v4203_v33 = vrot.slane %v4202_v29, 4  ;;  %v3772_v51 = vpop.permute.xlu1 %3771 }
 0x42d   :  { %v4179_v13 = vrot.slane %v4178_v55, 1  ;;  %4542 = vadd.xlane.f32.xlu0 %v4541_v37  ;;  %v4190_v45 = vadd.f32 %v4189_v63, %v4188_v6  ;;  %v3918_v12 = vmul.f32 %v3757_v7, %v19968_v19  ;;  %v3919_v31 = vmul.f32 %v3762_v28, %v19969_v38 }
 0x42e   :  { %v4184_v2 = vrot.slane %v4183_v0, 2  ;;  %v4197_v47 = vadd.f32 %v4196_v57, %v4195_v9  ;;  %v4204_v32 = vadd.f32 %v4203_v33, %v4202_v29  ;;  %v4209_v20 = vsel %vm204_vm1, %v3917_v48, 0.0 }
 0x42f   :  { %v4180_v46 = vadd.f32 %v4179_v13, %v4178_v55  ;;  %v4191_v44 = vrot.slane %v4190_v45, 2  ;;  %v4216_v61 = vsel %vm204_vm1, %v3918_v12, 0.0  ;;  %v3787_v40 = vpop.permute.xlu0 %3786  ;;  %v4210_v6 = vrot.slane %v4209_v20, 4  ;;  %v19970_v12 = vld [vmem:[#allocation50_spill] sm:$0xff] }
 0x430   :  { %v4185_v27 = vadd.f32 %v4184_v2, %v4183_v0  ;;  %v4198_v14 = vrot.slane %v4197_v47, 2  ;;  %v4205_v37 = vrot.slane %v4204_v32, 2  ;;  %v3782_v63 = vpop.permute.xlu1 %3781  ;;  %v4217_v19 = vrot.slane %v4216_v61, 4 }
 0x431   :  { %v4483_v53 = vsel %vm1887_vm2, %v4180_v46, %v4173_v8  ;;  %v4192_v7 = vadd.f32 %v4191_v44, %v4190_v45  ;;  %v4223_v9 = vsel %vm204_vm1, %v3919_v31, 0.0  ;;  %v4211_v57 = vadd.f32 %v4210_v6, %v4209_v20 }
 0x432   :  { %v4186_v29 = vrot.slane %v4185_v27, 1  ;;  %v4199_v28 = vadd.f32 %v4198_v14, %v4197_v47  ;;  %v4206_v55 = vadd.f32 %v4205_v37, %v4204_v32  ;;  %v4218_v13 = vadd.f32 %v4217_v19, %v4216_v61 }
 0x433   :  { %v4193_v33 = vrot.slane %v4192_v7, 1  ;;  %v4224_v48 = vrot.slane %v4223_v9, 4  ;;  %v3920_v4 = vmul.f32 %v3767_v62, %v19970_v12  ;;  %v3797_v0 = vpop.permute.xlu0 %3796  ;;  %v4212_v3 = vrot.slane %v4211_v57, 2 }
 0x434   :  { %v4187_v2 = vadd.f32 %v4186_v29, %v4185_v27  ;;  %v4200_v5 = vrot.slane %v4199_v28, 1  ;;  %v4207_v54 = vrot.slane %v4206_v55, 1  ;;  %v3792_v11 = vpop.permute.xlu1 %3791  ;;  %v4219_v44 = vrot.slane %v4218_v13, 2 }
 0x435   :  { %v4194_v46 = vadd.f32 %v4193_v33, %v4192_v7  ;;  %v4225_v8 = vadd.f32 %v4224_v48, %v4223_v9  ;;  %v4230_v45 = vsel %vm204_vm1, %v3920_v4, 0.0  ;;  %v4213_v19 = vadd.f32 %v4212_v3, %v4211_v57  ;;  %v19971_v4 = vld [vmem:[#allocation53_spill] sm:$0xff]  ;;  %v19972_v33 = vld [vmem:[#allocation52_spill] sm:$0xff]  ;;  %v19973_v48 = vld [vmem:[#allocation22_spill] sm:$0xff] }
 0x436   :  { %v4484_v14 = vsel %vm1889_vm3, %v4187_v2, %v4483_v53  ;;  %v4201_v47 = vadd.f32 %v4200_v5, %v4199_v28  ;;  %v15830_v32 = vadd.f32 %v4207_v54, %v4206_v55  ;;  %v4220_v62 = vadd.f32 %v4219_v44, %v4218_v13  ;;  %v19974_v44 = vld [vmem:[#allocation55_spill] sm:$0xff] }
 0x437   :  { %v4485_v31 = vsel %vm1891_vm4, %v4194_v46, %v4484_v14  ;;  %v4226_v20 = vrot.slane %v4225_v8, 2  ;;  %v4231_v27 = vrot.slane %v4230_v45, 4  ;;  %v4214_v37 = vrot.slane %v4213_v19, 1  ;;  %v3807_v5 = vpop.permute.xlu0 %3806 }
 0x438   :  { %v15834_v61 = vsel %vm1893_vm5, %v4201_v47, %v4485_v31  ;;  %v4480_v6 = vsel %vm1895_vm6, %v15794_v43, %v15789_v35  ;;  %v3921_v7 = vmul.f32 %v3772_v51, %v19971_v4  ;;  %v3802_v53 = vpop.permute.xlu1 %3801  ;;  %v4221_v54 = vrot.slane %v4220_v62, 1 }
 0x439   :  { %v4227_v9 = vadd.f32 %v4226_v20, %v4225_v8  ;;  %v4232_v3 = vadd.f32 %v4231_v27, %v4230_v45  ;;  %v4481_v29 = vsel %vm1897_vm7, %v15796_v26, %v4480_v6  ;;  %v15842_v28 = vadd.f32 %v4214_v37, %v4213_v19  ;;  %v19975_v45 = vld [vmem:[#allocation54_spill] sm:$0xff]  ;;  %v19976_v37 = vld [vmem:[#allocation57_spill] sm:$0xff] }
 0x43a   :  { %v4482_v55 = vsel %vm1899_vm8, %v15808_v34, %v4481_v29  ;;  %v4237_v57 = vsel %vm204_vm1, %v3921_v7, 0.0  ;;  %v3922_v35 = vmul.f32 %v15817_v60, %v19972_v33  ;;  %v15849_v43 = vadd.f32 %v4221_v54, %v4220_v62 }
 0x43b   :  { %v4228_v51 = vrot.slane %v4227_v9, 1  ;;  %v4233_v13 = vrot.slane %v4232_v3, 2  ;;  %v15852_v2 = vadd.f32 %v4482_v55, %v19973_v48  ;;  %v4238_v46 = vrot.slane %v4237_v57, 4  ;;  %v15864_v7 = vpop.permute.xlu0 %3816 }
 0x43c   :  { %v4244_v26 = vsel %vm204_vm1, %v3922_v35, 0.0  ;;  %v3923_v8 = vmul.f32 %v3782_v63, %v19974_v44  ;;  %v3924_v14 = vmul.f32 %v3787_v40, %v19975_v45  ;;  %v15857_v34 = vpop.permute.xlu1 %3811  ;;  %v3925_v6 = vmul.f32 %v3792_v11, %v19976_v37  ;;  %v19977_v35 = vld [vmem:[#allocation56_spill] sm:$0xff] }
 0x43d   :  { %v4229_v47 = vadd.f32 %v4228_v51, %v4227_v9  ;;  %v4234_v19 = vadd.f32 %v4233_v13, %v4232_v3  ;;  %v4530_v60 = vmul.f32 %v15852_v2, %v15852_v2  ;;  %v4245_v31 = vrot.slane %v4244_v26, 4  ;;  %v19978_v37 = vld [vmem:[#allocation60_spill] sm:$0xff] }
 0x43e   :  { %v4239_v62 = vadd.f32 %v4238_v46, %v4237_v57  ;;  %v4251_v20 = vsel %vm204_vm1, %v3923_v8, 0.0  ;;  %v4258_v27 = vsel %vm204_vm1, %v3924_v14, 0.0  ;;  %v4265_v55 = vsel %vm204_vm1, %v3925_v6, 0.0 }
 0x43f   :  { %v4235_v63 = vrot.slane %v4234_v19, 1  ;;  %v4544_v40 = vsel %vm91_vm0, %v4530_v60, 0.0  ;;  %v4246_v54 = vadd.f32 %v4245_v31, %v4244_v26  ;;  %v4252_v29 = vrot.slane %v4251_v20, 4 }
 0x440   :  { %4545 = vadd.xlane.f32.xlu1 %v4544_v40  ;;  %v4240_v9 = vrot.slane %v4239_v62, 2  ;;  %v4259_v3 = vrot.slane %v4258_v27, 4  ;;  %v3926_v57 = vmul.f32 %v3797_v0, %v19977_v35  ;;  %v4266_v8 = vrot.slane %v4265_v55, 4  ;;  %v3822_v60 = vpop.permute.xlu1 %3821 }
 0x441   :  { %v4236_v51 = vadd.f32 %v4235_v63, %v4234_v19  ;;  %v4247_v13 = vrot.slane %v4246_v54, 2  ;;  %v4253_v46 = vadd.f32 %v4252_v29, %v4251_v20  ;;  %v3927_v45 = vmul.f32 %v3802_v53, %v19978_v37  ;;  %v3827_v19 = vpop.permute.xlu0 %3826  ;;  %v19979_v53 = vld [vmem:[#allocation58_spill] sm:$0xff] }
 0x442   :  { %v4241_v14 = vadd.f32 %v4240_v9, %v4239_v62  ;;  %v4260_v11 = vadd.f32 %v4259_v3, %v4258_v27  ;;  %v4272_v48 = vsel %vm204_vm1, %v3926_v57, 0.0  ;;  %v4267_v44 = vadd.f32 %v4266_v8, %v4265_v55 }
 0x443   :  { %v4490_v26 = vsel %vm1887_vm2, %v4236_v51, %v4229_v47  ;;  %v4248_v31 = vadd.f32 %v4247_v13, %v4246_v54  ;;  %v4254_v40 = vrot.slane %v4253_v46, 2  ;;  %v4273_v4 = vrot.slane %v4272_v48, 4 }
 0x444   :  { %v4242_v33 = vrot.slane %v4241_v14, 1  ;;  %v4261_v6 = vrot.slane %v4260_v11, 2  ;;  %v4279_v0 = vsel %vm204_vm1, %v3927_v45, 0.0  ;;  %v4268_v62 = vrot.slane %v4267_v44, 2  ;;  %v3832_v16 = vpop.permute.xlu1 %3831 }
 0x445   :  { %v4249_v20 = vrot.slane %v4248_v31, 1  ;;  %v4255_v63 = vadd.f32 %v4254_v40, %v4253_v46  ;;  %v4280_v27 = vrot.slane %v4279_v0, 4  ;;  %v4274_v3 = vadd.f32 %v4273_v4, %v4272_v48  ;;  %v3837_v48 = vpop.permute.xlu0 %3836 }
 0x446   :  { %v4243_v29 = vadd.f32 %v4242_v33, %v4241_v14  ;;  %v4262_v9 = vadd.f32 %v4261_v6, %v4260_v11  ;;  %v3928_v57 = vmul.f32 %v3807_v5, %v19979_v53  ;;  %v4269_v54 = vadd.f32 %v4268_v62, %v4267_v44 }
 0x447   :  { %v4250_v35 = vadd.f32 %v4249_v20, %v4248_v31  ;;  %v4256_v47 = vrot.slane %v4255_v63, 1  ;;  %v4281_v51 = vadd.f32 %v4280_v27, %v4279_v0  ;;  %v4275_v8 = vrot.slane %v4274_v3, 2  ;;  %v19980_v20 = vld [vmem:[#allocation62_spill] sm:$0xff] }
 0x448   :  { %v4491_v55 = vsel %vm1889_vm3, %v4243_v29, %v4490_v26  ;;  %v4263_v13 = vrot.slane %v4262_v9, 1  ;;  %v4286_v45 = vsel %vm204_vm1, %v3928_v57, 0.0  ;;  %v4270_v46 = vrot.slane %v4269_v54, 1  ;;  %v19983_v29 = vld [vmem:[#allocation64_spill] sm:$0xff] }
 0x449   :  { %v4257_v42 = vadd.f32 %v4256_v47, %v4255_v63  ;;  %v4282_v40 = vrot.slane %v4281_v51, 2  ;;  %v4492_v33 = vsel %vm1891_vm4, %v4250_v35, %v4491_v55  ;;  %v15877_v14 = vadd.f32 %v4275_v8, %v4274_v3  ;;  %v19984_v47 = vld [vmem:[#allocation63_spill] sm:$0xff] }
 0x44a   :  { %v4287_v4 = vrot.slane %v4286_v45, 4  ;;  %v4487_v5 = vsel %vm1895_vm6, %v15830_v32, %v15834_v61  ;;  %v15885_v11 = vadd.f32 %v4263_v13, %v4262_v9  ;;  %v15889_v6 = vadd.f32 %v4270_v46, %v4269_v54  ;;  %v19981_v61 = vld [vmem:[#allocation32_spill] sm:$0xff]  ;;  %v3847_v46 = vpop.permute.xlu0 %3846 }
 0x44b   :  { %v15883_v44 = vsel %vm1893_vm5, %v4257_v42, %v4492_v33  ;;  %v4283_v26 = vadd.f32 %v4282_v40, %v4281_v51  ;;  %v4488_v31 = vsel %vm1897_vm7, %v15842_v28, %v4487_v5  ;;  %v3929_v63 = vmul.f32 %v15857_v34, %v19980_v20  ;;  %v19982_v42 = vld [vmem:[#allocation61_spill] sm:$0xff] }
 0x44c   :  { %v4288_v35 = vadd.f32 %v4287_v4, %v4286_v45  ;;  %v4489_v0 = vsel %vm1899_vm8, %v15849_v43, %v4488_v31  ;;  %v3930_v27 = vmul.f32 %v15864_v7, %v19982_v42  ;;  %v3931_v9 = vmul.f32 %v3822_v60, %v19983_v29  ;;  %v3842_v43 = vpop.permute.xlu1 %3841  ;;  %v19985_v31 = vld [vmem:[#allocation66_spill] sm:$0xff] }
 0x44d   :  { %v4284_v32 = vrot.slane %v4283_v26, 1  ;;  %v15896_v62 = vadd.f32 %v4489_v0, %v19981_v61  ;;  %v4277_v28 = vrot.slane %v15877_v14, 1  ;;  %v4293_v57 = vsel %vm204_vm1, %v3929_v63, 0.0  ;;  %v19986_v63 = vld [vmem:[#allocation65_spill] sm:$0xff]  ;;  %v19987_v61 = vld [vmem:[#allocation68_spill] sm:$0xff] }
 0x44e   :  { %v4289_v3 = vrot.slane %v4288_v35, 2  ;;  %v3932_v54 = vmul.f32 %v3827_v19, %v19984_v47  ;;  %v4294_v55 = vrot.slane %v4293_v57, 4  ;;  %v4300_v13 = vsel %vm204_vm1, %v3930_v27, 0.0 }
 0x44f   :  { %v4285_v51 = vadd.f32 %v4284_v32, %v4283_v26  ;;  %v4531_v34 = vmul.f32 %v15896_v62, %v15896_v62  ;;  %v4301_v45 = vrot.slane %v4300_v13, 4  ;;  %v4307_v7 = vsel %vm204_vm1, %v3931_v9, 0.0 }
 0x450   :  { %v4290_v8 = vadd.f32 %v4289_v3, %v4288_v35  ;;  %v4314_v60 = vsel %vm204_vm1, %v3932_v54, 0.0  ;;  %v4295_v33 = vadd.f32 %v4294_v55, %v4293_v57  ;;  %v4308_v4 = vrot.slane %v4307_v7, 4 }
 0x451   :  { %v4547_v40 = vsel %vm91_vm0, %v4531_v34, 0.0  ;;  %v4315_v19 = vrot.slane %v4314_v60, 4  ;;  %v4302_v26 = vadd.f32 %v4301_v45, %v4300_v13  ;;  %v3933_v0 = vmul.f32 %v3832_v16, %v19985_v31  ;;  %v3852_v34 = vpop.permute.xlu1 %3851 }
 0x452   :  { %v4291_v5 = vrot.slane %v4290_v8, 1  ;;  %4548 = vadd.xlane.f32.xlu0 %v4547_v40  ;;  %v3934_v32 = vmul.f32 %v3837_v48, %v19986_v63  ;;  %v4296_v27 = vrot.slane %v4295_v33, 2  ;;  %v4309_v35 = vadd.f32 %v4308_v4, %v4307_v7 }
 0x453   :  { %v4316_v3 = vadd.f32 %v4315_v19, %v4314_v60  ;;  %v3935_v9 = vmul.f32 %v3842_v43, %v19987_v61  ;;  %v4303_v54 = vrot.slane %v4302_v26, 2  ;;  %v4321_v29 = vsel %vm204_vm1, %v3933_v0, 0.0  ;;  %v3857_v60 = vpop.permute.xlu0 %3856 }
 0x454   :  { %v4292_v47 = vadd.f32 %v4291_v5, %v4290_v8  ;;  %v4328_v57 = vsel %vm204_vm1, %v3934_v32, 0.0  ;;  %v4297_v55 = vadd.f32 %v4296_v27, %v4295_v33  ;;  %v4310_v42 = vrot.slane %v4309_v35, 2  ;;  %v19988_v32 = vld [vmem:[#allocation67_spill] sm:$0xff] }
 0x455   :  { %v4317_v40 = vrot.slane %v4316_v3, 2  ;;  %v4322_v13 = vrot.slane %v4321_v29, 4  ;;  %v4304_v45 = vadd.f32 %v4303_v54, %v4302_v26  ;;  %v4329_v48 = vrot.slane %v4328_v57, 4 }
 0x456   :  { %v4497_v16 = vsel %vm1887_vm2, %v4292_v47, %v4285_v51  ;;  %v4335_v7 = vsel %vm204_vm1, %v3935_v9, 0.0  ;;  %v4298_v4 = vrot.slane %v4297_v55, 1  ;;  %v4311_v43 = vadd.f32 %v4310_v42, %v4309_v35  ;;  %v3862_v9 = vpop.permute.xlu1 %3861 }
 0x457   :  { %v4318_v8 = vadd.f32 %v4317_v40, %v4316_v3  ;;  %v4323_v19 = vadd.f32 %v4322_v13, %v4321_v29  ;;  %v4305_v5 = vrot.slane %v4304_v45, 1  ;;  %v4330_v0 = vadd.f32 %v4329_v48, %v4328_v57 }
 0x458   :  { %v4336_v63 = vrot.slane %v4335_v7, 4  ;;  %v3936_v31 = vmul.f32 %v3847_v46, %v19988_v32  ;;  %v4299_v33 = vadd.f32 %v4298_v4, %v4297_v55  ;;  %v4312_v27 = vrot.slane %v4311_v43, 1  ;;  %v3867_v55 = vpop.permute.xlu0 %3866 }
 0x459   :  { %v4319_v20 = vrot.slane %v4318_v8, 1  ;;  %v4324_v58 = vrot.slane %v4323_v19, 2  ;;  %v4306_v52 = vadd.f32 %v4305_v5, %v4304_v45  ;;  %v4331_v47 = vrot.slane %v4330_v0, 2 }
 0x45a   :  { %v4337_v51 = vadd.f32 %v4336_v63, %v4335_v7  ;;  %v4342_v26 = vsel %vm204_vm1, %v3936_v31, 0.0  ;;  %v4278_v54 = vadd.f32 %v4277_v28, %v15877_v14  ;;  %v4498_v42 = vsel %vm1889_vm3, %v4299_v33, %v4497_v16  ;;  %v19989_v31 = vld [vmem:[#allocation70_spill] sm:$0xff] }
 0x45b   :  { %v4313_v29 = vadd.f32 %v4312_v27, %v4311_v43  ;;  %v4325_v35 = vadd.f32 %v4324_v58, %v4323_v19  ;;  %v4320_v3 = vadd.f32 %v4319_v20, %v4318_v8  ;;  %v4332_v57 = vadd.f32 %v4331_v47, %v4330_v0  ;;  %v19992_v27 = vld [vmem:[#allocation72_spill] sm:$0xff]  ;;  %v19993_v47 = vld [vmem:[#allocation71_spill] sm:$0xff] }
 0x45c   :  { %v4338_v40 = vrot.slane %v4337_v51, 2  ;;  %v4343_v46 = vrot.slane %v4342_v26, 4  ;;  %v4499_v13 = vsel %vm1891_vm4, %v4306_v52, %v4498_v42  ;;  %v4494_v63 = vsel %vm1895_vm6, %v15885_v11, %v15883_v44  ;;  %v19990_v52 = vld [vmem:[#allocation69_spill] sm:$0xff]  ;;  %v19991_v44 = vld [vmem:[#allocation42_spill] sm:$0xff] }
 0x45d   :  { %v4326_v48 = vrot.slane %v4325_v35, 1  ;;  %v3937_v45 = vmul.f32 %v3852_v34, %v19989_v31  ;;  %v4333_v7 = vrot.slane %v4332_v57, 1  ;;  %v4495_v58 = vsel %vm1897_vm7, %v15889_v6, %v4494_v63  ;;  %v3872_v34 = vpop.permute.xlu1 %3871 }
 0x45e   :  { %v4339_v14 = vadd.f32 %v4338_v40, %v4337_v51  ;;  %v4344_v28 = vadd.f32 %v4343_v46, %v4342_v26  ;;  %v4500_v20 = vsel %vm1893_vm5, %v4313_v29, %v4499_v13  ;;  %v4496_v16 = vsel %vm1899_vm8, %v4278_v54, %v4495_v58  ;;  %v3877_v29 = vpop.permute.xlu0 %3876  ;;  %v19994_v46 = vld [vmem:[#allocation74_spill] sm:$0xff]  ;;  %v19995_v58 = vld [vmem:[#allocation73_spill] sm:$0xff] }
 0x45f   :  { %v4349_v4 = vsel %vm204_vm1, %v3937_v45, 0.0  ;;  %v3938_v43 = vmul.f32 %v3857_v60, %v19990_v52  ;;  %v4327_v8 = vadd.f32 %v4326_v48, %v4325_v35  ;;  %v4334_v19 = vadd.f32 %v4333_v7, %v4332_v57 }
 0x460   :  { %v4345_v5 = vrot.slane %v4344_v28, 2  ;;  %v15933_v11 = vadd.f32 %v4496_v16, %v19991_v44  ;;  %v4350_v0 = vrot.slane %v4349_v4, 4  ;;  %v3939_v6 = vmul.f32 %v3862_v9, %v19992_v27 }
 0x461   :  { %v4356_v33 = vsel %vm204_vm1, %v3938_v43, 0.0  ;;  %v3940_v51 = vmul.f32 %v3867_v55, %v19993_v47  ;;  %v4340_v26 = vrot.slane %v4339_v14, 1  ;;  %v3941_v13 = vmul.f32 %v3872_v34, %v19994_v46 }
 0x462   :  { %v4346_v54 = vadd.f32 %v4345_v5, %v4344_v28  ;;  %v4532_v42 = vmul.f32 %v15933_v11, %v15933_v11  ;;  %v4357_v60 = vrot.slane %v4356_v33, 4  ;;  %v4351_v35 = vadd.f32 %v4350_v0, %v4349_v4 }
 0x463   :  { %v4363_v57 = vsel %vm204_vm1, %v3939_v6, 0.0  ;;  %v4370_v40 = vsel %vm204_vm1, %v3940_v51, 0.0  ;;  %v4377_v28 = vsel %vm204_vm1, %v3941_v13, 0.0  ;;  %v3942_v16 = vmul.f32 %v3877_v29, %v19995_v58 }
 0x464   :  { %v4347_v48 = vrot.slane %v4346_v54, 1  ;;  %v4550_v63 = vsel %vm91_vm0, %v4532_v42, 0.0  ;;  %v4358_v9 = vadd.f32 %v4357_v60, %v4356_v33  ;;  %v4364_v45 = vrot.slane %v4363_v57, 4 }
 0x465   :  { %4551 = vadd.xlane.f32.xlu1 %v4550_v63  ;;  %v4352_v55 = vrot.slane %v4351_v35, 2  ;;  %v4371_v7 = vrot.slane %v4370_v40, 4  ;;  %v4341_v43 = vadd.f32 %v4340_v26, %v4339_v14  ;;  %v4378_v0 = vrot.slane %v4377_v28, 4 }
 0x466   :  { %v4359_v4 = vrot.slane %v4358_v9, 2  ;;  %v4365_v5 = vadd.f32 %v4364_v45, %v4363_v57  ;;  %v4348_v6 = vadd.f32 %v4347_v48, %v4346_v54  ;;  %v4384_v34 = vsel %vm204_vm1, %v3942_v16, 0.0  ;;  %v19996_v48 = vld [vmem:[#allocation49_spill] sm:$0xff] }
 0x467   :  { %v4353_v51 = vadd.f32 %v4352_v55, %v4351_v35  ;;  %v4372_v44 = vadd.f32 %v4371_v7, %v4370_v40  ;;  %v4379_v33 = vadd.f32 %v4378_v0, %v4377_v28  ;;  %v4501_v60 = vsel %vm1895_vm6, %v4320_v3, %v4500_v20 }
 0x468   :  { %v4360_v46 = vadd.f32 %v4359_v4, %v4358_v9  ;;  %v4366_v42 = vrot.slane %v4365_v5, 2  ;;  %v4385_v27 = vrot.slane %v4384_v34, 4  ;;  %v4502_v13 = vsel %vm1897_vm7, %v4327_v8, %v4501_v60 }
 0x469   :  { %v4354_v63 = vrot.slane %v4353_v51, 1  ;;  %v4373_v47 = vrot.slane %v4372_v44, 2  ;;  %v4380_v26 = vrot.slane %v4379_v33, 2  ;;  %v4503_v57 = vsel %vm1899_vm8, %v4334_v19, %v4502_v13 }
 0x46a   :  { %v4361_v29 = vrot.slane %v4360_v46, 1  ;;  %v4367_v14 = vadd.f32 %v4366_v42, %v4365_v5  ;;  %v4386_v40 = vadd.f32 %v4385_v27, %v4384_v34  ;;  %v15951_v45 = vadd.f32 %v4503_v57, %v19996_v48  ;;  %v20002_v48 = vld [vmem:[#allocation16_spill] sm:$0xff] }
 0x46b   :  { %v4355_v54 = vadd.f32 %v4354_v63, %v4353_v51  ;;  %v4374_v35 = vadd.f32 %v4373_v47, %v4372_v44  ;;  %v4504_v9 = vsel %vm1887_vm2, %v4348_v6, %v4341_v43  ;;  %v4381_v20 = vadd.f32 %v4380_v26, %v4379_v33  ;;  %v19997_v33 = vld [vmem:[#allocation59_spill] sm:$0xff] }
 0x46c   :  { %v4362_v55 = vadd.f32 %v4361_v29, %v4360_v46  ;;  %v4368_v3 = vrot.slane %v4367_v14, 1  ;;  %v4387_v8 = vrot.slane %v4386_v40, 2  ;;  %v4533_v16 = vmul.f32 %v15951_v45, %v15951_v45 }
 0x46d   :  { %v4505_v7 = vsel %vm1889_vm3, %v4355_v54, %v4504_v9  ;;  %v4375_v28 = vrot.slane %v4374_v35, 1  ;;  %v4382_v19 = vrot.slane %v4381_v20, 1  ;;  %v19998_v54 = vld [vmem:[#allocation3_spill] sm:$0xff] }
 0x46e   :  { %v4369_v4 = vadd.f32 %v4368_v3, %v4367_v14  ;;  %v4506_v44 = vsel %vm1891_vm4, %v4362_v55, %v4505_v7  ;;  %v4388_v47 = vadd.f32 %v4387_v8, %v4386_v40  ;;  %v4553_v5 = vsel %vm91_vm0, %v4533_v16, 0.0 }
 0x46f   :  { %v4376_v27 = vadd.f32 %v4375_v28, %v4374_v35  ;;  %v4383_v46 = vadd.f32 %v4382_v19, %v4381_v20  ;;  %4554 = vadd.xlane.f32.xlu0 %v4553_v5 }
 0x470   :  { %v4507_v43 = vsel %vm1893_vm5, %v4369_v4, %v4506_v44  ;;  %v4389_v0 = vrot.slane %v4388_v47, 1 }
 0x471   :  { %v4508_v6 = vsel %vm1895_vm6, %v4376_v27, %v4507_v43 }
 0x472   :  { %v4509_v51 = vsel %vm1897_vm7, %v4383_v46, %v4508_v6  ;;  %v4390_v34 = vadd.f32 %v4389_v0, %v4388_v47 }
 0x474   :  { %v4510_v42 = vsel %vm1899_vm8, %v4390_v34, %v4509_v51 }
 0x475   :  { %v15964_v60 = vadd.f32 %v4510_v42, %v19997_v33  ;;  %v20001_v33 = vld [vmem:[#allocation17_spill] sm:$0xff] }
 0x477   :  { %v4534_v63 = vmul.f32 %v15964_v60, %v15964_v60 }
 0x479   :  { %v4556_v13 = vsel %vm91_vm0, %v4534_v63, 0.0 }
 0x47a   :  { %4557 = vadd.xlane.f32.xlu1 %v4556_v13 }
 0x495   :  { %v4537_v29 = vpop.xlane.xlu1 %4536 }
 0x496   :  { %v4559_v14 = vmax.f32 %v4537_v29, 1e-24 }
 0x498   :  { %12967 = vrsqrt.f32 %v4559_v14 }
 0x4a2   :  { %v12968_v26 = vpop.eup %12967 }
 0x4a3   :  { %v15970_v57 = vmul.f32 %v12968_v26, %v15724_v1 }
 0x4a5   :  { %v4598_v35 = vrot.slane %v15970_v57, %v19998_v54 }
 0x4a7   :  { %v15975_v40 = vrot.slane %v4598_v35, %v19998_v54  ;;  %v4606_v9 = vcombine.high %v4598_v35, %v4598_v35 }
 0x4a8   :  { %v4540_v55 = vpop.xlane.xlu0 %4539 }
 0x4a9   :  { %v4560_v3 = vmax.f32 %v4540_v55, 1e-24  ;;  %v4986_v20 = vrot.slane %v15975_v40, %v14032_v30  ;;  %v15980_v7 = vrot.slane %v4606_v9, %v19998_v54 }
 0x4ab   :  { %12969 = vrsqrt.f32 %v4560_v3  ;;  %v5303_v28 = vmul.f32 %v4986_v20, %v19926_v10  ;;  %v4990_v1 = vrot.slane %v15980_v7, %v14032_v30 }
 0x4ad   :  { %v5367_v8 = vsel %vm204_vm1, %v5303_v28, 0.0  ;;  %v5304_v16 = vmul.f32 %v4990_v1, %v19927_v59 }
 0x4ae   :  { %5368 = vadd.xlane.f32.xlu0 %v5367_v8 }
 0x4af   :  { %v5370_v4 = vsel %vm204_vm1, %v5304_v16, 0.0 }
 0x4b0   :  { %5371 = vadd.xlane.f32.xlu1 %v5370_v4 }
 0x4b5   :  { %v12970_v19 = vpop.eup %12969 }
 0x4b6   :  { %v15989_v44 = vmul.f32 %v12970_v19, %v15764_v23 }
 0x4b8   :  { %v4647_v27 = vrot.slane %v15989_v44, %v19998_v54 }
 0x4ba   :  { %v4543_v47 = vpop.xlane.xlu0 %4542  ;;  %v15994_v5 = vrot.slane %v4647_v27, %v19998_v54  ;;  %v4655_v43 = vcombine.high %v4647_v27, %v4647_v27 }
 0x4bb   :  { %v4561_v46 = vmax.f32 %v4543_v47, 1e-24 }
 0x4bc   :  { %v5018_v0 = vrot.slane %v15994_v5, %v14032_v30  ;;  %v15999_v6 = vrot.slane %v4655_v43, %v19998_v54 }
 0x4bd   :  { %12971 = vrsqrt.f32 %v4561_v46 }
 0x4be   :  { %v5311_v51 = vmul.f32 %v5018_v0, %v19934_v36  ;;  %v5022_v23 = vrot.slane %v15999_v6, %v14032_v30 }
 0x4c0   :  { %v5391_v34 = vsel %vm204_vm1, %v5311_v51, 0.0  ;;  %v5312_v42 = vmul.f32 %v5022_v23, %v19935_v41 }
 0x4c1   :  { %5392 = vadd.xlane.f32.xlu0 %v5391_v34 }
 0x4c2   :  { %v5394_v63 = vsel %vm204_vm1, %v5312_v42, 0.0 }
 0x4c3   :  { %5395 = vadd.xlane.f32.xlu1 %v5394_v63 }
 0x4c7   :  { %v12972_v13 = vpop.eup %12971 }
 0x4c8   :  { %v16008_v29 = vmul.f32 %v12972_v13, %v15804_v50 }
 0x4ca   :  { %v4696_v14 = vrot.slane %v16008_v29, %v19998_v54 }
 0x4cc   :  { %v16013_v26 = vrot.slane %v4696_v14, %v19998_v54  ;;  %v4704_v35 = vcombine.high %v4696_v14, %v4696_v14 }
 0x4cd   :  { %v4546_v9 = vpop.xlane.xlu1 %4545 }
 0x4ce   :  { %v4562_v55 = vmax.f32 %v4546_v9, 1e-24  ;;  %v5050_v3 = vrot.slane %v16013_v26, %v14032_v30  ;;  %v16018_v20 = vrot.slane %v4704_v35, %v19998_v54 }
 0x4d0   :  { %12973 = vrsqrt.f32 %v4562_v55  ;;  %v5319_v28 = vmul.f32 %v5050_v3, %v19942_v15  ;;  %v5054_v50 = vrot.slane %v16018_v20, %v14032_v30 }
 0x4d2   :  { %v5415_v1 = vsel %vm204_vm1, %v5319_v28, 0.0  ;;  %v5320_v8 = vmul.f32 %v5054_v50, %v19943_v49 }
 0x4d3   :  { %5416 = vadd.xlane.f32.xlu0 %v5415_v1 }
 0x4d4   :  { %v5418_v16 = vsel %vm204_vm1, %v5320_v8, 0.0 }
 0x4d5   :  { %5419 = vadd.xlane.f32.xlu1 %v5418_v16 }
 0x4da   :  { %v12974_v4 = vpop.eup %12973 }
 0x4db   :  { %v16027_v19 = vmul.f32 %v12974_v4, %v15852_v2 }
 0x4dd   :  { %v4745_v27 = vrot.slane %v16027_v19, %v19998_v54 }
 0x4df   :  { %v4549_v47 = vpop.xlane.xlu0 %4548  ;;  %v16032_v43 = vrot.slane %v4745_v27, %v19998_v54  ;;  %v4753_v46 = vcombine.high %v4745_v27, %v4745_v27 }
 0x4e0   :  { %v4563_v0 = vmax.f32 %v4549_v47, 1e-24 }
 0x4e1   :  { %v5082_v51 = vrot.slane %v16032_v43, %v14032_v30  ;;  %v16037_v23 = vrot.slane %v4753_v46, %v19998_v54 }
 0x4e2   :  { %12975 = vrsqrt.f32 %v4563_v0 }
 0x4e3   :  { %v5327_v34 = vmul.f32 %v5082_v51, %v19951_v22  ;;  %v5086_v2 = vrot.slane %v16037_v23, %v14032_v30 }
 0x4e5   :  { %v5439_v42 = vsel %vm204_vm1, %v5327_v34, 0.0  ;;  %v5328_v63 = vmul.f32 %v5086_v2, %v19952_v17 }
 0x4e6   :  { %5440 = vadd.xlane.f32.xlu0 %v5439_v42 }
 0x4e7   :  { %v5442_v13 = vsel %vm204_vm1, %v5328_v63, 0.0 }
 0x4e8   :  { %5443 = vadd.xlane.f32.xlu1 %v5442_v13 }
 0x4ec   :  { %v12976_v14 = vpop.eup %12975 }
 0x4ed   :  { %v16046_v35 = vmul.f32 %v12976_v14, %v15896_v62 }
 0x4ef   :  { %v4794_v9 = vrot.slane %v16046_v35, %v19998_v54 }
 0x4f1   :  { %v16051_v55 = vrot.slane %v4794_v9, %v19998_v54  ;;  %v4802_v3 = vcombine.high %v4794_v9, %v4794_v9 }
 0x4f2   :  { %v4552_v28 = vpop.xlane.xlu1 %4551 }
 0x4f3   :  { %v4564_v50 = vmax.f32 %v4552_v28, 1e-24  ;;  %v5114_v1 = vrot.slane %v16051_v55, %v14032_v30  ;;  %v16056_v8 = vrot.slane %v4802_v3, %v19998_v54 }
 0x4f5   :  { %12977 = vrsqrt.f32 %v4564_v50  ;;  %v5335_v16 = vmul.f32 %v5114_v1, %v19960_v24  ;;  %v5118_v62 = vrot.slane %v16056_v8, %v14032_v30 }
 0x4f7   :  { %v5463_v4 = vsel %vm204_vm1, %v5335_v16, 0.0  ;;  %v5336_v27 = vmul.f32 %v5118_v62, %v19961_v56  ;;  %v20010_v56 = vld [vmem:[#allocation36_spill] sm:$0xff] }
 0x4f8   :  { %5464 = vadd.xlane.f32.xlu0 %v5463_v4 }
 0x4f9   :  { %v5466_v47 = vsel %vm204_vm1, %v5336_v27, 0.0 }
 0x4fa   :  { %5467 = vadd.xlane.f32.xlu1 %v5466_v47 }
 0x4fc   :  { %v4555_v46 = vpop.xlane.xlu0 %4554 }
 0x4fd   :  { %v4565_v0 = vmax.f32 %v4555_v46, 1e-24 }
 0x4ff   :  { %v12978_v51 = vpop.eup %12977  ;;  %12979 = vrsqrt.f32 %v4565_v0 }
 0x500   :  { %v16065_v34 = vmul.f32 %v12978_v51, %v15933_v11 }
 0x502   :  { %v4843_v2 = vrot.slane %v16065_v34, %v19998_v54 }
 0x504   :  { %v16070_v42 = vrot.slane %v4843_v2, %v19998_v54  ;;  %v4851_v63 = vcombine.high %v4843_v2, %v4843_v2 }
 0x506   :  { %v5146_v13 = vrot.slane %v16070_v42, %v14032_v30  ;;  %v16075_v14 = vrot.slane %v4851_v63, %v19998_v54 }
 0x507   :  { %v4558_v11 = vpop.xlane.xlu1 %4557 }
 0x508   :  { %v5343_v9 = vmul.f32 %v5146_v13, %v19969_v38  ;;  %v5150_v3 = vrot.slane %v16075_v14, %v14032_v30  ;;  %v4566_v28 = vmax.f32 %v4558_v11, 1e-24 }
 0x509   :  { %v12980_v50 = vpop.eup %12979 }
 0x50a   :  { %v5487_v1 = vsel %vm204_vm1, %v5343_v9, 0.0  ;;  %v5344_v16 = vmul.f32 %v5150_v3, %v19970_v12  ;;  %12981 = vrsqrt.f32 %v4566_v28  ;;  %v16083_v62 = vmul.f32 %v12980_v50, %v15951_v45  ;;  %v20009_v12 = vld [vmem:[#allocation37_spill] sm:$0xff] }
 0x50b   :  { %5488 = vadd.xlane.f32.xlu0 %v5487_v1  ;;  %v4591_v45 = vcombine.high %v15970_v57, %v15970_v57  ;;  %v4636_v1 = vcombine.high %v15975_v40, %v15975_v40 }
 0x50c   :  { %v5490_v4 = vsel %vm204_vm1, %v5344_v16, 0.0  ;;  %v4892_v27 = vrot.slane %v16083_v62, %v19998_v54 }
 0x50d   :  { %5491 = vadd.xlane.f32.xlu1 %v5490_v4  ;;  %v4605_v11 = vrot.slane %v4591_v45, %v19998_v54  ;;  %v4640_v4 = vcombine.high %v15989_v44, %v15989_v44  ;;  %v4994_v40 = vrot.slane %v4636_v1, %v14032_v30  ;;  %v4685_v1 = vcombine.high %v15994_v5, %v15994_v5 }
 0x50e   :  { %v16089_v47 = vrot.slane %v4892_v27, %v19998_v54  ;;  %v4900_v46 = vcombine.high %v4892_v27, %v4892_v27 }
 0x50f   :  { %v4607_v16 = vcombine.high %v4605_v11, %v4605_v11 }
 0x510   :  { %v5178_v0 = vrot.slane %v16089_v47, %v14032_v30  ;;  %v16094_v51 = vrot.slane %v4900_v46, %v19998_v54 }
 0x511   :  { %v16129_v44 = vrot.slane %v4607_v16, %v19998_v54 }
 0x512   :  { %v5351_v2 = vmul.f32 %v5178_v0, %v19978_v37  ;;  %v5182_v63 = vrot.slane %v16094_v51, %v14032_v30  ;;  %v16120_v0 = vrot.slane %v4605_v11, %v19998_v54 }
 0x513   :  { %v5006_v16 = vrot.slane %v16129_v44, %v14032_v30 }
 0x514   :  { %v12982_v13 = vpop.eup %12981  ;;  %v5511_v9 = vsel %vm204_vm1, %v5351_v2, 0.0  ;;  %v5352_v3 = vmul.f32 %v5182_v63, %v19979_v53  ;;  %v4654_v63 = vrot.slane %v4640_v4, %v19998_v54  ;;  %v20006_v53 = vld [vmem:[#allocation27_spill] sm:$0xff] }
 0x515   :  { %5512 = vadd.xlane.f32.xlu0 %v5511_v9  ;;  %v16105_v28 = vmul.f32 %v12982_v13, %v15964_v60  ;;  %v4638_v60 = vcombine.high %v15980_v7, %v15980_v7 }
 0x516   :  { %v5514_v50 = vsel %vm204_vm1, %v5352_v3, 0.0  ;;  %v5002_v3 = vrot.slane %v16120_v0, %v14032_v30  ;;  %v4656_v4 = vcombine.high %v4654_v63, %v4654_v63 }
 0x517   :  { %5515 = vadd.xlane.f32.xlu1 %v5514_v50  ;;  %v4941_v57 = vrot.slane %v16105_v28, %v19998_v54  ;;  %v4998_v9 = vrot.slane %v4638_v60, %v14032_v30 }
 0x518   :  { %v5307_v5 = vmul.f32 %v5002_v3, %v19931_v18 }
 0x519   :  { %v16115_v27 = vrot.slane %v4941_v57, %v19998_v54  ;;  %v4949_v46 = vcombine.high %v4941_v57, %v4941_v57  ;;  %v5305_v57 = vmul.f32 %v4994_v40, %v19929_v21  ;;  %v5306_v60 = vmul.f32 %v4998_v9, %v19928_v25 }
 0x51a   :  { %v16159_v9 = vrot.slane %v4656_v4, %v19998_v54  ;;  %v5379_v3 = vsel %vm204_vm1, %v5307_v5, 0.0 }
 0x51b   :  { %v5210_v45 = vrot.slane %v16115_v27, %v14032_v30  ;;  %v16125_v2 = vrot.slane %v4949_v46, %v19998_v54  ;;  %v5373_v40 = vsel %vm204_vm1, %v5305_v57, 0.0  ;;  %v19999_v57 = vld [vmem:[#allocation15_spill] sm:$0xff] }
 0x51d   :  { %v5359_v13 = vmul.f32 %v5210_v45, %v19987_v61  ;;  %v5214_v7 = vrot.slane %v16125_v2, %v14032_v30  ;;  %v4687_v45 = vcombine.high %v15999_v6, %v15999_v6  ;;  %v5376_v6 = vsel %vm204_vm1, %v5306_v60, 0.0 }
 0x51e   :  { %v5038_v60 = vrot.slane %v16159_v9, %v14032_v30 }
 0x51f   :  { %v5535_v11 = vsel %vm204_vm1, %v5359_v13, 0.0  ;;  %v5360_v50 = vmul.f32 %v5214_v7, %v19988_v32  ;;  %v4689_v13 = vcombine.high %v16008_v29, %v16008_v29  ;;  %v5026_v7 = vrot.slane %v4685_v1, %v14032_v30 }
 0x520   :  { %5536 = vadd.xlane.f32.xlu0 %v5535_v11  ;;  %v16155_v11 = vrot.slane %v4654_v63, %v19998_v54  ;;  %v5030_v29 = vrot.slane %v4687_v45, %v14032_v30  ;;  %v20000_v45 = vld [vmem:[#allocation14_spill] sm:$0xff] }
 0x521   :  { %v5538_v46 = vsel %vm204_vm1, %v5360_v50, 0.0  ;;  %v5308_v50 = vmul.f32 %v5006_v16, %v19930_v39  ;;  %v5313_v1 = vmul.f32 %v5026_v7, %v19999_v57  ;;  %v4734_v16 = vcombine.high %v16013_v26, %v16013_v26 }
 0x522   :  { %5539 = vadd.xlane.f32.xlu1 %v5538_v46  ;;  %v4703_v46 = vrot.slane %v4689_v13, %v19998_v54  ;;  %v5034_v63 = vrot.slane %v16155_v11, %v14032_v30  ;;  %v4736_v13 = vcombine.high %v16018_v20, %v16018_v20  ;;  %v4738_v7 = vcombine.high %v16027_v19, %v16027_v19 }
 0x523   :  { %v5382_v4 = vsel %vm204_vm1, %v5308_v50, 0.0 }
 0x524   :  { %5374 = vadd.xlane.f32.xlu0 %v5373_v40  ;;  %v5314_v40 = vmul.f32 %v5030_v29, %v20000_v45  ;;  %v4705_v5 = vcombine.high %v4703_v46, %v4703_v46  ;;  %v5315_v26 = vmul.f32 %v5034_v63, %v20001_v33  ;;  %v16182_v50 = vrot.slane %v4703_v46, %v19998_v54  ;;  %v20003_v63 = vld [vmem:[#allocation26_spill] sm:$0xff] }
 0x525   :  { %v5316_v29 = vmul.f32 %v5038_v60, %v20002_v48  ;;  %v5062_v20 = vrot.slane %v4736_v13, %v14032_v30  ;;  %v4752_v19 = vrot.slane %v4738_v7, %v19998_v54  ;;  %v20004_v13 = vld [vmem:[#allocation25_spill] sm:$0xff]  ;;  %v4785_v7 = vcombine.high %v16037_v23, %v16037_v23 }
 0x526   :  { %5377 = vadd.xlane.f32.xlu1 %v5376_v6  ;;  %v5397_v6 = vsel %vm204_vm1, %v5313_v1, 0.0  ;;  %v5400_v32 = vsel %vm204_vm1, %v5314_v40, 0.0  ;;  %v16188_v61 = vrot.slane %v4705_v5, %v19998_v54  ;;  %v5403_v1 = vsel %vm204_vm1, %v5315_v26, 0.0 }
 0x527   :  { %v5066_v46 = vrot.slane %v16182_v50, %v14032_v30  ;;  %v5406_v60 = vsel %vm204_vm1, %v5316_v29, 0.0  ;;  %v4787_v40 = vcombine.high %v16046_v35, %v16046_v35  ;;  %v5322_v5 = vmul.f32 %v5062_v20, %v20004_v13 }
 0x528   :  { %5380 = vadd.xlane.f32.xlu0 %v5379_v3  ;;  %v5058_v3 = vrot.slane %v4734_v16, %v14032_v30  ;;  %v16209_v29 = vrot.slane %v4752_v19, %v19998_v54  ;;  %v5094_v23 = vrot.slane %v4785_v7, %v14032_v30 }
 0x529   :  { %v4801_v35 = vrot.slane %v4787_v40, %v19998_v54  ;;  %v5424_v20 = vsel %vm204_vm1, %v5322_v5, 0.0  ;;  %v4832_v40 = vcombine.high %v16051_v55, %v16051_v55 }
 0x52a   :  { %5383 = vadd.xlane.f32.xlu1 %v5382_v4  ;;  %v5321_v16 = vmul.f32 %v5058_v3, %v20003_v63  ;;  %v4783_v4 = vcombine.high %v16032_v43, %v16032_v43  ;;  %v20005_v3 = vld [vmem:[#allocation28_spill] sm:$0xff] }
 0x52b   :  { %v5323_v43 = vmul.f32 %v5066_v46, %v20005_v3  ;;  %v20007_v46 = vld [vmem:[#allocation35_spill] sm:$0xff]  ;;  %v4803_v5 = vcombine.high %v4801_v35, %v4801_v35  ;;  %v16236_v38 = vrot.slane %v4801_v35, %v19998_v54 }
 0x52c   :  { %5398 = vadd.xlane.f32.xlu0 %v5397_v6  ;;  %v4754_v6 = vcombine.high %v4752_v19, %v4752_v19  ;;  %v5421_v26 = vsel %vm204_vm1, %v5321_v16, 0.0  ;;  %v5098_v19 = vrot.slane %v16209_v29, %v14032_v30  ;;  %v20056_v3 = vld [vmem:[#allocation75_spill] sm:$0xff] }
 0x52d   :  { %v5427_v16 = vsel %vm204_vm1, %v5323_v43, 0.0  ;;  %v5130_v35 = vrot.slane %v16236_v38, %v14032_v30 }
 0x52e   :  { %5401 = vadd.xlane.f32.xlu1 %v5400_v32  ;;  %v5070_v32 = vrot.slane %v16188_v61, %v14032_v30  ;;  %v5331_v55 = vmul.f32 %v5098_v19, %v20009_v12  ;;  %v20011_v19 = vld [vmem:[#allocation44_spill] sm:$0xff] }
 0x530   :  { %5404 = vadd.xlane.f32.xlu0 %v5403_v1  ;;  %v5090_v1 = vrot.slane %v4783_v4, %v14032_v30  ;;  %v5324_v37 = vmul.f32 %v5070_v32, %v20006_v53  ;;  %v4836_v32 = vcombine.high %v16065_v34, %v16065_v34 }
 0x532   :  { %5407 = vadd.xlane.f32.xlu1 %v5406_v60  ;;  %v16216_v60 = vrot.slane %v4754_v6, %v19998_v54  ;;  %v5329_v4 = vmul.f32 %v5090_v1, %v20007_v46  ;;  %v5430_v7 = vsel %vm204_vm1, %v5324_v37, 0.0  ;;  %v20008_v6 = vld [vmem:[#allocation34_spill] sm:$0xff]  ;;  %v4834_v1 = vcombine.high %v16056_v8, %v16056_v8 }
 0x533   :  { %v16239_v37 = vrot.slane %v4803_v5, %v19998_v54  ;;  %v4850_v34 = vrot.slane %v4836_v32, %v19998_v54  ;;  %v4881_v5 = vcombine.high %v16070_v42, %v16070_v42 }
 0x534   :  { %5422 = vadd.xlane.f32.xlu0 %v5421_v26  ;;  %v5330_v26 = vmul.f32 %v5094_v23, %v20008_v6  ;;  %v5102_v43 = vrot.slane %v16216_v60, %v14032_v30 }
 0x535   :  { %v5134_v32 = vrot.slane %v16239_v37, %v14032_v30  ;;  %v16263_v24 = vrot.slane %v4850_v34, %v19998_v54 }
 0x536   :  { %5425 = vadd.xlane.f32.xlu1 %v5424_v20  ;;  %v5445_v20 = vsel %vm204_vm1, %v5329_v4, 0.0  ;;  %v5448_v23 = vsel %vm204_vm1, %v5330_v26, 0.0  ;;  %v5332_v8 = vmul.f32 %v5102_v43, %v20010_v56  ;;  %v5451_v4 = vsel %vm204_vm1, %v5331_v55, 0.0 }
 0x537   :  { %v4852_v26 = vcombine.high %v4850_v34, %v4850_v34  ;;  %v4883_v55 = vcombine.high %v16075_v14, %v16075_v14  ;;  %v5162_v34 = vrot.slane %v16263_v24, %v14032_v30 }
 0x538   :  { %5428 = vadd.xlane.f32.xlu0 %v5427_v16  ;;  %v5122_v16 = vrot.slane %v4832_v40, %v14032_v30  ;;  %v5454_v43 = vsel %vm204_vm1, %v5332_v8, 0.0  ;;  %v20014_v8 = vld [vmem:[#allocation45_spill] sm:$0xff] }
 0x539   :  { %v5340_v56 = vmul.f32 %v5134_v32, %v20014_v8  ;;  %v4930_v32 = vcombine.high %v16089_v47, %v16089_v47  ;;  %v20018_v8 = vld [vmem:[#allocation54_spill] sm:$0xff] }
 0x53a   :  { %5431 = vadd.xlane.f32.xlu1 %v5430_v7  ;;  %v5126_v7 = vrot.slane %v4834_v1, %v14032_v30  ;;  %v5337_v40 = vmul.f32 %v5122_v16, %v20011_v19  ;;  %v4885_v16 = vcombine.high %v16083_v62, %v16083_v62  ;;  %v20013_v19 = vld [vmem:[#allocation46_spill] sm:$0xff]  ;;  %v5158_v62 = vrot.slane %v4883_v55, %v14032_v30  ;;  %v20016_v55 = vld [vmem:[#allocation52_spill] sm:$0xff] }
 0x53b   :  { %v5339_v42 = vmul.f32 %v5130_v35, %v20013_v19  ;;  %v20015_v35 = vld [vmem:[#allocation53_spill] sm:$0xff] }
 0x53c   :  { %5446 = vadd.xlane.f32.xlu0 %v5445_v20  ;;  %v20012_v20 = vld [vmem:[#allocation43_spill] sm:$0xff] }
 0x53d   :  { %v5338_v1 = vmul.f32 %v5126_v7, %v20012_v20  ;;  %v16267_v7 = vrot.slane %v4852_v26, %v19998_v54  ;;  %v5478_v26 = vsel %vm204_vm1, %v5340_v56, 0.0 }
 0x53e   :  { %5449 = vadd.xlane.f32.xlu1 %v5448_v23  ;;  %v5469_v23 = vsel %vm204_vm1, %v5337_v40, 0.0  ;;  %v5475_v40 = vsel %vm204_vm1, %v5339_v42, 0.0 }
 0x53f   :  { %v5472_v14 = vsel %vm204_vm1, %v5338_v1, 0.0  ;;  %v5166_v1 = vrot.slane %v16267_v7, %v14032_v30 }
 0x540   :  { %5452 = vadd.xlane.f32.xlu0 %v5451_v4  ;;  %v5154_v4 = vrot.slane %v4881_v5, %v14032_v30 }
 0x542   :  { %5455 = vadd.xlane.f32.xlu1 %v5454_v43  ;;  %v4899_v43 = vrot.slane %v4885_v16, %v19998_v54  ;;  %v5345_v5 = vmul.f32 %v5154_v4, %v20015_v35  ;;  %v4932_v16 = vcombine.high %v16094_v51, %v16094_v51  ;;  %v4934_v4 = vcombine.high %v16105_v28, %v16105_v28  ;;  %v20017_v35 = vld [vmem:[#allocation55_spill] sm:$0xff] }
 0x543   :  { %v5347_v47 = vmul.f32 %v5162_v34, %v20017_v35  ;;  %v20019_v34 = vld [vmem:[#allocation62_spill] sm:$0xff] }
 0x544   :  { %5470 = vadd.xlane.f32.xlu0 %v5469_v23  ;;  %v5346_v23 = vmul.f32 %v5158_v62, %v20016_v55  ;;  %v4901_v42 = vcombine.high %v4899_v43, %v4899_v43  ;;  %v16290_v56 = vrot.slane %v4899_v43, %v19998_v54  ;;  %v5348_v62 = vmul.f32 %v5166_v1, %v20018_v8 }
 0x545   :  { %v5190_v51 = vrot.slane %v4932_v16, %v14032_v30  ;;  %v4948_v28 = vrot.slane %v4934_v4, %v19998_v54 }
 0x546   :  { %5473 = vadd.xlane.f32.xlu1 %v5472_v14  ;;  %v5493_v14 = vsel %vm204_vm1, %v5345_v5, 0.0  ;;  %v5496_v55 = vsel %vm204_vm1, %v5346_v23, 0.0  ;;  %v16296_v19 = vrot.slane %v4901_v42, %v19998_v54  ;;  %v5499_v5 = vsel %vm204_vm1, %v5347_v47, 0.0  ;;  %v20020_v23 = vld [vmem:[#allocation61_spill] sm:$0xff]  ;;  %v20021_v47 = vld [vmem:[#allocation64_spill] sm:$0xff] }
 0x547   :  { %v5194_v43 = vrot.slane %v16290_v56, %v14032_v30  ;;  %v5502_v1 = vsel %vm204_vm1, %v5348_v62, 0.0  ;;  %v5354_v16 = vmul.f32 %v5190_v51, %v20020_v23  ;;  %v4950_v4 = vcombine.high %v4948_v28, %v4948_v28  ;;  %v20022_v51 = vld [vmem:[#allocation63_spill] sm:$0xff] }
 0x548   :  { %5476 = vadd.xlane.f32.xlu0 %v5475_v40  ;;  %v5186_v40 = vrot.slane %v4930_v32, %v14032_v30  ;;  %v5198_v42 = vrot.slane %v16296_v19, %v14032_v30 }
 0x549   :  { %v5520_v62 = vsel %vm204_vm1, %v5354_v16, 0.0 }
 0x54a   :  { %5479 = vadd.xlane.f32.xlu1 %v5478_v26  ;;  %v5353_v32 = vmul.f32 %v5186_v40, %v20019_v34  ;;  %v4979_v26 = vcombine.high %v16115_v27, %v16115_v27  ;;  %v5355_v40 = vmul.f32 %v5194_v43, %v20021_v47  ;;  %v16315_v27 = vrot.slane %v4948_v28, %v19998_v54 }
 0x54b   :  { %v4637_v28 = vcombine.high %v16120_v0, %v16120_v0  ;;  %v4686_v0 = vcombine.high %v16155_v11, %v16155_v11  ;;  %v4735_v11 = vcombine.high %v16182_v50, %v16182_v50  ;;  %v4784_v50 = vcombine.high %v16209_v29, %v16209_v29 }
 0x54c   :  { %5494 = vadd.xlane.f32.xlu0 %v5493_v14  ;;  %v5517_v14 = vsel %vm204_vm1, %v5353_v32, 0.0  ;;  %v5218_v34 = vrot.slane %v4979_v26, %v14032_v30  ;;  %v5523_v32 = vsel %vm204_vm1, %v5355_v40, 0.0  ;;  %v5226_v26 = vrot.slane %v16315_v27, %v14032_v30 }
 0x54d   :  { %v5010_v40 = vrot.slane %v4637_v28, %v14032_v30  ;;  %v5042_v28 = vrot.slane %v4686_v0, %v14032_v30  ;;  %v5074_v0 = vrot.slane %v4735_v11, %v14032_v30  ;;  %v5106_v11 = vrot.slane %v4784_v50, %v14032_v30 }
 0x54e   :  { %5497 = vadd.xlane.f32.xlu1 %v5496_v55  ;;  %v4981_v55 = vcombine.high %v16125_v2, %v16125_v2  ;;  %v16321_v2 = vrot.slane %v4950_v4, %v19998_v54  ;;  %v5361_v43 = vmul.f32 %v5218_v34, %v19989_v31  ;;  %v20023_v4 = vld [vmem:[#allocation72_spill] sm:$0xff]  ;;  %v4833_v29 = vcombine.high %v16236_v38, %v16236_v38 }
 0x54f   :  { %v4882_v38 = vcombine.high %v16263_v24, %v16263_v24  ;;  %v4931_v24 = vcombine.high %v16290_v56, %v16290_v56  ;;  %v4980_v56 = vcombine.high %v16315_v27, %v16315_v27 }
 0x550   :  { %5500 = vadd.xlane.f32.xlu0 %v5499_v5  ;;  %v5356_v5 = vmul.f32 %v5198_v42, %v20022_v51  ;;  %v5222_v23 = vrot.slane %v4981_v55, %v14032_v30  ;;  %v5230_v42 = vrot.slane %v16321_v2, %v14032_v30  ;;  %v4639_v55 = vcombine.high %v16129_v44, %v16129_v44 }
 0x551   :  { %v5541_v34 = vsel %vm204_vm1, %v5361_v43, 0.0  ;;  %v4688_v44 = vcombine.high %v16159_v9, %v16159_v9  ;;  %v4737_v9 = vcombine.high %v16188_v61, %v16188_v61  ;;  %v4786_v61 = vcombine.high %v16216_v60, %v16216_v60 }
 0x552   :  { %5503 = vadd.xlane.f32.xlu1 %v5502_v1  ;;  %v5526_v1 = vsel %vm204_vm1, %v5356_v5, 0.0  ;;  %v5362_v16 = vmul.f32 %v5222_v23, %v19990_v52  ;;  %v20024_v23 = vld [vmem:[#allocation71_spill] sm:$0xff]  ;;  %v4835_v60 = vcombine.high %v16239_v37, %v16239_v37  ;;  %v5138_v50 = vrot.slane %v4833_v29, %v14032_v30 }
 0x553   :  { %v5364_v5 = vmul.f32 %v5230_v42, %v20024_v23  ;;  %v4884_v37 = vcombine.high %v16267_v7, %v16267_v7  ;;  %v5170_v29 = vrot.slane %v4882_v38, %v14032_v30  ;;  %v4933_v7 = vcombine.high %v16296_v19, %v16296_v19 }
 0x554   :  { %5518 = vadd.xlane.f32.xlu0 %v5517_v14  ;;  %v5363_v14 = vmul.f32 %v5226_v26, %v20023_v4  ;;  %v5202_v38 = vrot.slane %v4931_v24, %v14032_v30  ;;  %v4982_v19 = vcombine.high %v16321_v2, %v16321_v2  ;;  %v5234_v24 = vrot.slane %v4980_v56, %v14032_v30 }
 0x556   :  { %5521 = vadd.xlane.f32.xlu1 %v5520_v62  ;;  %v5544_v62 = vsel %vm204_vm1, %v5362_v16, 0.0  ;;  %v5547_v43 = vsel %vm204_vm1, %v5363_v14, 0.0  ;;  %v5550_v16 = vsel %vm204_vm1, %v5364_v5, 0.0 }
 0x558   :  { %5524 = vadd.xlane.f32.xlu0 %v5523_v32  ;;  %v5014_v32 = vrot.slane %v4639_v55, %v14032_v30  ;;  %v5046_v55 = vrot.slane %v4688_v44, %v14032_v30  ;;  %v5078_v44 = vrot.slane %v4737_v9, %v14032_v30  ;;  %v5110_v9 = vrot.slane %v4786_v61, %v14032_v30 }
 0x559   :  { %v5142_v61 = vrot.slane %v4835_v60, %v14032_v30  ;;  %v5174_v60 = vrot.slane %v4884_v37, %v14032_v30  ;;  %v5206_v37 = vrot.slane %v4933_v7, %v14032_v30  ;;  %v20039_v7 = vld [vmem:[#allocation74_spill] sm:$0xff] }
 0x55a   :  { %5527 = vadd.xlane.f32.xlu1 %v5526_v1  ;;  %v20025_v1 = vld [vmem:[#allocation19_spill] sm:$0xff]  ;;  %v5365_v23 = vmul.f32 %v5234_v24, %v20039_v7 }
 0x55b   :  { %v5309_v26 = vmul.f32 %v5010_v40, %v20025_v1 }
 0x55c   :  { %5542 = vadd.xlane.f32.xlu0 %v5541_v34  ;;  %v20026_v34 = vld [vmem:[#allocation20_spill] sm:$0xff] }
 0x55d   :  { %v5310_v42 = vmul.f32 %v5014_v32, %v20026_v34  ;;  %v5385_v14 = vsel %vm204_vm1, %v5309_v26, 0.0 }
 0x55e   :  { %5545 = vadd.xlane.f32.xlu1 %v5544_v62  ;;  %v20027_v62 = vld [vmem:[#allocation21_spill] sm:$0xff] }
 0x55f   :  { %v5317_v40 = vmul.f32 %v5042_v28, %v20027_v62  ;;  %v5388_v5 = vsel %vm204_vm1, %v5310_v42, 0.0 }
 0x560   :  { %5548 = vadd.xlane.f32.xlu0 %v5547_v43  ;;  %v20028_v43 = vld [vmem:[#allocation23_spill] sm:$0xff] }
 0x561   :  { %v5318_v32 = vmul.f32 %v5046_v55, %v20028_v43  ;;  %v5409_v26 = vsel %vm204_vm1, %v5317_v40, 0.0 }
 0x562   :  { %5551 = vadd.xlane.f32.xlu1 %v5550_v16  ;;  %v20029_v16 = vld [vmem:[#allocation30_spill] sm:$0xff] }
 0x563   :  { %v5325_v28 = vmul.f32 %v5074_v0, %v20029_v16  ;;  %v5412_v42 = vsel %vm204_vm1, %v5318_v32, 0.0 }
 0x564   :  { %5386 = vadd.xlane.f32.xlu0 %v5385_v14  ;;  %v20030_v14 = vld [vmem:[#allocation29_spill] sm:$0xff] }
 0x565   :  { %v5326_v55 = vmul.f32 %v5078_v44, %v20030_v14  ;;  %v5433_v40 = vsel %vm204_vm1, %v5325_v28, 0.0 }
 0x566   :  { %5389 = vadd.xlane.f32.xlu1 %v5388_v5  ;;  %v20031_v5 = vld [vmem:[#allocation39_spill] sm:$0xff] }
 0x567   :  { %v5333_v0 = vmul.f32 %v5106_v11, %v20031_v5  ;;  %v5436_v32 = vsel %vm204_vm1, %v5326_v55, 0.0 }
 0x568   :  { %5410 = vadd.xlane.f32.xlu0 %v5409_v26  ;;  %v20032_v26 = vld [vmem:[#allocation38_spill] sm:$0xff] }
 0x569   :  { %v5334_v44 = vmul.f32 %v5110_v9, %v20032_v26  ;;  %v5457_v28 = vsel %vm204_vm1, %v5333_v0, 0.0 }
 0x56a   :  { %5413 = vadd.xlane.f32.xlu1 %v5412_v42  ;;  %v20033_v42 = vld [vmem:[#allocation48_spill] sm:$0xff] }
 0x56b   :  { %v5341_v11 = vmul.f32 %v5138_v50, %v20033_v42  ;;  %v5460_v55 = vsel %vm204_vm1, %v5334_v44, 0.0 }
 0x56c   :  { %5434 = vadd.xlane.f32.xlu0 %v5433_v40  ;;  %v20034_v40 = vld [vmem:[#allocation47_spill] sm:$0xff] }
 0x56d   :  { %v5342_v9 = vmul.f32 %v5142_v61, %v20034_v40  ;;  %v5481_v0 = vsel %vm204_vm1, %v5341_v11, 0.0 }
 0x56e   :  { %5437 = vadd.xlane.f32.xlu1 %v5436_v32  ;;  %v20035_v32 = vld [vmem:[#allocation57_spill] sm:$0xff] }
 0x56f   :  { %v5349_v50 = vmul.f32 %v5170_v29, %v20035_v32  ;;  %v5484_v44 = vsel %vm204_vm1, %v5342_v9, 0.0  ;;  %v5238_v9 = vrot.slane %v4982_v19, %v14032_v30 }
 0x570   :  { %5458 = vadd.xlane.f32.xlu0 %v5457_v28  ;;  %v20036_v28 = vld [vmem:[#allocation56_spill] sm:$0xff] }
 0x571   :  { %v5350_v61 = vmul.f32 %v5174_v60, %v20036_v28  ;;  %v5505_v11 = vsel %vm204_vm1, %v5349_v50, 0.0  ;;  %v5366_v50 = vmul.f32 %v5238_v9, %v19995_v58 }
 0x572   :  { %5461 = vadd.xlane.f32.xlu1 %v5460_v55  ;;  %v20037_v55 = vld [vmem:[#allocation66_spill] sm:$0xff] }
 0x573   :  { %v5357_v29 = vmul.f32 %v5202_v38, %v20037_v55  ;;  %v5508_v27 = vsel %vm204_vm1, %v5350_v61, 0.0  ;;  %v5553_v38 = vsel %vm204_vm1, %v5365_v23, 0.0  ;;  %v5556_v56 = vsel %vm204_vm1, %v5366_v50, 0.0  ;;  %v16419_v61 = vpop.xlane.xlu1 %5371 }
 0x574   :  { %5482 = vadd.xlane.f32.xlu0 %v5481_v0  ;;  %v20038_v0 = vld [vmem:[#allocation65_spill] sm:$0xff]  ;;  %v5630_v13 = vrot.slane %v16419_v61, %v20056_v3 }
 0x575   :  { %v5358_v54 = vmul.f32 %v5206_v37, %v20038_v0  ;;  %v5529_v60 = vsel %vm204_vm1, %v5357_v29, 0.0 }
 0x576   :  { %5485 = vadd.xlane.f32.xlu1 %v5484_v44  ;;  %v16417_v44 = vpop.xlane.xlu0 %5368 }
 0x577   :  { %v5532_v2 = vsel %vm204_vm1, %v5358_v54, 0.0  ;;  %v16423_v19 = vpop.xlane.xlu1 %5395  ;;  %v5626_v15 = vrot.slane %v16417_v44, %v20056_v3 }
 0x578   :  { %5506 = vadd.xlane.f32.xlu0 %v5505_v11  ;;  %v5662_v48 = vrot.slane %v16423_v19, %v20056_v3 }
 0x579   :  { %v5879_v62 = vsel %vm1887_vm2, %v5630_v13, %v5626_v15 }
 0x57a   :  { %5509 = vadd.xlane.f32.xlu1 %v5508_v27  ;;  %v16421_v37 = vpop.xlane.xlu0 %5392 }
 0x57b   :  { %v16427_v54 = vpop.xlane.xlu1 %5419  ;;  %v5658_v36 = vrot.slane %v16421_v37, %v20056_v3 }
 0x57c   :  { %5530 = vadd.xlane.f32.xlu0 %v5529_v60  ;;  %20041 = vst [vmem:[#allocation104_spill] sm:$0xff] %v16427_v54  ;;  %v5694_v34 = vrot.slane %v16427_v54, %v20056_v3 }
 0x57d   :  { %v5886_v13 = vsel %vm1887_vm2, %v5662_v48, %v5658_v36 }
 0x57e   :  { %5533 = vadd.xlane.f32.xlu1 %v5532_v2  ;;  %v16425_v11 = vpop.xlane.xlu0 %5416 }
 0x57f   :  { %20040 = vst [vmem:[#allocation109_spill] sm:$0xff] %v16425_v11  ;;  %v16431_v24 = vpop.xlane.xlu1 %5443  ;;  %v5690_v25 = vrot.slane %v16425_v11, %v20056_v3 }
 0x580   :  { %5554 = vadd.xlane.f32.xlu0 %v5553_v38  ;;  %20043 = vst [vmem:[#allocation105_spill] sm:$0xff] %v16431_v24 }
 0x581   :  { %v5893_v59 = vsel %vm1887_vm2, %v5694_v34, %v5690_v25 }
 0x582   :  { %5557 = vadd.xlane.f32.xlu1 %v5556_v56  ;;  %v16429_v29 = vpop.xlane.xlu0 %5440 }
 0x583   :  { %20042 = vst [vmem:[#allocation111_spill] sm:$0xff] %v16429_v29  ;;  %v5722_v25 = vrot.slane %v16429_v29, %v20056_v3 }
 0x586   :  { %v16433_v23 = vpop.xlane.xlu0 %5464 }
 0x587   :  { %20044 = vst [vmem:[#allocation76_spill] sm:$0xff] %v16433_v23  ;;  %v16435_v27 = vpop.xlane.xlu1 %5467 }
 0x588   :  { %20045 = vst [vmem:[#allocation106_spill] sm:$0xff] %v16435_v27  ;;  %v5758_v29 = vrot.slane %v16435_v27, %v20056_v3 }
 0x598   :  { %v16437_v9 = vpop.xlane.xlu0 %5488 }
 0x599   :  { %20046 = vst [vmem:[#allocation77_spill] sm:$0xff] %v16437_v9 }
 0x59a   :  { %v16439_v60 = vpop.xlane.xlu1 %5491 }
 0x59b   :  { %v5790_v27 = vrot.slane %v16439_v60, %v20056_v3 }
 0x5a2   :  { %v16441_v2 = vpop.xlane.xlu0 %5512 }
 0x5a3   :  { %20047 = vst [vmem:[#allocation107_spill] sm:$0xff] %v16441_v2 }
 0x5a4   :  { %v16443_v50 = vpop.xlane.xlu1 %5515 }
 0x5ad   :  { %v16445_v38 = vpop.xlane.xlu0 %5536 }
 0x5ae   :  { %20048 = vst [vmem:[#allocation78_spill] sm:$0xff] %v16445_v38 }
 0x5af   :  { %v16447_v56 = vpop.xlane.xlu1 %5539 }
 0x5b0   :  { %20049 = vst [vmem:[#allocation108_spill] sm:$0xff] %v16447_v56 }
 0x5b1   :  { %v16449_v58 = vpop.xlane.xlu0 %5374 }
 0x5b2   :  { %v5634_v49 = vrot.slane %v16449_v58, %v20056_v3 }
 0x5b3   :  { %v16451_v7 = vpop.xlane.xlu1 %5377 }
 0x5b4   :  { %v5638_v33 = vrot.slane %v16451_v7, %v20056_v3  ;;  %v5880_v57 = vsel %vm1889_vm3, %v5634_v49, %v5879_v62 }
 0x5b5   :  { %v16453_v4 = vpop.xlane.xlu0 %5380 }
 0x5b6   :  { %v5642_v15 = vrot.slane %v16453_v4, %v20056_v3  ;;  %v5881_v18 = vsel %vm1891_vm4, %v5638_v33, %v5880_v57 }
 0x5b7   :  { %v16455_v52 = vpop.xlane.xlu1 %5383 }
 0x5b8   :  { %v5646_v36 = vrot.slane %v16455_v52, %v20056_v3  ;;  %v5882_v33 = vsel %vm1893_vm5, %v5642_v15, %v5881_v18 }
 0x5b9   :  { %v16457_v31 = vpop.xlane.xlu0 %5398 }
 0x5ba   :  { %v5666_v41 = vrot.slane %v16457_v31, %v20056_v3 }
 0x5bb   :  { %v16459_v0 = vpop.xlane.xlu1 %5401 }
 0x5bc   :  { %v5670_v49 = vrot.slane %v16459_v0, %v20056_v3  ;;  %v5887_v39 = vsel %vm1889_vm3, %v5666_v41, %v5886_v13  ;;  %v5726_v41 = vrot.slane %v16431_v24, %v20056_v3 }
 0x5bd   :  { %v16461_v55 = vpop.xlane.xlu0 %5404 }
 0x5be   :  { %v5674_v57 = vrot.slane %v16461_v55, %v20056_v3  ;;  %v5888_v13 = vsel %vm1891_vm4, %v5670_v49, %v5887_v39  ;;  %v5883_v49 = vsel %vm1895_vm6, %v5646_v36, %v5882_v33 }
 0x5bf   :  { %v16463_v51 = vpop.xlane.xlu1 %5407 }
 0x5c0   :  { %v5678_v34 = vrot.slane %v16463_v51, %v20056_v3  ;;  %v5889_v24 = vsel %vm1893_vm5, %v5674_v57, %v5888_v13 }
 0x5c1   :  { %v16465_v47 = vpop.xlane.xlu0 %5422 }
 0x5c2   :  { %20050 = vst [vmem:[#allocation79_spill] sm:$0xff] %v16465_v47  ;;  %v5698_v21 = vrot.slane %v16465_v47, %v20056_v3 }
 0x5c3   :  { %v16467_v28 = vpop.xlane.xlu1 %5425 }
 0x5c4   :  { %20051 = vst [vmem:[#allocation110_spill] sm:$0xff] %v16467_v28  ;;  %v5702_v10 = vrot.slane %v16467_v28, %v20056_v3  ;;  %v5894_v11 = vsel %vm1889_vm3, %v5698_v21, %v5893_v59  ;;  %v5900_v28 = vsel %vm1887_vm2, %v5726_v41, %v5722_v25  ;;  %v5754_v25 = vrot.slane %v16433_v23, %v20056_v3 }
 0x5c5   :  { %v16469_v32 = vpop.xlane.xlu0 %5428 }
 0x5c6   :  { %v5706_v59 = vrot.slane %v16469_v32, %v20056_v3  ;;  %v5895_v54 = vsel %vm1891_vm4, %v5702_v10, %v5894_v11  ;;  %v5907_v23 = vsel %vm1887_vm2, %v5758_v29, %v5754_v25  ;;  %v5786_v25 = vrot.slane %v16437_v9, %v20056_v3 }
 0x5c7   :  { %v16471_v8 = vpop.xlane.xlu1 %5431  ;;  %v5822_v9 = vrot.slane %v16443_v50, %v20056_v3 }
 0x5c8   :  { %v5710_v10 = vrot.slane %v16471_v8, %v20056_v3 }
 0x5c9   :  { %v16473_v35 = vpop.xlane.xlu0 %5446 }
 0x5ca   :  { %20052 = vst [vmem:[#allocation80_spill] sm:$0xff] %v16473_v35  ;;  %v5730_v18 = vrot.slane %v16473_v35, %v20056_v3 }
 0x5cb   :  { %v16475_v40 = vpop.xlane.xlu1 %5449 }
 0x5cc   :  { %v5734_v36 = vrot.slane %v16475_v40, %v20056_v3  ;;  %v5901_v57 = vsel %vm1889_vm3, %v5730_v18, %v5900_v28  ;;  %v5890_v28 = vsel %vm1895_vm6, %v5678_v34, %v5889_v24  ;;  %v5896_v18 = vsel %vm1893_vm5, %v5706_v59, %v5895_v54 }
 0x5cd   :  { %v16477_v42 = vpop.xlane.xlu0 %5452 }
 0x5cf   :  { %v16479_v20 = vpop.xlane.xlu1 %5455 }
 0x5d1   :  { %v16481_v26 = vpop.xlane.xlu0 %5470 }
 0x5d2   :  { %20053 = vst [vmem:[#allocation81_spill] sm:$0xff] %v16481_v26  ;;  %v5762_v13 = vrot.slane %v16481_v26, %v20056_v3  ;;  %v5738_v26 = vrot.slane %v16477_v42, %v20056_v3 }
 0x5d3   :  { %v16483_v5 = vpop.xlane.xlu1 %5473 }
 0x5d4   :  { %v5766_v24 = vrot.slane %v16483_v5, %v20056_v3  ;;  %v5908_v34 = vsel %vm1889_vm3, %v5762_v13, %v5907_v23  ;;  %v5897_v23 = vsel %vm1895_vm6, %v5710_v10, %v5896_v18 }
 0x5d5   :  { %v16485_v12 = vpop.xlane.xlu0 %5476 }
 0x5d7   :  { %v16487_v6 = vpop.xlane.xlu1 %5479 }
 0x5d9   :  { %v16489_v46 = vpop.xlane.xlu0 %5494 }
 0x5da   :  { %20054 = vst [vmem:[#allocation82_spill] sm:$0xff] %v16489_v46  ;;  %v5794_v59 = vrot.slane %v16489_v46, %v20056_v3  ;;  %v5914_v46 = vsel %vm1887_vm2, %v5790_v27, %v5786_v25  ;;  %v5818_v25 = vrot.slane %v16441_v2, %v20056_v3  ;;  %v5854_v2 = vrot.slane %v16447_v56, %v20056_v3 }
 0x5db   :  { %v16491_v17 = vpop.xlane.xlu1 %5497 }
 0x5dc   :  { %v5798_v10 = vrot.slane %v16491_v17, %v20056_v3  ;;  %v5915_v18 = vsel %vm1889_vm3, %v5794_v59, %v5914_v46 }
 0x5dd   :  { %v16493_v22 = vpop.xlane.xlu0 %5500 }
 0x5df   :  { %v16495_v14 = vpop.xlane.xlu1 %5503 }
 0x5e1   :  { %v16497_v16 = vpop.xlane.xlu0 %5518 }
 0x5e2   :  { %20055 = vst [vmem:[#allocation83_spill] sm:$0xff] %v16497_v16 }
 0x5e3   :  { %v16499_v53 = vpop.xlane.xlu1 %5521 }
 0x5e5   :  { %v16503_v63 = vpop.xlane.xlu0 %5524 }
 0x5e6   :  { %20057 = vst [vmem:[#allocation84_spill] sm:$0xff] %v16503_v63 }
 0x5e7   :  { %v16509_v43 = vpop.xlane.xlu1 %5527 }
 0x5e9   :  { %v16516_v45 = vpop.xlane.xlu0 %5542 }
 0x5ea   :  { %20058 = vst [vmem:[#allocation85_spill] sm:$0xff] %v16516_v45 }
 0x5eb   :  { %v16523_v1 = vpop.xlane.xlu1 %5545 }
 0x5ec   :  { %20059 = vst [vmem:[#allocation86_spill] sm:$0xff] %v16523_v1 }
 0x5ed   :  { %v16533_v62 = vpop.xlane.xlu0 %5548 }
 0x5ee   :  { %20060 = vst [vmem:[#allocation87_spill] sm:$0xff] %v16533_v62 }
 0x5ef   :  { %v16542_v48 = vpop.xlane.xlu1 %5551 }
 0x5f0   :  { %20061 = vst [vmem:[#allocation112_spill] sm:$0xff] %v16542_v48 }
 0x5f1   :  { %v16553_v47 = vpop.xlane.xlu0 %5386 }
 0x5f2   :  { %v5650_v15 = vrot.slane %v16553_v47, %v20056_v3 }
 0x5f3   :  { %v16564_v39 = vpop.xlane.xlu1 %5389 }
 0x5f4   :  { %v5654_v21 = vrot.slane %v16564_v39, %v20056_v3  ;;  %v5884_v35 = vsel %vm1897_vm7, %v5650_v15, %v5883_v49 }
 0x5f5   :  { %v16579_v33 = vpop.xlane.xlu0 %5410 }
 0x5f6   :  { %v5682_v15 = vrot.slane %v16579_v33, %v20056_v3  ;;  %v5885_v41 = vsel %vm1899_vm8, %v5654_v21, %v5884_v35 }
 0x5f7   :  { %v16591_v11 = vpop.xlane.xlu1 %5413  ;;  %v5943_v49 = vsel %vm1958_vm9, %v5885_v41, -inf  ;;  %v5902_v41 = vsel %vm1891_vm4, %v5734_v36, %v5901_v57  ;;  %v5742_v36 = vrot.slane %v16479_v20, %v20056_v3 }
 0x5f8   :  { %v5686_v35 = vrot.slane %v16591_v11, %v20056_v3  ;;  %5944 = vmax.xlane.f32.xlu0 %v5943_v49  ;;  %v5891_v21 = vsel %vm1897_vm7, %v5682_v15, %v5890_v28  ;;  %v5903_v13 = vsel %vm1893_vm5, %v5738_v26, %v5902_v41  ;;  %v5770_v28 = vrot.slane %v16485_v12, %v20056_v3 }
 0x5f9   :  { %v16607_v54 = vpop.xlane.xlu0 %5434  ;;  %v5826_v41 = vrot.slane %v16497_v16, %v20056_v3  ;;  %v5904_v46 = vsel %vm1895_vm6, %v5742_v36, %v5903_v13  ;;  %v5921_v16 = vsel %vm1887_vm2, %v5822_v9, %v5818_v25  ;;  %v5830_v36 = vrot.slane %v16499_v53, %v20056_v3 }
 0x5fa   :  { %v5714_v15 = vrot.slane %v16607_v54, %v20056_v3  ;;  %v5892_v29 = vsel %vm1899_vm8, %v5686_v35, %v5891_v21  ;;  %v5850_v25 = vrot.slane %v16445_v38, %v20056_v3 }
 0x5fb   :  { %v16619_v57 = vpop.xlane.xlu1 %5437  ;;  %v5946_v49 = vsel %vm1958_vm9, %v5892_v29, -inf  ;;  %v5909_v29 = vsel %vm1891_vm4, %v5766_v24, %v5908_v34  ;;  %v5774_v24 = vrot.slane %v16487_v6, %v20056_v3 }
 0x5fc   :  { %v5718_v35 = vrot.slane %v16619_v57, %v20056_v3  ;;  %5947 = vmax.xlane.f32.xlu1 %v5946_v49  ;;  %v5898_v21 = vsel %vm1897_vm7, %v5714_v15, %v5897_v23  ;;  %v5910_v59 = vsel %vm1893_vm5, %v5770_v28, %v5909_v29  ;;  %v5802_v23 = vrot.slane %v16493_v22, %v20056_v3 }
 0x5fd   :  { %v16635_v26 = vpop.xlane.xlu0 %5458  ;;  %v5922_v28 = vsel %vm1889_vm3, %v5826_v41, %v5921_v16  ;;  %v5858_v29 = vrot.slane %v16516_v45, %v20056_v3  ;;  %v5911_v16 = vsel %vm1895_vm6, %v5774_v24, %v5910_v59  ;;  %v5928_v45 = vsel %vm1887_vm2, %v5854_v2, %v5850_v25 }
 0x5fe   :  { %v5746_v15 = vrot.slane %v16635_v26, %v20056_v3  ;;  %v5899_v27 = vsel %vm1899_vm8, %v5718_v35, %v5898_v21  ;;  %v5923_v38 = vsel %vm1891_vm4, %v5830_v36, %v5922_v28  ;;  %v5866_v25 = vrot.slane %v16533_v62, %v20056_v3 }
 0x5ff   :  { %v16647_v34 = vpop.xlane.xlu1 %5461  ;;  %v5949_v49 = vsel %vm1958_vm9, %v5899_v27, -inf  ;;  %v5916_v27 = vsel %vm1891_vm4, %v5798_v10, %v5915_v18  ;;  %v5806_v10 = vrot.slane %v16495_v14, %v20056_v3  ;;  %v5929_v24 = vsel %vm1889_vm3, %v5858_v29, %v5928_v45 }
 0x600   :  { %v5750_v35 = vrot.slane %v16647_v34, %v20056_v3  ;;  %5950 = vmax.xlane.f32.xlu0 %v5949_v49  ;;  %v5905_v21 = vsel %vm1897_vm7, %v5746_v15, %v5904_v46  ;;  %v5917_v41 = vsel %vm1893_vm5, %v5802_v23, %v5916_v27  ;;  %v5834_v46 = vrot.slane %v16503_v63, %v20056_v3 }
 0x601   :  { %v16663_v13 = vpop.xlane.xlu0 %5482  ;;  %v5838_v27 = vrot.slane %v16509_v43, %v20056_v3  ;;  %v5918_v36 = vsel %vm1895_vm6, %v5806_v10, %v5917_v41 }
 0x602   :  { %v5778_v15 = vrot.slane %v16663_v13, %v20056_v3  ;;  %v5906_v9 = vsel %vm1899_vm8, %v5750_v35, %v5905_v21  ;;  %v5924_v28 = vsel %vm1893_vm5, %v5834_v46, %v5923_v38  ;;  %v5870_v38 = vrot.slane %v16542_v48, %v20056_v3 }
 0x603   :  { %v16675_v18 = vpop.xlane.xlu1 %5485  ;;  %v5952_v49 = vsel %vm1958_vm9, %v5906_v9, -inf  ;;  %v5862_v9 = vrot.slane %v16523_v1, %v20056_v3 }
 0x604   :  { %v5782_v35 = vrot.slane %v16675_v18, %v20056_v3  ;;  %5953 = vmax.xlane.f32.xlu1 %v5952_v49  ;;  %v5912_v21 = vsel %vm1897_vm7, %v5778_v15, %v5911_v16 }
 0x605   :  { %v16689_v56 = vpop.xlane.xlu0 %5506  ;;  %v5930_v49 = vsel %vm1891_vm4, %v5862_v9, %v5929_v24 }
 0x606   :  { %v5810_v59 = vrot.slane %v16689_v56, %v20056_v3  ;;  %v5913_v23 = vsel %vm1899_vm8, %v5782_v35, %v5912_v21  ;;  %v5925_v21 = vsel %vm1895_vm6, %v5838_v27, %v5924_v28 }
 0x607   :  { %v16697_v15 = vpop.xlane.xlu1 %5509  ;;  %v5955_v2 = vsel %vm1958_vm9, %v5913_v23, -inf }
 0x608   :  { %v5814_v45 = vrot.slane %v16697_v15, %v20056_v3  ;;  %5956 = vmax.xlane.f32.xlu0 %v5955_v2  ;;  %v5919_v29 = vsel %vm1897_vm7, %v5810_v59, %v5918_v36  ;;  %v5931_v59 = vsel %vm1893_vm5, %v5866_v25, %v5930_v49 }
 0x609   :  { %v16708_v16 = vpop.xlane.xlu0 %5530  ;;  %v5932_v27 = vsel %vm1895_vm6, %v5870_v38, %v5931_v59  ;;  %v20069_v59 = vld [vmem:[#allocation101_spill] sm:$0xff] }
 0x60a   :  { %20062 = vst [vmem:[#allocation89_spill] sm:$0xff] %v16708_v16  ;;  %v5842_v35 = vrot.slane %v16708_v16, %v20056_v3  ;;  %v5920_v10 = vsel %vm1899_vm8, %v5814_v45, %v5919_v29 }
 0x60b   :  { %v16715_v41 = vpop.xlane.xlu1 %5533  ;;  %v5958_v46 = vsel %vm1958_vm9, %v5920_v10, -inf }
 0x60c   :  { %20063 = vst [vmem:[#allocation113_spill] sm:$0xff] %v16715_v41  ;;  %v5846_v9 = vrot.slane %v16715_v41, %v20056_v3  ;;  %5959 = vmax.xlane.f32.xlu1 %v5958_v46  ;;  %v5926_v24 = vsel %vm1897_vm7, %v5842_v35, %v5925_v21  ;;  %v20066_v21 = vld [vmem:[#allocation97_spill] sm:$0xff]  ;;  %v20072_v41 = vld [vmem:[#allocation102_spill] sm:$0xff] }
 0x60d   :  { %v16723_v23 = vpop.xlane.xlu0 %5554 }
 0x60e   :  { %20064 = vst [vmem:[#allocation91_spill] sm:$0xff] %v16723_v23  ;;  %v5874_v2 = vrot.slane %v16723_v23, %v20056_v3  ;;  %v5927_v36 = vsel %vm1899_vm8, %v5846_v9, %v5926_v24  ;;  %v20067_v24 = vld [vmem:[#allocation98_spill] sm:$0xff]  ;;  %v20068_v23 = vld [vmem:[#allocation99_spill] sm:$0xff] }
 0x60f   :  { %v16728_v45 = vpop.xlane.xlu1 %5557  ;;  %v5961_v29 = vsel %vm1958_vm9, %v5927_v36, -inf }
 0x610   :  { %20065 = vst [vmem:[#allocation114_spill] sm:$0xff] %v16728_v45  ;;  %v5878_v28 = vrot.slane %v16728_v45, %v20056_v3  ;;  %5962 = vmax.xlane.f32.xlu0 %v5961_v29  ;;  %v5933_v25 = vsel %vm1897_vm7, %v5874_v2, %v5932_v27  ;;  %v20071_v45 = vld [vmem:[#allocation103_spill] sm:$0xff] }
 0x612   :  { %v5934_v49 = vsel %vm1899_vm8, %v5878_v28, %v5933_v25  ;;  %v20070_v28 = vld [vmem:[#allocation100_spill] sm:$0xff] }
 0x613   :  { %v5964_v35 = vsel %vm1958_vm9, %v5934_v49, -inf }
 0x614   :  { %5965 = vmax.xlane.f32.xlu1 %v5964_v35 }
 0x685   :  { %v5945_v10 = vpop.xlane.xlu0 %5944 }
 0x686   :  { %v5978_v46 = vrot.slane %v5945_v10, %v14032_v30  ;;  %v5982_v9 = vrot.slane %v5945_v10, %v20066_v21  ;;  %v5986_v36 = vrot.slane %v5945_v10, %v20067_v24  ;;  %v5990_v38 = vrot.slane %v5945_v10, %v20068_v23 }
 0x687   :  { %v5998_v62 = vrot.slane %v5945_v10, %v20069_v59  ;;  %v5994_v25 = vrot.slane %v5945_v10, %v20070_v28  ;;  %v6006_v48 = vrot.slane %v5945_v10, %v20071_v45  ;;  %v6002_v63 = vrot.slane %v5945_v10, %v20072_v41 }
 0x688   :  { %v6295_v29 = vsub.f32 %v16417_v44, %v5978_v46  ;;  %v6296_v2 = vsub.f32 %v16419_v61, %v5982_v9  ;;  %v6298_v27 = vsub.f32 %v16451_v7, %v5990_v38  ;;  %v6297_v49 = vsub.f32 %v16449_v58, %v5986_v36 }
 0x689   :  { %v6300_v1 = vsub.f32 %v16455_v52, %v5998_v62  ;;  %v6299_v44 = vsub.f32 %v16453_v4, %v5994_v25  ;;  %v5948_v46 = vpop.xlane.xlu1 %5947  ;;  %v6302_v7 = vsub.f32 %v16564_v39, %v6006_v48  ;;  %v6301_v36 = vsub.f32 %v16553_v47, %v6002_v63 }
 0x68a   :  { %v6359_v35 = vmul.f32 1.442695, %v6295_v29  ;;  %v6361_v3 = vmul.f32 1.442695, %v6296_v2  ;;  %v6365_v16 = vmul.f32 1.442695, %v6298_v27  ;;  %v6014_v58 = vrot.slane %v5948_v46, %v20066_v21 }
 0x68b   :  { %v6363_v61 = vmul.f32 1.442695, %v6297_v49  ;;  %v6369_v9 = vmul.f32 1.442695, %v6300_v1  ;;  %v6367_v38 = vmul.f32 1.442695, %v6299_v44  ;;  %v6010_v52 = vrot.slane %v5948_v46, %v14032_v30 }
 0x68c   :  { %12983 = vpow2.f32 %v6359_v35  ;;  %v6373_v62 = vmul.f32 1.442695, %v6302_v7  ;;  %v6022_v10 = vrot.slane %v5948_v46, %v20068_v23  ;;  %v6371_v4 = vmul.f32 1.442695, %v6301_v36 }
 0x68d   :  { %12985 = vpow2.f32 %v6361_v3  ;;  %v6304_v3 = vsub.f32 %v16423_v19, %v6014_v58  ;;  %v6018_v48 = vrot.slane %v5948_v46, %v20067_v24  ;;  %v6303_v1 = vsub.f32 %v16421_v37, %v6010_v52  ;;  %v5951_v7 = vpop.xlane.xlu0 %5950 }
 0x68e   :  { %12987 = vpow2.f32 %v6365_v16  ;;  %v6030_v63 = vrot.slane %v5948_v46, %v20069_v59  ;;  %v6306_v47 = vsub.f32 %v16459_v0, %v6022_v10  ;;  %v6026_v19 = vrot.slane %v5948_v46, %v20070_v28 }
 0x68f   :  { %12989 = vpow2.f32 %v6363_v61  ;;  %v6377_v29 = vmul.f32 1.442695, %v6304_v3  ;;  %v6305_v2 = vsub.f32 %v16457_v31, %v6018_v48  ;;  %v6375_v37 = vmul.f32 1.442695, %v6303_v1 }
 0x690   :  { %12991 = vpow2.f32 %v6369_v9  ;;  %v6038_v49 = vrot.slane %v5948_v46, %v20071_v45  ;;  %v6308_v35 = vsub.f32 %v16463_v51, %v6030_v63  ;;  %v6381_v0 = vmul.f32 1.442695, %v6306_v47  ;;  %v20074_v63 = vld [vmem:[#allocation109_spill] sm:$0xff] }
 0x691   :  { %12993 = vpow2.f32 %v6367_v38  ;;  %v6034_v44 = vrot.slane %v5948_v46, %v20072_v41  ;;  %v6307_v61 = vsub.f32 %v16461_v55, %v6026_v19  ;;  %v6379_v31 = vmul.f32 1.442695, %v6305_v2 }
 0x692   :  { %12995 = vpow2.f32 %v6373_v62  ;;  %v6310_v36 = vsub.f32 %v16591_v11, %v6038_v49  ;;  %v6385_v51 = vmul.f32 1.442695, %v6308_v35  ;;  %v6046_v38 = vrot.slane %v5951_v7, %v20066_v21 }
 0x693   :  { %12997 = vpow2.f32 %v6371_v4  ;;  %v6309_v46 = vsub.f32 %v16579_v33, %v6034_v44  ;;  %v6383_v55 = vmul.f32 1.442695, %v6307_v61  ;;  %v6042_v52 = vrot.slane %v5951_v7, %v14032_v30  ;;  %v20073_v4 = vld [vmem:[#allocation104_spill] sm:$0xff]  ;;  %v20076_v44 = vld [vmem:[#allocation79_spill] sm:$0xff] }
 0x694   :  { %12999 = vpow2.f32 %v6377_v29  ;;  %v6389_v11 = vmul.f32 1.442695, %v6310_v36  ;;  %v6054_v3 = vrot.slane %v5951_v7, %v20068_v23  ;;  %v6312_v48 = vsub.f32 %v20073_v4, %v6046_v38  ;;  %v5954_v4 = vpop.xlane.xlu1 %5953 }
 0x695   :  { %13001 = vpow2.f32 %v6375_v37  ;;  %v6387_v33 = vmul.f32 1.442695, %v6309_v46  ;;  %v6050_v1 = vrot.slane %v5951_v7, %v20067_v24  ;;  %v6311_v47 = vsub.f32 %v20074_v63, %v6042_v52  ;;  %v20075_v37 = vld [vmem:[#allocation110_spill] sm:$0xff] }
 0x696   :  { %v16759_v39 = vpop.eup %12983  ;;  %13003 = vpow2.f32 %v6381_v0  ;;  %v6062_v2 = vrot.slane %v5951_v7, %v20069_v59  ;;  %v6314_v49 = vsub.f32 %v20075_v37, %v6054_v3  ;;  %v6393_v35 = vmul.f32 1.442695, %v6312_v48 }
 0x697   :  { %v16761_v16 = vpop.eup %12985  ;;  %6552 = vperm.xlu0 %12565, %v16759_v39   ;;  %13005 = vpow2.f32 %v6379_v31  ;;  %v6058_v0 = vrot.slane %v5951_v7, %v20070_v28  ;;  %v6313_v61 = vsub.f32 %v20076_v44, %v6050_v1  ;;  %v6391_v31 = vmul.f32 1.442695, %v6311_v47 }
 0x698   :  { %6555 = vperm.xlu1 %12566, %v16761_v16   ;;  %v16769_v27 = vpop.eup %12987  ;;  %13007 = vpow2.f32 %v6385_v51  ;;  %v6070_v38 = vrot.slane %v5951_v7, %v20071_v45  ;;  %v6316_v46 = vsub.f32 %v16471_v8, %v6062_v2  ;;  %v6066_v52 = vrot.slane %v5951_v7, %v20072_v41 }
 0x699   :  { %v16771_v25 = vpop.eup %12989  ;;  %13009 = vpow2.f32 %v6383_v55  ;;  %v6397_v55 = vmul.f32 1.442695, %v6314_v49  ;;  %v6395_v3 = vmul.f32 1.442695, %v6313_v61  ;;  %v6078_v63 = vrot.slane %v5954_v4, %v20066_v21  ;;  %v20078_v61 = vld [vmem:[#allocation111_spill] sm:$0xff] }
 0x69a   :  { %v16779_v9 = vpop.eup %12991  ;;  %13011 = vpow2.f32 %v6389_v11  ;;  %v6315_v11 = vsub.f32 %v16469_v32, %v6058_v0  ;;  %v6318_v1 = vsub.f32 %v16619_v57, %v6070_v38  ;;  %v6401_v8 = vmul.f32 1.442695, %v6316_v46 }
 0x69b   :  { %6561 = vperm.xlu0 %12565, %v16769_v27   ;;  %v16781_v58 = vpop.eup %12993  ;;  %13013 = vpow2.f32 %v6387_v33  ;;  %v6317_v7 = vsub.f32 %v16607_v54, %v6066_v52  ;;  %v6074_v47 = vrot.slane %v5954_v4, %v14032_v30  ;;  %v6086_v49 = vrot.slane %v5954_v4, %v20068_v23 }
 0x69c   :  { %6558 = vperm.xlu1 %12566, %v16771_v25   ;;  %v16789_v62 = vpop.eup %12995  ;;  %13015 = vpow2.f32 %v6393_v35  ;;  %v6399_v32 = vmul.f32 1.442695, %v6315_v11  ;;  %v6405_v57 = vmul.f32 1.442695, %v6318_v1  ;;  %v20077_v35 = vld [vmem:[#allocation105_spill] sm:$0xff]  ;;  %v6082_v44 = vrot.slane %v5954_v4, %v20067_v24  ;;  %v20079_v1 = vld [vmem:[#allocation80_spill] sm:$0xff] }
 0x69d   :  { %v16791_v10 = vpop.eup %12997  ;;  %13017 = vpow2.f32 %v6391_v31  ;;  %v6320_v0 = vsub.f32 %v20077_v35, %v6078_v63  ;;  %v6403_v54 = vmul.f32 1.442695, %v6317_v7  ;;  %v6319_v31 = vsub.f32 %v20078_v61, %v6074_v47 }
 0x69e   :  { %v16799_v29 = vpop.eup %12999  ;;  %13019 = vpow2.f32 %v6397_v55  ;;  %v6094_v55 = vrot.slane %v5954_v4, %v20069_v59  ;;  %v6322_v52 = vsub.f32 %v16475_v40, %v6086_v49  ;;  %v6102_v47 = vrot.slane %v5954_v4, %v20071_v45 }
 0x69f   :  { %6567 = vperm.xlu0 %12565, %v16779_v9   ;;  %v16801_v19 = vpop.eup %13001  ;;  %13021 = vpow2.f32 %v6395_v3  ;;  %v6409_v11 = vmul.f32 1.442695, %v6320_v0  ;;  %v6090_v3 = vrot.slane %v5954_v4, %v20070_v28  ;;  %v6407_v63 = vmul.f32 1.442695, %v6319_v31 }
 0x6a0   :  { %6564 = vperm.xlu1 %12566, %v16781_v58   ;;  %v16809_v36 = vpop.eup %13003  ;;  %13023 = vpow2.f32 %v6401_v8  ;;  %v6321_v8 = vsub.f32 %v20079_v1, %v6082_v44  ;;  %v6413_v40 = vmul.f32 1.442695, %v6322_v52  ;;  %v6098_v49 = vrot.slane %v5954_v4, %v20072_v41 }
 0x6a1   :  { %v16811_v51 = vpop.eup %13005  ;;  %13025 = vpow2.f32 %v6399_v32  ;;  %v6323_v35 = vsub.f32 %v16477_v42, %v6090_v3  ;;  %v6326_v31 = vsub.f32 %v16647_v34, %v6102_v47 }
 0x6a2   :  { %v16819_v48 = vpop.eup %13007  ;;  %13027 = vpow2.f32 %v6405_v57  ;;  %v6324_v57 = vsub.f32 %v16479_v20, %v6094_v55  ;;  %v6411_v0 = vmul.f32 1.442695, %v6321_v8  ;;  %v6325_v4 = vsub.f32 %v16635_v26, %v6098_v49  ;;  %v20080_v8 = vld [vmem:[#allocation106_spill] sm:$0xff] }
 0x6a3   :  { %6573 = vperm.xlu0 %12565, %v16789_v62   ;;  %v16821_v33 = vpop.eup %13009  ;;  %13029 = vpow2.f32 %v6403_v54  ;;  %v5957_v54 = vpop.xlane.xlu0 %5956  ;;  %v6415_v42 = vmul.f32 1.442695, %v6323_v35  ;;  %v6421_v34 = vmul.f32 1.442695, %v6326_v31 }
 0x6a4   :  { %6570 = vperm.xlu1 %12566, %v16791_v10   ;;  %v16829_v2 = vpop.eup %13011  ;;  %13031 = vpow2.f32 %v6409_v11  ;;  %v6417_v20 = vmul.f32 1.442695, %v6324_v57  ;;  %v6110_v55 = vrot.slane %v5957_v54, %v20066_v21  ;;  %v6106_v52 = vrot.slane %v5957_v54, %v14032_v30  ;;  %v20081_v57 = vld [vmem:[#allocation76_spill] sm:$0xff] }
 0x6a5   :  { %v16831_v37 = vpop.eup %13013  ;;  %13033 = vpow2.f32 %v6407_v63  ;;  %v6118_v1 = vrot.slane %v5957_v54, %v20068_v23  ;;  %v6419_v26 = vmul.f32 1.442695, %v6325_v4  ;;  %v6114_v47 = vrot.slane %v5957_v54, %v20067_v24  ;;  %v20083_v4 = vld [vmem:[#allocation81_spill] sm:$0xff] }
 0x6a6   :  { %v16839_v38 = vpop.eup %13015  ;;  %13035 = vpow2.f32 %v6413_v40  ;;  %v6328_v63 = vsub.f32 %v20080_v8, %v6110_v55  ;;  %v6327_v40 = vsub.f32 %v20081_v57, %v6106_v52  ;;  %v6122_v55 = vrot.slane %v5957_v54, %v20070_v28 }
 0x6a7   :  { %6579 = vperm.xlu0 %12565, %v16799_v29   ;;  %v16841_v46 = vpop.eup %13017  ;;  %13037 = vpow2.f32 %v6411_v0  ;;  %v6126_v0 = vrot.slane %v5957_v54, %v20069_v59  ;;  %v6330_v31 = vsub.f32 %v16483_v5, %v6118_v1  ;;  %v6130_v1 = vrot.slane %v5957_v54, %v20072_v41 }
 0x6a8   :  { %6576 = vperm.xlu1 %12566, %v16801_v19   ;;  %v16849_v7 = vpop.eup %13019  ;;  %13039 = vpow2.f32 %v6417_v20  ;;  %v6425_v20 = vmul.f32 1.442695, %v6328_v63  ;;  %v6423_v52 = vmul.f32 1.442695, %v6327_v40  ;;  %v6331_v63 = vsub.f32 %v16485_v12, %v6122_v55 }
 0x6a9   :  { %v16851_v32 = vpop.eup %13021  ;;  %13041 = vpow2.f32 %v6415_v42  ;;  %v6329_v42 = vsub.f32 %v20083_v4, %v6114_v47  ;;  %v6429_v5 = vmul.f32 1.442695, %v6330_v31  ;;  %v5960_v47 = vpop.xlane.xlu1 %5959 }
 0x6aa   :  { %v16859_v44 = vpop.eup %13023  ;;  %13043 = vpow2.f32 %v6421_v34  ;;  %v6134_v34 = vrot.slane %v5957_v54, %v20071_v45  ;;  %v6333_v54 = vsub.f32 %v16663_v13, %v6130_v1  ;;  %v6431_v12 = vmul.f32 1.442695, %v6331_v63 }
 0x6ab   :  { %6585 = vperm.xlu0 %12565, %v16809_v36   ;;  %v16861_v61 = vpop.eup %13025  ;;  %13045 = vpow2.f32 %v6419_v26  ;;  %v6427_v26 = vmul.f32 1.442695, %v6329_v42  ;;  %v6138_v31 = vrot.slane %v5960_v47, %v14032_v30 }
 0x6ac   :  { %6582 = vperm.xlu1 %12566, %v16811_v51   ;;  %v16869_v11 = vpop.eup %13027  ;;  %13047 = vpow2.f32 %v6425_v20  ;;  %v6435_v13 = vmul.f32 1.442695, %v6333_v54 }
 0x6ad   :  { %v16871_v3 = vpop.eup %13029  ;;  %13049 = vpow2.f32 %v6423_v52  ;;  %v6146_v52 = vrot.slane %v5960_v47, %v20067_v24 }
 0x6ae   :  { %v16879_v49 = vpop.eup %13031  ;;  %13051 = vpow2.f32 %v6429_v5 }
 0x6af   :  { %6591 = vperm.xlu0 %12565, %v16819_v48   ;;  %20082 = vst [vmem:[#allocation93_spill] sm:$0xff] %v16879_v49  ;;  %v16881_v35 = vpop.eup %13033  ;;  %13053 = vpow2.f32 %v6427_v26 }
 0x6b0   :  { %6588 = vperm.xlu1 %12566, %v16821_v33   ;;  %v16889_v8 = vpop.eup %13035 }
 0x6b1   :  { %20084 = vst [vmem:[#allocation115_spill] sm:$0xff] %v16889_v8  ;;  %v16891_v57 = vpop.eup %13037 }
 0x6b2   :  { %v16899_v40 = vpop.eup %13039 }
 0x6b3   :  { %6597 = vperm.xlu0 %12565, %v16829_v2   ;;  %v16901_v4 = vpop.eup %13041 }
 0x6b4   :  { %6594 = vperm.xlu1 %12566, %v16831_v37   ;;  %v16909_v20 = vpop.eup %13043 }
 0x6b5   :  { %v16911_v55 = vpop.eup %13045 }
 0x6b6   :  { %v16919_v1 = vpop.eup %13047 }
 0x6b7   :  { %6603 = vperm.xlu0 %12565, %v16839_v38   ;;  %20086 = vst [vmem:[#allocation95_spill] sm:$0xff] %v16919_v1  ;;  %v16921_v63 = vpop.eup %13049 }
 0x6b8   :  { %6600 = vperm.xlu1 %12566, %v16841_v46  }
 0x6bb   :  { %6609 = vperm.xlu0 %12565, %v16849_v7  }
 0x6bc   :  { %6606 = vperm.xlu1 %12566, %v16851_v32  }
 0x6bf   :  { %6615 = vperm.xlu0 %12565, %v16859_v44  }
 0x6c0   :  { %6612 = vperm.xlu1 %12566, %v16861_v61  }
 0x6c3   :  { %6621 = vperm.xlu0 %12565, %v16869_v11  }
 0x6c4   :  { %6618 = vperm.xlu1 %12566, %v16871_v3  }
 0x6c7   :  { %6627 = vperm.xlu0 %12565, %v16879_v49   ;;  %v6332_v49 = vsub.f32 %v16487_v6, %v6126_v0  ;;  %v6142_v0 = vrot.slane %v5960_v47, %v20066_v21 }
 0x6c8   :  { %6624 = vperm.xlu1 %12566, %v16881_v35  }
 0x6c9   :  { %v6433_v6 = vmul.f32 1.442695, %v6332_v49  ;;  %v6150_v49 = vrot.slane %v5960_v47, %v20068_v23  ;;  %v6336_v42 = vsub.f32 %v16439_v60, %v6142_v0  ;;  %v20087_v0 = vld [vmem:[#allocation82_spill] sm:$0xff] }
 0x6ca   :  { %v6337_v54 = vsub.f32 %v20087_v0, %v6146_v52  ;;  %v5963_v52 = vpop.xlane.xlu0 %5962 }
 0x6cb   :  { %6633 = vperm.xlu0 %12565, %v16889_v8   ;;  %v6334_v8 = vsub.f32 %v16675_v18, %v6134_v34  ;;  %13055 = vpow2.f32 %v6433_v6  ;;  %v20085_v34 = vld [vmem:[#allocation77_spill] sm:$0xff]  ;;  %v6338_v26 = vsub.f32 %v16491_v17, %v6150_v49  ;;  %v6441_v60 = vmul.f32 1.442695, %v6336_v42 }
 0x6cc   :  { %6630 = vperm.xlu1 %12566, %v16891_v57   ;;  %13057 = vpow2.f32 %v6431_v12  ;;  %v6335_v5 = vsub.f32 %v20085_v34, %v6138_v31  ;;  %v6154_v6 = vrot.slane %v5960_v47, %v20070_v28  ;;  %v16929_v31 = vpop.eup %13051  ;;  %v6162_v49 = vrot.slane %v5960_v47, %v20072_v41 }
 0x6cd   :  { %v6437_v18 = vmul.f32 1.442695, %v6334_v8  ;;  %v6158_v8 = vrot.slane %v5960_v47, %v20069_v59  ;;  %20088 = vst [vmem:[#allocation96_spill] sm:$0xff] %v16929_v31  ;;  %v16931_v34 = vpop.eup %13053  ;;  %v6445_v17 = vmul.f32 1.442695, %v6338_v26  ;;  %v6170_v26 = vrot.slane %v5963_v52, %v14032_v30 }
 0x6ce   :  { %v6439_v12 = vmul.f32 1.442695, %v6335_v5  ;;  %v6339_v42 = vsub.f32 %v16493_v22, %v6154_v6 }
 0x6cf   :  { %6639 = vperm.xlu0 %12565, %v16899_v40   ;;  %13059 = vpow2.f32 %v6437_v18  ;;  %v6166_v18 = vrot.slane %v5960_v47, %v20071_v45  ;;  %v6341_v47 = vsub.f32 %v16689_v56, %v6162_v49 }
 0x6d0   :  { %6636 = vperm.xlu1 %12566, %v16901_v4   ;;  %13061 = vpow2.f32 %v6435_v13  ;;  %v6443_v13 = vmul.f32 1.442695, %v6337_v54  ;;  %v6447_v22 = vmul.f32 1.442695, %v6339_v42 }
 0x6d1   :  { %13063 = vpow2.f32 %v6441_v60  ;;  %v6451_v56 = vmul.f32 1.442695, %v6341_v47 }
 0x6d2   :  { %13065 = vpow2.f32 %v6439_v12  ;;  %v6178_v12 = vrot.slane %v5963_v52, %v20067_v24 }
 0x6d3   :  { %6645 = vperm.xlu0 %12565, %v16909_v20   ;;  %13067 = vpow2.f32 %v6445_v17 }
 0x6d4   :  { %6642 = vperm.xlu1 %12566, %v16911_v55   ;;  %13069 = vpow2.f32 %v6443_v13 }
 0x6d5   :  { %v16939_v5 = vpop.eup %13055 }
 0x6d6   :  { %v16941_v0 = vpop.eup %13057 }
 0x6d7   :  { %6651 = vperm.xlu0 %12565, %v16919_v1   ;;  %v6340_v1 = vsub.f32 %v16495_v14, %v6158_v8  ;;  %v6174_v8 = vrot.slane %v5963_v52, %v20066_v21 }
 0x6d8   :  { %6648 = vperm.xlu1 %12566, %v16921_v63  }
 0x6d9   :  { %v6449_v14 = vmul.f32 1.442695, %v6340_v1  ;;  %v16949_v60 = vpop.eup %13059  ;;  %v6182_v1 = vrot.slane %v5963_v52, %v20068_v23  ;;  %v6344_v54 = vsub.f32 %v16443_v50, %v6174_v8  ;;  %v20094_v8 = vld [vmem:[#allocation83_spill] sm:$0xff] }
 0x6da   :  { %20089 = vst [vmem:[#allocation88_spill] sm:$0xff] %v16949_v60  ;;  %v16951_v6 = vpop.eup %13061  ;;  %v6345_v47 = vsub.f32 %v20094_v8, %v6178_v12 }
 0x6db   :  { %6657 = vperm.xlu0 %12565, %v16929_v31   ;;  %v6342_v31 = vsub.f32 %v16697_v15, %v6166_v18  ;;  %20090 = vst [vmem:[#allocation116_spill] sm:$0xff] %v16951_v6  ;;  %13071 = vpow2.f32 %v6449_v14  ;;  %v20091_v18 = vld [vmem:[#allocation107_spill] sm:$0xff]  ;;  %v16959_v49 = vpop.eup %13063  ;;  %v6346_v13 = vsub.f32 %v16499_v53, %v6182_v1  ;;  %v6457_v50 = vmul.f32 1.442695, %v6344_v54  ;;  %v20097_v54 = vld [vmem:[#allocation84_spill] sm:$0xff] }
 0x6dc   :  { %6654 = vperm.xlu1 %12566, %v16931_v34   ;;  %13073 = vpow2.f32 %v6447_v22  ;;  %v6343_v17 = vsub.f32 %v20091_v18, %v6170_v26  ;;  %20092 = vst [vmem:[#allocation90_spill] sm:$0xff] %v16959_v49  ;;  %v16961_v42 = vpop.eup %13065  ;;  %v6186_v14 = vrot.slane %v5963_v52, %v20070_v28  ;;  %v6194_v1 = vrot.slane %v5963_v52, %v20072_v41 }
 0x6dd   :  { %v6453_v15 = vmul.f32 1.442695, %v6342_v31  ;;  %20093 = vst [vmem:[#allocation117_spill] sm:$0xff] %v16961_v42  ;;  %v6190_v31 = vrot.slane %v5963_v52, %v20069_v59  ;;  %v16969_v26 = vpop.eup %13067  ;;  %v6461_v53 = vmul.f32 1.442695, %v6346_v13 }
 0x6de   :  { %v6455_v22 = vmul.f32 1.442695, %v6343_v17  ;;  %20095 = vst [vmem:[#allocation92_spill] sm:$0xff] %v16969_v26  ;;  %v16971_v18 = vpop.eup %13069  ;;  %v6459_v12 = vmul.f32 1.442695, %v6345_v47  ;;  %v5966_v17 = vpop.xlane.xlu1 %5965 }
 0x6df   :  { %6663 = vperm.xlu0 %12565, %v16939_v5   ;;  %13075 = vpow2.f32 %v6453_v15  ;;  %20096 = vst [vmem:[#allocation118_spill] sm:$0xff] %v16971_v18  ;;  %v6198_v15 = vrot.slane %v5963_v52, %v20071_v45  ;;  %v20101_v52 = vld [vmem:[#allocation89_spill] sm:$0xff] }
 0x6e0   :  { %6660 = vperm.xlu1 %12566, %v16941_v0   ;;  %13077 = vpow2.f32 %v6451_v56  ;;  %v6347_v56 = vsub.f32 %v20097_v54, %v6186_v14  ;;  %v6349_v13 = vsub.f32 %v20101_v52, %v6194_v1  ;;  %v6202_v14 = vrot.slane %v5966_v17, %v14032_v30 }
 0x6e1   :  { %13079 = vpow2.f32 %v6457_v50  ;;  %v6210_v54 = vrot.slane %v5966_v17, %v20067_v24 }
 0x6e2   :  { %13081 = vpow2.f32 %v6455_v22  ;;  %v6463_v50 = vmul.f32 1.442695, %v6347_v56  ;;  %v6467_v1 = vmul.f32 1.442695, %v6349_v13  ;;  %v20105_v56 = vld [vmem:[#allocation78_spill] sm:$0xff]  ;;  %v6218_v13 = vrot.slane %v5966_v17, %v20070_v28 }
 0x6e3   :  { %6669 = vperm.xlu0 %12565, %v16949_v60   ;;  %13083 = vpow2.f32 %v6461_v53 }
 0x6e4   :  { %6666 = vperm.xlu1 %12566, %v16951_v6   ;;  %13085 = vpow2.f32 %v6459_v12  ;;  %v6351_v12 = vsub.f32 %v20105_v56, %v6202_v14 }
 0x6e5   :  { %v16979_v8 = vpop.eup %13071 }
 0x6e6   :  { %20098 = vst [vmem:[#allocation94_spill] sm:$0xff] %v16979_v8  ;;  %v6471_v14 = vmul.f32 1.442695, %v6351_v12 }
 0x6e7   :  { %6675 = vperm.xlu0 %12565, %v16959_v49   ;;  %v6348_v49 = vsub.f32 %v16509_v43, %v6190_v31  ;;  %v6206_v31 = vrot.slane %v5966_v17, %v20066_v21 }
 0x6e8   :  { %6672 = vperm.xlu1 %12566, %v16961_v42   ;;  %v16981_v42 = vpop.eup %13073 }
 0x6e9   :  { %20099 = vst [vmem:[#allocation119_spill] sm:$0xff] %v16981_v42  ;;  %v6465_v43 = vmul.f32 1.442695, %v6348_v49  ;;  %v16989_v47 = vpop.eup %13075  ;;  %v6214_v49 = vrot.slane %v5966_v17, %v20068_v23 }
 0x6ea   :  { %20102 = vst [vmem:[#allocation104_spill] sm:$0xff] %v16989_v47  ;;  %v16991_v22 = vpop.eup %13077 }
 0x6eb   :  { %6681 = vperm.xlu0 %12565, %v16969_v26   ;;  %v20100_v26 = vld [vmem:[#allocation113_spill] sm:$0xff]  ;;  %20103 = vst [vmem:[#allocation109_spill] sm:$0xff] %v16991_v22  ;;  %13087 = vpow2.f32 %v6465_v43  ;;  %v16999_v52 = vpop.eup %13079  ;;  %v20108_v43 = vld [vmem:[#allocation86_spill] sm:$0xff] }
 0x6ec   :  { %6678 = vperm.xlu1 %12566, %v16971_v18   ;;  %v6350_v6 = vsub.f32 %v20100_v26, %v6198_v15  ;;  %v20104_v15 = vld [vmem:[#allocation108_spill] sm:$0xff]  ;;  %13089 = vpow2.f32 %v6463_v50  ;;  %20106 = vst [vmem:[#allocation110_spill] sm:$0xff] %v16999_v52  ;;  %v20109_v50 = vld [vmem:[#allocation85_spill] sm:$0xff] }
 0x6ed   :  { %v6352_v53 = vsub.f32 %v20104_v15, %v6206_v31  ;;  %v6353_v15 = vsub.f32 %v20109_v50, %v6210_v54 }
 0x6ee   :  { %v6469_v26 = vmul.f32 1.442695, %v6350_v6  ;;  %v6222_v6 = vrot.slane %v5966_v17, %v20069_v59 }
 0x6ef   :  { %6687 = vperm.xlu0 %12565, %v16979_v8   ;;  %v6473_v31 = vmul.f32 1.442695, %v6352_v53  ;;  %v6226_v53 = vrot.slane %v5966_v17, %v20072_v41  ;;  %v6475_v54 = vmul.f32 1.442695, %v6353_v15 }
 0x6f0   :  { %6684 = vperm.xlu1 %12566, %v16981_v42   ;;  %v17001_v42 = vpop.eup %13081  ;;  %13091 = vpow2.f32 %v6469_v26  ;;  %v6230_v26 = vrot.slane %v5966_v17, %v20071_v45 }
 0x6f1   :  { %20107 = vst [vmem:[#allocation79_spill] sm:$0xff] %v17001_v42  ;;  %13093 = vpow2.f32 %v6467_v1  ;;  %v17009_v56 = vpop.eup %13083  ;;  %v20113_v1 = vld [vmem:[#allocation87_spill] sm:$0xff] }
 0x6f2   :  { %20110 = vst [vmem:[#allocation105_spill] sm:$0xff] %v17009_v56  ;;  %13095 = vpow2.f32 %v6473_v31 }
 0x6f3   :  { %6693 = vperm.xlu0 %12565, %v16989_v47   ;;  %v6354_v47 = vsub.f32 %v20108_v43, %v6214_v49  ;;  %v6355_v43 = vsub.f32 %v20113_v1, %v6218_v13  ;;  %13097 = vpow2.f32 %v6471_v14 }
 0x6f4   :  { %6690 = vperm.xlu1 %12566, %v16991_v22   ;;  %v17011_v22 = vpop.eup %13085 }
 0x6f5   :  { %20111 = vst [vmem:[#allocation111_spill] sm:$0xff] %v17011_v22  ;;  %v6477_v49 = vmul.f32 1.442695, %v6354_v47  ;;  %v17019_v12 = vpop.eup %13087  ;;  %v20117_v47 = vld [vmem:[#allocation91_spill] sm:$0xff]  ;;  %v6479_v17 = vmul.f32 1.442695, %v6355_v43 }
 0x6f6   :  { %20114 = vst [vmem:[#allocation80_spill] sm:$0xff] %v17019_v12  ;;  %v17021_v50 = vpop.eup %13089 }
 0x6f7   :  { %6699 = vperm.xlu0 %12565, %v16999_v52   ;;  %v20112_v52 = vld [vmem:[#allocation112_spill] sm:$0xff]  ;;  %20115 = vst [vmem:[#allocation106_spill] sm:$0xff] %v17021_v50  ;;  %13099 = vpow2.f32 %v6477_v49 }
 0x6f8   :  { %6696 = vperm.xlu1 %12566, %v17001_v42   ;;  %v6356_v8 = vsub.f32 %v20112_v52, %v6222_v6  ;;  %v6357_v6 = vsub.f32 %v20117_v47, %v6226_v53  ;;  %13101 = vpow2.f32 %v6475_v54 }
 0x6fa   :  { %v6481_v52 = vmul.f32 1.442695, %v6356_v8  ;;  %v17027_v31 = vpop.eup %13091  ;;  %v6483_v14 = vmul.f32 1.442695, %v6357_v6 }
 0x6fb   :  { %6705 = vperm.xlu0 %12565, %v17009_v56   ;;  %v20116_v56 = vld [vmem:[#allocation114_spill] sm:$0xff]  ;;  %20118 = vst [vmem:[#allocation76_spill] sm:$0xff] %v17027_v31  ;;  %v17029_v13 = vpop.eup %13093 }
 0x6fc   :  { %6702 = vperm.xlu1 %12566, %v17011_v22   ;;  %v6358_v42 = vsub.f32 %v20116_v56, %v6230_v26  ;;  %20119 = vst [vmem:[#allocation81_spill] sm:$0xff] %v17029_v13  ;;  %13103 = vpow2.f32 %v6481_v52  ;;  %v17033_v56 = vpop.eup %13095 }
 0x6fd   :  { %13105 = vpow2.f32 %v6479_v17  ;;  %20120 = vst [vmem:[#allocation77_spill] sm:$0xff] %v17033_v56  ;;  %v17035_v8 = vpop.eup %13097 }
 0x6fe   :  { %v6485_v15 = vmul.f32 1.442695, %v6358_v42  ;;  %20121 = vst [vmem:[#allocation82_spill] sm:$0xff] %v17035_v8 }
 0x6ff   :  { %6711 = vperm.xlu0 %12565, %v17019_v12  }
 0x700   :  { %6708 = vperm.xlu1 %12566, %v17021_v50   ;;  %13107 = vpow2.f32 %v6485_v15 }
 0x701   :  { %13109 = vpow2.f32 %v6483_v14  ;;  %v17039_v26 = vpop.eup %13099 }
 0x702   :  { %20122 = vst [vmem:[#allocation107_spill] sm:$0xff] %v17039_v26  ;;  %v17041_v49 = vpop.eup %13101 }
 0x703   :  { %6717 = vperm.xlu0 %12565, %v17027_v31   ;;  %20123 = vst [vmem:[#allocation83_spill] sm:$0xff] %v17041_v49 }
 0x704   :  { %6714 = vperm.xlu1 %12566, %v17029_v13  }
 0x706   :  { %v17045_v42 = vpop.eup %13103 }
 0x707   :  { %6723 = vperm.xlu0 %12565, %v17033_v56   ;;  %20124 = vst [vmem:[#allocation84_spill] sm:$0xff] %v17045_v42  ;;  %v17047_v53 = vpop.eup %13105 }
 0x708   :  { %6720 = vperm.xlu1 %12566, %v17035_v8   ;;  %20125 = vst [vmem:[#allocation113_spill] sm:$0xff] %v17047_v53 }
 0x70a   :  { %v17051_v1 = vpop.eup %13107 }
 0x70b   :  { %6729 = vperm.xlu0 %12565, %v17039_v26   ;;  %20126 = vst [vmem:[#allocation89_spill] sm:$0xff] %v17051_v1  ;;  %v17053_v43 = vpop.eup %13109  ;;  %v20128_v26 = vld [vmem:[#allocation75_spill] sm:$0xff] }
 0x70c   :  { %6726 = vperm.xlu1 %12566, %v17041_v49   ;;  %20127 = vst [vmem:[#allocation108_spill] sm:$0xff] %v17053_v43 }
 0x70f   :  { %6735 = vperm.xlu0 %12565, %v17045_v42  }
 0x710   :  { %6732 = vperm.xlu1 %12566, %v17047_v53  }
 0x713   :  { %6741 = vperm.xlu0 %12565, %v17051_v1  }
 0x714   :  { %6738 = vperm.xlu1 %12566, %v17053_v43  }
 0x716   :  { %v6553_v54 = vpop.permute.xlu0 %6552 }
 0x717   :  { %v6556_v52 = vpop.permute.xlu1 %6555  ;;  %v6746_v53 = vrot.slane %v6553_v54, %v20128_v26 }
 0x718   :  { %v6750_v42 = vrot.slane %v6556_v52, %v20128_v26 }
 0x71a   :  { %v6562_v47 = vpop.permute.xlu0 %6561  ;;  %v6999_v1 = vsel %vm1887_vm2, %v6750_v42, %v6746_v53 }
 0x71b   :  { %v6559_v6 = vpop.permute.xlu1 %6558  ;;  %v6758_v43 = vrot.slane %v6562_v47, %v20128_v26 }
 0x71c   :  { %v6754_v8 = vrot.slane %v6559_v6, %v20128_v26 }
 0x71e   :  { %v6568_v17 = vpop.permute.xlu0 %6567  ;;  %v7000_v31 = vsel %vm1889_vm3, %v6754_v8, %v6999_v1 }
 0x71f   :  { %v6565_v15 = vpop.permute.xlu1 %6564  ;;  %v7001_v54 = vsel %vm1891_vm4, %v6758_v43, %v7000_v31  ;;  %v6766_v6 = vrot.slane %v6568_v17, %v20128_v26 }
 0x720   :  { %v6762_v50 = vrot.slane %v6565_v15, %v20128_v26 }
 0x722   :  { %v6574_v14 = vpop.permute.xlu0 %6573  ;;  %v7002_v42 = vsel %vm1893_vm5, %v6762_v50, %v7001_v54 }
 0x723   :  { %v6571_v49 = vpop.permute.xlu1 %6570  ;;  %v7003_v15 = vsel %vm1895_vm6, %v6766_v6, %v7002_v42  ;;  %v6774_v31 = vrot.slane %v6574_v14, %v20128_v26 }
 0x724   :  { %v6770_v53 = vrot.slane %v6571_v49, %v20128_v26 }
 0x726   :  { %v6580_v56 = vpop.permute.xlu0 %6579  ;;  %v7004_v49 = vsel %vm1897_vm7, %v6770_v53, %v7003_v15 }
 0x727   :  { %v6577_v13 = vpop.permute.xlu1 %6576  ;;  %v6782_v22 = vrot.slane %v6580_v56, %v20128_v26  ;;  %v7005_v54 = vsel %vm1899_vm8, %v6774_v31, %v7004_v49 }
 0x728   :  { %v6778_v12 = vrot.slane %v6577_v13, %v20128_v26 }
 0x72a   :  { %v6586_v18 = vpop.permute.xlu0 %6585  ;;  %v7006_v8 = vsel %vm1887_vm2, %v6782_v22, %v6778_v12 }
 0x72b   :  { %v6583_v52 = vpop.permute.xlu1 %6582  ;;  %v6790_v1 = vrot.slane %v6586_v18, %v20128_v26 }
 0x72c   :  { %v6786_v60 = vrot.slane %v6583_v52, %v20128_v26 }
 0x72e   :  { %v7007_v13 = vsel %vm1889_vm3, %v6786_v60, %v7006_v8  ;;  %v6592_v47 = vpop.permute.xlu0 %6591 }
 0x72f   :  { %v6589_v56 = vpop.permute.xlu1 %6588  ;;  %v7008_v17 = vsel %vm1891_vm4, %v6790_v1, %v7007_v13  ;;  %v6798_v50 = vrot.slane %v6592_v47, %v20128_v26  ;;  %v7063_v1 = vsel %vm1958_vm9, %v7005_v54, 0.0 }
 0x730   :  { %v6794_v43 = vrot.slane %v6589_v56, %v20128_v26 }
 0x732   :  { %v7009_v22 = vsel %vm1893_vm5, %v6794_v43, %v7008_v17  ;;  %v6598_v12 = vpop.permute.xlu0 %6597 }
 0x733   :  { %v6595_v18 = vpop.permute.xlu1 %6594  ;;  %v6806_v60 = vrot.slane %v6598_v12, %v20128_v26  ;;  %v7010_v14 = vsel %vm1895_vm6, %v6798_v50, %v7009_v22 }
 0x734   :  { %v6802_v52 = vrot.slane %v6595_v18, %v20128_v26 }
 0x736   :  { %v6604_v6 = vpop.permute.xlu0 %6603  ;;  %v7011_v42 = vsel %vm1897_vm7, %v6802_v52, %v7010_v14 }
 0x737   :  { %v6601_v8 = vpop.permute.xlu1 %6600  ;;  %v7012_v53 = vsel %vm1899_vm8, %v6806_v60, %v7011_v42  ;;  %v6814_v56 = vrot.slane %v6604_v6, %v20128_v26 }
 0x738   :  { %7064 = vadd.xlane.f32.xlu1 %v7063_v1  ;;  %v7066_v13 = vsel %vm1958_vm9, %v7012_v53, 0.0  ;;  %v6810_v47 = vrot.slane %v6601_v8, %v20128_v26 }
 0x739   :  { %7067 = vadd.xlane.f32.xlu0 %v7066_v13 }
 0x73a   :  { %v6610_v15 = vpop.permute.xlu0 %6609  ;;  %v7013_v17 = vsel %vm1887_vm2, %v6814_v56, %v6810_v47 }
 0x73b   :  { %v6607_v31 = vpop.permute.xlu1 %6606  ;;  %v6822_v50 = vrot.slane %v6610_v15, %v20128_v26 }
 0x73c   :  { %v6818_v43 = vrot.slane %v6607_v31, %v20128_v26 }
 0x73e   :  { %v7014_v49 = vsel %vm1889_vm3, %v6818_v43, %v7013_v17  ;;  %v6616_v22 = vpop.permute.xlu0 %6615 }
 0x73f   :  { %v6613_v12 = vpop.permute.xlu1 %6612  ;;  %v7015_v60 = vsel %vm1891_vm4, %v6822_v50, %v7014_v49  ;;  %v6830_v52 = vrot.slane %v6616_v22, %v20128_v26 }
 0x740   :  { %v6826_v18 = vrot.slane %v6613_v12, %v20128_v26 }
 0x742   :  { %v7016_v54 = vsel %vm1893_vm5, %v6826_v18, %v7015_v60  ;;  %v6622_v14 = vpop.permute.xlu0 %6621 }
 0x743   :  { %v6619_v6 = vpop.permute.xlu1 %6618  ;;  %v6838_v42 = vrot.slane %v6622_v14, %v20128_v26  ;;  %v7017_v1 = vsel %vm1895_vm6, %v6830_v52, %v7016_v54 }
 0x744   :  { %v6834_v8 = vrot.slane %v6619_v6, %v20128_v26 }
 0x746   :  { %v6628_v53 = vpop.permute.xlu0 %6627  ;;  %v7018_v13 = vsel %vm1897_vm7, %v6834_v8, %v7017_v1 }
 0x747   :  { %v6625_v47 = vpop.permute.xlu1 %6624  ;;  %v7019_v56 = vsel %vm1899_vm8, %v6838_v42, %v7018_v13  ;;  %v6846_v43 = vrot.slane %v6628_v53, %v20128_v26 }
 0x748   :  { %v7069_v15 = vsel %vm1958_vm9, %v7019_v56, 0.0  ;;  %v6842_v31 = vrot.slane %v6625_v47, %v20128_v26 }
 0x749   :  { %7070 = vadd.xlane.f32.xlu0 %v7069_v15 }
 0x74a   :  { %v6634_v17 = vpop.permute.xlu0 %6633  ;;  %v7020_v22 = vsel %vm1887_vm2, %v6846_v43, %v6842_v31 }
 0x74b   :  { %v6631_v50 = vpop.permute.xlu1 %6630  ;;  %v6854_v12 = vrot.slane %v6634_v17, %v20128_v26 }
 0x74c   :  { %v6850_v49 = vrot.slane %v6631_v50, %v20128_v26 }
 0x74e   :  { %v7021_v18 = vsel %vm1889_vm3, %v6850_v49, %v7020_v22  ;;  %v6640_v60 = vpop.permute.xlu0 %6639 }
 0x74f   :  { %v6637_v52 = vpop.permute.xlu1 %6636  ;;  %v7022_v14 = vsel %vm1891_vm4, %v6854_v12, %v7021_v18  ;;  %v6862_v6 = vrot.slane %v6640_v60, %v20128_v26 }
 0x750   :  { %v6858_v54 = vrot.slane %v6637_v52, %v20128_v26 }
 0x752   :  { %v7023_v42 = vsel %vm1893_vm5, %v6858_v54, %v7022_v14  ;;  %v6646_v8 = vpop.permute.xlu0 %6645 }
 0x753   :  { %v6643_v1 = vpop.permute.xlu1 %6642  ;;  %v6870_v53 = vrot.slane %v6646_v8, %v20128_v26  ;;  %v7024_v47 = vsel %vm1895_vm6, %v6862_v6, %v7023_v42 }
 0x754   :  { %v6866_v13 = vrot.slane %v6643_v1, %v20128_v26 }
 0x756   :  { %v6652_v56 = vpop.permute.xlu0 %6651  ;;  %v7025_v15 = vsel %vm1897_vm7, %v6866_v13, %v7024_v47 }
 0x757   :  { %v6649_v31 = vpop.permute.xlu1 %6648  ;;  %v7026_v43 = vsel %vm1899_vm8, %v6870_v53, %v7025_v15  ;;  %v6878_v49 = vrot.slane %v6652_v56, %v20128_v26 }
 0x758   :  { %v7072_v17 = vsel %vm1958_vm9, %v7026_v43, 0.0  ;;  %v6874_v50 = vrot.slane %v6649_v31, %v20128_v26 }
 0x759   :  { %7073 = vadd.xlane.f32.xlu1 %v7072_v17 }
 0x75a   :  { %v6658_v22 = vpop.permute.xlu0 %6657  ;;  %v7027_v60 = vsel %vm1887_vm2, %v6878_v49, %v6874_v50 }
 0x75b   :  { %v6655_v12 = vpop.permute.xlu1 %6654  ;;  %v6886_v52 = vrot.slane %v6658_v22, %v20128_v26 }
 0x75c   :  { %v6882_v18 = vrot.slane %v6655_v12, %v20128_v26 }
 0x75e   :  { %v7028_v54 = vsel %vm1889_vm3, %v6882_v18, %v7027_v60  ;;  %v6664_v14 = vpop.permute.xlu0 %6663 }
 0x75f   :  { %v6661_v6 = vpop.permute.xlu1 %6660  ;;  %v7029_v8 = vsel %vm1891_vm4, %v6886_v52, %v7028_v54  ;;  %v6894_v1 = vrot.slane %v6664_v14, %v20128_v26 }
 0x760   :  { %v6890_v42 = vrot.slane %v6661_v6, %v20128_v26 }
 0x762   :  { %v7030_v53 = vsel %vm1893_vm5, %v6890_v42, %v7029_v8  ;;  %v6670_v13 = vpop.permute.xlu0 %6669 }
 0x763   :  { %v6667_v47 = vpop.permute.xlu1 %6666  ;;  %v6902_v56 = vrot.slane %v6670_v13, %v20128_v26  ;;  %v7031_v31 = vsel %vm1895_vm6, %v6894_v1, %v7030_v53 }
 0x764   :  { %v6898_v15 = vrot.slane %v6667_v47, %v20128_v26 }
 0x766   :  { %v6676_v43 = vpop.permute.xlu0 %6675  ;;  %v7032_v17 = vsel %vm1897_vm7, %v6898_v15, %v7031_v31 }
 0x767   :  { %v6673_v50 = vpop.permute.xlu1 %6672  ;;  %v7033_v49 = vsel %vm1899_vm8, %v6902_v56, %v7032_v17  ;;  %v6910_v18 = vrot.slane %v6676_v43, %v20128_v26 }
 0x768   :  { %v7075_v22 = vsel %vm1958_vm9, %v7033_v49, 0.0  ;;  %v6906_v12 = vrot.slane %v6673_v50, %v20128_v26 }
 0x769   :  { %7076 = vadd.xlane.f32.xlu0 %v7075_v22 }
 0x76a   :  { %v6682_v60 = vpop.permute.xlu0 %6681  ;;  %v7034_v14 = vsel %vm1887_vm2, %v6910_v18, %v6906_v12 }
 0x76b   :  { %v6679_v52 = vpop.permute.xlu1 %6678  ;;  %v6918_v6 = vrot.slane %v6682_v60, %v20128_v26 }
 0x76c   :  { %v6914_v54 = vrot.slane %v6679_v52, %v20128_v26 }
 0x76e   :  { %v7035_v42 = vsel %vm1889_vm3, %v6914_v54, %v7034_v14  ;;  %v6688_v8 = vpop.permute.xlu0 %6687 }
 0x76f   :  { %v6685_v1 = vpop.permute.xlu1 %6684  ;;  %v7036_v13 = vsel %vm1891_vm4, %v6918_v6, %v7035_v42  ;;  %v6926_v47 = vrot.slane %v6688_v8, %v20128_v26 }
 0x770   :  { %v6922_v53 = vrot.slane %v6685_v1, %v20128_v26 }
 0x772   :  { %v7037_v56 = vsel %vm1893_vm5, %v6922_v53, %v7036_v13  ;;  %v6694_v15 = vpop.permute.xlu0 %6693 }
 0x773   :  { %v6691_v31 = vpop.permute.xlu1 %6690  ;;  %v6934_v43 = vrot.slane %v6694_v15, %v20128_v26  ;;  %v7038_v50 = vsel %vm1895_vm6, %v6926_v47, %v7037_v56 }
 0x774   :  { %v6930_v17 = vrot.slane %v6691_v31, %v20128_v26 }
 0x776   :  { %v6700_v49 = vpop.permute.xlu0 %6699  ;;  %v7039_v22 = vsel %vm1897_vm7, %v6930_v17, %v7038_v50 }
 0x777   :  { %v6697_v12 = vpop.permute.xlu1 %6696  ;;  %v7040_v18 = vsel %vm1899_vm8, %v6934_v43, %v7039_v22  ;;  %v6942_v54 = vrot.slane %v6700_v49, %v20128_v26 }
 0x778   :  { %v7078_v60 = vsel %vm1958_vm9, %v7040_v18, 0.0  ;;  %v6938_v52 = vrot.slane %v6697_v12, %v20128_v26 }
 0x779   :  { %7079 = vadd.xlane.f32.xlu1 %v7078_v60 }
 0x77a   :  { %v6706_v14 = vpop.permute.xlu0 %6705  ;;  %v7041_v8 = vsel %vm1887_vm2, %v6942_v54, %v6938_v52 }
 0x77b   :  { %v6703_v6 = vpop.permute.xlu1 %6702  ;;  %v6950_v1 = vrot.slane %v6706_v14, %v20128_v26 }
 0x77c   :  { %v6946_v42 = vrot.slane %v6703_v6, %v20128_v26 }
 0x77e   :  { %v7042_v53 = vsel %vm1889_vm3, %v6946_v42, %v7041_v8  ;;  %v6712_v13 = vpop.permute.xlu0 %6711 }
 0x77f   :  { %v6709_v47 = vpop.permute.xlu1 %6708  ;;  %v7043_v15 = vsel %vm1891_vm4, %v6950_v1, %v7042_v53  ;;  %v6958_v31 = vrot.slane %v6712_v13, %v20128_v26 }
 0x780   :  { %v6954_v56 = vrot.slane %v6709_v47, %v20128_v26 }
 0x782   :  { %v7044_v43 = vsel %vm1893_vm5, %v6954_v56, %v7043_v15  ;;  %v6718_v17 = vpop.permute.xlu0 %6717 }
 0x783   :  { %v6715_v50 = vpop.permute.xlu1 %6714  ;;  %v6966_v49 = vrot.slane %v6718_v17, %v20128_v26  ;;  %v7045_v12 = vsel %vm1895_vm6, %v6958_v31, %v7044_v43 }
 0x784   :  { %v6962_v22 = vrot.slane %v6715_v50, %v20128_v26 }
 0x786   :  { %v6724_v18 = vpop.permute.xlu0 %6723  ;;  %v7046_v60 = vsel %vm1897_vm7, %v6962_v22, %v7045_v12 }
 0x787   :  { %v6721_v52 = vpop.permute.xlu1 %6720  ;;  %v7047_v54 = vsel %vm1899_vm8, %v6966_v49, %v7046_v60  ;;  %v6974_v42 = vrot.slane %v6724_v18, %v20128_v26 }
 0x788   :  { %v7081_v14 = vsel %vm1958_vm9, %v7047_v54, 0.0  ;;  %v6970_v6 = vrot.slane %v6721_v52, %v20128_v26 }
 0x789   :  { %7082 = vadd.xlane.f32.xlu0 %v7081_v14 }
 0x78a   :  { %v6730_v8 = vpop.permute.xlu0 %6729  ;;  %v7048_v13 = vsel %vm1887_vm2, %v6974_v42, %v6970_v6 }
 0x78b   :  { %v6727_v1 = vpop.permute.xlu1 %6726  ;;  %v6982_v47 = vrot.slane %v6730_v8, %v20128_v26 }
 0x78c   :  { %v6978_v53 = vrot.slane %v6727_v1, %v20128_v26 }
 0x78e   :  { %v7049_v56 = vsel %vm1889_vm3, %v6978_v53, %v7048_v13  ;;  %v6736_v15 = vpop.permute.xlu0 %6735 }
 0x78f   :  { %v6733_v31 = vpop.permute.xlu1 %6732  ;;  %v7050_v17 = vsel %vm1891_vm4, %v6982_v47, %v7049_v56  ;;  %v6990_v50 = vrot.slane %v6736_v15, %v20128_v26 }
 0x790   :  { %v6986_v43 = vrot.slane %v6733_v31, %v20128_v26 }
 0x792   :  { %v7051_v49 = vsel %vm1893_vm5, %v6986_v43, %v7050_v17  ;;  %v6742_v22 = vpop.permute.xlu0 %6741 }
 0x793   :  { %v6739_v12 = vpop.permute.xlu1 %6738  ;;  %v6998_v18 = vrot.slane %v6742_v22, %v20128_v26  ;;  %v7052_v52 = vsel %vm1895_vm6, %v6990_v50, %v7051_v49 }
 0x794   :  { %v6994_v60 = vrot.slane %v6739_v12, %v20128_v26 }
 0x796   :  { %v7053_v54 = vsel %vm1897_vm7, %v6994_v60, %v7052_v52 }
 0x797   :  { %v7054_v14 = vsel %vm1899_vm8, %v6998_v18, %v7053_v54 }
 0x798   :  { %v7084_v6 = vsel %vm1958_vm9, %v7054_v14, 0.0 }
 0x799   :  { %7085 = vadd.xlane.f32.xlu1 %v7084_v6 }
 0x7c5   :  { %v7065_v42 = vpop.xlane.xlu1 %7064 }
 0x7c6   :  { %v7098_v8 = vrot.slane %v7065_v42, %v14032_v30  ;;  %v7102_v1 = vrot.slane %v7065_v42, %v20066_v21  ;;  %v7110_v53 = vrot.slane %v7065_v42, %v20068_v23  ;;  %v7106_v13 = vrot.slane %v7065_v42, %v20067_v24  ;;  %v7068_v31 = vpop.xlane.xlu0 %7067 }
 0x7c7   :  { %v7118_v47 = vrot.slane %v7065_v42, %v20069_v59  ;;  %v7114_v56 = vrot.slane %v7065_v42, %v20070_v28  ;;  %v7126_v15 = vrot.slane %v7065_v42, %v20071_v45  ;;  %v7122_v43 = vrot.slane %v7065_v42, %v20072_v41 }
 0x7c8   :  { %13111 = vrcp.f32 %v7098_v8  ;;  %v7134_v50 = vrot.slane %v7068_v31, %v20066_v21  ;;  %v7130_v12 = vrot.slane %v7068_v31, %v14032_v30  ;;  %v7142_v54 = vrot.slane %v7068_v31, %v20068_v23 }
 0x7c9   :  { %13113 = vrcp.f32 %v7102_v1  ;;  %v7138_v6 = vrot.slane %v7068_v31, %v20067_v24 }
 0x7ca   :  { %13115 = vrcp.f32 %v7110_v53  ;;  %v7146_v53 = vrot.slane %v7068_v31, %v20070_v28 }
 0x7cb   :  { %13117 = vrcp.f32 %v7106_v13 }
 0x7cc   :  { %13119 = vrcp.f32 %v7118_v47 }
 0x7cd   :  { %13121 = vrcp.f32 %v7114_v56 }
 0x7ce   :  { %13123 = vrcp.f32 %v7126_v15 }
 0x7cf   :  { %13125 = vrcp.f32 %v7122_v43  ;;  %v7154_v43 = vrot.slane %v7068_v31, %v20072_v41 }
 0x7d0   :  { %13127 = vrcp.f32 %v7134_v50 }
 0x7d1   :  { %13129 = vrcp.f32 %v7130_v12 }
 0x7d2   :  { %v13112_v17 = vpop.eup %13111  ;;  %13131 = vrcp.f32 %v7142_v54 }
 0x7d3   :  { %v13114_v49 = vpop.eup %13113  ;;  %v7416_v22 = vmul.f32 %v13112_v17, %v16759_v39  ;;  %13133 = vrcp.f32 %v7138_v6 }
 0x7d4   :  { %v13116_v18 = vpop.eup %13115  ;;  %v7418_v60 = vmul.f32 %v13114_v49, %v16761_v16  ;;  %v7150_v16 = vrot.slane %v7068_v31, %v20069_v59 }
 0x7d5   :  { %v13118_v52 = vpop.eup %13117  ;;  %7545 = vperm.xlu0 %12565, %v7416_v22   ;;  %v7422_v14 = vmul.f32 %v13116_v18, %v16769_v27 }
 0x7d6   :  { %7550 = vperm.xlu1 %12566, %v7418_v60   ;;  %v13120_v42 = vpop.eup %13119  ;;  %v7420_v39 = vmul.f32 %v13118_v52, %v16771_v25  ;;  %13135 = vrcp.f32 %v7150_v16  ;;  %v7158_v25 = vrot.slane %v7068_v31, %v20071_v45  ;;  %v7071_v56 = vpop.xlane.xlu0 %7070 }
 0x7d7   :  { %v13122_v8 = vpop.eup %13121  ;;  %v7426_v1 = vmul.f32 %v13120_v42, %v16779_v9  ;;  %13137 = vrcp.f32 %v7146_v53  ;;  %v7162_v22 = vrot.slane %v7071_v56, %v14032_v30  ;;  %v7170_v60 = vrot.slane %v7071_v56, %v20067_v24 }
 0x7d8   :  { %v13124_v13 = vpop.eup %13123  ;;  %v7424_v27 = vmul.f32 %v13122_v8, %v16781_v58  ;;  %13139 = vrcp.f32 %v7158_v25  ;;  %v7166_v58 = vrot.slane %v7071_v56, %v20066_v21  ;;  %v7178_v6 = vrot.slane %v7071_v56, %v20070_v28 }
 0x7d9   :  { %7560 = vperm.xlu0 %12565, %v7422_v14   ;;  %v13126_v47 = vpop.eup %13125  ;;  %v7430_v15 = vmul.f32 %v13124_v13, %v16789_v62  ;;  %13141 = vrcp.f32 %v7154_v43 }
 0x7da   :  { %7555 = vperm.xlu1 %12566, %v7420_v39   ;;  %v13128_v17 = vpop.eup %13127  ;;  %v7428_v9 = vmul.f32 %v13126_v47, %v16791_v10  ;;  %13143 = vrcp.f32 %v7166_v58  ;;  %v7174_v10 = vrot.slane %v7071_v56, %v20068_v23 }
 0x7db   :  { %v13130_v50 = vpop.eup %13129  ;;  %v7434_v49 = vmul.f32 %v13128_v17, %v16799_v29  ;;  %13145 = vrcp.f32 %v7162_v22 }
 0x7dc   :  { %v13132_v12 = vpop.eup %13131  ;;  %v7432_v62 = vmul.f32 %v13130_v50, %v16801_v19  ;;  %13147 = vrcp.f32 %v7174_v10  ;;  %v7182_v19 = vrot.slane %v7071_v56, %v20069_v59 }
 0x7dd   :  { %7570 = vperm.xlu0 %12565, %v7426_v1   ;;  %v13134_v18 = vpop.eup %13133  ;;  %v7438_v31 = vmul.f32 %v13132_v12, %v16809_v36  ;;  %13149 = vrcp.f32 %v7170_v60  ;;  %v7186_v1 = vrot.slane %v7071_v56, %v20072_v41  ;;  %v20129_v60 = vld [vmem:[#allocation93_spill] sm:$0xff] }
 0x7de   :  { %7565 = vperm.xlu1 %12566, %v7424_v27   ;;  %v7436_v29 = vmul.f32 %v13134_v18, %v16811_v51  ;;  %13151 = vrcp.f32 %v7182_v19  ;;  %v7190_v51 = vrot.slane %v7071_v56, %v20071_v45 }
 0x7df   :  { %13153 = vrcp.f32 %v7178_v6 }
 0x7e0   :  { %v13136_v52 = vpop.eup %13135  ;;  %13155 = vrcp.f32 %v7190_v51 }
 0x7e1   :  { %7580 = vperm.xlu0 %12565, %v7430_v15   ;;  %v13138_v54 = vpop.eup %13137  ;;  %v7442_v14 = vmul.f32 %v13136_v52, %v16819_v48  ;;  %13157 = vrcp.f32 %v7186_v1 }
 0x7e2   :  { %7575 = vperm.xlu1 %12566, %v7428_v9   ;;  %v13140_v42 = vpop.eup %13139  ;;  %v7440_v36 = vmul.f32 %v13138_v54, %v16821_v33 }
 0x7e3   :  { %v13142_v39 = vpop.eup %13141  ;;  %v7446_v16 = vmul.f32 %v13140_v42, %v16829_v2 }
 0x7e4   :  { %v13144_v53 = vpop.eup %13143  ;;  %v7444_v48 = vmul.f32 %v13142_v39, %v16831_v37 }
 0x7e5   :  { %7590 = vperm.xlu0 %12565, %v7434_v49   ;;  %v13146_v13 = vpop.eup %13145  ;;  %v7450_v27 = vmul.f32 %v13144_v53, %v16839_v38 }
 0x7e6   :  { %7585 = vperm.xlu1 %12566, %v7432_v62   ;;  %v7074_v8 = vpop.xlane.xlu1 %7073  ;;  %v13148_v25 = vpop.eup %13147  ;;  %v7448_v2 = vmul.f32 %v13146_v13, %v16841_v46 }
 0x7e7   :  { %v7198_v33 = vrot.slane %v7074_v8, %v20066_v21  ;;  %v7194_v47 = vrot.slane %v7074_v8, %v14032_v30  ;;  %v13150_v15 = vpop.eup %13149  ;;  %v7206_v37 = vrot.slane %v7074_v8, %v20068_v23  ;;  %v7454_v56 = vmul.f32 %v13148_v25, %v16849_v7 }
 0x7e8   :  { %v7202_v43 = vrot.slane %v7074_v8, %v20067_v24  ;;  %v13152_v17 = vpop.eup %13151  ;;  %v7452_v38 = vmul.f32 %v13150_v15, %v16851_v32  ;;  %v7214_v46 = vrot.slane %v7074_v8, %v20069_v59  ;;  %v7210_v58 = vrot.slane %v7074_v8, %v20070_v28 }
 0x7e9   :  { %7600 = vperm.xlu0 %12565, %v7438_v31   ;;  %13159 = vrcp.f32 %v7198_v33  ;;  %v13154_v9 = vpop.eup %13153  ;;  %v7458_v50 = vmul.f32 %v13152_v17, %v16859_v44  ;;  %v7222_v32 = vrot.slane %v7074_v8, %v20071_v45  ;;  %v7218_v18 = vrot.slane %v7074_v8, %v20072_v41  ;;  %v20132_v17 = vld [vmem:[#allocation96_spill] sm:$0xff] }
 0x7ea   :  { %7595 = vperm.xlu1 %12566, %v7436_v29   ;;  %13161 = vrcp.f32 %v7194_v47  ;;  %v13156_v49 = vpop.eup %13155  ;;  %v7456_v7 = vmul.f32 %v13154_v9, %v16861_v61 }
 0x7eb   :  { %13163 = vrcp.f32 %v7206_v37  ;;  %v13158_v22 = vpop.eup %13157  ;;  %v7462_v62 = vmul.f32 %v13156_v49, %v16869_v11 }
 0x7ec   :  { %13165 = vrcp.f32 %v7202_v43  ;;  %v7460_v44 = vmul.f32 %v13158_v22, %v16871_v3 }
 0x7ed   :  { %7610 = vperm.xlu0 %12565, %v7442_v14   ;;  %13167 = vrcp.f32 %v7214_v46  ;;  %v20130_v14 = vld [vmem:[#allocation115_spill] sm:$0xff] }
 0x7ee   :  { %7605 = vperm.xlu1 %12566, %v7440_v36   ;;  %13169 = vrcp.f32 %v7210_v58 }
 0x7ef   :  { %13171 = vrcp.f32 %v7222_v32 }
 0x7f0   :  { %13173 = vrcp.f32 %v7218_v18  ;;  %v20133_v18 = vld [vmem:[#allocation88_spill] sm:$0xff] }
 0x7f1   :  { %7620 = vperm.xlu0 %12565, %v7446_v16  }
 0x7f2   :  { %7615 = vperm.xlu1 %12566, %v7444_v48  }
 0x7f3   :  { %v13160_v10 = vpop.eup %13159 }
 0x7f4   :  { %v13162_v31 = vpop.eup %13161  ;;  %v7466_v52 = vmul.f32 %v13160_v10, %v20129_v60 }
 0x7f5   :  { %7630 = vperm.xlu0 %12565, %v7450_v27   ;;  %v13164_v54 = vpop.eup %13163  ;;  %v7464_v11 = vmul.f32 %v13162_v31, %v16881_v35 }
 0x7f6   :  { %7625 = vperm.xlu1 %12566, %v7448_v2   ;;  %v7077_v12 = vpop.xlane.xlu0 %7076  ;;  %v13166_v19 = vpop.eup %13165  ;;  %v7470_v6 = vmul.f32 %v13164_v54, %v20130_v14  ;;  %v20131_v2 = vld [vmem:[#allocation95_spill] sm:$0xff] }
 0x7f7   :  { %v7230_v61 = vrot.slane %v7077_v12, %v20066_v21  ;;  %v7226_v29 = vrot.slane %v7077_v12, %v14032_v30  ;;  %v7238_v3 = vrot.slane %v7077_v12, %v20068_v23  ;;  %v7234_v42 = vrot.slane %v7077_v12, %v20067_v24  ;;  %v13168_v36 = vpop.eup %13167 }
 0x7f8   :  { %v7468_v39 = vmul.f32 %v13166_v19, %v16891_v57  ;;  %v13170_v51 = vpop.eup %13169  ;;  %v7246_v35 = vrot.slane %v7077_v12, %v20069_v59  ;;  %v7474_v8 = vmul.f32 %v13168_v36, %v16899_v40  ;;  %v7242_v16 = vrot.slane %v7077_v12, %v20070_v28  ;;  %v20136_v19 = vld [vmem:[#allocation117_spill] sm:$0xff] }
 0x7f9   :  { %7640 = vperm.xlu0 %12565, %v7454_v56   ;;  %13175 = vrcp.f32 %v7230_v61  ;;  %v13172_v1 = vpop.eup %13171  ;;  %v7472_v53 = vmul.f32 %v13170_v51, %v16901_v4  ;;  %v7254_v57 = vrot.slane %v7077_v12, %v20071_v45  ;;  %v7250_v27 = vrot.slane %v7077_v12, %v20072_v41 }
 0x7fa   :  { %7635 = vperm.xlu1 %12566, %v7452_v38   ;;  %13177 = vrcp.f32 %v7226_v29  ;;  %v13174_v48 = vpop.eup %13173  ;;  %v7478_v33 = vmul.f32 %v13172_v1, %v16909_v20 }
 0x7fb   :  { %13179 = vrcp.f32 %v7238_v3  ;;  %v7476_v40 = vmul.f32 %v13174_v48, %v16911_v55 }
 0x7fc   :  { %13181 = vrcp.f32 %v7234_v42  ;;  %v20137_v42 = vld [vmem:[#allocation92_spill] sm:$0xff] }
 0x7fd   :  { %7650 = vperm.xlu0 %12565, %v7458_v50   ;;  %13183 = vrcp.f32 %v7246_v35  ;;  %v20138_v35 = vld [vmem:[#allocation118_spill] sm:$0xff] }
 0x7fe   :  { %7645 = vperm.xlu1 %12566, %v7456_v7   ;;  %13185 = vrcp.f32 %v7242_v16 }
 0x7ff   :  { %13187 = vrcp.f32 %v7254_v57 }
 0x800   :  { %13189 = vrcp.f32 %v7250_v27 }
 0x801   :  { %7660 = vperm.xlu0 %12565, %v7462_v62  }
 0x802   :  { %7655 = vperm.xlu1 %12566, %v7460_v44  }
 0x803   :  { %v13176_v47 = vpop.eup %13175 }
 0x804   :  { %v13178_v25 = vpop.eup %13177  ;;  %v7482_v15 = vmul.f32 %v13176_v47, %v20131_v2 }
 0x805   :  { %7670 = vperm.xlu0 %12565, %v7466_v52   ;;  %v13180_v56 = vpop.eup %13179  ;;  %v7480_v20 = vmul.f32 %v13178_v25, %v16921_v63  ;;  %v20135_v52 = vld [vmem:[#allocation90_spill] sm:$0xff] }
 0x806   :  { %7665 = vperm.xlu1 %12566, %v7464_v11   ;;  %v7080_v13 = vpop.xlane.xlu1 %7079  ;;  %v13182_v43 = vpop.eup %13181  ;;  %v7486_v38 = vmul.f32 %v13180_v56, %v20132_v17  ;;  %v20142_v56 = vld [vmem:[#allocation109_spill] sm:$0xff]  ;;  %v20143_v17 = vld [vmem:[#allocation110_spill] sm:$0xff] }
 0x807   :  { %v7262_v4 = vrot.slane %v7080_v13, %v20066_v21  ;;  %v7258_v37 = vrot.slane %v7080_v13, %v14032_v30  ;;  %v7270_v55 = vrot.slane %v7080_v13, %v20068_v23  ;;  %v7266_v9 = vrot.slane %v7080_v13, %v20067_v24  ;;  %v13184_v46 = vpop.eup %13183 }
 0x808   :  { %v7484_v50 = vmul.f32 %v13182_v43, %v16931_v34  ;;  %v13186_v58 = vpop.eup %13185  ;;  %v7278_v63 = vrot.slane %v7080_v13, %v20069_v59  ;;  %v7490_v49 = vmul.f32 %v13184_v46, %v16939_v5  ;;  %v7274_v7 = vrot.slane %v7080_v13, %v20070_v28  ;;  %v20134_v5 = vld [vmem:[#allocation116_spill] sm:$0xff] }
 0x809   :  { %7680 = vperm.xlu0 %12565, %v7470_v6   ;;  %13191 = vrcp.f32 %v7262_v4  ;;  %v13188_v22 = vpop.eup %13187  ;;  %v7488_v32 = vmul.f32 %v13186_v58, %v16941_v0  ;;  %v7286_v34 = vrot.slane %v7080_v13, %v20071_v45  ;;  %v7282_v44 = vrot.slane %v7080_v13, %v20072_v41  ;;  %v20141_v4 = vld [vmem:[#allocation104_spill] sm:$0xff] }
 0x80a   :  { %7675 = vperm.xlu1 %12566, %v7468_v39   ;;  %13193 = vrcp.f32 %v7258_v37  ;;  %v13190_v12 = vpop.eup %13189  ;;  %v7494_v10 = vmul.f32 %v13188_v22, %v20133_v18 }
 0x80b   :  { %13195 = vrcp.f32 %v7270_v55  ;;  %v7492_v61 = vmul.f32 %v13190_v12, %v20134_v5 }
 0x80c   :  { %13197 = vrcp.f32 %v7266_v9 }
 0x80d   :  { %7690 = vperm.xlu0 %12565, %v7474_v8   ;;  %13199 = vrcp.f32 %v7278_v63 }
 0x80e   :  { %7685 = vperm.xlu1 %12566, %v7472_v53   ;;  %13201 = vrcp.f32 %v7274_v7  ;;  %v20139_v53 = vld [vmem:[#allocation94_spill] sm:$0xff]  ;;  %v20145_v7 = vld [vmem:[#allocation105_spill] sm:$0xff] }
 0x80f   :  { %13203 = vrcp.f32 %v7286_v34  ;;  %v20146_v34 = vld [vmem:[#allocation111_spill] sm:$0xff] }
 0x810   :  { %13205 = vrcp.f32 %v7282_v44  ;;  %v20147_v44 = vld [vmem:[#allocation80_spill] sm:$0xff] }
 0x811   :  { %7700 = vperm.xlu0 %12565, %v7478_v33   ;;  %v20140_v33 = vld [vmem:[#allocation119_spill] sm:$0xff] }
 0x812   :  { %7695 = vperm.xlu1 %12566, %v7476_v40  }
 0x813   :  { %v13192_v31 = vpop.eup %13191 }
 0x814   :  { %v13194_v60 = vpop.eup %13193  ;;  %v7498_v29 = vmul.f32 %v13192_v31, %v20135_v52 }
 0x815   :  { %7710 = vperm.xlu0 %12565, %v7482_v15   ;;  %v13196_v11 = vpop.eup %13195  ;;  %v7496_v3 = vmul.f32 %v13194_v60, %v20136_v19  ;;  %v20148_v60 = vld [vmem:[#allocation106_spill] sm:$0xff] }
 0x816   :  { %7705 = vperm.xlu1 %12566, %v7480_v20   ;;  %v7083_v62 = vpop.xlane.xlu0 %7082  ;;  %v13198_v14 = vpop.eup %13197  ;;  %v7502_v36 = vmul.f32 %v13196_v11, %v20137_v42 }
 0x817   :  { %v7294_v0 = vrot.slane %v7083_v62, %v20066_v21  ;;  %v7290_v54 = vrot.slane %v7083_v62, %v14032_v30  ;;  %v7302_v6 = vrot.slane %v7083_v62, %v20068_v23  ;;  %v7298_v39 = vrot.slane %v7083_v62, %v20067_v24  ;;  %v13200_v51 = vpop.eup %13199 }
 0x818   :  { %v7500_v8 = vmul.f32 %v13198_v14, %v20138_v35  ;;  %v13202_v16 = vpop.eup %13201  ;;  %v7310_v1 = vrot.slane %v7083_v62, %v20069_v59  ;;  %v7506_v48 = vmul.f32 %v13200_v51, %v20139_v53  ;;  %v7306_v57 = vrot.slane %v7083_v62, %v20070_v28  ;;  %v20150_v14 = vld [vmem:[#allocation81_spill] sm:$0xff]  ;;  %v20152_v35 = vld [vmem:[#allocation82_spill] sm:$0xff] }
 0x819   :  { %7720 = vperm.xlu0 %12565, %v7486_v38   ;;  %13207 = vrcp.f32 %v7294_v0  ;;  %v13204_v13 = vpop.eup %13203  ;;  %v7504_v27 = vmul.f32 %v13202_v16, %v20140_v33  ;;  %v7318_v40 = vrot.slane %v7083_v62, %v20071_v45  ;;  %v7314_v15 = vrot.slane %v7083_v62, %v20072_v41 }
 0x81a   :  { %7715 = vperm.xlu1 %12566, %v7484_v50   ;;  %13209 = vrcp.f32 %v7290_v54  ;;  %v13206_v47 = vpop.eup %13205  ;;  %v7510_v2 = vmul.f32 %v13204_v13, %v20141_v4  ;;  %v20144_v50 = vld [vmem:[#allocation79_spill] sm:$0xff]  ;;  %v20149_v54 = vld [vmem:[#allocation76_spill] sm:$0xff] }
 0x81b   :  { %13211 = vrcp.f32 %v7302_v6  ;;  %v7508_v20 = vmul.f32 %v13206_v47, %v20142_v56  ;;  %v20158_v56 = vld [vmem:[#allocation108_spill] sm:$0xff] }
 0x81c   :  { %13213 = vrcp.f32 %v7298_v39 }
 0x81d   :  { %7730 = vperm.xlu0 %12565, %v7490_v49   ;;  %13215 = vrcp.f32 %v7310_v1  ;;  %v20153_v1 = vld [vmem:[#allocation107_spill] sm:$0xff] }
 0x81e   :  { %7725 = vperm.xlu1 %12566, %v7488_v32   ;;  %13217 = vrcp.f32 %v7306_v57  ;;  %v20154_v57 = vld [vmem:[#allocation83_spill] sm:$0xff] }
 0x81f   :  { %13219 = vrcp.f32 %v7318_v40 }
 0x820   :  { %13221 = vrcp.f32 %v7314_v15  ;;  %v20157_v15 = vld [vmem:[#allocation89_spill] sm:$0xff] }
 0x821   :  { %7740 = vperm.xlu0 %12565, %v7494_v10  }
 0x822   :  { %7735 = vperm.xlu1 %12566, %v7492_v61  }
 0x823   :  { %v13208_v37 = vpop.eup %13207 }
 0x824   :  { %v13210_v43 = vpop.eup %13209  ;;  %v7514_v38 = vmul.f32 %v13208_v37, %v20143_v17  ;;  %v20159_v17 = vld [vmem:[#allocation6_spill] sm:$0xff] }
 0x825   :  { %7750 = vperm.xlu0 %12565, %v7498_v29   ;;  %v13212_v46 = vpop.eup %13211  ;;  %v7512_v58 = vmul.f32 %v13210_v43, %v20144_v50 }
 0x826   :  { %7745 = vperm.xlu1 %12566, %v7496_v3   ;;  %v7086_v25 = vpop.xlane.xlu1 %7085  ;;  %v13214_v63 = vpop.eup %13213  ;;  %v7518_v22 = vmul.f32 %v13212_v46, %v20145_v7 }
 0x827   :  { %v7326_v55 = vrot.slane %v7086_v25, %v20066_v21  ;;  %v7322_v9 = vrot.slane %v7086_v25, %v14032_v30  ;;  %v7334_v49 = vrot.slane %v7086_v25, %v20068_v23  ;;  %v7330_v32 = vrot.slane %v7086_v25, %v20067_v24  ;;  %v13216_v12 = vpop.eup %13215 }
 0x828   :  { %v7516_v62 = vmul.f32 %v13214_v63, %v20146_v34  ;;  %v13218_v18 = vpop.eup %13217  ;;  %v7342_v10 = vrot.slane %v7086_v25, %v20069_v59  ;;  %v7522_v31 = vmul.f32 %v13216_v12, %v20147_v44  ;;  %v7338_v5 = vrot.slane %v7086_v25, %v20070_v28 }
 0x829   :  { %7760 = vperm.xlu0 %12565, %v7502_v36   ;;  %13223 = vrcp.f32 %v7326_v55  ;;  %v13220_v61 = vpop.eup %13219  ;;  %v7520_v0 = vmul.f32 %v13218_v18, %v20148_v60  ;;  %v7350_v29 = vrot.slane %v7086_v25, %v20071_v45  ;;  %v7346_v19 = vrot.slane %v7086_v25, %v20072_v41  ;;  %v20151_v36 = vld [vmem:[#allocation77_spill] sm:$0xff] }
 0x82a   :  { %7755 = vperm.xlu1 %12566, %v7500_v8   ;;  %13225 = vrcp.f32 %v7322_v9  ;;  %v13222_v52 = vpop.eup %13221  ;;  %v7526_v11 = vmul.f32 %v13220_v61, %v20149_v54  ;;  %v20156_v25 = vld [vmem:[#allocation113_spill] sm:$0xff]  ;;  %v20163_v54 = vld [vmem:[#allocation12_spill] sm:$0xff] }
 0x82b   :  { %13227 = vrcp.f32 %v7334_v49  ;;  %v7524_v6 = vmul.f32 %v13222_v52, %v20150_v14  ;;  %v20160_v9 = vld [vmem:[#allocation5_spill] sm:$0xff] }
 0x82c   :  { %13229 = vrcp.f32 %v7330_v32  ;;  %v20161_v32 = vld [vmem:[#allocation8_spill] sm:$0xff]  ;;  %v20164_v14 = vld [vmem:[#allocation13_spill] sm:$0xff] }
 0x82d   :  { %7770 = vperm.xlu0 %12565, %v7506_v48   ;;  %13231 = vrcp.f32 %v7342_v10 }
 0x82e   :  { %7765 = vperm.xlu1 %12566, %v7504_v27   ;;  %13233 = vrcp.f32 %v7338_v5  ;;  %v20155_v27 = vld [vmem:[#allocation84_spill] sm:$0xff] }
 0x82f   :  { %13235 = vrcp.f32 %v7350_v29 }
 0x830   :  { %13237 = vrcp.f32 %v7346_v19 }
 0x831   :  { %7780 = vperm.xlu0 %12565, %v7510_v2  }
 0x832   :  { %7775 = vperm.xlu1 %12566, %v7508_v20  }
 0x833   :  { %v13224_v3 = vpop.eup %13223 }
 0x834   :  { %v13226_v42 = vpop.eup %13225  ;;  %v7530_v39 = vmul.f32 %v13224_v3, %v20151_v36 }
 0x835   :  { %7790 = vperm.xlu0 %12565, %v7514_v38   ;;  %v13228_v51 = vpop.eup %13227  ;;  %v7528_v8 = vmul.f32 %v13226_v42, %v20152_v35 }
 0x836   :  { %7785 = vperm.xlu1 %12566, %v7512_v58   ;;  %v13230_v16 = vpop.eup %13229  ;;  %v7534_v53 = vmul.f32 %v13228_v51, %v20153_v1 }
 0x837   :  { %v13232_v48 = vpop.eup %13231  ;;  %v7532_v13 = vmul.f32 %v13230_v16, %v20154_v57 }
 0x838   :  { %v13234_v33 = vpop.eup %13233  ;;  %v7538_v47 = vmul.f32 %v13232_v48, %v20155_v27 }
 0x839   :  { %7800 = vperm.xlu0 %12565, %v7518_v22   ;;  %v13236_v40 = vpop.eup %13235  ;;  %v7536_v4 = vmul.f32 %v13234_v33, %v20156_v25  ;;  %v20165_v33 = vld [vmem:[#allocation20_spill] sm:$0xff] }
 0x83a   :  { %7795 = vperm.xlu1 %12566, %v7516_v62   ;;  %v13238_v2 = vpop.eup %13237  ;;  %v7542_v37 = vmul.f32 %v13236_v40, %v20157_v15  ;;  %v20162_v62 = vld [vmem:[#allocation10_spill] sm:$0xff] }
 0x83b   :  { %v7540_v20 = vmul.f32 %v13238_v2, %v20158_v56 }
 0x83d   :  { %7810 = vperm.xlu0 %12565, %v7522_v31  }
 0x83e   :  { %7805 = vperm.xlu1 %12566, %v7520_v0  }
 0x841   :  { %7820 = vperm.xlu0 %12565, %v7526_v11  }
 0x842   :  { %7815 = vperm.xlu1 %12566, %v7524_v6  }
 0x845   :  { %7830 = vperm.xlu0 %12565, %v7530_v39  }
 0x846   :  { %7825 = vperm.xlu1 %12566, %v7528_v8  }
 0x849   :  { %7840 = vperm.xlu0 %12565, %v7534_v53  }
 0x84a   :  { %7835 = vperm.xlu1 %12566, %v7532_v13  }
 0x84d   :  { %7850 = vperm.xlu0 %12565, %v7538_v47  }
 0x84e   :  { %7845 = vperm.xlu1 %12566, %v7536_v4   ;;  %v20166_v4 = vld [vmem:[#allocation19_spill] sm:$0xff] }
 0x851   :  { %7860 = vperm.xlu0 %12565, %v7542_v37  }
 0x852   :  { %7855 = vperm.xlu1 %12566, %v7540_v20  }
 0x854   :  { %v7546_v43 = vpop.permute.xlu0 %7545 }
 0x855   :  { %v7551_v55 = vpop.permute.xlu1 %7550  ;;  %v7863_v38 = vmul.f32 %v7546_v43, %v20159_v17 }
 0x856   :  { %v7864_v46 = vmul.f32 %v7551_v55, %v20160_v9 }
 0x857   :  { %v7927_v50 = vsel %vm204_vm1, %v7863_v38, 0.0 }
 0x858   :  { %v7934_v58 = vsel %vm204_vm1, %v7864_v46, 0.0  ;;  %v7928_v63 = vrot.slane %v7927_v50, 4  ;;  %v7561_v49 = vpop.permute.xlu0 %7560 }
 0x859   :  { %v7935_v7 = vrot.slane %v7934_v58, 4  ;;  %v7556_v22 = vpop.permute.xlu1 %7555  ;;  %v7866_v12 = vmul.f32 %v7561_v49, %v20161_v32 }
 0x85a   :  { %v7929_v34 = vadd.f32 %v7928_v63, %v7927_v50  ;;  %v7865_v18 = vmul.f32 %v7556_v22, %v20162_v62 }
 0x85b   :  { %v7936_v10 = vadd.f32 %v7935_v7, %v7934_v58  ;;  %v7948_v44 = vsel %vm204_vm1, %v7866_v12, 0.0 }
 0x85c   :  { %v7930_v31 = vrot.slane %v7929_v34, 2  ;;  %v7941_v5 = vsel %vm204_vm1, %v7865_v18, 0.0  ;;  %v7949_v61 = vrot.slane %v7948_v44, 4  ;;  %v7571_v60 = vpop.permute.xlu0 %7570  ;;  %v20167_v18 = vld [vmem:[#allocation11_spill] sm:$0xff] }
 0x85d   :  { %v7937_v0 = vrot.slane %v7936_v10, 2  ;;  %v7942_v52 = vrot.slane %v7941_v5, 4  ;;  %v7566_v29 = vpop.permute.xlu1 %7565  ;;  %v7868_v11 = vmul.f32 %v7571_v60, %v20163_v54 }
 0x85e   :  { %v7931_v19 = vadd.f32 %v7930_v31, %v7929_v34  ;;  %v7950_v3 = vadd.f32 %v7949_v61, %v7948_v44  ;;  %v7867_v6 = vmul.f32 %v7566_v29, %v20164_v14  ;;  %v20168_v61 = vld [vmem:[#allocation9_spill] sm:$0xff] }
 0x85f   :  { %v7938_v42 = vadd.f32 %v7937_v0, %v7936_v10  ;;  %v7943_v36 = vadd.f32 %v7942_v52, %v7941_v5  ;;  %v7962_v39 = vsel %vm204_vm1, %v7868_v11, 0.0 }
 0x860   :  { %v7932_v51 = vrot.slane %v7931_v19, 1  ;;  %v7951_v35 = vrot.slane %v7950_v3, 2  ;;  %v7955_v8 = vsel %vm204_vm1, %v7867_v6, 0.0  ;;  %v7963_v16 = vrot.slane %v7962_v39, 4  ;;  %v7581_v1 = vpop.permute.xlu0 %7580 }
 0x861   :  { %v7939_v53 = vrot.slane %v7938_v42, 1  ;;  %v7944_v48 = vrot.slane %v7943_v36, 2  ;;  %v7956_v57 = vrot.slane %v7955_v8, 4  ;;  %v7576_v13 = vpop.permute.xlu1 %7575  ;;  %v7870_v27 = vmul.f32 %v7581_v1, %v20165_v33 }
 0x862   :  { %v7933_v47 = vadd.f32 %v7932_v51, %v7931_v19  ;;  %v7952_v40 = vadd.f32 %v7951_v35, %v7950_v3  ;;  %v7964_v25 = vadd.f32 %v7963_v16, %v7962_v39  ;;  %v7869_v2 = vmul.f32 %v7576_v13, %v20166_v4 }
 0x863   :  { %v7940_v15 = vadd.f32 %v7939_v53, %v7938_v42  ;;  %v7945_v37 = vadd.f32 %v7944_v48, %v7943_v36  ;;  %v7957_v56 = vadd.f32 %v7956_v57, %v7955_v8  ;;  %v7976_v20 = vsel %vm204_vm1, %v7870_v27, 0.0  ;;  %v20169_v27 = vld [vmem:[#allocation15_spill] sm:$0xff] }
 0x864   :  { %v7953_v43 = vrot.slane %v7952_v40, 1  ;;  %v7965_v55 = vrot.slane %v7964_v25, 2  ;;  %v7969_v38 = vsel %vm204_vm1, %v7869_v2, 0.0  ;;  %v7977_v46 = vrot.slane %v7976_v20, 4  ;;  %v7591_v50 = vpop.permute.xlu0 %7590 }
 0x865   :  { %v7946_v58 = vrot.slane %v7945_v37, 1  ;;  %v7958_v63 = vrot.slane %v7957_v56, 2  ;;  %v7970_v49 = vrot.slane %v7969_v38, 4  ;;  %v7586_v7 = vpop.permute.xlu1 %7585  ;;  %v7872_v60 = vmul.f32 %v7591_v50, %v20168_v61  ;;  %v20171_v50 = vld [vmem:[#allocation17_spill] sm:$0xff] }
 0x866   :  { %v7954_v22 = vadd.f32 %v7953_v43, %v7952_v40  ;;  %v7966_v12 = vadd.f32 %v7965_v55, %v7964_v25  ;;  %v7978_v34 = vadd.f32 %v7977_v46, %v7976_v20  ;;  %v7871_v10 = vmul.f32 %v7586_v7, %v20167_v18  ;;  %v20170_v40 = vld [vmem:[#allocation14_spill] sm:$0xff] }
 0x867   :  { %v7947_v44 = vadd.f32 %v7946_v58, %v7945_v37  ;;  %v7959_v31 = vadd.f32 %v7958_v63, %v7957_v56  ;;  %v7971_v5 = vadd.f32 %v7970_v49, %v7969_v38  ;;  %v8439_v0 = vsel %vm1887_vm2, %v7940_v15, %v7933_v47 }
 0x868   :  { %v7967_v52 = vrot.slane %v7966_v12, 1  ;;  %v7979_v29 = vrot.slane %v7978_v34, 2  ;;  %v7983_v11 = vsel %vm204_vm1, %v7871_v10, 0.0  ;;  %v7601_v19 = vpop.permute.xlu0 %7600  ;;  %v7990_v8 = vsel %vm204_vm1, %v7872_v60, 0.0  ;;  %v20172_v10 = vld [vmem:[#allocation16_spill] sm:$0xff] }
 0x869   :  { %v8440_v3 = vsel %vm1889_vm3, %v7947_v44, %v8439_v0  ;;  %v7960_v6 = vrot.slane %v7959_v31, 1  ;;  %v7972_v42 = vrot.slane %v7971_v5, 2  ;;  %v7984_v36 = vrot.slane %v7983_v11, 4  ;;  %v7596_v39 = vpop.permute.xlu1 %7595 }
 0x86a   :  { %v8441_v51 = vsel %vm1891_vm4, %v7954_v22, %v8440_v3  ;;  %v7980_v35 = vadd.f32 %v7979_v29, %v7978_v34  ;;  %v7991_v48 = vrot.slane %v7990_v8, 4  ;;  %v7968_v57 = vadd.f32 %v7967_v52, %v7966_v12 }
 0x86b   :  { %v7961_v16 = vadd.f32 %v7960_v6, %v7959_v31  ;;  %v7973_v1 = vadd.f32 %v7972_v42, %v7971_v5  ;;  %v7985_v53 = vadd.f32 %v7984_v36, %v7983_v11  ;;  %v7873_v47 = vmul.f32 %v7596_v39, %v20169_v27  ;;  %v20173_v6 = vld [vmem:[#allocation21_spill] sm:$0xff]  ;;  %v20174_v36 = vld [vmem:[#allocation23_spill] sm:$0xff] }
 0x86c   :  { %v7981_v13 = vrot.slane %v7980_v35, 1  ;;  %v7874_v25 = vmul.f32 %v7601_v19, %v20170_v40  ;;  %v7611_v2 = vpop.permute.xlu0 %7610  ;;  %v7992_v20 = vadd.f32 %v7991_v48, %v7990_v8 }
 0x86d   :  { %v8442_v15 = vsel %vm1893_vm5, %v7961_v16, %v8441_v51  ;;  %v7974_v37 = vrot.slane %v7973_v1, 1  ;;  %v7986_v56 = vrot.slane %v7985_v53, 2  ;;  %v7606_v43 = vpop.permute.xlu1 %7605  ;;  %v7997_v38 = vsel %vm204_vm1, %v7873_v47, 0.0 }
 0x86e   :  { %v17339_v55 = vadd.f32 %v7981_v13, %v7980_v35  ;;  %v8004_v46 = vsel %vm204_vm1, %v7874_v25, 0.0  ;;  %v7875_v58 = vmul.f32 %v7606_v43, %v20171_v50  ;;  %v7993_v7 = vrot.slane %v7992_v20, 2 }
 0x86f   :  { %v17344_v63 = vadd.f32 %v7974_v37, %v7973_v1  ;;  %v7987_v49 = vadd.f32 %v7986_v56, %v7985_v53  ;;  %v7998_v22 = vrot.slane %v7997_v38, 4  ;;  %v8005_v12 = vrot.slane %v8004_v46, 4 }
 0x870   :  { %v8011_v34 = vsel %vm204_vm1, %v7875_v58, 0.0  ;;  %v7876_v44 = vmul.f32 %v7611_v2, %v20172_v10  ;;  %v7621_v31 = vpop.permute.xlu0 %7620  ;;  %v17349_v5 = vsel %vm1895_vm6, %v7968_v57, %v8442_v15  ;;  %v7994_v0 = vadd.f32 %v7993_v7, %v7992_v20 }
 0x871   :  { %v7988_v60 = vrot.slane %v7987_v49, 1  ;;  %v7999_v52 = vadd.f32 %v7998_v22, %v7997_v38  ;;  %v8012_v29 = vrot.slane %v8011_v34, 4  ;;  %v7616_v11 = vpop.permute.xlu1 %7615  ;;  %v8006_v19 = vadd.f32 %v8005_v12, %v8004_v46  ;;  %v20175_v38 = vld [vmem:[#allocation24_spill] sm:$0xff] }
 0x872   :  { %v8018_v3 = vsel %vm204_vm1, %v7876_v44, 0.0  ;;  %v7877_v42 = vmul.f32 %v7616_v11, %v20173_v6  ;;  %v7878_v39 = vmul.f32 %v7621_v31, %v20174_v36  ;;  %v7995_v35 = vrot.slane %v7994_v0, 1 }
 0x873   :  { %v7989_v51 = vadd.f32 %v7988_v60, %v7987_v49  ;;  %v8000_v8 = vrot.slane %v7999_v52, 2  ;;  %v8013_v16 = vadd.f32 %v8012_v29, %v8011_v34  ;;  %v8007_v1 = vrot.slane %v8006_v19, 2 }
 0x874   :  { %v8019_v53 = vrot.slane %v8018_v3, 4  ;;  %v8025_v48 = vsel %vm204_vm1, %v7877_v42, 0.0  ;;  %v8032_v57 = vsel %vm204_vm1, %v7878_v39, 0.0  ;;  %v7631_v13 = vpop.permute.xlu0 %7630  ;;  %v7996_v47 = vadd.f32 %v7995_v35, %v7994_v0  ;;  %v20176_v35 = vld [vmem:[#allocation18_spill] sm:$0xff] }
 0x875   :  { %v8001_v25 = vadd.f32 %v8000_v8, %v7999_v52  ;;  %v8014_v2 = vrot.slane %v8013_v16, 2  ;;  %v8026_v15 = vrot.slane %v8025_v48, 4  ;;  %v7626_v37 = vpop.permute.xlu1 %7625  ;;  %v8008_v56 = vadd.f32 %v8007_v1, %v8006_v19 }
 0x876   :  { %v8020_v20 = vadd.f32 %v8019_v53, %v8018_v3  ;;  %v8033_v43 = vrot.slane %v8032_v57, 4  ;;  %v7879_v46 = vmul.f32 %v7626_v37, %v20175_v38  ;;  %v8446_v58 = vsel %vm1887_vm2, %v7996_v47, %v7989_v51 }
 0x877   :  { %v8002_v49 = vrot.slane %v8001_v25, 1  ;;  %v8015_v7 = vadd.f32 %v8014_v2, %v8013_v16  ;;  %v8027_v22 = vadd.f32 %v8026_v15, %v8025_v48  ;;  %v8009_v12 = vrot.slane %v8008_v56, 1 }
 0x878   :  { %v8021_v34 = vrot.slane %v8020_v20, 2  ;;  %v8034_v44 = vadd.f32 %v8033_v43, %v8032_v57  ;;  %v8039_v31 = vsel %vm204_vm1, %v7879_v46, 0.0  ;;  %v7641_v60 = vpop.permute.xlu0 %7640  ;;  %v7880_v8 = vmul.f32 %v7631_v13, %v20176_v35 }
 0x879   :  { %v8003_v0 = vadd.f32 %v8002_v49, %v8001_v25  ;;  %v8016_v52 = vrot.slane %v8015_v7, 1  ;;  %v8028_v29 = vrot.slane %v8027_v22, 2  ;;  %v8040_v11 = vrot.slane %v8039_v31, 4  ;;  %v7636_v19 = vpop.permute.xlu1 %7635  ;;  %v20177_v49 = vld [vmem:[#allocation26_spill] sm:$0xff] }
 0x87a   :  { %v8010_v3 = vadd.f32 %v8009_v12, %v8008_v56  ;;  %v8022_v42 = vadd.f32 %v8021_v34, %v8020_v20  ;;  %v8035_v39 = vrot.slane %v8034_v44, 2  ;;  %v8046_v25 = vsel %vm204_vm1, %v7880_v8, 0.0 }
 0x87b   :  { %v8447_v51 = vsel %vm1889_vm3, %v8003_v0, %v8446_v58  ;;  %v8017_v16 = vadd.f32 %v8016_v52, %v8015_v7  ;;  %v8029_v1 = vadd.f32 %v8028_v29, %v8027_v22  ;;  %v8041_v53 = vadd.f32 %v8040_v11, %v8039_v31  ;;  %v20178_v0 = vld [vmem:[#allocation2_spill] sm:$0xff]  ;;  %v20179_v11 = vld [vmem:[#allocation25_spill] sm:$0xff] }
 0x87c   :  { %v8448_v48 = vsel %vm1891_vm4, %v8010_v3, %v8447_v51  ;;  %v8023_v57 = vrot.slane %v8022_v42, 1  ;;  %v8036_v47 = vadd.f32 %v8035_v39, %v8034_v44  ;;  %v7651_v2 = vpop.permute.xlu0 %7650  ;;  %v8047_v20 = vrot.slane %v8046_v25, 4  ;;  %v20180_v39 = vld [vmem:[#allocation28_spill] sm:$0xff] }
 0x87d   :  { %v17364_v15 = vsel %vm1893_vm5, %v8017_v16, %v8448_v48  ;;  %v8030_v37 = vrot.slane %v8029_v1, 1  ;;  %v8042_v56 = vrot.slane %v8041_v53, 2  ;;  %v7646_v43 = vpop.permute.xlu1 %7645  ;;  %v8444_v58 = vsel %vm1897_vm7, %v17344_v63, %v17349_v5  ;;  %v20182_v48 = vld [vmem:[#allocation30_spill] sm:$0xff] }
 0x87e   :  { %v17366_v13 = vadd.f32 %v8023_v57, %v8022_v42  ;;  %v8037_v46 = vrot.slane %v8036_v47, 1  ;;  %v7881_v7 = vmul.f32 %v7636_v19, %v20177_v49  ;;  %v8048_v34 = vadd.f32 %v8047_v20, %v8046_v25 }
 0x87f   :  { %v17372_v22 = vadd.f32 %v8030_v37, %v8029_v1  ;;  %v8043_v12 = vadd.f32 %v8042_v56, %v8041_v53  ;;  %v8445_v44 = vsel %vm1899_vm8, %v17339_v55, %v8444_v58  ;;  %v7882_v3 = vmul.f32 %v7641_v60, %v20179_v11  ;;  %v20181_v1 = vld [vmem:[#allocation27_spill] sm:$0xff] }
 0x880   :  { %v17376_v31 = vadd.f32 %v8037_v46, %v8036_v47  ;;  %v17379_v52 = vadd.f32 %v8445_v44, %v20178_v0  ;;  %v8053_v29 = vsel %vm204_vm1, %v7881_v7, 0.0  ;;  %v7661_v42 = vpop.permute.xlu0 %7660  ;;  %v8049_v5 = vrot.slane %v8048_v34, 2 }
 0x881   :  { %v8044_v63 = vrot.slane %v8043_v12, 1  ;;  %v8054_v19 = vrot.slane %v8053_v29, 4  ;;  %v7883_v8 = vmul.f32 %v7646_v43, %v20180_v39  ;;  %v7656_v51 = vpop.permute.xlu1 %7655  ;;  %v8060_v55 = vsel %vm204_vm1, %v7882_v3, 0.0 }
 0x882   :  { %v8511_v16 = vmul.f32 %v17379_v52, %v17379_v52  ;;  %v7884_v53 = vmul.f32 %v7651_v2, %v20181_v1  ;;  %v7885_v57 = vmul.f32 %v7656_v51, %v20182_v48  ;;  %v8050_v25 = vadd.f32 %v8049_v5, %v8048_v34  ;;  %v20183_v34 = vld [vmem:[#allocation29_spill] sm:$0xff] }
 0x883   :  { %v8045_v47 = vadd.f32 %v8044_v63, %v8043_v12  ;;  %v8055_v37 = vadd.f32 %v8054_v19, %v8053_v29  ;;  %v8061_v60 = vrot.slane %v8060_v55, 4  ;;  %v8067_v20 = vsel %vm204_vm1, %v7883_v8, 0.0  ;;  %v20184_v63 = vld [vmem:[#allocation33_spill] sm:$0xff] }
 0x884   :  { %v8519_v56 = vsel %vm91_vm0, %v8511_v16, 0.0  ;;  %v8074_v43 = vsel %vm204_vm1, %v7884_v53, 0.0  ;;  %v8081_v46 = vsel %vm204_vm1, %v7885_v57, 0.0  ;;  %v7671_v58 = vpop.permute.xlu0 %7670  ;;  %v8051_v7 = vrot.slane %v8050_v25, 1 }
 0x885   :  { %8520 = vadd.xlane.f32.xlu1 %v8519_v56  ;;  %v8056_v44 = vrot.slane %v8055_v37, 2  ;;  %v8062_v3 = vadd.f32 %v8061_v60, %v8060_v55  ;;  %v8068_v2 = vrot.slane %v8067_v20, 4  ;;  %v7666_v0 = vpop.permute.xlu1 %7665  ;;  %v8075_v51 = vrot.slane %v8074_v43, 4 }
 0x886   :  { %v8082_v12 = vrot.slane %v8081_v46, 4  ;;  %v7886_v29 = vmul.f32 %v7661_v42, %v20183_v34  ;;  %v7887_v5 = vmul.f32 %v7666_v0, %v20184_v63  ;;  %v8052_v19 = vadd.f32 %v8051_v7, %v8050_v25 }
 0x887   :  { %v8057_v16 = vadd.f32 %v8056_v44, %v8055_v37  ;;  %v8063_v8 = vrot.slane %v8062_v3, 2  ;;  %v8069_v41 = vadd.f32 %v8068_v2, %v8067_v20  ;;  %v8076_v53 = vadd.f32 %v8075_v51, %v8074_v43  ;;  %v20185_v43 = vld [vmem:[#allocation31_spill] sm:$0xff] }
 0x888   :  { %v8083_v45 = vadd.f32 %v8082_v12, %v8081_v46  ;;  %v8088_v57 = vsel %vm204_vm1, %v7886_v29, 0.0  ;;  %v8095_v56 = vsel %vm204_vm1, %v7887_v5, 0.0  ;;  %v7681_v28 = vpop.permute.xlu0 %7680  ;;  %v8453_v55 = vsel %vm1887_vm2, %v8052_v19, %v8045_v47 }
 0x889   :  { %v8058_v60 = vrot.slane %v8057_v16, 1  ;;  %v8064_v59 = vadd.f32 %v8063_v8, %v8062_v3  ;;  %v8070_v23 = vrot.slane %v8069_v41, 2  ;;  %v7676_v24 = vpop.permute.xlu1 %7675  ;;  %v8077_v42 = vrot.slane %v8076_v53, 2 }
 0x88a   :  { %v8084_v21 = vrot.slane %v8083_v45, 2  ;;  %v8089_v0 = vrot.slane %v8088_v57, 4  ;;  %v8096_v25 = vrot.slane %v8095_v56, 4  ;;  %v7888_v46 = vmul.f32 %v7671_v58, %v20185_v43 }
 0x88b   :  { %v8059_v37 = vadd.f32 %v8058_v60, %v8057_v16  ;;  %v8065_v7 = vrot.slane %v8064_v59, 1  ;;  %v8071_v20 = vadd.f32 %v8070_v23, %v8069_v41  ;;  %v8078_v44 = vadd.f32 %v8077_v42, %v8076_v53 }
 0x88c   :  { %v8085_v2 = vadd.f32 %v8084_v21, %v8083_v45  ;;  %v8090_v51 = vadd.f32 %v8089_v0, %v8088_v57  ;;  %v8097_v12 = vadd.f32 %v8096_v25, %v8095_v56  ;;  %v7691_v29 = vpop.permute.xlu0 %7690  ;;  %v8102_v19 = vsel %vm204_vm1, %v7888_v46, 0.0  ;;  %v20186_v0 = vld [vmem:[#allocation35_spill] sm:$0xff] }
 0x88d   :  { %v8454_v47 = vsel %vm1889_vm3, %v8059_v37, %v8453_v55  ;;  %v8066_v5 = vadd.f32 %v8065_v7, %v8064_v59  ;;  %v8072_v3 = vrot.slane %v8071_v20, 1  ;;  %v7686_v8 = vpop.permute.xlu1 %7685  ;;  %v8079_v26 = vrot.slane %v8078_v44, 1 }
 0x88e   :  { %v8086_v34 = vrot.slane %v8085_v2, 1  ;;  %v8091_v48 = vrot.slane %v8090_v51, 2  ;;  %v8098_v16 = vrot.slane %v8097_v12, 2  ;;  %v8103_v58 = vrot.slane %v8102_v19, 4 }
 0x88f   :  { %v8455_v41 = vsel %vm1891_vm4, %v8066_v5, %v8454_v47  ;;  %v8073_v23 = vadd.f32 %v8072_v3, %v8071_v20  ;;  %v8450_v45 = vsel %vm1895_vm6, %v17366_v13, %v17364_v15  ;;  %v17405_v21 = vadd.f32 %v8079_v26, %v8078_v44  ;;  %v20187_v15 = vld [vmem:[#allocation34_spill] sm:$0xff] }
 0x890   :  { %v17407_v53 = vadd.f32 %v8086_v34, %v8085_v2  ;;  %v8092_v59 = vadd.f32 %v8091_v48, %v8090_v51  ;;  %v8099_v57 = vadd.f32 %v8098_v16, %v8097_v12  ;;  %v7701_v56 = vpop.permute.xlu0 %7700  ;;  %v8104_v60 = vadd.f32 %v8103_v58, %v8102_v19  ;;  %v20188_v34 = vld [vmem:[#allocation4_spill] sm:$0xff]  ;;  %v20189_v2 = vld [vmem:[#allocation37_spill] sm:$0xff] }
 0x891   :  { %v17410_v55 = vsel %vm1893_vm5, %v8073_v23, %v8455_v41  ;;  %v8451_v42 = vsel %vm1897_vm7, %v17372_v22, %v8450_v45  ;;  %v7889_v25 = vmul.f32 %v7676_v24, %v20186_v0  ;;  %v7696_v37 = vpop.permute.xlu1 %7695  ;;  %v7890_v13 = vmul.f32 %v7681_v28, %v20187_v15  ;;  %v20190_v58 = vld [vmem:[#allocation36_spill] sm:$0xff] }
 0x892   :  { %v8093_v7 = vrot.slane %v8092_v59, 1  ;;  %v8100_v20 = vrot.slane %v8099_v57, 1  ;;  %v8452_v26 = vsel %vm1899_vm8, %v17376_v31, %v8451_v42  ;;  %v8105_v48 = vrot.slane %v8104_v60, 2 }
 0x893   :  { %v17419_v46 = vadd.f32 %v8452_v26, %v20188_v34  ;;  %v8109_v44 = vsel %vm204_vm1, %v7889_v25, 0.0  ;;  %v7891_v51 = vmul.f32 %v7686_v8, %v20189_v2  ;;  %v8116_v47 = vsel %vm204_vm1, %v7890_v13, 0.0  ;;  %v20191_v8 = vld [vmem:[#allocation39_spill] sm:$0xff] }
 0x894   :  { %v17423_v12 = vadd.f32 %v8093_v7, %v8092_v59  ;;  %v8101_v22 = vadd.f32 %v8100_v20, %v8099_v57  ;;  %v8110_v24 = vrot.slane %v8109_v44, 4  ;;  %v7711_v5 = vpop.permute.xlu0 %7710  ;;  %v8106_v3 = vadd.f32 %v8105_v48, %v8104_v60  ;;  %v20192_v7 = vld [vmem:[#allocation38_spill] sm:$0xff] }
 0x895   :  { %v8512_v31 = vmul.f32 %v17419_v46, %v17419_v46  ;;  %v8117_v28 = vrot.slane %v8116_v47, 4  ;;  %v8123_v19 = vsel %vm204_vm1, %v7891_v51, 0.0  ;;  %v7706_v16 = vpop.permute.xlu1 %7705  ;;  %v7892_v45 = vmul.f32 %v7691_v29, %v20190_v58 }
 0x896   :  { %v8111_v41 = vadd.f32 %v8110_v24, %v8109_v44  ;;  %v8124_v23 = vrot.slane %v8123_v19, 4  ;;  %v7893_v59 = vmul.f32 %v7696_v37, %v20191_v8  ;;  %v8107_v42 = vrot.slane %v8106_v3, 1 }
 0x897   :  { %v8522_v57 = vsel %vm91_vm0, %v8512_v31, 0.0  ;;  %v8118_v25 = vadd.f32 %v8117_v28, %v8116_v47  ;;  %v7894_v20 = vmul.f32 %v7701_v56, %v20192_v7  ;;  %v8130_v13 = vsel %vm204_vm1, %v7892_v45, 0.0  ;;  %v20193_v47 = vld [vmem:[#allocation41_spill] sm:$0xff] }
 0x898   :  { %8523 = vadd.xlane.f32.xlu0 %v8522_v57  ;;  %v8112_v60 = vrot.slane %v8111_v41, 2  ;;  %v8125_v26 = vadd.f32 %v8124_v23, %v8123_v19  ;;  %v8137_v48 = vsel %vm204_vm1, %v7893_v59, 0.0  ;;  %v7721_v51 = vpop.permute.xlu0 %7720  ;;  %v8108_v44 = vadd.f32 %v8107_v42, %v8106_v3 }
 0x899   :  { %v8119_v24 = vrot.slane %v8118_v25, 2  ;;  %v8131_v34 = vrot.slane %v8130_v13, 4  ;;  %v8138_v29 = vrot.slane %v8137_v48, 4  ;;  %v7716_v36 = vpop.permute.xlu1 %7715  ;;  %v8144_v31 = vsel %vm204_vm1, %v7894_v20, 0.0 }
 0x89a   :  { %v8113_v37 = vadd.f32 %v8112_v60, %v8111_v41  ;;  %v8126_v8 = vrot.slane %v8125_v26, 2  ;;  %v7895_v28 = vmul.f32 %v7706_v16, %v20193_v47  ;;  %v8460_v56 = vsel %vm1887_vm2, %v8108_v44, %v8101_v22  ;;  %v20194_v16 = vld [vmem:[#allocation40_spill] sm:$0xff] }
 0x89b   :  { %v8120_v57 = vadd.f32 %v8119_v24, %v8118_v25  ;;  %v8132_v19 = vadd.f32 %v8131_v34, %v8130_v13  ;;  %v8139_v23 = vadd.f32 %v8138_v29, %v8137_v48  ;;  %v8145_v59 = vrot.slane %v8144_v31, 4 }
 0x89c   :  { %v8114_v45 = vrot.slane %v8113_v37, 1  ;;  %v8127_v7 = vadd.f32 %v8126_v8, %v8125_v26  ;;  %v8151_v3 = vsel %vm204_vm1, %v7895_v28, 0.0  ;;  %v7731_v42 = vpop.permute.xlu0 %7730  ;;  %v7896_v15 = vmul.f32 %v7711_v5, %v20194_v16 }
 0x89d   :  { %v8121_v6 = vrot.slane %v8120_v57, 1  ;;  %v8133_v33 = vrot.slane %v8132_v19, 2  ;;  %v8140_v4 = vrot.slane %v8139_v23, 2  ;;  %v8152_v41 = vrot.slane %v8151_v3, 4  ;;  %v7726_v60 = vpop.permute.xlu1 %7725 }
 0x89e   :  { %v8115_v58 = vadd.f32 %v8114_v45, %v8113_v37  ;;  %v8128_v20 = vrot.slane %v8127_v7, 1  ;;  %v8146_v2 = vadd.f32 %v8145_v59, %v8144_v31  ;;  %v8158_v44 = vsel %vm204_vm1, %v7896_v15, 0.0 }
 0x89f   :  { %v8122_v22 = vadd.f32 %v8121_v6, %v8120_v57  ;;  %v8134_v25 = vadd.f32 %v8133_v33, %v8132_v19  ;;  %v8141_v34 = vadd.f32 %v8140_v4, %v8139_v23  ;;  %v8153_v13 = vadd.f32 %v8152_v41, %v8151_v3  ;;  %v20195_v23 = vld [vmem:[#allocation44_spill] sm:$0xff]  ;;  %v20196_v41 = vld [vmem:[#allocation7_spill] sm:$0xff] }
 0x8a0   :  { %v8461_v8 = vsel %vm1889_vm3, %v8115_v58, %v8460_v56  ;;  %v8129_v26 = vadd.f32 %v8128_v20, %v8127_v7  ;;  %v8147_v48 = vrot.slane %v8146_v2, 2  ;;  %v7741_v24 = vpop.permute.xlu0 %7740  ;;  %v8159_v33 = vrot.slane %v8158_v44, 4 }
 0x8a1   :  { %v8462_v29 = vsel %vm1891_vm4, %v8122_v22, %v8461_v8  ;;  %v8135_v28 = vrot.slane %v8134_v25, 1  ;;  %v8142_v0 = vrot.slane %v8141_v34, 1  ;;  %v8154_v37 = vrot.slane %v8153_v13, 2  ;;  %v7736_v45 = vpop.permute.xlu1 %7735  ;;  %v20199_v8 = vld [vmem:[#allocation45_spill] sm:$0xff] }
 0x8a2   :  { %v17444_v31 = vsel %vm1893_vm5, %v8129_v26, %v8462_v29  ;;  %v8148_v6 = vadd.f32 %v8147_v48, %v8146_v2  ;;  %v8457_v4 = vsel %vm1895_vm6, %v17405_v21, %v17410_v55  ;;  %v8160_v57 = vadd.f32 %v8159_v33, %v8158_v44  ;;  %v20197_v21 = vld [vmem:[#allocation43_spill] sm:$0xff] }
 0x8a3   :  { %v17449_v5 = vadd.f32 %v8135_v28, %v8134_v25  ;;  %v17451_v58 = vadd.f32 %v8142_v0, %v8141_v34  ;;  %v8155_v15 = vadd.f32 %v8154_v37, %v8153_v13  ;;  %v8458_v7 = vsel %vm1897_vm7, %v17407_v53, %v8457_v4  ;;  %v20198_v0 = vld [vmem:[#allocation46_spill] sm:$0xff] }
 0x8a4   :  { %v8149_v56 = vrot.slane %v8148_v6, 1  ;;  %v8459_v19 = vsel %vm1899_vm8, %v17423_v12, %v8458_v7  ;;  %v7897_v2 = vmul.f32 %v7716_v36, %v20195_v23  ;;  %v7751_v59 = vpop.permute.xlu0 %7750  ;;  %v7898_v55 = vmul.f32 %v7721_v51, %v20197_v21 }
 0x8a5   :  { %v8156_v3 = vrot.slane %v8155_v15, 1  ;;  %v17459_v20 = vadd.f32 %v8459_v19, %v20196_v41  ;;  %v7899_v22 = vmul.f32 %v7726_v60, %v20198_v0  ;;  %v7746_v25 = vpop.permute.xlu1 %7745  ;;  %v8161_v53 = vrot.slane %v8160_v57, 2  ;;  %v20200_v19 = vld [vmem:[#allocation48_spill] sm:$0xff]  ;;  %v20202_v41 = vld [vmem:[#allocation51_spill] sm:$0xff] }
 0x8a6   :  { %v17463_v34 = vadd.f32 %v8149_v56, %v8148_v6  ;;  %v8165_v13 = vsel %vm204_vm1, %v7897_v2, 0.0  ;;  %v7900_v26 = vmul.f32 %v7731_v42, %v20199_v8  ;;  %v8172_v44 = vsel %vm204_vm1, %v7898_v55, 0.0 }
 0x8a7   :  { %v8157_v12 = vadd.f32 %v8156_v3, %v8155_v15  ;;  %v8513_v36 = vmul.f32 %v17459_v20, %v17459_v20  ;;  %v8166_v48 = vrot.slane %v8165_v13, 4  ;;  %v8162_v29 = vadd.f32 %v8161_v53, %v8160_v57  ;;  %v20201_v3 = vld [vmem:[#allocation47_spill] sm:$0xff] }
 0x8a8   :  { %v8173_v28 = vrot.slane %v8172_v44, 4  ;;  %v8179_v51 = vsel %vm204_vm1, %v7899_v22, 0.0  ;;  %v8186_v60 = vsel %vm204_vm1, %v7900_v26, 0.0  ;;  %v17472_v37 = vpop.permute.xlu0 %7760  ;;  %v7901_v2 = vmul.f32 %v7736_v45, %v20200_v19 }
 0x8a9   :  { %v8525_v6 = vsel %vm91_vm0, %v8513_v36, 0.0  ;;  %v8167_v33 = vadd.f32 %v8166_v48, %v8165_v13  ;;  %v8180_v4 = vrot.slane %v8179_v51, 4  ;;  %v8187_v42 = vrot.slane %v8186_v60, 4  ;;  %v7756_v15 = vpop.permute.xlu1 %7755 }
 0x8aa   :  { %v8163_v7 = vrot.slane %v8162_v29, 1  ;;  %8526 = vadd.xlane.f32.xlu0 %v8525_v6  ;;  %v8174_v56 = vadd.f32 %v8173_v28, %v8172_v44  ;;  %v7902_v57 = vmul.f32 %v7741_v24, %v20201_v3  ;;  %v7903_v26 = vmul.f32 %v7746_v25, %v20202_v41 }
 0x8ab   :  { %v8168_v55 = vrot.slane %v8167_v33, 2  ;;  %v8181_v53 = vadd.f32 %v8180_v4, %v8179_v51  ;;  %v8188_v22 = vadd.f32 %v8187_v42, %v8186_v60  ;;  %v8193_v36 = vsel %vm204_vm1, %v7901_v2, 0.0 }
 0x8ac   :  { %v8164_v8 = vadd.f32 %v8163_v7, %v8162_v29  ;;  %v8175_v0 = vrot.slane %v8174_v56, 2  ;;  %v8200_v13 = vsel %vm204_vm1, %v7902_v57, 0.0  ;;  %v7771_v48 = vpop.permute.xlu0 %7770  ;;  %v8194_v44 = vrot.slane %v8193_v36, 4  ;;  %v20203_v57 = vld [vmem:[#allocation50_spill] sm:$0xff] }
 0x8ad   :  { %v8169_v21 = vadd.f32 %v8168_v55, %v8167_v33  ;;  %v8182_v23 = vrot.slane %v8181_v53, 2  ;;  %v8189_v6 = vrot.slane %v8188_v22, 2  ;;  %v7766_v28 = vpop.permute.xlu1 %7765  ;;  %v8201_v3 = vrot.slane %v8200_v13, 4 }
 0x8ae   :  { %v8467_v45 = vsel %vm1887_vm2, %v8164_v8, %v8157_v12  ;;  %v8176_v24 = vadd.f32 %v8175_v0, %v8174_v56  ;;  %v8207_v51 = vsel %vm204_vm1, %v7903_v26, 0.0  ;;  %v8195_v4 = vadd.f32 %v8194_v44, %v8193_v36 }
 0x8af   :  { %v8170_v60 = vrot.slane %v8169_v21, 1  ;;  %v8183_v25 = vadd.f32 %v8182_v23, %v8181_v53  ;;  %v8190_v29 = vadd.f32 %v8189_v6, %v8188_v22  ;;  %v8202_v7 = vadd.f32 %v8201_v3, %v8200_v13 }
 0x8b0   :  { %v8177_v42 = vrot.slane %v8176_v24, 1  ;;  %v8208_v2 = vrot.slane %v8207_v51, 4  ;;  %v7904_v19 = vmul.f32 %v7751_v59, %v20203_v57  ;;  %v7781_v33 = vpop.permute.xlu0 %7780  ;;  %v8196_v11 = vrot.slane %v8195_v4, 2 }
 0x8b1   :  { %v8171_v55 = vadd.f32 %v8170_v60, %v8169_v21  ;;  %v8184_v1 = vrot.slane %v8183_v25, 1  ;;  %v8191_v39 = vrot.slane %v8190_v29, 1  ;;  %v7776_v49 = vpop.permute.xlu1 %7775  ;;  %v8203_v0 = vrot.slane %v8202_v7, 2 }
 0x8b2   :  { %v8178_v8 = vadd.f32 %v8177_v42, %v8176_v24  ;;  %v8209_v12 = vadd.f32 %v8208_v2, %v8207_v51  ;;  %v8214_v56 = vsel %vm204_vm1, %v7904_v19, 0.0  ;;  %v8197_v3 = vadd.f32 %v8196_v11, %v8195_v4  ;;  %v20204_v19 = vld [vmem:[#allocation53_spill] sm:$0xff]  ;;  %v20205_v42 = vld [vmem:[#allocation52_spill] sm:$0xff]  ;;  %v20206_v2 = vld [vmem:[#allocation22_spill] sm:$0xff] }
 0x8b3   :  { %v8468_v23 = vsel %vm1889_vm3, %v8171_v55, %v8467_v45  ;;  %v8185_v53 = vadd.f32 %v8184_v1, %v8183_v25  ;;  %v17485_v22 = vadd.f32 %v8191_v39, %v8190_v29  ;;  %v8204_v59 = vadd.f32 %v8203_v0, %v8202_v7  ;;  %v20207_v0 = vld [vmem:[#allocation55_spill] sm:$0xff] }
 0x8b4   :  { %v8469_v26 = vsel %vm1891_vm4, %v8178_v8, %v8468_v23  ;;  %v8210_v36 = vrot.slane %v8209_v12, 2  ;;  %v8215_v21 = vrot.slane %v8214_v56, 4  ;;  %v8198_v6 = vrot.slane %v8197_v3, 1  ;;  %v7791_v1 = vpop.permute.xlu0 %7790 }
 0x8b5   :  { %v17489_v13 = vsel %vm1893_vm5, %v8185_v53, %v8469_v26  ;;  %v8464_v44 = vsel %vm1895_vm6, %v17449_v5, %v17444_v31  ;;  %v7905_v24 = vmul.f32 %v7756_v15, %v20204_v19  ;;  %v7786_v45 = vpop.permute.xlu1 %7785  ;;  %v8205_v39 = vrot.slane %v8204_v59, 1 }
 0x8b6   :  { %v8211_v51 = vadd.f32 %v8210_v36, %v8209_v12  ;;  %v8216_v11 = vadd.f32 %v8215_v21, %v8214_v56  ;;  %v8465_v60 = vsel %vm1897_vm7, %v17451_v58, %v8464_v44  ;;  %v17497_v25 = vadd.f32 %v8198_v6, %v8197_v3  ;;  %v20208_v56 = vld [vmem:[#allocation54_spill] sm:$0xff]  ;;  %v20209_v6 = vld [vmem:[#allocation57_spill] sm:$0xff] }
 0x8b7   :  { %v8466_v29 = vsel %vm1899_vm8, %v17463_v34, %v8465_v60  ;;  %v8221_v4 = vsel %vm204_vm1, %v7905_v24, 0.0  ;;  %v7906_v31 = vmul.f32 %v17472_v37, %v20205_v42  ;;  %v17504_v5 = vadd.f32 %v8205_v39, %v8204_v59 }
 0x8b8   :  { %v8212_v15 = vrot.slane %v8211_v51, 1  ;;  %v8217_v7 = vrot.slane %v8216_v11, 2  ;;  %v17507_v55 = vadd.f32 %v8466_v29, %v20206_v2  ;;  %v8222_v8 = vrot.slane %v8221_v4, 4  ;;  %v17519_v24 = vpop.permute.xlu0 %7800 }
 0x8b9   :  { %v8228_v58 = vsel %vm204_vm1, %v7906_v31, 0.0  ;;  %v7907_v12 = vmul.f32 %v7766_v28, %v20207_v0  ;;  %v7908_v23 = vmul.f32 %v7771_v48, %v20208_v56  ;;  %v17512_v34 = vpop.permute.xlu1 %7795  ;;  %v7909_v44 = vmul.f32 %v7776_v49, %v20209_v6  ;;  %v20210_v31 = vld [vmem:[#allocation56_spill] sm:$0xff] }
 0x8ba   :  { %v8213_v53 = vadd.f32 %v8212_v15, %v8211_v51  ;;  %v8218_v3 = vadd.f32 %v8217_v7, %v8216_v11  ;;  %v8514_v37 = vmul.f32 %v17507_v55, %v17507_v55  ;;  %v8229_v26 = vrot.slane %v8228_v58, 4  ;;  %v20211_v6 = vld [vmem:[#allocation60_spill] sm:$0xff] }
 0x8bb   :  { %v8223_v59 = vadd.f32 %v8222_v8, %v8221_v4  ;;  %v8235_v36 = vsel %vm204_vm1, %v7907_v12, 0.0  ;;  %v8242_v21 = vsel %vm204_vm1, %v7908_v23, 0.0  ;;  %v8249_v29 = vsel %vm204_vm1, %v7909_v44, 0.0 }
 0x8bc   :  { %v8219_v28 = vrot.slane %v8218_v3, 1  ;;  %v8528_v48 = vsel %vm91_vm0, %v8514_v37, 0.0  ;;  %v8230_v39 = vadd.f32 %v8229_v26, %v8228_v58  ;;  %v8236_v60 = vrot.slane %v8235_v36, 4 }
 0x8bd   :  { %8529 = vadd.xlane.f32.xlu1 %v8528_v48  ;;  %v8224_v51 = vrot.slane %v8223_v59, 2  ;;  %v8243_v11 = vrot.slane %v8242_v21, 4  ;;  %v7910_v4 = vmul.f32 %v7781_v33, %v20210_v31  ;;  %v8250_v12 = vrot.slane %v8249_v29, 4  ;;  %v7806_v37 = vpop.permute.xlu1 %7805 }
 0x8be   :  { %v8220_v15 = vadd.f32 %v8219_v28, %v8218_v3  ;;  %v8231_v7 = vrot.slane %v8230_v39, 2  ;;  %v8237_v8 = vadd.f32 %v8236_v60, %v8235_v36  ;;  %v7911_v56 = vmul.f32 %v7786_v45, %v20211_v6  ;;  %v7811_v3 = vpop.permute.xlu0 %7810  ;;  %v20212_v45 = vld [vmem:[#allocation58_spill] sm:$0xff] }
 0x8bf   :  { %v8225_v23 = vadd.f32 %v8224_v51, %v8223_v59  ;;  %v8244_v49 = vadd.f32 %v8243_v11, %v8242_v21  ;;  %v8256_v2 = vsel %vm204_vm1, %v7910_v4, 0.0  ;;  %v8251_v0 = vadd.f32 %v8250_v12, %v8249_v29 }
 0x8c0   :  { %v8474_v58 = vsel %vm1887_vm2, %v8220_v15, %v8213_v53  ;;  %v8232_v26 = vadd.f32 %v8231_v7, %v8230_v39  ;;  %v8238_v48 = vrot.slane %v8237_v8, 2  ;;  %v8257_v19 = vrot.slane %v8256_v2, 4 }
 0x8c1   :  { %v8226_v42 = vrot.slane %v8225_v23, 1  ;;  %v8245_v44 = vrot.slane %v8244_v49, 2  ;;  %v8263_v33 = vsel %vm204_vm1, %v7911_v56, 0.0  ;;  %v8252_v59 = vrot.slane %v8251_v0, 2  ;;  %v7816_v10 = vpop.permute.xlu1 %7815 }
 0x8c2   :  { %v8233_v36 = vrot.slane %v8232_v26, 1  ;;  %v8239_v28 = vadd.f32 %v8238_v48, %v8237_v8  ;;  %v8264_v21 = vrot.slane %v8263_v33, 4  ;;  %v8258_v11 = vadd.f32 %v8257_v19, %v8256_v2  ;;  %v7821_v2 = vpop.permute.xlu0 %7820 }
 0x8c3   :  { %v8227_v60 = vadd.f32 %v8226_v42, %v8225_v23  ;;  %v8246_v51 = vadd.f32 %v8245_v44, %v8244_v49  ;;  %v7912_v4 = vmul.f32 %v7791_v1, %v20212_v45  ;;  %v8253_v39 = vadd.f32 %v8252_v59, %v8251_v0 }
 0x8c4   :  { %v8234_v31 = vadd.f32 %v8233_v36, %v8232_v26  ;;  %v8240_v53 = vrot.slane %v8239_v28, 1  ;;  %v8265_v15 = vadd.f32 %v8264_v21, %v8263_v33  ;;  %v8259_v12 = vrot.slane %v8258_v11, 2  ;;  %v20213_v36 = vld [vmem:[#allocation62_spill] sm:$0xff] }
 0x8c5   :  { %v8475_v29 = vsel %vm1889_vm3, %v8227_v60, %v8474_v58  ;;  %v8247_v7 = vrot.slane %v8246_v51, 1  ;;  %v8270_v56 = vsel %vm204_vm1, %v7912_v4, 0.0  ;;  %v8254_v8 = vrot.slane %v8253_v39, 1  ;;  %v20216_v60 = vld [vmem:[#allocation64_spill] sm:$0xff] }
 0x8c6   :  { %v8241_v50 = vadd.f32 %v8240_v53, %v8239_v28  ;;  %v8266_v48 = vrot.slane %v8265_v15, 2  ;;  %v8476_v42 = vsel %vm1891_vm4, %v8234_v31, %v8475_v29  ;;  %v17532_v23 = vadd.f32 %v8259_v12, %v8258_v11  ;;  %v20217_v53 = vld [vmem:[#allocation63_spill] sm:$0xff] }
 0x8c7   :  { %v8271_v19 = vrot.slane %v8270_v56, 4  ;;  %v8471_v1 = vsel %vm1895_vm6, %v17485_v22, %v17489_v13  ;;  %v17540_v49 = vadd.f32 %v8247_v7, %v8246_v51  ;;  %v17544_v44 = vadd.f32 %v8254_v8, %v8253_v39  ;;  %v20214_v13 = vld [vmem:[#allocation32_spill] sm:$0xff]  ;;  %v7831_v8 = vpop.permute.xlu0 %7830 }
 0x8c8   :  { %v17538_v0 = vsel %vm1893_vm5, %v8241_v50, %v8476_v42  ;;  %v8267_v58 = vadd.f32 %v8266_v48, %v8265_v15  ;;  %v8472_v26 = vsel %vm1897_vm7, %v17497_v25, %v8471_v1  ;;  %v7913_v28 = vmul.f32 %v17512_v34, %v20213_v36  ;;  %v20215_v50 = vld [vmem:[#allocation61_spill] sm:$0xff] }
 0x8c9   :  { %v8272_v31 = vadd.f32 %v8271_v19, %v8270_v56  ;;  %v8473_v33 = vsel %vm1899_vm8, %v17504_v5, %v8472_v26  ;;  %v7914_v21 = vmul.f32 %v17519_v24, %v20215_v50  ;;  %v7915_v51 = vmul.f32 %v7806_v37, %v20216_v60  ;;  %v7826_v5 = vpop.permute.xlu1 %7825  ;;  %v20218_v26 = vld [vmem:[#allocation66_spill] sm:$0xff] }
 0x8ca   :  { %v8268_v22 = vrot.slane %v8267_v58, 1  ;;  %v17551_v59 = vadd.f32 %v8473_v33, %v20214_v13  ;;  %v8261_v25 = vrot.slane %v17532_v23, 1  ;;  %v8277_v4 = vsel %vm204_vm1, %v7913_v28, 0.0  ;;  %v20219_v28 = vld [vmem:[#allocation65_spill] sm:$0xff]  ;;  %v20220_v13 = vld [vmem:[#allocation68_spill] sm:$0xff] }
 0x8cb   :  { %v8273_v11 = vrot.slane %v8272_v31, 2  ;;  %v7916_v39 = vmul.f32 %v7811_v3, %v20217_v53  ;;  %v8278_v29 = vrot.slane %v8277_v4, 4  ;;  %v8284_v7 = vsel %vm204_vm1, %v7914_v21, 0.0 }
 0x8cc   :  { %v8269_v15 = vadd.f32 %v8268_v22, %v8267_v58  ;;  %v8515_v34 = vmul.f32 %v17551_v59, %v17551_v59  ;;  %v8285_v56 = vrot.slane %v8284_v7, 4  ;;  %v8291_v24 = vsel %vm204_vm1, %v7915_v51, 0.0 }
 0x8cd   :  { %v8274_v12 = vadd.f32 %v8273_v11, %v8272_v31  ;;  %v8298_v37 = vsel %vm204_vm1, %v7916_v39, 0.0  ;;  %v8279_v42 = vadd.f32 %v8278_v29, %v8277_v4  ;;  %v8292_v19 = vrot.slane %v8291_v24, 4 }
 0x8ce   :  { %v8531_v48 = vsel %vm91_vm0, %v8515_v34, 0.0  ;;  %v8299_v3 = vrot.slane %v8298_v37, 4  ;;  %v8286_v58 = vadd.f32 %v8285_v56, %v8284_v7  ;;  %v7917_v33 = vmul.f32 %v7816_v10, %v20218_v26  ;;  %v7836_v34 = vpop.permute.xlu1 %7835 }
 0x8cf   :  { %v8275_v1 = vrot.slane %v8274_v12, 1  ;;  %8532 = vadd.xlane.f32.xlu0 %v8531_v48  ;;  %v7918_v22 = vmul.f32 %v7821_v2, %v20219_v28  ;;  %v8280_v21 = vrot.slane %v8279_v42, 2  ;;  %v8293_v31 = vadd.f32 %v8292_v19, %v8291_v24 }
 0x8d0   :  { %v8300_v11 = vadd.f32 %v8299_v3, %v8298_v37  ;;  %v7919_v51 = vmul.f32 %v7826_v5, %v20220_v13  ;;  %v8287_v39 = vrot.slane %v8286_v58, 2  ;;  %v8305_v60 = vsel %vm204_vm1, %v7917_v33, 0.0  ;;  %v7841_v37 = vpop.permute.xlu0 %7840 }
 0x8d1   :  { %v8276_v53 = vadd.f32 %v8275_v1, %v8274_v12  ;;  %v8312_v4 = vsel %vm204_vm1, %v7918_v22, 0.0  ;;  %v8281_v29 = vadd.f32 %v8280_v21, %v8279_v42  ;;  %v8294_v50 = vrot.slane %v8293_v31, 2  ;;  %v20221_v22 = vld [vmem:[#allocation67_spill] sm:$0xff] }
 0x8d2   :  { %v8301_v48 = vrot.slane %v8300_v11, 2  ;;  %v8306_v7 = vrot.slane %v8305_v60, 4  ;;  %v8288_v56 = vadd.f32 %v8287_v39, %v8286_v58  ;;  %v8313_v2 = vrot.slane %v8312_v4, 4 }
 0x8d3   :  { %v8481_v10 = vsel %vm1887_vm2, %v8276_v53, %v8269_v15  ;;  %v8319_v24 = vsel %vm204_vm1, %v7919_v51, 0.0  ;;  %v8282_v19 = vrot.slane %v8281_v29, 1  ;;  %v8295_v5 = vadd.f32 %v8294_v50, %v8293_v31  ;;  %v7846_v51 = vpop.permute.xlu1 %7845 }
 0x8d4   :  { %v8302_v12 = vadd.f32 %v8301_v48, %v8300_v11  ;;  %v8307_v3 = vadd.f32 %v8306_v7, %v8305_v60  ;;  %v8289_v1 = vrot.slane %v8288_v56, 1  ;;  %v8314_v33 = vadd.f32 %v8313_v2, %v8312_v4 }
 0x8d5   :  { %v8320_v28 = vrot.slane %v8319_v24, 4  ;;  %v7920_v26 = vmul.f32 %v7831_v8, %v20221_v22  ;;  %v8283_v42 = vadd.f32 %v8282_v19, %v8281_v29  ;;  %v8296_v21 = vrot.slane %v8295_v5, 1  ;;  %v7851_v29 = vpop.permute.xlu0 %7850 }
 0x8d6   :  { %v8303_v36 = vrot.slane %v8302_v12, 1  ;;  %v8308_v40 = vrot.slane %v8307_v3, 2  ;;  %v8290_v27 = vadd.f32 %v8289_v1, %v8288_v56  ;;  %v8315_v53 = vrot.slane %v8314_v33, 2 }
 0x8d7   :  { %v8321_v15 = vadd.f32 %v8320_v28, %v8319_v24  ;;  %v8326_v58 = vsel %vm204_vm1, %v7920_v26, 0.0  ;;  %v8262_v39 = vadd.f32 %v8261_v25, %v17532_v23  ;;  %v8482_v50 = vsel %vm1889_vm3, %v8283_v42, %v8481_v10  ;;  %v20222_v26 = vld [vmem:[#allocation70_spill] sm:$0xff] }
 0x8d8   :  { %v8297_v60 = vadd.f32 %v8296_v21, %v8295_v5  ;;  %v8309_v31 = vadd.f32 %v8308_v40, %v8307_v3  ;;  %v8304_v11 = vadd.f32 %v8303_v36, %v8302_v12  ;;  %v8316_v4 = vadd.f32 %v8315_v53, %v8314_v33  ;;  %v20225_v21 = vld [vmem:[#allocation72_spill] sm:$0xff]  ;;  %v20226_v53 = vld [vmem:[#allocation71_spill] sm:$0xff] }
 0x8d9   :  { %v8322_v48 = vrot.slane %v8321_v15, 2  ;;  %v8327_v8 = vrot.slane %v8326_v58, 4  ;;  %v8483_v7 = vsel %vm1891_vm4, %v8290_v27, %v8482_v50  ;;  %v8478_v28 = vsel %vm1895_vm6, %v17540_v49, %v17538_v0  ;;  %v20223_v27 = vld [vmem:[#allocation69_spill] sm:$0xff]  ;;  %v20224_v0 = vld [vmem:[#allocation42_spill] sm:$0xff] }
 0x8da   :  { %v8310_v2 = vrot.slane %v8309_v31, 1  ;;  %v7921_v56 = vmul.f32 %v7836_v34, %v20222_v26  ;;  %v8317_v24 = vrot.slane %v8316_v4, 1  ;;  %v8479_v40 = vsel %vm1897_vm7, %v17544_v44, %v8478_v28  ;;  %v7856_v34 = vpop.permute.xlu1 %7855 }
 0x8db   :  { %v8323_v23 = vadd.f32 %v8322_v48, %v8321_v15  ;;  %v8328_v25 = vadd.f32 %v8327_v8, %v8326_v58  ;;  %v8484_v36 = vsel %vm1893_vm5, %v8297_v60, %v8483_v7  ;;  %v8480_v10 = vsel %vm1899_vm8, %v8262_v39, %v8479_v40  ;;  %v7861_v60 = vpop.permute.xlu0 %7860  ;;  %v20227_v8 = vld [vmem:[#allocation74_spill] sm:$0xff]  ;;  %v20228_v40 = vld [vmem:[#allocation73_spill] sm:$0xff] }
 0x8dc   :  { %v8333_v19 = vsel %vm204_vm1, %v7921_v56, 0.0  ;;  %v7922_v5 = vmul.f32 %v7841_v37, %v20223_v27  ;;  %v8311_v12 = vadd.f32 %v8310_v2, %v8309_v31  ;;  %v8318_v3 = vadd.f32 %v8317_v24, %v8316_v4 }
 0x8dd   :  { %v8329_v1 = vrot.slane %v8328_v25, 2  ;;  %v17588_v49 = vadd.f32 %v8480_v10, %v20224_v0  ;;  %v8334_v33 = vrot.slane %v8333_v19, 4  ;;  %v7923_v44 = vmul.f32 %v7846_v51, %v20225_v21 }
 0x8de   :  { %v8340_v42 = vsel %vm204_vm1, %v7922_v5, 0.0  ;;  %v7924_v15 = vmul.f32 %v7851_v29, %v20226_v53  ;;  %v8324_v58 = vrot.slane %v8323_v23, 1  ;;  %v7925_v7 = vmul.f32 %v7856_v34, %v20227_v8 }
 0x8df   :  { %v8330_v39 = vadd.f32 %v8329_v1, %v8328_v25  ;;  %v8516_v50 = vmul.f32 %v17588_v49, %v17588_v49  ;;  %v8341_v37 = vrot.slane %v8340_v42, 4  ;;  %v8335_v31 = vadd.f32 %v8334_v33, %v8333_v19 }
 0x8e0   :  { %v8347_v4 = vsel %vm204_vm1, %v7923_v44, 0.0  ;;  %v8354_v48 = vsel %vm204_vm1, %v7924_v15, 0.0  ;;  %v8361_v25 = vsel %vm204_vm1, %v7925_v7, 0.0  ;;  %v7926_v10 = vmul.f32 %v7861_v60, %v20228_v40 }
 0x8e1   :  { %v8331_v2 = vrot.slane %v8330_v39, 1  ;;  %v8534_v28 = vsel %vm91_vm0, %v8516_v50, 0.0  ;;  %v8342_v51 = vadd.f32 %v8341_v37, %v8340_v42  ;;  %v8348_v56 = vrot.slane %v8347_v4, 4 }
 0x8e2   :  { %8535 = vadd.xlane.f32.xlu1 %v8534_v28  ;;  %v8336_v29 = vrot.slane %v8335_v31, 2  ;;  %v8355_v24 = vrot.slane %v8354_v48, 4  ;;  %v8325_v5 = vadd.f32 %v8324_v58, %v8323_v23  ;;  %v8362_v33 = vrot.slane %v8361_v25, 4 }
 0x8e3   :  { %v8343_v19 = vrot.slane %v8342_v51, 2  ;;  %v8349_v1 = vadd.f32 %v8348_v56, %v8347_v4  ;;  %v8332_v44 = vadd.f32 %v8331_v2, %v8330_v39  ;;  %v8368_v34 = vsel %vm204_vm1, %v7926_v10, 0.0  ;;  %v20229_v2 = vld [vmem:[#allocation49_spill] sm:$0xff] }
 0x8e4   :  { %v8337_v15 = vadd.f32 %v8336_v29, %v8335_v31  ;;  %v8356_v0 = vadd.f32 %v8355_v24, %v8354_v48  ;;  %v8363_v42 = vadd.f32 %v8362_v33, %v8361_v25  ;;  %v8485_v37 = vsel %vm1895_vm6, %v8304_v11, %v8484_v36 }
 0x8e5   :  { %v8344_v8 = vadd.f32 %v8343_v19, %v8342_v51  ;;  %v8350_v50 = vrot.slane %v8349_v1, 2  ;;  %v8369_v21 = vrot.slane %v8368_v34, 4  ;;  %v8486_v7 = vsel %vm1897_vm7, %v8311_v12, %v8485_v37 }
 0x8e6   :  { %v8338_v28 = vrot.slane %v8337_v15, 1  ;;  %v8357_v53 = vrot.slane %v8356_v0, 2  ;;  %v8364_v58 = vrot.slane %v8363_v42, 2  ;;  %v8487_v4 = vsel %vm1899_vm8, %v8318_v3, %v8486_v7 }
 0x8e7   :  { %v8345_v60 = vrot.slane %v8344_v8, 1  ;;  %v8351_v23 = vadd.f32 %v8350_v50, %v8349_v1  ;;  %v8370_v48 = vadd.f32 %v8369_v21, %v8368_v34  ;;  %v17606_v56 = vadd.f32 %v8487_v4, %v20229_v2  ;;  %v20235_v2 = vld [vmem:[#allocation16_spill] sm:$0xff] }
 0x8e8   :  { %v8339_v39 = vadd.f32 %v8338_v28, %v8337_v15  ;;  %v8358_v31 = vadd.f32 %v8357_v53, %v8356_v0  ;;  %v8488_v51 = vsel %vm1887_vm2, %v8332_v44, %v8325_v5  ;;  %v8365_v36 = vadd.f32 %v8364_v58, %v8363_v42  ;;  %v20230_v42 = vld [vmem:[#allocation59_spill] sm:$0xff] }
 0x8e9   :  { %v8346_v29 = vadd.f32 %v8345_v60, %v8344_v8  ;;  %v8352_v11 = vrot.slane %v8351_v23, 1  ;;  %v8371_v12 = vrot.slane %v8370_v48, 2  ;;  %v8517_v10 = vmul.f32 %v17606_v56, %v17606_v56 }
 0x8ea   :  { %v8489_v24 = vsel %vm1889_vm3, %v8339_v39, %v8488_v51  ;;  %v8359_v25 = vrot.slane %v8358_v31, 1  ;;  %v8366_v3 = vrot.slane %v8365_v36, 1  ;;  %v20231_v39 = vld [vmem:[#allocation3_spill] sm:$0xff] }
 0x8eb   :  { %v8353_v19 = vadd.f32 %v8352_v11, %v8351_v23  ;;  %v8490_v0 = vsel %vm1891_vm4, %v8346_v29, %v8489_v24  ;;  %v8372_v53 = vadd.f32 %v8371_v12, %v8370_v48  ;;  %v8537_v1 = vsel %vm91_vm0, %v8517_v10, 0.0 }
 0x8ec   :  { %v8360_v21 = vadd.f32 %v8359_v25, %v8358_v31  ;;  %v8367_v8 = vadd.f32 %v8366_v3, %v8365_v36  ;;  %8538 = vadd.xlane.f32.xlu0 %v8537_v1 }
 0x8ed   :  { %v8491_v5 = vsel %vm1893_vm5, %v8353_v19, %v8490_v0  ;;  %v8373_v33 = vrot.slane %v8372_v53, 1 }
 0x8ee   :  { %v8492_v44 = vsel %vm1895_vm6, %v8360_v21, %v8491_v5 }
 0x8ef   :  { %v8493_v15 = vsel %vm1897_vm7, %v8367_v8, %v8492_v44  ;;  %v8374_v34 = vadd.f32 %v8373_v33, %v8372_v53 }
 0x8f1   :  { %v8494_v50 = vsel %vm1899_vm8, %v8374_v34, %v8493_v15 }
 0x8f2   :  { %v17619_v37 = vadd.f32 %v8494_v50, %v20230_v42  ;;  %v20234_v42 = vld [vmem:[#allocation17_spill] sm:$0xff] }
 0x8f4   :  { %v8518_v28 = vmul.f32 %v17619_v37, %v17619_v37 }
 0x8f6   :  { %v8540_v7 = vsel %vm91_vm0, %v8518_v28, 0.0 }
 0x8f7   :  { %8541 = vadd.xlane.f32.xlu1 %v8540_v7 }
 0x912   :  { %v8521_v60 = vpop.xlane.xlu1 %8520 }
 0x913   :  { %v8543_v23 = vmax.f32 %v8521_v60, 1e-24 }
 0x915   :  { %13239 = vrsqrt.f32 %v8543_v23 }
 0x91f   :  { %v13240_v58 = vpop.eup %13239 }
 0x920   :  { %v17625_v4 = vmul.f32 %v13240_v58, %v17379_v52 }
 0x922   :  { %v8582_v31 = vrot.slane %v17625_v4, %v20231_v39 }
 0x924   :  { %v17630_v48 = vrot.slane %v8582_v31, %v20231_v39  ;;  %v8590_v51 = vcombine.high %v8582_v31, %v8582_v31 }
 0x925   :  { %v8524_v29 = vpop.xlane.xlu0 %8523 }
 0x926   :  { %v8544_v11 = vmax.f32 %v8524_v29, 1e-24  ;;  %v8970_v36 = vrot.slane %v17630_v48, %v14032_v30  ;;  %v17635_v24 = vrot.slane %v8590_v51, %v20231_v39 }
 0x928   :  { %13241 = vrsqrt.f32 %v8544_v11  ;;  %v9287_v25 = vmul.f32 %v8970_v36, %v20159_v17  ;;  %v8974_v52 = vrot.slane %v17635_v24, %v14032_v30 }
 0x92a   :  { %v9351_v12 = vsel %vm204_vm1, %v9287_v25, 0.0  ;;  %v9288_v10 = vmul.f32 %v8974_v52, %v20160_v9 }
 0x92b   :  { %9352 = vadd.xlane.f32.xlu0 %v9351_v12 }
 0x92c   :  { %v9354_v19 = vsel %vm204_vm1, %v9288_v10, 0.0 }
 0x92d   :  { %9355 = vadd.xlane.f32.xlu1 %v9354_v19 }
 0x932   :  { %v13242_v3 = vpop.eup %13241 }
 0x933   :  { %v17644_v0 = vmul.f32 %v13242_v3, %v17419_v46 }
 0x935   :  { %v8631_v21 = vrot.slane %v17644_v0, %v20231_v39 }
 0x937   :  { %v8527_v53 = vpop.xlane.xlu0 %8526  ;;  %v17649_v1 = vrot.slane %v8631_v21, %v20231_v39  ;;  %v8639_v5 = vcombine.high %v8631_v21, %v8631_v21 }
 0x938   :  { %v8545_v8 = vmax.f32 %v8527_v53, 1e-24 }
 0x939   :  { %v9002_v33 = vrot.slane %v17649_v1, %v14032_v30  ;;  %v17654_v44 = vrot.slane %v8639_v5, %v20231_v39 }
 0x93a   :  { %13243 = vrsqrt.f32 %v8545_v8 }
 0x93b   :  { %v9295_v15 = vmul.f32 %v9002_v33, %v20167_v18  ;;  %v9006_v46 = vrot.slane %v17654_v44, %v14032_v30 }
 0x93d   :  { %v9375_v34 = vsel %vm204_vm1, %v9295_v15, 0.0  ;;  %v9296_v50 = vmul.f32 %v9006_v46, %v20168_v61 }
 0x93e   :  { %9376 = vadd.xlane.f32.xlu0 %v9375_v34 }
 0x93f   :  { %v9378_v28 = vsel %vm204_vm1, %v9296_v50, 0.0 }
 0x940   :  { %9379 = vadd.xlane.f32.xlu1 %v9378_v28 }
 0x944   :  { %v13244_v7 = vpop.eup %13243 }
 0x945   :  { %v17663_v60 = vmul.f32 %v13244_v7, %v17459_v20 }
 0x947   :  { %v8680_v23 = vrot.slane %v17663_v60, %v20231_v39 }
 0x949   :  { %v17668_v58 = vrot.slane %v8680_v23, %v20231_v39  ;;  %v8688_v31 = vcombine.high %v8680_v23, %v8680_v23 }
 0x94a   :  { %v8530_v51 = vpop.xlane.xlu1 %8529 }
 0x94b   :  { %v8546_v29 = vmax.f32 %v8530_v51, 1e-24  ;;  %v9034_v11 = vrot.slane %v17668_v58, %v14032_v30  ;;  %v17673_v36 = vrot.slane %v8688_v31, %v20231_v39 }
 0x94d   :  { %13245 = vrsqrt.f32 %v8546_v29  ;;  %v9303_v25 = vmul.f32 %v9034_v11, %v20175_v38  ;;  %v9038_v20 = vrot.slane %v17673_v36, %v14032_v30 }
 0x94f   :  { %v9399_v52 = vsel %vm204_vm1, %v9303_v25, 0.0  ;;  %v9304_v12 = vmul.f32 %v9038_v20, %v20176_v35 }
 0x950   :  { %9400 = vadd.xlane.f32.xlu0 %v9399_v52 }
 0x951   :  { %v9402_v10 = vsel %vm204_vm1, %v9304_v12, 0.0 }
 0x952   :  { %9403 = vadd.xlane.f32.xlu1 %v9402_v10 }
 0x957   :  { %v13246_v19 = vpop.eup %13245 }
 0x958   :  { %v17682_v3 = vmul.f32 %v13246_v19, %v17507_v55 }
 0x95a   :  { %v8729_v21 = vrot.slane %v17682_v3, %v20231_v39 }
 0x95c   :  { %v8533_v53 = vpop.xlane.xlu0 %8532  ;;  %v17687_v5 = vrot.slane %v8729_v21, %v20231_v39  ;;  %v8737_v8 = vcombine.high %v8729_v21, %v8729_v21 }
 0x95d   :  { %v8547_v33 = vmax.f32 %v8533_v53, 1e-24 }
 0x95e   :  { %v9066_v15 = vrot.slane %v17687_v5, %v14032_v30  ;;  %v17692_v46 = vrot.slane %v8737_v8, %v20231_v39 }
 0x95f   :  { %13247 = vrsqrt.f32 %v8547_v33 }
 0x960   :  { %v9311_v34 = vmul.f32 %v9066_v15, %v20184_v63  ;;  %v9070_v55 = vrot.slane %v17692_v46, %v14032_v30 }
 0x962   :  { %v9423_v50 = vsel %vm204_vm1, %v9311_v34, 0.0  ;;  %v9312_v28 = vmul.f32 %v9070_v55, %v20185_v43 }
 0x963   :  { %9424 = vadd.xlane.f32.xlu0 %v9423_v50 }
 0x964   :  { %v9426_v7 = vsel %vm204_vm1, %v9312_v28, 0.0 }
 0x965   :  { %9427 = vadd.xlane.f32.xlu1 %v9426_v7 }
 0x969   :  { %v13248_v23 = vpop.eup %13247 }
 0x96a   :  { %v17701_v31 = vmul.f32 %v13248_v23, %v17551_v59 }
 0x96c   :  { %v8778_v51 = vrot.slane %v17701_v31, %v20231_v39 }
 0x96e   :  { %v17706_v29 = vrot.slane %v8778_v51, %v20231_v39  ;;  %v8786_v11 = vcombine.high %v8778_v51, %v8778_v51 }
 0x96f   :  { %v8536_v25 = vpop.xlane.xlu1 %8535 }
 0x970   :  { %v8548_v20 = vmax.f32 %v8536_v25, 1e-24  ;;  %v9098_v52 = vrot.slane %v17706_v29, %v14032_v30  ;;  %v17711_v12 = vrot.slane %v8786_v11, %v20231_v39 }
 0x972   :  { %13249 = vrsqrt.f32 %v8548_v20  ;;  %v9319_v10 = vmul.f32 %v9098_v52, %v20193_v47  ;;  %v9102_v59 = vrot.slane %v17711_v12, %v14032_v30 }
 0x974   :  { %v9447_v19 = vsel %vm204_vm1, %v9319_v10, 0.0  ;;  %v9320_v21 = vmul.f32 %v9102_v59, %v20194_v16 }
 0x975   :  { %9448 = vadd.xlane.f32.xlu0 %v9447_v19 }
 0x976   :  { %v9450_v53 = vsel %vm204_vm1, %v9320_v21, 0.0 }
 0x977   :  { %9451 = vadd.xlane.f32.xlu1 %v9450_v53 }
 0x979   :  { %v8539_v8 = vpop.xlane.xlu0 %8538 }
 0x97a   :  { %v8549_v33 = vmax.f32 %v8539_v8, 1e-24 }
 0x97c   :  { %v13250_v15 = vpop.eup %13249  ;;  %13251 = vrsqrt.f32 %v8549_v33 }
 0x97d   :  { %v17720_v34 = vmul.f32 %v13250_v15, %v17588_v49 }
 0x97f   :  { %v8827_v55 = vrot.slane %v17720_v34, %v20231_v39 }
 0x981   :  { %v17725_v50 = vrot.slane %v8827_v55, %v20231_v39  ;;  %v8835_v28 = vcombine.high %v8827_v55, %v8827_v55 }
 0x983   :  { %v9130_v7 = vrot.slane %v17725_v50, %v14032_v30  ;;  %v17730_v23 = vrot.slane %v8835_v28, %v20231_v39 }
 0x984   :  { %v8542_v49 = vpop.xlane.xlu1 %8541 }
 0x985   :  { %v9327_v51 = vmul.f32 %v9130_v7, %v20202_v41  ;;  %v9134_v11 = vrot.slane %v17730_v23, %v14032_v30  ;;  %v8550_v25 = vmax.f32 %v8542_v49, 1e-24  ;;  %v20242_v41 = vld [vmem:[#allocation37_spill] sm:$0xff] }
 0x986   :  { %v13252_v20 = vpop.eup %13251 }
 0x987   :  { %v9471_v52 = vsel %vm204_vm1, %v9327_v51, 0.0  ;;  %v9328_v10 = vmul.f32 %v9134_v11, %v20203_v57  ;;  %13253 = vrsqrt.f32 %v8550_v25  ;;  %v17738_v59 = vmul.f32 %v13252_v20, %v17606_v56 }
 0x988   :  { %9472 = vadd.xlane.f32.xlu0 %v9471_v52  ;;  %v8575_v56 = vcombine.high %v17625_v4, %v17625_v4  ;;  %v8620_v52 = vcombine.high %v17630_v48, %v17630_v48 }
 0x989   :  { %v9474_v19 = vsel %vm204_vm1, %v9328_v10, 0.0  ;;  %v8876_v21 = vrot.slane %v17738_v59, %v20231_v39 }
 0x98a   :  { %9475 = vadd.xlane.f32.xlu1 %v9474_v19  ;;  %v8589_v49 = vrot.slane %v8575_v56, %v20231_v39  ;;  %v8624_v19 = vcombine.high %v17644_v0, %v17644_v0  ;;  %v8978_v48 = vrot.slane %v8620_v52, %v14032_v30  ;;  %v8669_v52 = vcombine.high %v17649_v1, %v17649_v1 }
 0x98b   :  { %v17744_v53 = vrot.slane %v8876_v21, %v20231_v39  ;;  %v8884_v8 = vcombine.high %v8876_v21, %v8876_v21 }
 0x98c   :  { %v8591_v10 = vcombine.high %v8589_v49, %v8589_v49 }
 0x98d   :  { %v9162_v33 = vrot.slane %v17744_v53, %v14032_v30  ;;  %v17749_v15 = vrot.slane %v8884_v8, %v20231_v39 }
 0x98e   :  { %v17784_v0 = vrot.slane %v8591_v10, %v20231_v39 }
 0x98f   :  { %v9335_v55 = vmul.f32 %v9162_v33, %v20211_v6  ;;  %v9166_v28 = vrot.slane %v17749_v15, %v14032_v30  ;;  %v17775_v33 = vrot.slane %v8589_v49, %v20231_v39  ;;  %v20239_v6 = vld [vmem:[#allocation27_spill] sm:$0xff] }
 0x990   :  { %v8990_v10 = vrot.slane %v17784_v0, %v14032_v30 }
 0x991   :  { %v13254_v7 = vpop.eup %13253  ;;  %v9495_v51 = vsel %vm204_vm1, %v9335_v55, 0.0  ;;  %v9336_v11 = vmul.f32 %v9166_v28, %v20212_v45  ;;  %v8638_v28 = vrot.slane %v8624_v19, %v20231_v39 }
 0x992   :  { %9496 = vadd.xlane.f32.xlu0 %v9495_v51  ;;  %v17760_v25 = vmul.f32 %v13254_v7, %v17619_v37  ;;  %v8622_v37 = vcombine.high %v17635_v24, %v17635_v24 }
 0x993   :  { %v9498_v20 = vsel %vm204_vm1, %v9336_v11, 0.0  ;;  %v8986_v11 = vrot.slane %v17775_v33, %v14032_v30  ;;  %v8640_v19 = vcombine.high %v8638_v28, %v8638_v28 }
 0x994   :  { %9499 = vadd.xlane.f32.xlu1 %v9498_v20  ;;  %v8925_v4 = vrot.slane %v17760_v25, %v20231_v39  ;;  %v8982_v51 = vrot.slane %v8622_v37, %v14032_v30 }
 0x995   :  { %v9291_v1 = vmul.f32 %v8986_v11, %v20164_v14 }
 0x996   :  { %v17770_v21 = vrot.slane %v8925_v4, %v20231_v39  ;;  %v8933_v8 = vcombine.high %v8925_v4, %v8925_v4  ;;  %v9289_v4 = vmul.f32 %v8978_v48, %v20162_v62  ;;  %v9290_v37 = vmul.f32 %v8982_v51, %v20161_v32 }
 0x997   :  { %v17814_v51 = vrot.slane %v8640_v19, %v20231_v39  ;;  %v9363_v11 = vsel %vm204_vm1, %v9291_v1, 0.0 }
 0x998   :  { %v9194_v56 = vrot.slane %v17770_v21, %v14032_v30  ;;  %v17780_v55 = vrot.slane %v8933_v8, %v20231_v39  ;;  %v9357_v48 = vsel %vm204_vm1, %v9289_v4, 0.0  ;;  %v20232_v4 = vld [vmem:[#allocation15_spill] sm:$0xff] }
 0x99a   :  { %v9343_v7 = vmul.f32 %v9194_v56, %v20220_v13  ;;  %v9198_v24 = vrot.slane %v17780_v55, %v14032_v30  ;;  %v8671_v56 = vcombine.high %v17654_v44, %v17654_v44  ;;  %v9360_v44 = vsel %vm204_vm1, %v9290_v37, 0.0 }
 0x99b   :  { %v9022_v37 = vrot.slane %v17814_v51, %v14032_v30 }
 0x99c   :  { %v9519_v49 = vsel %vm204_vm1, %v9343_v7, 0.0  ;;  %v9344_v20 = vmul.f32 %v9198_v24, %v20221_v22  ;;  %v8673_v7 = vcombine.high %v17663_v60, %v17663_v60  ;;  %v9010_v24 = vrot.slane %v8669_v52, %v14032_v30 }
 0x99d   :  { %9520 = vadd.xlane.f32.xlu0 %v9519_v49  ;;  %v17810_v49 = vrot.slane %v8638_v28, %v20231_v39  ;;  %v9014_v60 = vrot.slane %v8671_v56, %v14032_v30  ;;  %v20233_v56 = vld [vmem:[#allocation14_spill] sm:$0xff] }
 0x99e   :  { %v9522_v8 = vsel %vm204_vm1, %v9344_v20, 0.0  ;;  %v9292_v20 = vmul.f32 %v8990_v10, %v20163_v54  ;;  %v9297_v52 = vmul.f32 %v9010_v24, %v20232_v4  ;;  %v8718_v10 = vcombine.high %v17668_v58, %v17668_v58 }
 0x99f   :  { %9523 = vadd.xlane.f32.xlu1 %v9522_v8  ;;  %v8687_v8 = vrot.slane %v8673_v7, %v20231_v39  ;;  %v9018_v28 = vrot.slane %v17810_v49, %v14032_v30  ;;  %v8720_v7 = vcombine.high %v17673_v36, %v17673_v36  ;;  %v8722_v24 = vcombine.high %v17682_v3, %v17682_v3 }
 0x9a0   :  { %v9366_v19 = vsel %vm204_vm1, %v9292_v20, 0.0 }
 0x9a1   :  { %9358 = vadd.xlane.f32.xlu0 %v9357_v48  ;;  %v9298_v48 = vmul.f32 %v9014_v60, %v20233_v56  ;;  %v8689_v1 = vcombine.high %v8687_v8, %v8687_v8  ;;  %v9299_v58 = vmul.f32 %v9018_v28, %v20234_v42  ;;  %v17837_v20 = vrot.slane %v8687_v8, %v20231_v39  ;;  %v20236_v28 = vld [vmem:[#allocation26_spill] sm:$0xff] }
 0x9a2   :  { %v9300_v60 = vmul.f32 %v9022_v37, %v20235_v2  ;;  %v9046_v36 = vrot.slane %v8720_v7, %v14032_v30  ;;  %v8736_v3 = vrot.slane %v8722_v24, %v20231_v39  ;;  %v20237_v7 = vld [vmem:[#allocation25_spill] sm:$0xff]  ;;  %v8769_v24 = vcombine.high %v17692_v46, %v17692_v46 }
 0x9a3   :  { %9361 = vadd.xlane.f32.xlu1 %v9360_v44  ;;  %v9381_v44 = vsel %vm204_vm1, %v9297_v52, 0.0  ;;  %v9384_v13 = vsel %vm204_vm1, %v9298_v48, 0.0  ;;  %v17843_v22 = vrot.slane %v8689_v1, %v20231_v39  ;;  %v9387_v52 = vsel %vm204_vm1, %v9299_v58, 0.0 }
 0x9a4   :  { %v9050_v8 = vrot.slane %v17837_v20, %v14032_v30  ;;  %v9390_v37 = vsel %vm204_vm1, %v9300_v60, 0.0  ;;  %v8771_v48 = vcombine.high %v17701_v31, %v17701_v31  ;;  %v9306_v1 = vmul.f32 %v9046_v36, %v20237_v7 }
 0x9a5   :  { %9364 = vadd.xlane.f32.xlu0 %v9363_v11  ;;  %v9042_v11 = vrot.slane %v8718_v10, %v14032_v30  ;;  %v17864_v60 = vrot.slane %v8736_v3, %v20231_v39  ;;  %v9078_v46 = vrot.slane %v8769_v24, %v14032_v30 }
 0x9a6   :  { %v8785_v31 = vrot.slane %v8771_v48, %v20231_v39  ;;  %v9408_v36 = vsel %vm204_vm1, %v9306_v1, 0.0  ;;  %v8816_v48 = vcombine.high %v17706_v29, %v17706_v29 }
 0x9a7   :  { %9367 = vadd.xlane.f32.xlu1 %v9366_v19  ;;  %v9305_v10 = vmul.f32 %v9042_v11, %v20236_v28  ;;  %v8767_v19 = vcombine.high %v17687_v5, %v17687_v5  ;;  %v20238_v11 = vld [vmem:[#allocation28_spill] sm:$0xff] }
 0x9a8   :  { %v9307_v5 = vmul.f32 %v9050_v8, %v20238_v11  ;;  %v20240_v8 = vld [vmem:[#allocation35_spill] sm:$0xff]  ;;  %v8787_v1 = vcombine.high %v8785_v31, %v8785_v31  ;;  %v17891_v57 = vrot.slane %v8785_v31, %v20231_v39 }
 0x9a9   :  { %9382 = vadd.xlane.f32.xlu0 %v9381_v44  ;;  %v8738_v44 = vcombine.high %v8736_v3, %v8736_v3  ;;  %v9405_v58 = vsel %vm204_vm1, %v9305_v10, 0.0  ;;  %v9082_v3 = vrot.slane %v17864_v60, %v14032_v30  ;;  %v20289_v11 = vld [vmem:[#allocation75_spill] sm:$0xff] }
 0x9aa   :  { %v9411_v10 = vsel %vm204_vm1, %v9307_v5, 0.0  ;;  %v9114_v31 = vrot.slane %v17891_v57, %v14032_v30 }
 0x9ab   :  { %9385 = vadd.xlane.f32.xlu1 %v9384_v13  ;;  %v9054_v13 = vrot.slane %v17843_v22, %v14032_v30  ;;  %v9315_v29 = vmul.f32 %v9082_v3, %v20242_v41  ;;  %v20244_v3 = vld [vmem:[#allocation44_spill] sm:$0xff] }
 0x9ad   :  { %9388 = vadd.xlane.f32.xlu0 %v9387_v52  ;;  %v9074_v52 = vrot.slane %v8767_v19, %v14032_v30  ;;  %v9308_v45 = vmul.f32 %v9054_v13, %v20239_v6  ;;  %v8820_v13 = vcombine.high %v17720_v34, %v17720_v34 }
 0x9af   :  { %9391 = vadd.xlane.f32.xlu1 %v9390_v37  ;;  %v17871_v37 = vrot.slane %v8738_v44, %v20231_v39  ;;  %v9313_v19 = vmul.f32 %v9074_v52, %v20240_v8  ;;  %v9414_v24 = vsel %vm204_vm1, %v9308_v45, 0.0  ;;  %v20241_v44 = vld [vmem:[#allocation34_spill] sm:$0xff]  ;;  %v8818_v52 = vcombine.high %v17711_v12, %v17711_v12 }
 0x9b0   :  { %v17894_v45 = vrot.slane %v8787_v1, %v20231_v39  ;;  %v8834_v34 = vrot.slane %v8820_v13, %v20231_v39  ;;  %v8865_v1 = vcombine.high %v17725_v50, %v17725_v50 }
 0x9b1   :  { %9406 = vadd.xlane.f32.xlu0 %v9405_v58  ;;  %v9314_v58 = vmul.f32 %v9078_v46, %v20241_v44  ;;  %v9086_v5 = vrot.slane %v17871_v37, %v14032_v30  ;;  %v20243_v44 = vld [vmem:[#allocation36_spill] sm:$0xff] }
 0x9b2   :  { %v9118_v13 = vrot.slane %v17894_v45, %v14032_v30  ;;  %v17918_v41 = vrot.slane %v8834_v34, %v20231_v39 }
 0x9b3   :  { %9409 = vadd.xlane.f32.xlu1 %v9408_v36  ;;  %v9429_v36 = vsel %vm204_vm1, %v9313_v19, 0.0  ;;  %v9432_v46 = vsel %vm204_vm1, %v9314_v58, 0.0  ;;  %v9316_v12 = vmul.f32 %v9086_v5, %v20243_v44  ;;  %v9435_v19 = vsel %vm204_vm1, %v9315_v29, 0.0  ;;  %v20246_v44 = vld [vmem:[#allocation46_spill] sm:$0xff] }
 0x9b4   :  { %v8836_v58 = vcombine.high %v8834_v34, %v8834_v34  ;;  %v8867_v29 = vcombine.high %v17730_v23, %v17730_v23  ;;  %v9323_v50 = vmul.f32 %v9114_v31, %v20246_v44  ;;  %v20248_v31 = vld [vmem:[#allocation53_spill] sm:$0xff]  ;;  %v9146_v34 = vrot.slane %v17918_v41, %v14032_v30  ;;  %v20251_v44 = vld [vmem:[#allocation54_spill] sm:$0xff] }
 0x9b5   :  { %9412 = vadd.xlane.f32.xlu0 %v9411_v10  ;;  %v9106_v10 = vrot.slane %v8816_v48, %v14032_v30  ;;  %v9438_v5 = vsel %vm204_vm1, %v9316_v12, 0.0  ;;  %v20247_v12 = vld [vmem:[#allocation45_spill] sm:$0xff] }
 0x9b7   :  { %9415 = vadd.xlane.f32.xlu1 %v9414_v24  ;;  %v9110_v24 = vrot.slane %v8818_v52, %v14032_v30  ;;  %v9321_v48 = vmul.f32 %v9106_v10, %v20244_v3  ;;  %v8869_v10 = vcombine.high %v17738_v59, %v17738_v59  ;;  %v9324_v3 = vmul.f32 %v9118_v13, %v20247_v12  ;;  %v20250_v12 = vld [vmem:[#allocation55_spill] sm:$0xff] }
 0x9b8   :  { %v9142_v59 = vrot.slane %v8867_v29, %v14032_v30  ;;  %v8914_v13 = vcombine.high %v17744_v53, %v17744_v53  ;;  %v20249_v29 = vld [vmem:[#allocation52_spill] sm:$0xff]  ;;  %v9331_v53 = vmul.f32 %v9146_v34, %v20250_v12  ;;  %v20252_v34 = vld [vmem:[#allocation62_spill] sm:$0xff] }
 0x9b9   :  { %9430 = vadd.xlane.f32.xlu0 %v9429_v36  ;;  %v20245_v36 = vld [vmem:[#allocation43_spill] sm:$0xff] }
 0x9ba   :  { %v9322_v52 = vmul.f32 %v9110_v24, %v20245_v36  ;;  %v17922_v24 = vrot.slane %v8836_v58, %v20231_v39  ;;  %v9462_v58 = vsel %vm204_vm1, %v9324_v3, 0.0 }
 0x9bb   :  { %9433 = vadd.xlane.f32.xlu1 %v9432_v46  ;;  %v9453_v46 = vsel %vm204_vm1, %v9321_v48, 0.0  ;;  %v9459_v48 = vsel %vm204_vm1, %v9323_v50, 0.0 }
 0x9bc   :  { %v9456_v23 = vsel %vm204_vm1, %v9322_v52, 0.0  ;;  %v9150_v52 = vrot.slane %v17922_v24, %v14032_v30 }
 0x9bd   :  { %9436 = vadd.xlane.f32.xlu0 %v9435_v19  ;;  %v9138_v19 = vrot.slane %v8865_v1, %v14032_v30 }
 0x9bf   :  { %9439 = vadd.xlane.f32.xlu1 %v9438_v5  ;;  %v8883_v5 = vrot.slane %v8869_v10, %v20231_v39  ;;  %v9329_v1 = vmul.f32 %v9138_v19, %v20248_v31  ;;  %v8916_v10 = vcombine.high %v17749_v15, %v17749_v15  ;;  %v8918_v19 = vcombine.high %v17760_v25, %v17760_v25 }
 0x9c1   :  { %9454 = vadd.xlane.f32.xlu0 %v9453_v46  ;;  %v9330_v46 = vmul.f32 %v9142_v59, %v20249_v29  ;;  %v8885_v50 = vcombine.high %v8883_v5, %v8883_v5  ;;  %v17945_v3 = vrot.slane %v8883_v5, %v20231_v39  ;;  %v9332_v59 = vmul.f32 %v9150_v52, %v20251_v44 }
 0x9c2   :  { %v9174_v15 = vrot.slane %v8916_v10, %v14032_v30  ;;  %v8932_v25 = vrot.slane %v8918_v19, %v20231_v39 }
 0x9c3   :  { %9457 = vadd.xlane.f32.xlu1 %v9456_v23  ;;  %v9477_v23 = vsel %vm204_vm1, %v9329_v1, 0.0  ;;  %v9480_v29 = vsel %vm204_vm1, %v9330_v46, 0.0  ;;  %v17951_v36 = vrot.slane %v8885_v50, %v20231_v39  ;;  %v9483_v1 = vsel %vm204_vm1, %v9331_v53, 0.0  ;;  %v20253_v46 = vld [vmem:[#allocation61_spill] sm:$0xff]  ;;  %v20254_v53 = vld [vmem:[#allocation64_spill] sm:$0xff] }
 0x9c4   :  { %v9178_v5 = vrot.slane %v17945_v3, %v14032_v30  ;;  %v9486_v52 = vsel %vm204_vm1, %v9332_v59, 0.0  ;;  %v9338_v10 = vmul.f32 %v9174_v15, %v20253_v46  ;;  %v8934_v19 = vcombine.high %v8932_v25, %v8932_v25  ;;  %v20255_v15 = vld [vmem:[#allocation63_spill] sm:$0xff] }
 0x9c5   :  { %9460 = vadd.xlane.f32.xlu0 %v9459_v48  ;;  %v9170_v48 = vrot.slane %v8914_v13, %v14032_v30  ;;  %v9182_v50 = vrot.slane %v17951_v36, %v14032_v30 }
 0x9c6   :  { %v9504_v59 = vsel %vm204_vm1, %v9338_v10, 0.0 }
 0x9c7   :  { %9463 = vadd.xlane.f32.xlu1 %v9462_v58  ;;  %v9337_v13 = vmul.f32 %v9170_v48, %v20252_v34  ;;  %v8963_v58 = vcombine.high %v17770_v21, %v17770_v21  ;;  %v9339_v48 = vmul.f32 %v9178_v5, %v20254_v53  ;;  %v17970_v21 = vrot.slane %v8932_v25, %v20231_v39 }
 0x9c8   :  { %v8621_v25 = vcombine.high %v17775_v33, %v17775_v33  ;;  %v8670_v33 = vcombine.high %v17810_v49, %v17810_v49  ;;  %v8719_v49 = vcombine.high %v17837_v20, %v17837_v20  ;;  %v8768_v20 = vcombine.high %v17864_v60, %v17864_v60 }
 0x9c9   :  { %9478 = vadd.xlane.f32.xlu0 %v9477_v23  ;;  %v9501_v23 = vsel %vm204_vm1, %v9337_v13, 0.0  ;;  %v9202_v44 = vrot.slane %v8963_v58, %v14032_v30  ;;  %v9507_v13 = vsel %vm204_vm1, %v9339_v48, 0.0  ;;  %v9210_v58 = vrot.slane %v17970_v21, %v14032_v30 }
 0x9ca   :  { %v8817_v60 = vcombine.high %v17891_v57, %v17891_v57  ;;  %v8866_v57 = vcombine.high %v17918_v41, %v17918_v41  ;;  %v8915_v41 = vcombine.high %v17945_v3, %v17945_v3  ;;  %v8964_v3 = vcombine.high %v17970_v21, %v17970_v21 }
 0x9cb   :  { %9481 = vadd.xlane.f32.xlu1 %v9480_v29  ;;  %v8965_v29 = vcombine.high %v17780_v55, %v17780_v55  ;;  %v17976_v55 = vrot.slane %v8934_v19, %v20231_v39  ;;  %v9345_v5 = vmul.f32 %v9202_v44, %v20222_v26 }
 0x9cd   :  { %9484 = vadd.xlane.f32.xlu0 %v9483_v1  ;;  %v9340_v1 = vmul.f32 %v9182_v50, %v20255_v15  ;;  %v9206_v12 = vrot.slane %v8965_v29, %v14032_v30  ;;  %v9214_v39 = vrot.slane %v17976_v55, %v14032_v30  ;;  %v8623_v50 = vcombine.high %v17784_v0, %v17784_v0  ;;  %v20256_v29 = vld [vmem:[#allocation72_spill] sm:$0xff] }
 0x9ce   :  { %v9525_v44 = vsel %vm204_vm1, %v9345_v5, 0.0  ;;  %v9347_v19 = vmul.f32 %v9210_v58, %v20256_v29  ;;  %v8672_v0 = vcombine.high %v17814_v51, %v17814_v51  ;;  %v20258_v5 = vld [vmem:[#allocation19_spill] sm:$0xff]  ;;  %v8721_v51 = vcombine.high %v17843_v22, %v17843_v22 }
 0x9cf   :  { %9487 = vadd.xlane.f32.xlu1 %v9486_v52  ;;  %v9510_v52 = vsel %vm204_vm1, %v9340_v1, 0.0  ;;  %v9346_v10 = vmul.f32 %v9206_v12, %v20223_v27  ;;  %v20257_v12 = vld [vmem:[#allocation71_spill] sm:$0xff]  ;;  %v8998_v1 = vrot.slane %v8623_v50, %v14032_v30  ;;  %v8770_v22 = vcombine.high %v17871_v37, %v17871_v37 }
 0x9d0   :  { %v9030_v50 = vrot.slane %v8672_v0, %v14032_v30  ;;  %v9062_v0 = vrot.slane %v8721_v51, %v14032_v30  ;;  %v8819_v37 = vcombine.high %v17894_v45, %v17894_v45  ;;  %v8868_v45 = vcombine.high %v17922_v24, %v17922_v24 }
 0x9d1   :  { %9502 = vadd.xlane.f32.xlu0 %v9501_v23  ;;  %v8994_v23 = vrot.slane %v8621_v25, %v14032_v30  ;;  %v9528_v48 = vsel %vm204_vm1, %v9346_v10, 0.0  ;;  %v9026_v25 = vrot.slane %v8670_v33, %v14032_v30  ;;  %v20259_v10 = vld [vmem:[#allocation20_spill] sm:$0xff]  ;;  %v9058_v33 = vrot.slane %v8719_v49, %v14032_v30 }
 0x9d2   :  { %v9090_v49 = vrot.slane %v8768_v20, %v14032_v30  ;;  %v9094_v51 = vrot.slane %v8770_v22, %v14032_v30  ;;  %v9122_v20 = vrot.slane %v8817_v60, %v14032_v30  ;;  %v9126_v22 = vrot.slane %v8819_v37, %v14032_v30 }
 0x9d3   :  { %9505 = vadd.xlane.f32.xlu1 %v9504_v59  ;;  %v9348_v59 = vmul.f32 %v9214_v39, %v20257_v12  ;;  %v9293_v58 = vmul.f32 %v8994_v23, %v20258_v5  ;;  %v9294_v39 = vmul.f32 %v8998_v1, %v20259_v10  ;;  %v9154_v60 = vrot.slane %v8866_v57, %v14032_v30 }
 0x9d4   :  { %v9158_v37 = vrot.slane %v8868_v45, %v14032_v30  ;;  %v8917_v24 = vcombine.high %v17951_v36, %v17951_v36  ;;  %v9186_v57 = vrot.slane %v8915_v41, %v14032_v30  ;;  %v8966_v36 = vcombine.high %v17976_v55, %v17976_v55 }
 0x9d5   :  { %9508 = vadd.xlane.f32.xlu0 %v9507_v13  ;;  %v9531_v13 = vsel %vm204_vm1, %v9347_v19, 0.0  ;;  %v20260_v19 = vld [vmem:[#allocation21_spill] sm:$0xff]  ;;  %v9218_v41 = vrot.slane %v8964_v3, %v14032_v30 }
 0x9d6   :  { %v9301_v23 = vmul.f32 %v9026_v25, %v20260_v19  ;;  %v9190_v45 = vrot.slane %v8917_v24, %v14032_v30  ;;  %v20272_v24 = vld [vmem:[#allocation74_spill] sm:$0xff] }
 0x9d7   :  { %9511 = vadd.xlane.f32.xlu1 %v9510_v52  ;;  %v9534_v52 = vsel %vm204_vm1, %v9348_v59, 0.0  ;;  %v20261_v59 = vld [vmem:[#allocation23_spill] sm:$0xff] }
 0x9d8   :  { %v9302_v1 = vmul.f32 %v9030_v50, %v20261_v59 }
 0x9d9   :  { %9526 = vadd.xlane.f32.xlu0 %v9525_v44  ;;  %v9369_v44 = vsel %vm204_vm1, %v9293_v58, 0.0  ;;  %v20262_v58 = vld [vmem:[#allocation30_spill] sm:$0xff] }
 0x9da   :  { %v9309_v25 = vmul.f32 %v9058_v33, %v20262_v58 }
 0x9db   :  { %9529 = vadd.xlane.f32.xlu1 %v9528_v48  ;;  %v9372_v48 = vsel %vm204_vm1, %v9294_v39, 0.0  ;;  %v20263_v39 = vld [vmem:[#allocation29_spill] sm:$0xff] }
 0x9dc   :  { %v9310_v50 = vmul.f32 %v9062_v0, %v20263_v39 }
 0x9dd   :  { %9532 = vadd.xlane.f32.xlu0 %v9531_v13  ;;  %v9393_v13 = vsel %vm204_vm1, %v9301_v23, 0.0  ;;  %v20264_v23 = vld [vmem:[#allocation39_spill] sm:$0xff] }
 0x9de   :  { %v9317_v33 = vmul.f32 %v9090_v49, %v20264_v23 }
 0x9df   :  { %9535 = vadd.xlane.f32.xlu1 %v9534_v52  ;;  %v9396_v52 = vsel %vm204_vm1, %v9302_v1, 0.0  ;;  %v20265_v1 = vld [vmem:[#allocation38_spill] sm:$0xff] }
 0x9e0   :  { %v9318_v0 = vmul.f32 %v9094_v51, %v20265_v1 }
 0x9e1   :  { %9370 = vadd.xlane.f32.xlu0 %v9369_v44  ;;  %v9417_v44 = vsel %vm204_vm1, %v9309_v25, 0.0  ;;  %v20266_v25 = vld [vmem:[#allocation48_spill] sm:$0xff] }
 0x9e2   :  { %v9325_v49 = vmul.f32 %v9122_v20, %v20266_v25 }
 0x9e3   :  { %9373 = vadd.xlane.f32.xlu1 %v9372_v48  ;;  %v9420_v48 = vsel %vm204_vm1, %v9310_v50, 0.0  ;;  %v20267_v50 = vld [vmem:[#allocation47_spill] sm:$0xff] }
 0x9e4   :  { %v9326_v51 = vmul.f32 %v9126_v22, %v20267_v50 }
 0x9e5   :  { %9394 = vadd.xlane.f32.xlu0 %v9393_v13  ;;  %v9441_v13 = vsel %vm204_vm1, %v9317_v33, 0.0  ;;  %v20268_v33 = vld [vmem:[#allocation57_spill] sm:$0xff] }
 0x9e6   :  { %v9333_v20 = vmul.f32 %v9154_v60, %v20268_v33 }
 0x9e7   :  { %9397 = vadd.xlane.f32.xlu1 %v9396_v52  ;;  %v9444_v52 = vsel %vm204_vm1, %v9318_v0, 0.0  ;;  %v20269_v0 = vld [vmem:[#allocation56_spill] sm:$0xff] }
 0x9e8   :  { %v9334_v22 = vmul.f32 %v9158_v37, %v20269_v0  ;;  %v9349_v0 = vmul.f32 %v9218_v41, %v20272_v24 }
 0x9e9   :  { %9418 = vadd.xlane.f32.xlu0 %v9417_v44  ;;  %v9465_v44 = vsel %vm204_vm1, %v9325_v49, 0.0  ;;  %v20270_v49 = vld [vmem:[#allocation66_spill] sm:$0xff] }
 0x9ea   :  { %v9341_v60 = vmul.f32 %v9186_v57, %v20270_v49  ;;  %v9492_v21 = vsel %vm204_vm1, %v9334_v22, 0.0  ;;  %v9537_v57 = vsel %vm204_vm1, %v9349_v0, 0.0  ;;  %v18074_v22 = vpop.xlane.xlu1 %9355 }
 0x9eb   :  { %9421 = vadd.xlane.f32.xlu1 %v9420_v48  ;;  %v9468_v48 = vsel %vm204_vm1, %v9326_v51, 0.0  ;;  %v9222_v51 = vrot.slane %v8966_v36, %v14032_v30  ;;  %v9614_v7 = vrot.slane %v18074_v22, %v20289_v11 }
 0x9ec   :  { %v9513_v37 = vsel %vm204_vm1, %v9341_v60, 0.0 }
 0x9ed   :  { %9442 = vadd.xlane.f32.xlu0 %v9441_v13  ;;  %v9489_v13 = vsel %vm204_vm1, %v9333_v20, 0.0  ;;  %v9350_v20 = vmul.f32 %v9222_v51, %v20228_v40 }
 0x9ee   :  { %v18078_v36 = vpop.xlane.xlu1 %9379 }
 0x9ef   :  { %9445 = vadd.xlane.f32.xlu1 %v9444_v52  ;;  %v20271_v52 = vld [vmem:[#allocation65_spill] sm:$0xff]  ;;  %v9540_v3 = vsel %vm204_vm1, %v9350_v20, 0.0  ;;  %v9646_v2 = vrot.slane %v18078_v36, %v20289_v11 }
 0x9f1   :  { %9466 = vadd.xlane.f32.xlu0 %v9465_v44  ;;  %v9342_v44 = vmul.f32 %v9190_v45, %v20271_v52 }
 0x9f2   :  { %v18082_v60 = vpop.xlane.xlu1 %9403 }
 0x9f3   :  { %9469 = vadd.xlane.f32.xlu1 %v9468_v48  ;;  %v9516_v55 = vsel %vm204_vm1, %v9342_v44, 0.0  ;;  %v18072_v48 = vpop.xlane.xlu0 %9352  ;;  %20274 = vst [vmem:[#allocation86_spill] sm:$0xff] %v18082_v60  ;;  %v9678_v10 = vrot.slane %v18082_v60, %v20289_v11 }
 0x9f4   :  { %v9610_v38 = vrot.slane %v18072_v48, %v20289_v11 }
 0x9f5   :  { %9490 = vadd.xlane.f32.xlu0 %v9489_v13 }
 0x9f6   :  { %v9863_v19 = vsel %vm1887_vm2, %v9614_v7, %v9610_v38 }
 0x9f7   :  { %9493 = vadd.xlane.f32.xlu1 %v9492_v21  ;;  %v18076_v45 = vpop.xlane.xlu0 %9376  ;;  %v18086_v21 = vpop.xlane.xlu1 %9427 }
 0x9f8   :  { %20276 = vst [vmem:[#allocation112_spill] sm:$0xff] %v18086_v21  ;;  %v9642_v18 = vrot.slane %v18076_v45, %v20289_v11 }
 0x9f9   :  { %9514 = vadd.xlane.f32.xlu0 %v9513_v37 }
 0x9fa   :  { %v9870_v7 = vsel %vm1887_vm2, %v9646_v2, %v9642_v18 }
 0x9fb   :  { %9517 = vadd.xlane.f32.xlu1 %v9516_v55  ;;  %v18080_v13 = vpop.xlane.xlu0 %9400 }
 0x9fc   :  { %20273 = vst [vmem:[#allocation78_spill] sm:$0xff] %v18080_v13  ;;  %v9674_v32 = vrot.slane %v18080_v13, %v20289_v11 }
 0x9fd   :  { %9538 = vadd.xlane.f32.xlu0 %v9537_v57 }
 0x9fe   :  { %v9877_v9 = vsel %vm1887_vm2, %v9678_v10, %v9674_v32 }
 0x9ff   :  { %9541 = vadd.xlane.f32.xlu1 %v9540_v3  ;;  %v18084_v41 = vpop.xlane.xlu0 %9424 }
 0xa00   :  { %20275 = vst [vmem:[#allocation85_spill] sm:$0xff] %v18084_v41  ;;  %v9706_v32 = vrot.slane %v18084_v41, %v20289_v11 }
 0xa03   :  { %v18088_v0 = vpop.xlane.xlu0 %9448 }
 0xa04   :  { %20277 = vst [vmem:[#allocation87_spill] sm:$0xff] %v18088_v0  ;;  %v18090_v44 = vpop.xlane.xlu1 %9451 }
 0xa05   :  { %20278 = vst [vmem:[#allocation114_spill] sm:$0xff] %v18090_v44  ;;  %v9742_v41 = vrot.slane %v18090_v44, %v20289_v11 }
 0xa15   :  { %v18092_v51 = vpop.xlane.xlu0 %9472 }
 0xa16   :  { %20279 = vst [vmem:[#allocation91_spill] sm:$0xff] %v18092_v51 }
 0xa17   :  { %v18094_v37 = vpop.xlane.xlu1 %9475 }
 0xa18   :  { %v9774_v44 = vrot.slane %v18094_v37, %v20289_v11 }
 0xa1f   :  { %v18096_v55 = vpop.xlane.xlu0 %9496 }
 0xa20   :  { %20280 = vst [vmem:[#allocation93_spill] sm:$0xff] %v18096_v55 }
 0xa21   :  { %v18098_v20 = vpop.xlane.xlu1 %9499 }
 0xa2a   :  { %v18100_v57 = vpop.xlane.xlu0 %9520 }
 0xa2b   :  { %20281 = vst [vmem:[#allocation115_spill] sm:$0xff] %v18100_v57 }
 0xa2c   :  { %v18102_v3 = vpop.xlane.xlu1 %9523 }
 0xa2d   :  { %20282 = vst [vmem:[#allocation95_spill] sm:$0xff] %v18102_v3 }
 0xa2e   :  { %v18104_v40 = vpop.xlane.xlu0 %9358 }
 0xa2f   :  { %v9618_v35 = vrot.slane %v18104_v40, %v20289_v11 }
 0xa30   :  { %v18106_v52 = vpop.xlane.xlu1 %9361 }
 0xa31   :  { %v9622_v42 = vrot.slane %v18106_v52, %v20289_v11  ;;  %v9864_v4 = vsel %vm1889_vm3, %v9618_v35, %v9863_v19 }
 0xa32   :  { %v18108_v1 = vpop.xlane.xlu0 %9364 }
 0xa33   :  { %v9626_v38 = vrot.slane %v18108_v1, %v20289_v11  ;;  %v9865_v14 = vsel %vm1891_vm4, %v9622_v42, %v9864_v4 }
 0xa34   :  { %v18110_v50 = vpop.xlane.xlu1 %9367 }
 0xa35   :  { %v9630_v18 = vrot.slane %v18110_v50, %v20289_v11  ;;  %v9866_v42 = vsel %vm1893_vm5, %v9626_v38, %v9865_v14 }
 0xa36   :  { %v18112_v49 = vpop.xlane.xlu0 %9382 }
 0xa37   :  { %v9650_v61 = vrot.slane %v18112_v49, %v20289_v11 }
 0xa38   :  { %v18114_v24 = vpop.xlane.xlu1 %9385 }
 0xa39   :  { %v9654_v35 = vrot.slane %v18114_v24, %v20289_v11  ;;  %v9871_v54 = vsel %vm1889_vm3, %v9650_v61, %v9870_v7  ;;  %v9710_v61 = vrot.slane %v18086_v21, %v20289_v11 }
 0xa3a   :  { %v18116_v25 = vpop.xlane.xlu0 %9388 }
 0xa3b   :  { %v9658_v4 = vrot.slane %v18116_v25, %v20289_v11  ;;  %v9872_v7 = vsel %vm1891_vm4, %v9654_v35, %v9871_v54  ;;  %v9867_v35 = vsel %vm1895_vm6, %v9630_v18, %v9866_v42 }
 0xa3c   :  { %v18118_v33 = vpop.xlane.xlu1 %9391 }
 0xa3d   :  { %v9662_v10 = vrot.slane %v18118_v33, %v20289_v11  ;;  %v9873_v21 = vsel %vm1893_vm5, %v9658_v4, %v9872_v7 }
 0xa3e   :  { %v18120_v12 = vpop.xlane.xlu0 %9406 }
 0xa3f   :  { %20283 = vst [vmem:[#allocation96_spill] sm:$0xff] %v18120_v12  ;;  %v9682_v62 = vrot.slane %v18120_v12, %v20289_v11 }
 0xa40   :  { %v18122_v23 = vpop.xlane.xlu1 %9409 }
 0xa41   :  { %20284 = vst [vmem:[#allocation88_spill] sm:$0xff] %v18122_v23  ;;  %v9686_v17 = vrot.slane %v18122_v23, %v20289_v11  ;;  %v9878_v13 = vsel %vm1889_vm3, %v9682_v62, %v9877_v9  ;;  %v9884_v23 = vsel %vm1887_vm2, %v9710_v61, %v9706_v32  ;;  %v9738_v32 = vrot.slane %v18088_v0, %v20289_v11 }
 0xa42   :  { %v18124_v15 = vpop.xlane.xlu0 %9412 }
 0xa43   :  { %v9690_v9 = vrot.slane %v18124_v15, %v20289_v11  ;;  %v9879_v60 = vsel %vm1891_vm4, %v9686_v17, %v9878_v13  ;;  %v9891_v0 = vsel %vm1887_vm2, %v9742_v41, %v9738_v32  ;;  %v9770_v32 = vrot.slane %v18092_v51, %v20289_v11 }
 0xa44   :  { %v18126_v53 = vpop.xlane.xlu1 %9415  ;;  %v9806_v51 = vrot.slane %v18098_v20, %v20289_v11 }
 0xa45   :  { %v9694_v17 = vrot.slane %v18126_v53, %v20289_v11 }
 0xa46   :  { %v18128_v29 = vpop.xlane.xlu0 %9430 }
 0xa47   :  { %20285 = vst [vmem:[#allocation116_spill] sm:$0xff] %v18128_v29  ;;  %v9714_v14 = vrot.slane %v18128_v29, %v20289_v11 }
 0xa48   :  { %v18130_v27 = vpop.xlane.xlu1 %9433 }
 0xa49   :  { %v9718_v18 = vrot.slane %v18130_v27, %v20289_v11  ;;  %v9885_v4 = vsel %vm1889_vm3, %v9714_v14, %v9884_v23  ;;  %v9874_v23 = vsel %vm1895_vm6, %v9662_v10, %v9873_v21  ;;  %v9880_v14 = vsel %vm1893_vm5, %v9690_v9, %v9879_v60 }
 0xa4a   :  { %v18132_v46 = vpop.xlane.xlu0 %9436 }
 0xa4c   :  { %v18134_v34 = vpop.xlane.xlu1 %9439 }
 0xa4e   :  { %v18136_v26 = vpop.xlane.xlu0 %9454 }
 0xa4f   :  { %20286 = vst [vmem:[#allocation90_spill] sm:$0xff] %v18136_v26  ;;  %v9746_v7 = vrot.slane %v18136_v26, %v20289_v11  ;;  %v9722_v26 = vrot.slane %v18132_v46, %v20289_v11 }
 0xa50   :  { %v18138_v31 = vpop.xlane.xlu1 %9457 }
 0xa51   :  { %v9750_v21 = vrot.slane %v18138_v31, %v20289_v11  ;;  %v9892_v10 = vsel %vm1889_vm3, %v9746_v7, %v9891_v0  ;;  %v9881_v0 = vsel %vm1895_vm6, %v9694_v17, %v9880_v14 }
 0xa52   :  { %v18140_v47 = vpop.xlane.xlu0 %9460 }
 0xa54   :  { %v18142_v16 = vpop.xlane.xlu1 %9463 }
 0xa56   :  { %v18144_v8 = vpop.xlane.xlu0 %9478 }
 0xa57   :  { %20287 = vst [vmem:[#allocation117_spill] sm:$0xff] %v18144_v8  ;;  %v9778_v9 = vrot.slane %v18144_v8, %v20289_v11  ;;  %v9898_v8 = vsel %vm1887_vm2, %v9774_v44, %v9770_v32  ;;  %v9802_v32 = vrot.slane %v18096_v55, %v20289_v11  ;;  %v9838_v55 = vrot.slane %v18102_v3, %v20289_v11 }
 0xa58   :  { %v18146_v43 = vpop.xlane.xlu1 %9481 }
 0xa59   :  { %v9782_v17 = vrot.slane %v18146_v43, %v20289_v11  ;;  %v9899_v14 = vsel %vm1889_vm3, %v9778_v9, %v9898_v8 }
 0xa5a   :  { %v18148_v63 = vpop.xlane.xlu0 %9484 }
 0xa5c   :  { %v18150_v39 = vpop.xlane.xlu1 %9487 }
 0xa5e   :  { %v18152_v58 = vpop.xlane.xlu0 %9502 }
 0xa5f   :  { %20288 = vst [vmem:[#allocation92_spill] sm:$0xff] %v18152_v58 }
 0xa60   :  { %v18154_v6 = vpop.xlane.xlu1 %9505 }
 0xa62   :  { %v18158_v28 = vpop.xlane.xlu0 %9508 }
 0xa63   :  { %20290 = vst [vmem:[#allocation118_spill] sm:$0xff] %v18158_v28 }
 0xa64   :  { %v18164_v59 = vpop.xlane.xlu1 %9511 }
 0xa66   :  { %v18171_v56 = vpop.xlane.xlu0 %9526 }
 0xa67   :  { %20291 = vst [vmem:[#allocation94_spill] sm:$0xff] %v18171_v56 }
 0xa68   :  { %v18178_v5 = vpop.xlane.xlu1 %9529 }
 0xa69   :  { %20292 = vst [vmem:[#allocation119_spill] sm:$0xff] %v18178_v5 }
 0xa6a   :  { %v18188_v19 = vpop.xlane.xlu0 %9532 }
 0xa6b   :  { %20293 = vst [vmem:[#allocation104_spill] sm:$0xff] %v18188_v19 }
 0xa6c   :  { %v18197_v2 = vpop.xlane.xlu1 %9535 }
 0xa6d   :  { %20294 = vst [vmem:[#allocation109_spill] sm:$0xff] %v18197_v2 }
 0xa6e   :  { %v18208_v12 = vpop.xlane.xlu0 %9370 }
 0xa6f   :  { %v9634_v38 = vrot.slane %v18208_v12, %v20289_v11 }
 0xa70   :  { %v18219_v54 = vpop.xlane.xlu1 %9373 }
 0xa71   :  { %v9638_v62 = vrot.slane %v18219_v54, %v20289_v11  ;;  %v9868_v29 = vsel %vm1897_vm7, %v9634_v38, %v9867_v35 }
 0xa72   :  { %v18234_v42 = vpop.xlane.xlu0 %9394 }
 0xa73   :  { %v9666_v38 = vrot.slane %v18234_v42, %v20289_v11  ;;  %v9869_v61 = vsel %vm1899_vm8, %v9638_v62, %v9868_v29 }
 0xa74   :  { %v18246_v13 = vpop.xlane.xlu1 %9397  ;;  %v9927_v35 = vsel %vm1958_vm9, %v9869_v61, -inf  ;;  %v9886_v61 = vsel %vm1891_vm4, %v9718_v18, %v9885_v4  ;;  %v9726_v18 = vrot.slane %v18134_v34, %v20289_v11 }
 0xa75   :  { %v9670_v29 = vrot.slane %v18246_v13, %v20289_v11  ;;  %9928 = vmax.xlane.f32.xlu0 %v9927_v35  ;;  %v9875_v62 = vsel %vm1897_vm7, %v9666_v38, %v9874_v23  ;;  %v9887_v7 = vsel %vm1893_vm5, %v9722_v26, %v9886_v61  ;;  %v9754_v23 = vrot.slane %v18140_v47, %v20289_v11 }
 0xa76   :  { %v18262_v60 = vpop.xlane.xlu0 %9418  ;;  %v9810_v61 = vrot.slane %v18152_v58, %v20289_v11  ;;  %v9888_v8 = vsel %vm1895_vm6, %v9726_v18, %v9887_v7  ;;  %v9905_v58 = vsel %vm1887_vm2, %v9806_v51, %v9802_v32  ;;  %v9814_v18 = vrot.slane %v18154_v6, %v20289_v11 }
 0xa77   :  { %v9698_v38 = vrot.slane %v18262_v60, %v20289_v11  ;;  %v9876_v41 = vsel %vm1899_vm8, %v9670_v29, %v9875_v62  ;;  %v9834_v32 = vrot.slane %v18100_v57, %v20289_v11 }
 0xa78   :  { %v18274_v4 = vpop.xlane.xlu1 %9421  ;;  %v9930_v35 = vsel %vm1958_vm9, %v9876_v41, -inf  ;;  %v9893_v41 = vsel %vm1891_vm4, %v9750_v21, %v9892_v10  ;;  %v9758_v21 = vrot.slane %v18142_v16, %v20289_v11 }
 0xa79   :  { %v9702_v29 = vrot.slane %v18274_v4, %v20289_v11  ;;  %9931 = vmax.xlane.f32.xlu1 %v9930_v35  ;;  %v9882_v62 = vsel %vm1897_vm7, %v9698_v38, %v9881_v0  ;;  %v9894_v9 = vsel %vm1893_vm5, %v9754_v23, %v9893_v41  ;;  %v9786_v0 = vrot.slane %v18148_v63, %v20289_v11 }
 0xa7a   :  { %v18290_v26 = vpop.xlane.xlu0 %9442  ;;  %v9906_v23 = vsel %vm1889_vm3, %v9810_v61, %v9905_v58  ;;  %v9842_v41 = vrot.slane %v18171_v56, %v20289_v11  ;;  %v9895_v58 = vsel %vm1895_vm6, %v9758_v21, %v9894_v9  ;;  %v9912_v56 = vsel %vm1887_vm2, %v9838_v55, %v9834_v32 }
 0xa7b   :  { %v9730_v38 = vrot.slane %v18290_v26, %v20289_v11  ;;  %v9883_v44 = vsel %vm1899_vm8, %v9702_v29, %v9882_v62  ;;  %v9907_v57 = vsel %vm1891_vm4, %v9814_v18, %v9906_v23  ;;  %v9850_v32 = vrot.slane %v18188_v19, %v20289_v11 }
 0xa7c   :  { %v18302_v10 = vpop.xlane.xlu1 %9445  ;;  %v9933_v35 = vsel %vm1958_vm9, %v9883_v44, -inf  ;;  %v9900_v44 = vsel %vm1891_vm4, %v9782_v17, %v9899_v14  ;;  %v9790_v17 = vrot.slane %v18150_v39, %v20289_v11  ;;  %v9913_v21 = vsel %vm1889_vm3, %v9842_v41, %v9912_v56 }
 0xa7d   :  { %v9734_v29 = vrot.slane %v18302_v10, %v20289_v11  ;;  %9934 = vmax.xlane.f32.xlu0 %v9933_v35  ;;  %v9889_v62 = vsel %vm1897_vm7, %v9730_v38, %v9888_v8  ;;  %v9901_v61 = vsel %vm1893_vm5, %v9786_v0, %v9900_v44  ;;  %v9818_v8 = vrot.slane %v18158_v28, %v20289_v11 }
 0xa7e   :  { %v18318_v7 = vpop.xlane.xlu0 %9466  ;;  %v9822_v44 = vrot.slane %v18164_v59, %v20289_v11  ;;  %v9902_v18 = vsel %vm1895_vm6, %v9790_v17, %v9901_v61 }
 0xa7f   :  { %v9762_v38 = vrot.slane %v18318_v7, %v20289_v11  ;;  %v9890_v51 = vsel %vm1899_vm8, %v9734_v29, %v9889_v62  ;;  %v9908_v23 = vsel %vm1893_vm5, %v9818_v8, %v9907_v57  ;;  %v9854_v57 = vrot.slane %v18197_v2, %v20289_v11 }
 0xa80   :  { %v18330_v14 = vpop.xlane.xlu1 %9469  ;;  %v9936_v35 = vsel %vm1958_vm9, %v9890_v51, -inf  ;;  %v9846_v51 = vrot.slane %v18178_v5, %v20289_v11 }
 0xa81   :  { %v9766_v29 = vrot.slane %v18330_v14, %v20289_v11  ;;  %9937 = vmax.xlane.f32.xlu1 %v9936_v35  ;;  %v9896_v62 = vsel %vm1897_vm7, %v9762_v38, %v9895_v58 }
 0xa82   :  { %v18344_v3 = vpop.xlane.xlu0 %9490  ;;  %v9914_v35 = vsel %vm1891_vm4, %v9846_v51, %v9913_v21 }
 0xa83   :  { %v9794_v9 = vrot.slane %v18344_v3, %v20289_v11  ;;  %v9897_v0 = vsel %vm1899_vm8, %v9766_v29, %v9896_v62  ;;  %v9909_v62 = vsel %vm1895_vm6, %v9822_v44, %v9908_v23 }
 0xa84   :  { %v18352_v38 = vpop.xlane.xlu1 %9493  ;;  %v9939_v55 = vsel %vm1958_vm9, %v9897_v0, -inf }
 0xa85   :  { %v9798_v56 = vrot.slane %v18352_v38, %v20289_v11  ;;  %9940 = vmax.xlane.f32.xlu0 %v9939_v55  ;;  %v9903_v41 = vsel %vm1897_vm7, %v9794_v9, %v9902_v18  ;;  %v9915_v9 = vsel %vm1893_vm5, %v9850_v32, %v9914_v35 }
 0xa86   :  { %v18363_v58 = vpop.xlane.xlu0 %9514  ;;  %v9916_v44 = vsel %vm1895_vm6, %v9854_v57, %v9915_v9  ;;  %v20302_v9 = vld [vmem:[#allocation101_spill] sm:$0xff] }
 0xa87   :  { %20295 = vst [vmem:[#allocation110_spill] sm:$0xff] %v18363_v58  ;;  %v9826_v29 = vrot.slane %v18363_v58, %v20289_v11  ;;  %v9904_v17 = vsel %vm1899_vm8, %v9798_v56, %v9903_v41 }
 0xa88   :  { %v18370_v61 = vpop.xlane.xlu1 %9517  ;;  %v9942_v8 = vsel %vm1958_vm9, %v9904_v17, -inf }
 0xa89   :  { %20296 = vst [vmem:[#allocation79_spill] sm:$0xff] %v18370_v61  ;;  %v9830_v51 = vrot.slane %v18370_v61, %v20289_v11  ;;  %9943 = vmax.xlane.f32.xlu1 %v9942_v8  ;;  %v9910_v21 = vsel %vm1897_vm7, %v9826_v29, %v9909_v62  ;;  %v20299_v62 = vld [vmem:[#allocation97_spill] sm:$0xff]  ;;  %v20305_v61 = vld [vmem:[#allocation102_spill] sm:$0xff] }
 0xa8a   :  { %v18378_v0 = vpop.xlane.xlu0 %9538 }
 0xa8b   :  { %20297 = vst [vmem:[#allocation105_spill] sm:$0xff] %v18378_v0  ;;  %v9858_v55 = vrot.slane %v18378_v0, %v20289_v11  ;;  %v9911_v18 = vsel %vm1899_vm8, %v9830_v51, %v9910_v21  ;;  %v20300_v21 = vld [vmem:[#allocation98_spill] sm:$0xff]  ;;  %v20301_v0 = vld [vmem:[#allocation99_spill] sm:$0xff] }
 0xa8c   :  { %v18383_v56 = vpop.xlane.xlu1 %9541  ;;  %v9945_v41 = vsel %vm1958_vm9, %v9911_v18, -inf }
 0xa8d   :  { %20298 = vst [vmem:[#allocation111_spill] sm:$0xff] %v18383_v56  ;;  %v9862_v23 = vrot.slane %v18383_v56, %v20289_v11  ;;  %9946 = vmax.xlane.f32.xlu0 %v9945_v41  ;;  %v9917_v32 = vsel %vm1897_vm7, %v9858_v55, %v9916_v44  ;;  %v20304_v56 = vld [vmem:[#allocation103_spill] sm:$0xff] }
 0xa8f   :  { %v9918_v35 = vsel %vm1899_vm8, %v9862_v23, %v9917_v32  ;;  %v20303_v23 = vld [vmem:[#allocation100_spill] sm:$0xff] }
 0xa90   :  { %v9948_v29 = vsel %vm1958_vm9, %v9918_v35, -inf }
 0xa91   :  { %9949 = vmax.xlane.f32.xlu1 %v9948_v29 }
 0xb02   :  { %v9929_v17 = vpop.xlane.xlu0 %9928 }
 0xb03   :  { %v9962_v8 = vrot.slane %v9929_v17, %v14032_v30  ;;  %v9966_v51 = vrot.slane %v9929_v17, %v20299_v62  ;;  %v9970_v18 = vrot.slane %v9929_v17, %v20300_v21  ;;  %v9974_v57 = vrot.slane %v9929_v17, %v20301_v0 }
 0xb04   :  { %v9982_v19 = vrot.slane %v9929_v17, %v20302_v9  ;;  %v9978_v32 = vrot.slane %v9929_v17, %v20303_v23  ;;  %v9990_v2 = vrot.slane %v9929_v17, %v20304_v56  ;;  %v9986_v28 = vrot.slane %v9929_v17, %v20305_v61 }
 0xb05   :  { %v10279_v41 = vsub.f32 %v18072_v48, %v9962_v8  ;;  %v10280_v55 = vsub.f32 %v18074_v22, %v9966_v51  ;;  %v10282_v44 = vsub.f32 %v18106_v52, %v9974_v57  ;;  %v10281_v35 = vsub.f32 %v18104_v40, %v9970_v18 }
 0xb06   :  { %v10284_v5 = vsub.f32 %v18110_v50, %v9982_v19  ;;  %v10283_v48 = vsub.f32 %v18108_v1, %v9978_v32  ;;  %v9932_v8 = vpop.xlane.xlu1 %9931  ;;  %v10286_v52 = vsub.f32 %v18219_v54, %v9990_v2  ;;  %v10285_v18 = vsub.f32 %v18208_v12, %v9986_v28 }
 0xb07   :  { %v10343_v29 = vmul.f32 1.442695, %v10279_v41  ;;  %v10345_v11 = vmul.f32 1.442695, %v10280_v55  ;;  %v10349_v58 = vmul.f32 1.442695, %v10282_v44  ;;  %v9998_v40 = vrot.slane %v9932_v8, %v20299_v62 }
 0xb08   :  { %v10347_v22 = vmul.f32 1.442695, %v10281_v35  ;;  %v10353_v51 = vmul.f32 1.442695, %v10284_v5  ;;  %v10351_v57 = vmul.f32 1.442695, %v10283_v48  ;;  %v9994_v50 = vrot.slane %v9932_v8, %v14032_v30 }
 0xb09   :  { %13255 = vpow2.f32 %v10343_v29  ;;  %v10357_v19 = vmul.f32 1.442695, %v10286_v52  ;;  %v10006_v17 = vrot.slane %v9932_v8, %v20301_v0  ;;  %v10355_v1 = vmul.f32 1.442695, %v10285_v18 }
 0xb0a   :  { %13257 = vpow2.f32 %v10345_v11  ;;  %v10288_v11 = vsub.f32 %v18078_v36, %v9998_v40  ;;  %v10002_v2 = vrot.slane %v9932_v8, %v20300_v21  ;;  %v10287_v5 = vsub.f32 %v18076_v45, %v9994_v50  ;;  %v9935_v52 = vpop.xlane.xlu0 %9934 }
 0xb0b   :  { %13259 = vpow2.f32 %v10349_v58  ;;  %v10014_v28 = vrot.slane %v9932_v8, %v20302_v9  ;;  %v10290_v12 = vsub.f32 %v18114_v24, %v10006_v17  ;;  %v10010_v36 = vrot.slane %v9932_v8, %v20303_v23 }
 0xb0c   :  { %13261 = vpow2.f32 %v10347_v22  ;;  %v10361_v41 = vmul.f32 1.442695, %v10288_v11  ;;  %v10289_v55 = vsub.f32 %v18112_v49, %v10002_v2  ;;  %v10359_v45 = vmul.f32 1.442695, %v10287_v5 }
 0xb0d   :  { %13263 = vpow2.f32 %v10353_v51  ;;  %v10022_v35 = vrot.slane %v9932_v8, %v20304_v56  ;;  %v10292_v29 = vsub.f32 %v18118_v33, %v10014_v28  ;;  %v10365_v24 = vmul.f32 1.442695, %v10290_v12  ;;  %v20307_v28 = vld [vmem:[#allocation78_spill] sm:$0xff] }
 0xb0e   :  { %13265 = vpow2.f32 %v10351_v57  ;;  %v10018_v48 = vrot.slane %v9932_v8, %v20305_v61  ;;  %v10291_v22 = vsub.f32 %v18116_v25, %v10010_v36  ;;  %v10363_v49 = vmul.f32 1.442695, %v10289_v55 }
 0xb0f   :  { %13267 = vpow2.f32 %v10357_v19  ;;  %v10294_v18 = vsub.f32 %v18246_v13, %v10022_v35  ;;  %v10369_v33 = vmul.f32 1.442695, %v10292_v29  ;;  %v10030_v57 = vrot.slane %v9935_v52, %v20299_v62 }
 0xb10   :  { %13269 = vpow2.f32 %v10355_v1  ;;  %v10293_v8 = vsub.f32 %v18234_v42, %v10018_v48  ;;  %v10367_v25 = vmul.f32 1.442695, %v10291_v22  ;;  %v10026_v50 = vrot.slane %v9935_v52, %v14032_v30  ;;  %v20306_v1 = vld [vmem:[#allocation86_spill] sm:$0xff]  ;;  %v20309_v48 = vld [vmem:[#allocation96_spill] sm:$0xff] }
 0xb11   :  { %13271 = vpow2.f32 %v10361_v41  ;;  %v10373_v13 = vmul.f32 1.442695, %v10294_v18  ;;  %v10038_v11 = vrot.slane %v9935_v52, %v20301_v0  ;;  %v10296_v2 = vsub.f32 %v20306_v1, %v10030_v57  ;;  %v9938_v1 = vpop.xlane.xlu1 %9937 }
 0xb12   :  { %13273 = vpow2.f32 %v10359_v45  ;;  %v10371_v42 = vmul.f32 1.442695, %v10293_v8  ;;  %v10034_v5 = vrot.slane %v9935_v52, %v20300_v21  ;;  %v10295_v12 = vsub.f32 %v20307_v28, %v10026_v50  ;;  %v20308_v45 = vld [vmem:[#allocation88_spill] sm:$0xff] }
 0xb13   :  { %v18414_v54 = vpop.eup %13255  ;;  %13275 = vpow2.f32 %v10365_v24  ;;  %v10046_v55 = vrot.slane %v9935_v52, %v20302_v9  ;;  %v10298_v35 = vsub.f32 %v20308_v45, %v10038_v11  ;;  %v10377_v29 = vmul.f32 1.442695, %v10296_v2 }
 0xb14   :  { %v18416_v58 = vpop.eup %13257  ;;  %10536 = vperm.xlu0 %12565, %v18414_v54   ;;  %13277 = vpow2.f32 %v10363_v49  ;;  %v10042_v24 = vrot.slane %v9935_v52, %v20303_v23  ;;  %v10297_v22 = vsub.f32 %v20309_v48, %v10034_v5  ;;  %v10375_v49 = vmul.f32 1.442695, %v10295_v12 }
 0xb15   :  { %10539 = vperm.xlu1 %12566, %v18416_v58   ;;  %v18424_v44 = vpop.eup %13259  ;;  %13279 = vpow2.f32 %v10369_v33  ;;  %v10054_v57 = vrot.slane %v9935_v52, %v20304_v56  ;;  %v10300_v8 = vsub.f32 %v18126_v53, %v10046_v55  ;;  %v10050_v50 = vrot.slane %v9935_v52, %v20305_v61 }
 0xb16   :  { %v18426_v32 = vpop.eup %13261  ;;  %13281 = vpow2.f32 %v10367_v25  ;;  %v10381_v25 = vmul.f32 1.442695, %v10298_v35  ;;  %v10379_v11 = vmul.f32 1.442695, %v10297_v22  ;;  %v10062_v28 = vrot.slane %v9938_v1, %v20299_v62  ;;  %v20311_v22 = vld [vmem:[#allocation85_spill] sm:$0xff] }
 0xb17   :  { %v18434_v51 = vpop.eup %13263  ;;  %13283 = vpow2.f32 %v10373_v13  ;;  %v10299_v13 = vsub.f32 %v18124_v15, %v10042_v24  ;;  %v10302_v5 = vsub.f32 %v18274_v4, %v10054_v57  ;;  %v10385_v53 = vmul.f32 1.442695, %v10300_v8 }
 0xb18   :  { %10545 = vperm.xlu0 %12565, %v18424_v44   ;;  %v18436_v40 = vpop.eup %13265  ;;  %13285 = vpow2.f32 %v10371_v42  ;;  %v10301_v52 = vsub.f32 %v18262_v60, %v10050_v50  ;;  %v10058_v12 = vrot.slane %v9938_v1, %v14032_v30  ;;  %v10070_v35 = vrot.slane %v9938_v1, %v20301_v0 }
 0xb19   :  { %10542 = vperm.xlu1 %12566, %v18426_v32   ;;  %v18444_v19 = vpop.eup %13267  ;;  %13287 = vpow2.f32 %v10377_v29  ;;  %v10383_v15 = vmul.f32 1.442695, %v10299_v13  ;;  %v10389_v4 = vmul.f32 1.442695, %v10302_v5  ;;  %v20310_v29 = vld [vmem:[#allocation112_spill] sm:$0xff]  ;;  %v10066_v48 = vrot.slane %v9938_v1, %v20300_v21 }
 0xb1a   :  { %v18446_v17 = vpop.eup %13269  ;;  %13289 = vpow2.f32 %v10375_v49  ;;  %v10304_v24 = vsub.f32 %v20310_v29, %v10062_v28  ;;  %v10387_v60 = vmul.f32 1.442695, %v10301_v52  ;;  %v10303_v49 = vsub.f32 %v20311_v22, %v10058_v12  ;;  %v20312_v5 = vld [vmem:[#allocation116_spill] sm:$0xff] }
 0xb1b   :  { %v18454_v41 = vpop.eup %13271  ;;  %13291 = vpow2.f32 %v10381_v25  ;;  %v10078_v25 = vrot.slane %v9938_v1, %v20302_v9  ;;  %v10306_v50 = vsub.f32 %v18130_v27, %v10070_v35  ;;  %v10086_v12 = vrot.slane %v9938_v1, %v20304_v56 }
 0xb1c   :  { %10551 = vperm.xlu0 %12565, %v18434_v51   ;;  %v18456_v36 = vpop.eup %13273  ;;  %13293 = vpow2.f32 %v10379_v11  ;;  %v10393_v13 = vmul.f32 1.442695, %v10304_v24  ;;  %v10074_v11 = vrot.slane %v9938_v1, %v20303_v23  ;;  %v10391_v28 = vmul.f32 1.442695, %v10303_v49 }
 0xb1d   :  { %10548 = vperm.xlu1 %12566, %v18436_v40   ;;  %v18464_v18 = vpop.eup %13275  ;;  %13295 = vpow2.f32 %v10385_v53  ;;  %v10305_v53 = vsub.f32 %v20312_v5, %v10066_v48  ;;  %v10397_v27 = vmul.f32 1.442695, %v10306_v50  ;;  %v10082_v35 = vrot.slane %v9938_v1, %v20305_v61 }
 0xb1e   :  { %v18466_v33 = vpop.eup %13277  ;;  %13297 = vpow2.f32 %v10383_v15  ;;  %v10307_v29 = vsub.f32 %v18132_v46, %v10074_v11  ;;  %v10310_v49 = vsub.f32 %v18302_v10, %v10086_v12 }
 0xb1f   :  { %v18474_v2 = vpop.eup %13279  ;;  %13299 = vpow2.f32 %v10389_v4  ;;  %v10308_v4 = vsub.f32 %v18134_v34, %v10078_v25  ;;  %v10395_v24 = vmul.f32 1.442695, %v10305_v53  ;;  %v10309_v1 = vsub.f32 %v18290_v26, %v10082_v35  ;;  %v20313_v53 = vld [vmem:[#allocation114_spill] sm:$0xff] }
 0xb20   :  { %10557 = vperm.xlu0 %12565, %v18444_v19   ;;  %v18476_v42 = vpop.eup %13281  ;;  %13301 = vpow2.f32 %v10387_v60  ;;  %v9941_v60 = vpop.xlane.xlu0 %9940  ;;  %v10399_v46 = vmul.f32 1.442695, %v10307_v29  ;;  %v10405_v10 = vmul.f32 1.442695, %v10310_v49 }
 0xb21   :  { %10554 = vperm.xlu1 %12566, %v18446_v17   ;;  %v18484_v55 = vpop.eup %13283  ;;  %13303 = vpow2.f32 %v10393_v13  ;;  %v10401_v34 = vmul.f32 1.442695, %v10308_v4  ;;  %v10094_v25 = vrot.slane %v9941_v60, %v20299_v62  ;;  %v10090_v50 = vrot.slane %v9941_v60, %v14032_v30  ;;  %v20314_v4 = vld [vmem:[#allocation87_spill] sm:$0xff] }
 0xb22   :  { %v18486_v45 = vpop.eup %13285  ;;  %13305 = vpow2.f32 %v10391_v28  ;;  %v10102_v5 = vrot.slane %v9941_v60, %v20301_v0  ;;  %v10403_v26 = vmul.f32 1.442695, %v10309_v1  ;;  %v10098_v12 = vrot.slane %v9941_v60, %v20300_v21  ;;  %v20316_v1 = vld [vmem:[#allocation90_spill] sm:$0xff] }
 0xb23   :  { %v18494_v57 = vpop.eup %13287  ;;  %13307 = vpow2.f32 %v10397_v27  ;;  %v10312_v28 = vsub.f32 %v20313_v53, %v10094_v25  ;;  %v10311_v27 = vsub.f32 %v20314_v4, %v10090_v50  ;;  %v10106_v25 = vrot.slane %v9941_v60, %v20303_v23 }
 0xb24   :  { %10563 = vperm.xlu0 %12565, %v18454_v41   ;;  %v18496_v8 = vpop.eup %13289  ;;  %13309 = vpow2.f32 %v10395_v24  ;;  %v10110_v24 = vrot.slane %v9941_v60, %v20302_v9  ;;  %v10314_v49 = vsub.f32 %v18138_v31, %v10102_v5  ;;  %v10114_v5 = vrot.slane %v9941_v60, %v20305_v61 }
 0xb25   :  { %10560 = vperm.xlu1 %12566, %v18456_v36   ;;  %v18504_v52 = vpop.eup %13291  ;;  %13311 = vpow2.f32 %v10401_v34  ;;  %v10409_v34 = vmul.f32 1.442695, %v10312_v28  ;;  %v10407_v50 = vmul.f32 1.442695, %v10311_v27  ;;  %v10315_v28 = vsub.f32 %v18140_v47, %v10106_v25 }
 0xb26   :  { %v18506_v15 = vpop.eup %13293  ;;  %13313 = vpow2.f32 %v10399_v46  ;;  %v10313_v46 = vsub.f32 %v20316_v1, %v10098_v12  ;;  %v10413_v31 = vmul.f32 1.442695, %v10314_v49  ;;  %v9944_v12 = vpop.xlane.xlu1 %9943 }
 0xb27   :  { %v18514_v48 = vpop.eup %13295  ;;  %13315 = vpow2.f32 %v10405_v10  ;;  %v10118_v10 = vrot.slane %v9941_v60, %v20304_v56  ;;  %v10317_v60 = vsub.f32 %v18318_v7, %v10114_v5  ;;  %v10415_v47 = vmul.f32 1.442695, %v10315_v28 }
 0xb28   :  { %10569 = vperm.xlu0 %12565, %v18464_v18   ;;  %v18516_v22 = vpop.eup %13297  ;;  %13317 = vpow2.f32 %v10403_v26  ;;  %v10411_v26 = vmul.f32 1.442695, %v10313_v46  ;;  %v10122_v49 = vrot.slane %v9944_v12, %v14032_v30 }
 0xb29   :  { %10566 = vperm.xlu1 %12566, %v18466_v33   ;;  %v18524_v13 = vpop.eup %13299  ;;  %13319 = vpow2.f32 %v10409_v34  ;;  %v10419_v7 = vmul.f32 1.442695, %v10317_v60 }
 0xb2a   :  { %v18526_v11 = vpop.eup %13301  ;;  %13321 = vpow2.f32 %v10407_v50  ;;  %v10130_v50 = vrot.slane %v9944_v12, %v20300_v21 }
 0xb2b   :  { %v18534_v35 = vpop.eup %13303  ;;  %13323 = vpow2.f32 %v10413_v31 }
 0xb2c   :  { %10575 = vperm.xlu0 %12565, %v18474_v2   ;;  %20315 = vst [vmem:[#allocation80_spill] sm:$0xff] %v18534_v35  ;;  %v18536_v29 = vpop.eup %13305  ;;  %13325 = vpow2.f32 %v10411_v26 }
 0xb2d   :  { %10572 = vperm.xlu1 %12566, %v18476_v42   ;;  %v18544_v53 = vpop.eup %13307 }
 0xb2e   :  { %20317 = vst [vmem:[#allocation106_spill] sm:$0xff] %v18544_v53  ;;  %v18546_v4 = vpop.eup %13309 }
 0xb2f   :  { %v18554_v27 = vpop.eup %13311 }
 0xb30   :  { %10581 = vperm.xlu0 %12565, %v18484_v55   ;;  %20318 = vst [vmem:[#allocation76_spill] sm:$0xff] %v18554_v27  ;;  %v18556_v1 = vpop.eup %13313 }
 0xb31   :  { %10578 = vperm.xlu1 %12566, %v18486_v45   ;;  %20319 = vst [vmem:[#allocation81_spill] sm:$0xff] %v18556_v1  ;;  %v18564_v34 = vpop.eup %13315 }
 0xb32   :  { %20320 = vst [vmem:[#allocation77_spill] sm:$0xff] %v18564_v34  ;;  %v18566_v25 = vpop.eup %13317 }
 0xb33   :  { %20321 = vst [vmem:[#allocation82_spill] sm:$0xff] %v18566_v25  ;;  %v18574_v5 = vpop.eup %13319 }
 0xb34   :  { %10587 = vperm.xlu0 %12565, %v18494_v57   ;;  %v18576_v28 = vpop.eup %13321 }
 0xb35   :  { %10584 = vperm.xlu1 %12566, %v18496_v8  }
 0xb38   :  { %10593 = vperm.xlu0 %12565, %v18504_v52  }
 0xb39   :  { %10590 = vperm.xlu1 %12566, %v18506_v15  }
 0xb3c   :  { %10599 = vperm.xlu0 %12565, %v18514_v48  }
 0xb3d   :  { %10596 = vperm.xlu1 %12566, %v18516_v22  }
 0xb40   :  { %10605 = vperm.xlu0 %12565, %v18524_v13  }
 0xb41   :  { %10602 = vperm.xlu1 %12566, %v18526_v11  }
 0xb44   :  { %10611 = vperm.xlu0 %12565, %v18534_v35   ;;  %v10316_v35 = vsub.f32 %v18142_v16, %v10110_v24  ;;  %v10126_v24 = vrot.slane %v9944_v12, %v20299_v62 }
 0xb45   :  { %10608 = vperm.xlu1 %12566, %v18536_v29  }
 0xb46   :  { %v10417_v16 = vmul.f32 1.442695, %v10316_v35  ;;  %v10134_v35 = vrot.slane %v9944_v12, %v20301_v0  ;;  %v10320_v46 = vsub.f32 %v18094_v37, %v10126_v24  ;;  %v20323_v24 = vld [vmem:[#allocation117_spill] sm:$0xff] }
 0xb47   :  { %v10321_v60 = vsub.f32 %v20323_v24, %v10130_v50  ;;  %v9947_v50 = vpop.xlane.xlu0 %9946 }
 0xb48   :  { %10617 = vperm.xlu0 %12565, %v18544_v53   ;;  %v10318_v53 = vsub.f32 %v18330_v14, %v10118_v10  ;;  %13327 = vpow2.f32 %v10417_v16  ;;  %v20322_v10 = vld [vmem:[#allocation91_spill] sm:$0xff]  ;;  %v10322_v26 = vsub.f32 %v18146_v43, %v10134_v35  ;;  %v10425_v37 = vmul.f32 1.442695, %v10320_v46 }
 0xb49   :  { %10614 = vperm.xlu1 %12566, %v18546_v4   ;;  %13329 = vpow2.f32 %v10415_v47  ;;  %v10319_v31 = vsub.f32 %v20322_v10, %v10122_v49  ;;  %v10138_v16 = vrot.slane %v9944_v12, %v20303_v23  ;;  %v18584_v49 = vpop.eup %13323  ;;  %v10146_v35 = vrot.slane %v9944_v12, %v20305_v61 }
 0xb4a   :  { %v10421_v14 = vmul.f32 1.442695, %v10318_v53  ;;  %v10142_v53 = vrot.slane %v9944_v12, %v20302_v9  ;;  %20324 = vst [vmem:[#allocation107_spill] sm:$0xff] %v18584_v49  ;;  %v18586_v10 = vpop.eup %13325  ;;  %v10429_v43 = vmul.f32 1.442695, %v10322_v26  ;;  %v10154_v26 = vrot.slane %v9947_v50, %v14032_v30 }
 0xb4b   :  { %v10423_v47 = vmul.f32 1.442695, %v10319_v31  ;;  %20325 = vst [vmem:[#allocation83_spill] sm:$0xff] %v18586_v10  ;;  %v10323_v46 = vsub.f32 %v18148_v63, %v10138_v16 }
 0xb4c   :  { %10623 = vperm.xlu0 %12565, %v18554_v27   ;;  %13331 = vpow2.f32 %v10421_v14  ;;  %v10150_v14 = vrot.slane %v9944_v12, %v20304_v56  ;;  %v10325_v12 = vsub.f32 %v18344_v3, %v10146_v35  ;;  %v20337_v27 = vld [vmem:[#allocation79_spill] sm:$0xff] }
 0xb4d   :  { %10620 = vperm.xlu1 %12566, %v18556_v1   ;;  %13333 = vpow2.f32 %v10419_v7  ;;  %v10427_v7 = vmul.f32 1.442695, %v10321_v60  ;;  %v10431_v63 = vmul.f32 1.442695, %v10323_v46  ;;  %v20351_v1 = vld [vmem:[#allocation111_spill] sm:$0xff] }
 0xb4e   :  { %13335 = vpow2.f32 %v10425_v37  ;;  %v10435_v3 = vmul.f32 1.442695, %v10325_v12 }
 0xb4f   :  { %13337 = vpow2.f32 %v10423_v47  ;;  %v10162_v47 = vrot.slane %v9947_v50, %v20300_v21 }
 0xb50   :  { %10629 = vperm.xlu0 %12565, %v18564_v34   ;;  %v10324_v34 = vsub.f32 %v18150_v39, %v10142_v53  ;;  %13339 = vpow2.f32 %v10429_v43  ;;  %v10158_v53 = vrot.slane %v9947_v50, %v20299_v62 }
 0xb51   :  { %10626 = vperm.xlu1 %12566, %v18566_v25   ;;  %v10326_v25 = vsub.f32 %v18352_v38, %v10150_v14  ;;  %13341 = vpow2.f32 %v10427_v7  ;;  %v20330_v14 = vld [vmem:[#allocation93_spill] sm:$0xff] }
 0xb52   :  { %v18594_v31 = vpop.eup %13327  ;;  %v10433_v39 = vmul.f32 1.442695, %v10324_v34  ;;  %v10166_v34 = vrot.slane %v9947_v50, %v20301_v0  ;;  %v10328_v60 = vsub.f32 %v18098_v20, %v10158_v53  ;;  %v10327_v43 = vsub.f32 %v20330_v14, %v10154_v26  ;;  %v20331_v53 = vld [vmem:[#allocation92_spill] sm:$0xff] }
 0xb53   :  { %20326 = vst [vmem:[#allocation84_spill] sm:$0xff] %v18594_v31  ;;  %v18596_v24 = vpop.eup %13329  ;;  %v10437_v38 = vmul.f32 1.442695, %v10326_v25  ;;  %v10174_v25 = vrot.slane %v9947_v50, %v20302_v9  ;;  %v10329_v12 = vsub.f32 %v20331_v53, %v10162_v47 }
 0xb54   :  { %10635 = vperm.xlu0 %12565, %v18574_v5   ;;  %20327 = vst [vmem:[#allocation113_spill] sm:$0xff] %v18596_v24  ;;  %13343 = vpow2.f32 %v10433_v39  ;;  %v10330_v7 = vsub.f32 %v18154_v6, %v10166_v34  ;;  %v10441_v20 = vmul.f32 1.442695, %v10328_v60  ;;  %v10170_v39 = vrot.slane %v9947_v50, %v20303_v23  ;;  %v20334_v60 = vld [vmem:[#allocation118_spill] sm:$0xff] }
 0xb55   :  { %10632 = vperm.xlu1 %12566, %v18576_v28   ;;  %13345 = vpow2.f32 %v10431_v63  ;;  %v10439_v63 = vmul.f32 1.442695, %v10327_v43  ;;  %v10178_v34 = vrot.slane %v9947_v50, %v20305_v61  ;;  %v10443_v47 = vmul.f32 1.442695, %v10329_v12  ;;  %v9950_v43 = vpop.xlane.xlu1 %9949 }
 0xb56   :  { %v18604_v37 = vpop.eup %13331  ;;  %13347 = vpow2.f32 %v10437_v38  ;;  %v10182_v38 = vrot.slane %v9947_v50, %v20304_v56  ;;  %v10445_v6 = vmul.f32 1.442695, %v10330_v7  ;;  %v20338_v50 = vld [vmem:[#allocation110_spill] sm:$0xff] }
 0xb57   :  { %20328 = vst [vmem:[#allocation89_spill] sm:$0xff] %v18604_v37  ;;  %v18606_v16 = vpop.eup %13333  ;;  %13349 = vpow2.f32 %v10435_v3  ;;  %v10331_v3 = vsub.f32 %v20334_v60, %v10170_v39  ;;  %v10333_v7 = vsub.f32 %v20338_v50, %v10178_v34  ;;  %v10186_v39 = vrot.slane %v9950_v43, %v14032_v30 }
 0xb58   :  { %10641 = vperm.xlu0 %12565, %v18584_v49   ;;  %20329 = vst [vmem:[#allocation108_spill] sm:$0xff] %v18606_v16  ;;  %v18614_v35 = vpop.eup %13335  ;;  %13351 = vpow2.f32 %v10441_v20  ;;  %v10194_v60 = vrot.slane %v9950_v43, %v20300_v21 }
 0xb59   :  { %10638 = vperm.xlu1 %12566, %v18586_v10   ;;  %v18616_v46 = vpop.eup %13337  ;;  %13353 = vpow2.f32 %v10439_v63  ;;  %v10447_v20 = vmul.f32 1.442695, %v10331_v3  ;;  %v10451_v34 = vmul.f32 1.442695, %v10333_v7  ;;  %v20342_v3 = vld [vmem:[#allocation115_spill] sm:$0xff]  ;;  %v10202_v7 = vrot.slane %v9950_v43, %v20303_v23 }
 0xb5a   :  { %v18624_v26 = vpop.eup %13339  ;;  %13355 = vpow2.f32 %v10445_v6 }
 0xb5b   :  { %20332 = vst [vmem:[#allocation3_spill] sm:$0xff] %v18624_v26  ;;  %v18626_v14 = vpop.eup %13341  ;;  %13357 = vpow2.f32 %v10443_v47  ;;  %v10335_v47 = vsub.f32 %v20342_v3, %v10186_v39 }
 0xb5c   :  { %10647 = vperm.xlu0 %12565, %v18594_v31   ;;  %20333 = vst [vmem:[#allocation97_spill] sm:$0xff] %v18626_v14  ;;  %v10334_v31 = vsub.f32 %v20337_v27, %v10182_v38  ;;  %v20341_v38 = vld [vmem:[#allocation95_spill] sm:$0xff] }
 0xb5d   :  { %10644 = vperm.xlu1 %12566, %v18596_v24   ;;  %v10455_v39 = vmul.f32 1.442695, %v10335_v47  ;;  %v20347_v24 = vld [vmem:[#allocation109_spill] sm:$0xff] }
 0xb5e   :  { %v18634_v53 = vpop.eup %13343  ;;  %v10453_v27 = vmul.f32 1.442695, %v10334_v31  ;;  %v10206_v31 = vrot.slane %v9950_v43, %v20302_v9 }
 0xb5f   :  { %20335 = vst [vmem:[#allocation98_spill] sm:$0xff] %v18634_v53 }
 0xb60   :  { %10653 = vperm.xlu0 %12565, %v18604_v37   ;;  %v10332_v37 = vsub.f32 %v18164_v59, %v10174_v25  ;;  %v10190_v25 = vrot.slane %v9950_v43, %v20299_v62 }
 0xb61   :  { %10650 = vperm.xlu1 %12566, %v18606_v16   ;;  %v18636_v16 = vpop.eup %13345 }
 0xb62   :  { %20336 = vst [vmem:[#allocation99_spill] sm:$0xff] %v18636_v16  ;;  %v10449_v59 = vmul.f32 1.442695, %v10332_v37  ;;  %v18644_v12 = vpop.eup %13347  ;;  %v10198_v37 = vrot.slane %v9950_v43, %v20301_v0  ;;  %v10336_v6 = vsub.f32 %v20341_v38, %v10190_v25 }
 0xb63   :  { %20339 = vst [vmem:[#allocation101_spill] sm:$0xff] %v18644_v12  ;;  %v18646_v63 = vpop.eup %13349 }
 0xb64   :  { %10659 = vperm.xlu0 %12565, %v18614_v35   ;;  %20340 = vst [vmem:[#allocation100_spill] sm:$0xff] %v18646_v63  ;;  %13359 = vpow2.f32 %v10449_v59  ;;  %v18654_v50 = vpop.eup %13351  ;;  %v20343_v59 = vld [vmem:[#allocation119_spill] sm:$0xff]  ;;  %v10457_v25 = vmul.f32 1.442695, %v10336_v6  ;;  %v10210_v6 = vrot.slane %v9950_v43, %v20305_v61 }
 0xb65   :  { %10656 = vperm.xlu1 %12566, %v18616_v46   ;;  %13361 = vpow2.f32 %v10447_v20  ;;  %v20344_v20 = vld [vmem:[#allocation94_spill] sm:$0xff] }
 0xb66   :  { %13363 = vpow2.f32 %v10453_v27  ;;  %v10337_v38 = vsub.f32 %v20344_v20, %v10194_v60  ;;  %v10214_v27 = vrot.slane %v9950_v43, %v20304_v56 }
 0xb67   :  { %13365 = vpow2.f32 %v10451_v34  ;;  %v20348_v34 = vld [vmem:[#allocation104_spill] sm:$0xff] }
 0xb68   :  { %10665 = vperm.xlu0 %12565, %v18624_v26   ;;  %13367 = vpow2.f32 %v10457_v25  ;;  %v10459_v60 = vmul.f32 1.442695, %v10337_v38  ;;  %v10342_v26 = vsub.f32 %v20351_v1, %v10214_v27 }
 0xb69   :  { %10662 = vperm.xlu1 %12566, %v18626_v14   ;;  %13369 = vpow2.f32 %v10455_v39 }
 0xb6a   :  { %v10469_v38 = vmul.f32 1.442695, %v10342_v26 }
 0xb6c   :  { %10671 = vperm.xlu0 %12565, %v18634_v53   ;;  %v18656_v53 = vpop.eup %13353 }
 0xb6d   :  { %10668 = vperm.xlu1 %12566, %v18636_v16   ;;  %v18664_v3 = vpop.eup %13355  ;;  %v10340_v16 = vsub.f32 %v20347_v24, %v10206_v31 }
 0xb6e   :  { %20345 = vst [vmem:[#allocation103_spill] sm:$0xff] %v18664_v3 }
 0xb6f   :  { %v10465_v24 = vmul.f32 1.442695, %v10340_v16 }
 0xb70   :  { %10677 = vperm.xlu0 %12565, %v18644_v12   ;;  %v10338_v12 = vsub.f32 %v20343_v59, %v10198_v37  ;;  %v10339_v59 = vsub.f32 %v20348_v34, %v10202_v7 }
 0xb71   :  { %10674 = vperm.xlu1 %12566, %v18646_v63   ;;  %v18666_v63 = vpop.eup %13357 }
 0xb72   :  { %20346 = vst [vmem:[#allocation102_spill] sm:$0xff] %v18666_v63  ;;  %v10461_v37 = vmul.f32 1.442695, %v10338_v12  ;;  %v18674_v47 = vpop.eup %13359  ;;  %v20352_v12 = vld [vmem:[#allocation105_spill] sm:$0xff]  ;;  %v10463_v43 = vmul.f32 1.442695, %v10339_v59 }
 0xb73   :  { %20349 = vst [vmem:[#allocation86_spill] sm:$0xff] %v18674_v47  ;;  %v18676_v20 = vpop.eup %13361  ;;  %v10341_v31 = vsub.f32 %v20352_v12, %v10210_v6 }
 0xb74   :  { %10683 = vperm.xlu0 %12565, %v18654_v50   ;;  %20350 = vst [vmem:[#allocation78_spill] sm:$0xff] %v18676_v20  ;;  %13371 = vpow2.f32 %v10461_v37  ;;  %v18682_v25 = vpop.eup %13363 }
 0xb75   :  { %10680 = vperm.xlu1 %12566, %v18656_v53   ;;  %13373 = vpow2.f32 %v10459_v60  ;;  %20353 = vst [vmem:[#allocation88_spill] sm:$0xff] %v18682_v25  ;;  %v18684_v7 = vpop.eup %13365  ;;  %v10467_v1 = vmul.f32 1.442695, %v10341_v31 }
 0xb76   :  { %20354 = vst [vmem:[#allocation96_spill] sm:$0xff] %v18684_v7  ;;  %13375 = vpow2.f32 %v10465_v24  ;;  %v18688_v39 = vpop.eup %13367 }
 0xb77   :  { %13377 = vpow2.f32 %v10463_v43  ;;  %v18690_v16 = vpop.eup %13369 }
 0xb78   :  { %10689 = vperm.xlu0 %12565, %v18664_v3   ;;  %13379 = vpow2.f32 %v10469_v38 }
 0xb79   :  { %10686 = vperm.xlu1 %12566, %v18666_v63   ;;  %13381 = vpow2.f32 %v10467_v1 }
 0xb7c   :  { %10695 = vperm.xlu0 %12565, %v18674_v47  }
 0xb7d   :  { %10692 = vperm.xlu1 %12566, %v18676_v20  }
 0xb7e   :  { %v18694_v27 = vpop.eup %13371 }
 0xb7f   :  { %20355 = vst [vmem:[#allocation112_spill] sm:$0xff] %v18694_v27  ;;  %v18696_v37 = vpop.eup %13373 }
 0xb80   :  { %10701 = vperm.xlu0 %12565, %v18682_v25   ;;  %20356 = vst [vmem:[#allocation85_spill] sm:$0xff] %v18696_v37  ;;  %v18700_v26 = vpop.eup %13375 }
 0xb81   :  { %10698 = vperm.xlu1 %12566, %v18684_v7   ;;  %20357 = vst [vmem:[#allocation116_spill] sm:$0xff] %v18700_v26  ;;  %v18702_v6 = vpop.eup %13377  ;;  %v20361_v7 = vld [vmem:[#allocation75_spill] sm:$0xff] }
 0xb82   :  { %20358 = vst [vmem:[#allocation114_spill] sm:$0xff] %v18702_v6  ;;  %v18706_v34 = vpop.eup %13379 }
 0xb83   :  { %20359 = vst [vmem:[#allocation87_spill] sm:$0xff] %v18706_v34  ;;  %v18708_v59 = vpop.eup %13381 }
 0xb84   :  { %10707 = vperm.xlu0 %12565, %v18688_v39   ;;  %20360 = vst [vmem:[#allocation90_spill] sm:$0xff] %v18708_v59 }
 0xb85   :  { %10704 = vperm.xlu1 %12566, %v18690_v16  }
 0xb88   :  { %10713 = vperm.xlu0 %12565, %v18694_v27  }
 0xb89   :  { %10710 = vperm.xlu1 %12566, %v18696_v37  }
 0xb8c   :  { %10719 = vperm.xlu0 %12565, %v18700_v26  }
 0xb8d   :  { %10716 = vperm.xlu1 %12566, %v18702_v6  }
 0xb90   :  { %10725 = vperm.xlu0 %12565, %v18706_v34  }
 0xb91   :  { %10722 = vperm.xlu1 %12566, %v18708_v59  }
 0xb93   :  { %v10537_v60 = vpop.permute.xlu0 %10536 }
 0xb94   :  { %v10540_v24 = vpop.permute.xlu1 %10539  ;;  %v10730_v47 = vrot.slane %v10537_v60, %v20361_v7 }
 0xb95   :  { %v10734_v26 = vrot.slane %v10540_v24, %v20361_v7 }
 0xb97   :  { %v10546_v12 = vpop.permute.xlu0 %10545  ;;  %v10983_v34 = vsel %vm1887_vm2, %v10734_v26, %v10730_v47 }
 0xb98   :  { %v10543_v31 = vpop.permute.xlu1 %10542  ;;  %v10742_v59 = vrot.slane %v10546_v12, %v20361_v7 }
 0xb99   :  { %v10738_v20 = vrot.slane %v10543_v31, %v20361_v7 }
 0xb9b   :  { %v10552_v43 = vpop.permute.xlu0 %10551  ;;  %v10984_v3 = vsel %vm1889_vm3, %v10738_v20, %v10983_v34 }
 0xb9c   :  { %v10549_v38 = vpop.permute.xlu1 %10548  ;;  %v10985_v60 = vsel %vm1891_vm4, %v10742_v59, %v10984_v3  ;;  %v10750_v31 = vrot.slane %v10552_v43, %v20361_v7 }
 0xb9d   :  { %v10746_v49 = vrot.slane %v10549_v38, %v20361_v7 }
 0xb9f   :  { %v10558_v1 = vpop.permute.xlu0 %10557  ;;  %v10986_v47 = vsel %vm1893_vm5, %v10746_v49, %v10985_v60 }
 0xba0   :  { %v10555_v25 = vpop.permute.xlu1 %10554  ;;  %v10987_v38 = vsel %vm1895_vm6, %v10750_v31, %v10986_v47  ;;  %v10758_v3 = vrot.slane %v10558_v1, %v20361_v7 }
 0xba1   :  { %v10754_v26 = vrot.slane %v10555_v25, %v20361_v7 }
 0xba3   :  { %v10564_v6 = vpop.permute.xlu0 %10563  ;;  %v10988_v25 = vsel %vm1897_vm7, %v10754_v26, %v10987_v38 }
 0xba4   :  { %v10561_v27 = vpop.permute.xlu1 %10560  ;;  %v10766_v37 = vrot.slane %v10564_v6, %v20361_v7  ;;  %v10989_v60 = vsel %vm1899_vm8, %v10758_v3, %v10988_v25 }
 0xba5   :  { %v10762_v63 = vrot.slane %v10561_v27, %v20361_v7 }
 0xba7   :  { %v10570_v10 = vpop.permute.xlu0 %10569  ;;  %v10990_v20 = vsel %vm1887_vm2, %v10766_v37, %v10762_v63 }
 0xba8   :  { %v10567_v24 = vpop.permute.xlu1 %10566  ;;  %v10774_v34 = vrot.slane %v10570_v10, %v20361_v7 }
 0xba9   :  { %v10770_v14 = vrot.slane %v10567_v24, %v20361_v7 }
 0xbab   :  { %v10991_v27 = vsel %vm1889_vm3, %v10770_v14, %v10990_v20  ;;  %v10576_v12 = vpop.permute.xlu0 %10575 }
 0xbac   :  { %v10573_v6 = vpop.permute.xlu1 %10572  ;;  %v10992_v43 = vsel %vm1891_vm4, %v10774_v34, %v10991_v27  ;;  %v10782_v49 = vrot.slane %v10576_v12, %v20361_v7  ;;  %v11047_v34 = vsel %vm1958_vm9, %v10989_v60, 0.0 }
 0xbad   :  { %v10778_v59 = vrot.slane %v10573_v6, %v20361_v7 }
 0xbaf   :  { %v10993_v63 = vsel %vm1893_vm5, %v10778_v59, %v10992_v43  ;;  %v10582_v37 = vpop.permute.xlu0 %10581 }
 0xbb0   :  { %v10579_v10 = vpop.permute.xlu1 %10578  ;;  %v10790_v14 = vrot.slane %v10582_v37, %v20361_v7  ;;  %v10994_v1 = vsel %vm1895_vm6, %v10782_v49, %v10993_v63 }
 0xbb1   :  { %v10786_v24 = vrot.slane %v10579_v10, %v20361_v7 }
 0xbb3   :  { %v10588_v31 = vpop.permute.xlu0 %10587  ;;  %v10995_v47 = vsel %vm1897_vm7, %v10786_v24, %v10994_v1 }
 0xbb4   :  { %v10585_v20 = vpop.permute.xlu1 %10584  ;;  %v10996_v26 = vsel %vm1899_vm8, %v10790_v14, %v10995_v47  ;;  %v10798_v6 = vrot.slane %v10588_v31, %v20361_v7 }
 0xbb5   :  { %11048 = vadd.xlane.f32.xlu1 %v11047_v34  ;;  %v11050_v27 = vsel %vm1958_vm9, %v10996_v26, 0.0  ;;  %v10794_v12 = vrot.slane %v10585_v20, %v20361_v7 }
 0xbb6   :  { %11051 = vadd.xlane.f32.xlu0 %v11050_v27 }
 0xbb7   :  { %v10594_v38 = vpop.permute.xlu0 %10593  ;;  %v10997_v43 = vsel %vm1887_vm2, %v10798_v6, %v10794_v12 }
 0xbb8   :  { %v10591_v3 = vpop.permute.xlu1 %10590  ;;  %v10806_v49 = vrot.slane %v10594_v38, %v20361_v7 }
 0xbb9   :  { %v10802_v59 = vrot.slane %v10591_v3, %v20361_v7 }
 0xbbb   :  { %v10998_v25 = vsel %vm1889_vm3, %v10802_v59, %v10997_v43  ;;  %v10600_v63 = vpop.permute.xlu0 %10599 }
 0xbbc   :  { %v10597_v37 = vpop.permute.xlu1 %10596  ;;  %v10999_v14 = vsel %vm1891_vm4, %v10806_v49, %v10998_v25  ;;  %v10814_v24 = vrot.slane %v10600_v63, %v20361_v7 }
 0xbbd   :  { %v10810_v10 = vrot.slane %v10597_v37, %v20361_v7 }
 0xbbf   :  { %v11000_v60 = vsel %vm1893_vm5, %v10810_v10, %v10999_v14  ;;  %v10606_v1 = vpop.permute.xlu0 %10605 }
 0xbc0   :  { %v10603_v31 = vpop.permute.xlu1 %10602  ;;  %v10822_v47 = vrot.slane %v10606_v1, %v20361_v7  ;;  %v11001_v34 = vsel %vm1895_vm6, %v10814_v24, %v11000_v60 }
 0xbc1   :  { %v10818_v20 = vrot.slane %v10603_v31, %v20361_v7 }
 0xbc3   :  { %v10612_v26 = vpop.permute.xlu0 %10611  ;;  %v11002_v27 = vsel %vm1897_vm7, %v10818_v20, %v11001_v34 }
 0xbc4   :  { %v10609_v12 = vpop.permute.xlu1 %10608  ;;  %v11003_v6 = vsel %vm1899_vm8, %v10822_v47, %v11002_v27  ;;  %v10830_v59 = vrot.slane %v10612_v26, %v20361_v7 }
 0xbc5   :  { %v11053_v38 = vsel %vm1958_vm9, %v11003_v6, 0.0  ;;  %v10826_v3 = vrot.slane %v10609_v12, %v20361_v7 }
 0xbc6   :  { %11054 = vadd.xlane.f32.xlu0 %v11053_v38 }
 0xbc7   :  { %v10618_v43 = vpop.permute.xlu0 %10617  ;;  %v11004_v63 = vsel %vm1887_vm2, %v10830_v59, %v10826_v3 }
 0xbc8   :  { %v10615_v49 = vpop.permute.xlu1 %10614  ;;  %v10838_v37 = vrot.slane %v10618_v43, %v20361_v7 }
 0xbc9   :  { %v10834_v25 = vrot.slane %v10615_v49, %v20361_v7 }
 0xbcb   :  { %v11005_v10 = vsel %vm1889_vm3, %v10834_v25, %v11004_v63  ;;  %v10624_v14 = vpop.permute.xlu0 %10623 }
 0xbcc   :  { %v10621_v24 = vpop.permute.xlu1 %10620  ;;  %v11006_v1 = vsel %vm1891_vm4, %v10838_v37, %v11005_v10  ;;  %v10846_v31 = vrot.slane %v10624_v14, %v20361_v7 }
 0xbcd   :  { %v10842_v60 = vrot.slane %v10621_v24, %v20361_v7 }
 0xbcf   :  { %v11007_v47 = vsel %vm1893_vm5, %v10842_v60, %v11006_v1  ;;  %v10630_v20 = vpop.permute.xlu0 %10629 }
 0xbd0   :  { %v10627_v34 = vpop.permute.xlu1 %10626  ;;  %v10854_v26 = vrot.slane %v10630_v20, %v20361_v7  ;;  %v11008_v12 = vsel %vm1895_vm6, %v10846_v31, %v11007_v47 }
 0xbd1   :  { %v10850_v27 = vrot.slane %v10627_v34, %v20361_v7 }
 0xbd3   :  { %v10636_v6 = vpop.permute.xlu0 %10635  ;;  %v11009_v38 = vsel %vm1897_vm7, %v10850_v27, %v11008_v12 }
 0xbd4   :  { %v10633_v3 = vpop.permute.xlu1 %10632  ;;  %v11010_v59 = vsel %vm1899_vm8, %v10854_v26, %v11009_v38  ;;  %v10862_v25 = vrot.slane %v10636_v6, %v20361_v7 }
 0xbd5   :  { %v11056_v43 = vsel %vm1958_vm9, %v11010_v59, 0.0  ;;  %v10858_v49 = vrot.slane %v10633_v3, %v20361_v7 }
 0xbd6   :  { %11057 = vadd.xlane.f32.xlu1 %v11056_v43 }
 0xbd7   :  { %v10642_v63 = vpop.permute.xlu0 %10641  ;;  %v11011_v14 = vsel %vm1887_vm2, %v10862_v25, %v10858_v49 }
 0xbd8   :  { %v10639_v37 = vpop.permute.xlu1 %10638  ;;  %v10870_v24 = vrot.slane %v10642_v63, %v20361_v7 }
 0xbd9   :  { %v10866_v10 = vrot.slane %v10639_v37, %v20361_v7 }
 0xbdb   :  { %v11012_v60 = vsel %vm1889_vm3, %v10866_v10, %v11011_v14  ;;  %v10648_v1 = vpop.permute.xlu0 %10647 }
 0xbdc   :  { %v10645_v31 = vpop.permute.xlu1 %10644  ;;  %v11013_v20 = vsel %vm1891_vm4, %v10870_v24, %v11012_v60  ;;  %v10878_v34 = vrot.slane %v10648_v1, %v20361_v7 }
 0xbdd   :  { %v10874_v47 = vrot.slane %v10645_v31, %v20361_v7 }
 0xbdf   :  { %v11014_v26 = vsel %vm1893_vm5, %v10874_v47, %v11013_v20  ;;  %v10654_v27 = vpop.permute.xlu0 %10653 }
 0xbe0   :  { %v10651_v12 = vpop.permute.xlu1 %10650  ;;  %v10886_v6 = vrot.slane %v10654_v27, %v20361_v7  ;;  %v11015_v3 = vsel %vm1895_vm6, %v10878_v34, %v11014_v26 }
 0xbe1   :  { %v10882_v38 = vrot.slane %v10651_v12, %v20361_v7 }
 0xbe3   :  { %v10660_v59 = vpop.permute.xlu0 %10659  ;;  %v11016_v43 = vsel %vm1897_vm7, %v10882_v38, %v11015_v3 }
 0xbe4   :  { %v10657_v49 = vpop.permute.xlu1 %10656  ;;  %v11017_v25 = vsel %vm1899_vm8, %v10886_v6, %v11016_v43  ;;  %v10894_v10 = vrot.slane %v10660_v59, %v20361_v7 }
 0xbe5   :  { %v11059_v63 = vsel %vm1958_vm9, %v11017_v25, 0.0  ;;  %v10890_v37 = vrot.slane %v10657_v49, %v20361_v7 }
 0xbe6   :  { %11060 = vadd.xlane.f32.xlu0 %v11059_v63 }
 0xbe7   :  { %v10666_v14 = vpop.permute.xlu0 %10665  ;;  %v11018_v1 = vsel %vm1887_vm2, %v10894_v10, %v10890_v37 }
 0xbe8   :  { %v10663_v24 = vpop.permute.xlu1 %10662  ;;  %v10902_v31 = vrot.slane %v10666_v14, %v20361_v7 }
 0xbe9   :  { %v10898_v60 = vrot.slane %v10663_v24, %v20361_v7 }
 0xbeb   :  { %v11019_v47 = vsel %vm1889_vm3, %v10898_v60, %v11018_v1  ;;  %v10672_v20 = vpop.permute.xlu0 %10671 }
 0xbec   :  { %v10669_v34 = vpop.permute.xlu1 %10668  ;;  %v11020_v27 = vsel %vm1891_vm4, %v10902_v31, %v11019_v47  ;;  %v10910_v12 = vrot.slane %v10672_v20, %v20361_v7 }
 0xbed   :  { %v10906_v26 = vrot.slane %v10669_v34, %v20361_v7 }
 0xbef   :  { %v11021_v6 = vsel %vm1893_vm5, %v10906_v26, %v11020_v27  ;;  %v10678_v38 = vpop.permute.xlu0 %10677 }
 0xbf0   :  { %v10675_v3 = vpop.permute.xlu1 %10674  ;;  %v10918_v59 = vrot.slane %v10678_v38, %v20361_v7  ;;  %v11022_v49 = vsel %vm1895_vm6, %v10910_v12, %v11021_v6 }
 0xbf1   :  { %v10914_v43 = vrot.slane %v10675_v3, %v20361_v7 }
 0xbf3   :  { %v10684_v25 = vpop.permute.xlu0 %10683  ;;  %v11023_v63 = vsel %vm1897_vm7, %v10914_v43, %v11022_v49 }
 0xbf4   :  { %v10681_v37 = vpop.permute.xlu1 %10680  ;;  %v11024_v10 = vsel %vm1899_vm8, %v10918_v59, %v11023_v63  ;;  %v10926_v60 = vrot.slane %v10684_v25, %v20361_v7 }
 0xbf5   :  { %v11062_v14 = vsel %vm1958_vm9, %v11024_v10, 0.0  ;;  %v10922_v24 = vrot.slane %v10681_v37, %v20361_v7 }
 0xbf6   :  { %11063 = vadd.xlane.f32.xlu1 %v11062_v14 }
 0xbf7   :  { %v10690_v1 = vpop.permute.xlu0 %10689  ;;  %v11025_v20 = vsel %vm1887_vm2, %v10926_v60, %v10922_v24 }
 0xbf8   :  { %v10687_v31 = vpop.permute.xlu1 %10686  ;;  %v10934_v34 = vrot.slane %v10690_v1, %v20361_v7 }
 0xbf9   :  { %v10930_v47 = vrot.slane %v10687_v31, %v20361_v7 }
 0xbfb   :  { %v11026_v26 = vsel %vm1889_vm3, %v10930_v47, %v11025_v20  ;;  %v10696_v27 = vpop.permute.xlu0 %10695 }
 0xbfc   :  { %v10693_v12 = vpop.permute.xlu1 %10692  ;;  %v11027_v38 = vsel %vm1891_vm4, %v10934_v34, %v11026_v26  ;;  %v10942_v3 = vrot.slane %v10696_v27, %v20361_v7 }
 0xbfd   :  { %v10938_v6 = vrot.slane %v10693_v12, %v20361_v7 }
 0xbff   :  { %v11028_v59 = vsel %vm1893_vm5, %v10938_v6, %v11027_v38  ;;  %v10702_v43 = vpop.permute.xlu0 %10701 }
 0xc00   :  { %v10699_v49 = vpop.permute.xlu1 %10698  ;;  %v10950_v25 = vrot.slane %v10702_v43, %v20361_v7  ;;  %v11029_v37 = vsel %vm1895_vm6, %v10942_v3, %v11028_v59 }
 0xc01   :  { %v10946_v63 = vrot.slane %v10699_v49, %v20361_v7 }
 0xc03   :  { %v10708_v10 = vpop.permute.xlu0 %10707  ;;  %v11030_v14 = vsel %vm1897_vm7, %v10946_v63, %v11029_v37 }
 0xc04   :  { %v10705_v24 = vpop.permute.xlu1 %10704  ;;  %v11031_v60 = vsel %vm1899_vm8, %v10950_v25, %v11030_v14  ;;  %v10958_v47 = vrot.slane %v10708_v10, %v20361_v7 }
 0xc05   :  { %v11065_v1 = vsel %vm1958_vm9, %v11031_v60, 0.0  ;;  %v10954_v31 = vrot.slane %v10705_v24, %v20361_v7 }
 0xc06   :  { %11066 = vadd.xlane.f32.xlu0 %v11065_v1 }
 0xc07   :  { %v10714_v20 = vpop.permute.xlu0 %10713  ;;  %v11032_v27 = vsel %vm1887_vm2, %v10958_v47, %v10954_v31 }
 0xc08   :  { %v10711_v34 = vpop.permute.xlu1 %10710  ;;  %v10966_v12 = vrot.slane %v10714_v20, %v20361_v7 }
 0xc09   :  { %v10962_v26 = vrot.slane %v10711_v34, %v20361_v7 }
 0xc0b   :  { %v11033_v6 = vsel %vm1889_vm3, %v10962_v26, %v11032_v27  ;;  %v10720_v38 = vpop.permute.xlu0 %10719 }
 0xc0c   :  { %v10717_v3 = vpop.permute.xlu1 %10716  ;;  %v11034_v43 = vsel %vm1891_vm4, %v10966_v12, %v11033_v6  ;;  %v10974_v49 = vrot.slane %v10720_v38, %v20361_v7 }
 0xc0d   :  { %v10970_v59 = vrot.slane %v10717_v3, %v20361_v7 }
 0xc0f   :  { %v11035_v25 = vsel %vm1893_vm5, %v10970_v59, %v11034_v43  ;;  %v10726_v63 = vpop.permute.xlu0 %10725 }
 0xc10   :  { %v10723_v37 = vpop.permute.xlu1 %10722  ;;  %v10982_v10 = vrot.slane %v10726_v63, %v20361_v7  ;;  %v11036_v24 = vsel %vm1895_vm6, %v10974_v49, %v11035_v25 }
 0xc11   :  { %v10978_v14 = vrot.slane %v10723_v37, %v20361_v7 }
 0xc13   :  { %v11037_v60 = vsel %vm1897_vm7, %v10978_v14, %v11036_v24 }
 0xc14   :  { %v11038_v1 = vsel %vm1899_vm8, %v10982_v10, %v11037_v60 }
 0xc15   :  { %v11068_v31 = vsel %vm1958_vm9, %v11038_v1, 0.0 }
 0xc16   :  { %11069 = vadd.xlane.f32.xlu1 %v11068_v31 }
 0xc42   :  { %v11049_v47 = vpop.xlane.xlu1 %11048 }
 0xc43   :  { %v11082_v20 = vrot.slane %v11049_v47, %v14032_v30  ;;  %v11086_v34 = vrot.slane %v11049_v47, %v20299_v62  ;;  %v11094_v26 = vrot.slane %v11049_v47, %v20301_v0  ;;  %v11090_v27 = vrot.slane %v11049_v47, %v20300_v21  ;;  %v11052_v38 = vpop.xlane.xlu0 %11051 }
 0xc44   :  { %v11102_v7 = vrot.slane %v11049_v47, %v20302_v9  ;;  %v11098_v12 = vrot.slane %v11049_v47, %v20303_v23  ;;  %v11110_v6 = vrot.slane %v11049_v47, %v20304_v56  ;;  %v11106_v3 = vrot.slane %v11049_v47, %v20305_v61 }
 0xc45   :  { %13383 = vrcp.f32 %v11082_v20  ;;  %v11118_v43 = vrot.slane %v11052_v38, %v20299_v62  ;;  %v11114_v63 = vrot.slane %v11052_v38, %v14032_v30  ;;  %v11126_v24 = vrot.slane %v11052_v38, %v20301_v0 }
 0xc46   :  { %13385 = vrcp.f32 %v11086_v34  ;;  %v11122_v1 = vrot.slane %v11052_v38, %v20300_v21  ;;  %v11130_v34 = vrot.slane %v11052_v38, %v20303_v23 }
 0xc47   :  { %13387 = vrcp.f32 %v11094_v26 }
 0xc48   :  { %13389 = vrcp.f32 %v11090_v27 }
 0xc49   :  { %13391 = vrcp.f32 %v11102_v7 }
 0xc4a   :  { %13393 = vrcp.f32 %v11098_v12 }
 0xc4b   :  { %13395 = vrcp.f32 %v11110_v6  ;;  %v11138_v6 = vrot.slane %v11052_v38, %v20305_v61 }
 0xc4c   :  { %13397 = vrcp.f32 %v11106_v3 }
 0xc4d   :  { %13399 = vrcp.f32 %v11118_v43 }
 0xc4e   :  { %13401 = vrcp.f32 %v11114_v63 }
 0xc4f   :  { %v13384_v59 = vpop.eup %13383  ;;  %13403 = vrcp.f32 %v11126_v24 }
 0xc50   :  { %v13386_v49 = vpop.eup %13385  ;;  %v11400_v25 = vmul.f32 %v13384_v59, %v18414_v54  ;;  %13405 = vrcp.f32 %v11122_v1 }
 0xc51   :  { %v13388_v37 = vpop.eup %13387  ;;  %v11402_v10 = vmul.f32 %v13386_v49, %v18416_v58  ;;  %v11134_v58 = vrot.slane %v11052_v38, %v20302_v9 }
 0xc52   :  { %v13390_v14 = vpop.eup %13389  ;;  %11529 = vperm.xlu0 %12565, %v11400_v25   ;;  %v11406_v60 = vmul.f32 %v13388_v37, %v18424_v44 }
 0xc53   :  { %11534 = vperm.xlu1 %12566, %v11402_v10   ;;  %v13392_v31 = vpop.eup %13391  ;;  %v11404_v54 = vmul.f32 %v13390_v14, %v18426_v32  ;;  %13407 = vrcp.f32 %v11134_v58  ;;  %v11142_v32 = vrot.slane %v11052_v38, %v20304_v56  ;;  %v11055_v7 = vpop.xlane.xlu0 %11054 }
 0xc54   :  { %v13394_v47 = vpop.eup %13393  ;;  %v11410_v20 = vmul.f32 %v13392_v31, %v18434_v51  ;;  %13409 = vrcp.f32 %v11130_v34  ;;  %v11146_v49 = vrot.slane %v11055_v7, %v14032_v30  ;;  %v11154_v37 = vrot.slane %v11055_v7, %v20300_v21 }
 0xc55   :  { %v13396_v26 = vpop.eup %13395  ;;  %v11408_v44 = vmul.f32 %v13394_v47, %v18436_v40  ;;  %13411 = vrcp.f32 %v11142_v32  ;;  %v11150_v40 = vrot.slane %v11055_v7, %v20299_v62  ;;  %v11170_v58 = vrot.slane %v11055_v7, %v20305_v61 }
 0xc56   :  { %11544 = vperm.xlu0 %12565, %v11406_v60   ;;  %v13398_v27 = vpop.eup %13397  ;;  %v11414_v12 = vmul.f32 %v13396_v26, %v18444_v19  ;;  %13413 = vrcp.f32 %v11138_v6  ;;  %v11162_v60 = vrot.slane %v11055_v7, %v20303_v23 }
 0xc57   :  { %11539 = vperm.xlu1 %12566, %v11404_v54   ;;  %v13400_v3 = vpop.eup %13399  ;;  %v11412_v51 = vmul.f32 %v13398_v27, %v18446_v17  ;;  %13415 = vrcp.f32 %v11150_v40  ;;  %v11158_v17 = vrot.slane %v11055_v7, %v20301_v0 }
 0xc58   :  { %v13402_v59 = vpop.eup %13401  ;;  %v11418_v43 = vmul.f32 %v13400_v3, %v18454_v41  ;;  %13417 = vrcp.f32 %v11146_v49 }
 0xc59   :  { %v13404_v25 = vpop.eup %13403  ;;  %v11416_v19 = vmul.f32 %v13402_v59, %v18456_v36  ;;  %13419 = vrcp.f32 %v11158_v17  ;;  %v11166_v36 = vrot.slane %v11055_v7, %v20302_v9 }
 0xc5a   :  { %11554 = vperm.xlu0 %12565, %v11410_v20   ;;  %v13406_v63 = vpop.eup %13405  ;;  %v11422_v38 = vmul.f32 %v13404_v25, %v18464_v18  ;;  %13421 = vrcp.f32 %v11154_v37 }
 0xc5b   :  { %11549 = vperm.xlu1 %12566, %v11408_v44   ;;  %v11420_v41 = vmul.f32 %v13406_v63, %v18466_v33  ;;  %13423 = vrcp.f32 %v11166_v36  ;;  %v11174_v33 = vrot.slane %v11055_v7, %v20304_v56 }
 0xc5c   :  { %13425 = vrcp.f32 %v11162_v60 }
 0xc5d   :  { %v13408_v10 = vpop.eup %13407  ;;  %13427 = vrcp.f32 %v11174_v33 }
 0xc5e   :  { %11564 = vperm.xlu0 %12565, %v11414_v12   ;;  %v13410_v14 = vpop.eup %13409  ;;  %v11426_v24 = vmul.f32 %v13408_v10, %v18474_v2  ;;  %13429 = vrcp.f32 %v11170_v58 }
 0xc5f   :  { %11559 = vperm.xlu1 %12566, %v11412_v51   ;;  %v13412_v1 = vpop.eup %13411  ;;  %v11424_v18 = vmul.f32 %v13410_v14, %v18476_v42 }
 0xc60   :  { %v13414_v31 = vpop.eup %13413  ;;  %v11430_v47 = vmul.f32 %v13412_v1, %v18484_v55 }
 0xc61   :  { %v13416_v2 = vpop.eup %13415  ;;  %v11428_v20 = vmul.f32 %v13414_v31, %v18486_v45 }
 0xc62   :  { %11574 = vperm.xlu0 %12565, %v11418_v43   ;;  %v13418_v34 = vpop.eup %13417  ;;  %v11434_v26 = vmul.f32 %v13416_v2, %v18494_v57 }
 0xc63   :  { %11569 = vperm.xlu1 %12566, %v11416_v19   ;;  %v18877_v54 = vpop.xlane.xlu1 %11057  ;;  %v13420_v55 = vpop.eup %13419  ;;  %v11432_v27 = vmul.f32 %v13418_v34, %v18496_v8 }
 0xc64   :  { %v11182_v42 = vrot.slane %v18877_v54, %v20299_v62  ;;  %v11178_v44 = vrot.slane %v18877_v54, %v14032_v30  ;;  %v13422_v32 = vpop.eup %13421  ;;  %v11438_v7 = vmul.f32 %v13420_v55, %v18504_v52  ;;  %v11186_v12 = vrot.slane %v18877_v54, %v20300_v21 }
 0xc65   :  { %v13424_v6 = vpop.eup %13423  ;;  %v11436_v3 = vmul.f32 %v13422_v32, %v18506_v15 }
 0xc66   :  { %11584 = vperm.xlu0 %12565, %v11422_v38   ;;  %13431 = vrcp.f32 %v11182_v42  ;;  %v13426_v51 = vpop.eup %13425  ;;  %v11442_v8 = vmul.f32 %v13424_v6, %v18514_v48  ;;  %v20362_v48 = vld [vmem:[#allocation80_spill] sm:$0xff] }
 0xc67   :  { %11579 = vperm.xlu1 %12566, %v11420_v41   ;;  %13433 = vrcp.f32 %v11178_v44  ;;  %v13428_v59 = vpop.eup %13427  ;;  %v11440_v40 = vmul.f32 %v13426_v51, %v18516_v22 }
 0xc68   :  { %v13430_v43 = vpop.eup %13429  ;;  %v11446_v49 = vmul.f32 %v13428_v59, %v18524_v13 }
 0xc69   :  { %v11444_v25 = vmul.f32 %v13430_v43, %v18526_v11 }
 0xc6a   :  { %11594 = vperm.xlu0 %12565, %v11426_v24  }
 0xc6b   :  { %11589 = vperm.xlu1 %12566, %v11424_v18  }
 0xc6e   :  { %11604 = vperm.xlu0 %12565, %v11430_v47  }
 0xc6f   :  { %11599 = vperm.xlu1 %12566, %v11428_v20  }
 0xc70   :  { %v13432_v15 = vpop.eup %13431 }
 0xc71   :  { %v13434_v19 = vpop.eup %13433  ;;  %v11450_v63 = vmul.f32 %v13432_v15, %v20362_v48 }
 0xc72   :  { %11614 = vperm.xlu0 %12565, %v11434_v26   ;;  %v11448_v38 = vmul.f32 %v13434_v19, %v18536_v29  ;;  %v20367_v19 = vld [vmem:[#allocation107_spill] sm:$0xff] }
 0xc73   :  { %11609 = vperm.xlu1 %12566, %v11432_v27   ;;  %v18888_v45 = vpop.xlane.xlu0 %11060 }
 0xc74   :  { %v11210_v57 = vrot.slane %v18888_v45, %v14032_v30  ;;  %v11214_v52 = vrot.slane %v18888_v45, %v20299_v62  ;;  %v11218_v20 = vrot.slane %v18888_v45, %v20300_v21 }
 0xc76   :  { %11624 = vperm.xlu0 %12565, %v11438_v7   ;;  %13435 = vrcp.f32 %v11210_v57  ;;  %v11194_v7 = vrot.slane %v18877_v54, %v20303_v23 }
 0xc77   :  { %11619 = vperm.xlu1 %12566, %v11436_v3   ;;  %13437 = vrcp.f32 %v11186_v12  ;;  %v20363_v12 = vld [vmem:[#allocation97_spill] sm:$0xff]  ;;  %v20364_v3 = vld [vmem:[#allocation83_spill] sm:$0xff] }
 0xc78   :  { %13439 = vrcp.f32 %v11214_v52  ;;  %v20365_v52 = vld [vmem:[#allocation85_spill] sm:$0xff] }
 0xc7a   :  { %11634 = vperm.xlu0 %12565, %v11442_v8  }
 0xc7b   :  { %11629 = vperm.xlu1 %12566, %v11440_v40   ;;  %v11226_v40 = vrot.slane %v18888_v45, %v20303_v23 }
 0xc7e   :  { %11644 = vperm.xlu0 %12565, %v11446_v49   ;;  %v20366_v49 = vld [vmem:[#allocation102_spill] sm:$0xff] }
 0xc7f   :  { %11639 = vperm.xlu1 %12566, %v11444_v25  }
 0xc80   :  { %v13436_v17 = vpop.eup %13435 }
 0xc81   :  { %v13438_v37 = vpop.eup %13437  ;;  %v11464_v10 = vmul.f32 %v13436_v17, %v18576_v28 }
 0xc82   :  { %11654 = vperm.xlu0 %12565, %v11450_v63   ;;  %v11452_v41 = vmul.f32 %v13438_v37, %v18546_v4  ;;  %v13440_v14 = vpop.eup %13439 }
 0xc83   :  { %11649 = vperm.xlu1 %12566, %v11448_v38   ;;  %v18904_v22 = vpop.xlane.xlu1 %11063  ;;  %v11466_v29 = vmul.f32 %v13440_v14, %v18574_v5  ;;  %v20368_v38 = vld [vmem:[#allocation106_spill] sm:$0xff]  ;;  %v11198_v14 = vrot.slane %v18877_v54, %v20302_v9 }
 0xc84   :  { %v11246_v13 = vrot.slane %v18904_v22, %v20299_v62  ;;  %v11242_v11 = vrot.slane %v18904_v22, %v14032_v30  ;;  %v11250_v2 = vrot.slane %v18904_v22, %v20300_v21 }
 0xc86   :  { %11689 = vperm.xlu0 %12565, %v11464_v10   ;;  %13441 = vrcp.f32 %v11246_v13  ;;  %v11230_v13 = vrot.slane %v18888_v45, %v20302_v9 }
 0xc87   :  { %11659 = vperm.xlu1 %12566, %v11452_v41   ;;  %13443 = vrcp.f32 %v11242_v11  ;;  %v20369_v11 = vld [vmem:[#allocation103_spill] sm:$0xff] }
 0xc8b   :  { %11694 = vperm.xlu1 %12566, %v11466_v29  }
 0xc90   :  { %v13442_v36 = vpop.eup %13441 }
 0xc91   :  { %v13444_v24 = vpop.eup %13443  ;;  %v11482_v28 = vmul.f32 %v13442_v36, %v18614_v35  ;;  %v20370_v36 = vld [vmem:[#allocation3_spill] sm:$0xff] }
 0xc92   :  { %v11480_v60 = vmul.f32 %v13444_v24, %v18616_v46 }
 0xc93   :  { %11734 = vperm.xlu1 %12566, %v11482_v28   ;;  %v18915_v1 = vpop.xlane.xlu0 %11066 }
 0xc94   :  { %11729 = vperm.xlu0 %12565, %v11480_v60   ;;  %v11278_v4 = vrot.slane %v18915_v1, %v20299_v62  ;;  %v11274_v18 = vrot.slane %v18915_v1, %v14032_v30  ;;  %v11286_v42 = vrot.slane %v18915_v1, %v20301_v0  ;;  %v11290_v63 = vrot.slane %v18915_v1, %v20303_v23  ;;  %v20371_v60 = vld [vmem:[#allocation81_spill] sm:$0xff] }
 0xc95   :  { %v11294_v28 = vrot.slane %v18915_v1, %v20302_v9 }
 0xc96   :  { %13445 = vrcp.f32 %v11278_v4 }
 0xc97   :  { %13447 = vrcp.f32 %v11274_v18  ;;  %v11262_v18 = vrot.slane %v18904_v22, %v20302_v9 }
 0xca0   :  { %v13446_v5 = vpop.eup %13445 }
 0xca1   :  { %v13448_v31 = vpop.eup %13447  ;;  %v11498_v33 = vmul.f32 %v13446_v5, %v18654_v50  ;;  %v11282_v50 = vrot.slane %v18915_v1, %v20300_v21 }
 0xca2   :  { %v11496_v35 = vmul.f32 %v13448_v31, %v18656_v53  ;;  %v20372_v31 = vld [vmem:[#allocation112_spill] sm:$0xff] }
 0xca3   :  { %v18923_v47 = vpop.xlane.xlu1 %11069  ;;  %11774 = vperm.xlu1 %12566, %v11498_v33  }
 0xca4   :  { %11769 = vperm.xlu0 %12565, %v11496_v35   ;;  %v11310_v46 = vrot.slane %v18923_v47, %v20299_v62  ;;  %v11306_v58 = vrot.slane %v18923_v47, %v14032_v30  ;;  %v11314_v53 = vrot.slane %v18923_v47, %v20300_v21  ;;  %v11222_v30 = vrot.slane %v18888_v45, %v20301_v0 }
 0xca5   :  { %v11190_v62 = vrot.slane %v18877_v54, %v20301_v0  ;;  %v11254_v21 = vrot.slane %v18904_v22, %v20301_v0  ;;  %v11322_v25 = vrot.slane %v18923_v47, %v20303_v23 }
 0xca6   :  { %13449 = vrcp.f32 %v11310_v46  ;;  %v11202_v46 = vrot.slane %v18877_v54, %v20305_v61 }
 0xca7   :  { %13451 = vrcp.f32 %v11306_v58  ;;  %v20373_v58 = vld [vmem:[#allocation99_spill] sm:$0xff] }
 0xca8   :  { %13453 = vrcp.f32 %v11250_v2 }
 0xca9   :  { %13455 = vrcp.f32 %v11218_v20  ;;  %v11326_v20 = vrot.slane %v18923_v47, %v20302_v9  ;;  %v11206_v9 = vrot.slane %v18877_v54, %v20304_v56 }
 0xcaa   :  { %13457 = vrcp.f32 %v11314_v53 }
 0xcab   :  { %13459 = vrcp.f32 %v11282_v50  ;;  %v20374_v50 = vld [vmem:[#allocation113_spill] sm:$0xff] }
 0xcac   :  { %13461 = vrcp.f32 %v11222_v30 }
 0xcad   :  { %13463 = vrcp.f32 %v11190_v62 }
 0xcae   :  { %13465 = vrcp.f32 %v11286_v42  ;;  %v20375_v42 = vld [vmem:[#allocation114_spill] sm:$0xff] }
 0xcaf   :  { %13467 = vrcp.f32 %v11254_v21 }
 0xcb0   :  { %v13450_v34 = vpop.eup %13449  ;;  %13469 = vrcp.f32 %v11194_v7  ;;  %v11330_v7 = vrot.slane %v18923_v47, %v20305_v61 }
 0xcb1   :  { %v13452_v26 = vpop.eup %13451  ;;  %v11514_v44 = vmul.f32 %v13450_v34, %v18688_v39  ;;  %v11318_v39 = vrot.slane %v18923_v47, %v20301_v0  ;;  %v11266_v34 = vrot.slane %v18904_v22, %v20305_v61 }
 0xcb2   :  { %v13454_v55 = vpop.eup %13453  ;;  %v11512_v27 = vmul.f32 %v13452_v26, %v18690_v16  ;;  %v11258_v16 = vrot.slane %v18904_v22, %v20303_v23 }
 0xcb3   :  { %v13456_v32 = vpop.eup %13455  ;;  %11814 = vperm.xlu1 %12566, %v11514_v44   ;;  %v11484_v57 = vmul.f32 %v13454_v55, %v20363_v12  ;;  %13471 = vrcp.f32 %v11318_v39  ;;  %v11234_v44 = vrot.slane %v18888_v45, %v20305_v61  ;;  %v20376_v55 = vld [vmem:[#allocation78_spill] sm:$0xff]  ;;  %v11298_v12 = vrot.slane %v18915_v1, %v20305_v61  ;;  %v20377_v39 = vld [vmem:[#allocation84_spill] sm:$0xff] }
 0xcb4   :  { %11809 = vperm.xlu0 %12565, %v11512_v27   ;;  %v13458_v6 = vpop.eup %13457  ;;  %v11468_v51 = vmul.f32 %v13456_v32, %v20364_v3  ;;  %13473 = vrcp.f32 %v11258_v16  ;;  %v11270_v61 = vrot.slane %v18904_v22, %v20304_v56  ;;  %v20382_v22 = vld [vmem:[#allocation8_spill] sm:$0xff] }
 0xcb5   :  { %v13460_v8 = vpop.eup %13459  ;;  %v11516_v59 = vmul.f32 %v13458_v6, %v20365_v52  ;;  %13475 = vrcp.f32 %v11226_v40  ;;  %v20379_v52 = vld [vmem:[#allocation76_spill] sm:$0xff] }
 0xcb6   :  { %v13462_v43 = vpop.eup %13461  ;;  %v11500_v15 = vmul.f32 %v13460_v8, %v20366_v49  ;;  %13477 = vrcp.f32 %v11322_v25  ;;  %v20378_v8 = vld [vmem:[#allocation6_spill] sm:$0xff] }
 0xcb7   :  { %11739 = vperm.xlu1 %12566, %v11484_v57   ;;  %v13464_v0 = vpop.eup %13463  ;;  %v11470_v48 = vmul.f32 %v13462_v43, %v20367_v19  ;;  %13479 = vrcp.f32 %v11290_v63  ;;  %v20380_v43 = vld [vmem:[#allocation5_spill] sm:$0xff]  ;;  %v20381_v63 = vld [vmem:[#allocation86_spill] sm:$0xff] }
 0xcb8   :  { %11699 = vperm.xlu0 %12565, %v11468_v51   ;;  %v13466_v17 = vpop.eup %13465  ;;  %v11454_v37 = vmul.f32 %v13464_v0, %v20368_v38  ;;  %13481 = vrcp.f32 %v11230_v13  ;;  %v11302_v0 = vrot.slane %v18915_v1, %v20304_v56  ;;  %v11334_v38 = vrot.slane %v18923_v47, %v20304_v56  ;;  %v20384_v1 = vld [vmem:[#allocation10_spill] sm:$0xff] }
 0xcb9   :  { %v13468_v10 = vpop.eup %13467  ;;  %v11502_v41 = vmul.f32 %v13466_v17, %v20369_v11  ;;  %13483 = vrcp.f32 %v11198_v14  ;;  %v20383_v11 = vld [vmem:[#allocation98_spill] sm:$0xff] }
 0xcba   :  { %v13470_v29 = vpop.eup %13469  ;;  %v11486_v24 = vmul.f32 %v13468_v10, %v20370_v36  ;;  %13485 = vrcp.f32 %v11294_v28  ;;  %v20385_v28 = vld [vmem:[#allocation82_spill] sm:$0xff] }
 0xcbb   :  { %11819 = vperm.xlu1 %12566, %v11516_v59   ;;  %v11456_v4 = vmul.f32 %v13470_v29, %v20371_v60  ;;  %13487 = vrcp.f32 %v11262_v18  ;;  %v11238_v59 = vrot.slane %v18888_v45, %v20304_v56 }
 0xcbc   :  { %11779 = vperm.xlu0 %12565, %v11500_v15   ;;  %13489 = vrcp.f32 %v11202_v46  ;;  %v20386_v46 = vld [vmem:[#allocation12_spill] sm:$0xff] }
 0xcbd   :  { %v13472_v23 = vpop.eup %13471  ;;  %13491 = vrcp.f32 %v11326_v20 }
 0xcbe   :  { %v13474_v5 = vpop.eup %13473  ;;  %v11518_v33 = vmul.f32 %v13472_v23, %v20372_v31  ;;  %13493 = vrcp.f32 %v11266_v34 }
 0xcbf   :  { %11704 = vperm.xlu1 %12566, %v11470_v48   ;;  %v13476_v35 = vpop.eup %13475  ;;  %v11488_v2 = vmul.f32 %v13474_v5, %v20373_v58  ;;  %13495 = vrcp.f32 %v11234_v44 }
 0xcc0   :  { %11664 = vperm.xlu0 %12565, %v11454_v37   ;;  %v13478_v53 = vpop.eup %13477  ;;  %v11472_v30 = vmul.f32 %v13476_v35, %v20374_v50  ;;  %13497 = vrcp.f32 %v11206_v9 }
 0xcc1   :  { %v13480_v62 = vpop.eup %13479  ;;  %v11520_v26 = vmul.f32 %v13478_v53, %v20375_v42  ;;  %13499 = vrcp.f32 %v11330_v7  ;;  %v20389_v7 = vld [vmem:[#allocation100_spill] sm:$0xff] }
 0xcc2   :  { %v13482_v21 = vpop.eup %13481  ;;  %v11504_v27 = vmul.f32 %v13480_v62, %v20376_v55  ;;  %13501 = vrcp.f32 %v11298_v12 }
 0xcc3   :  { %11784 = vperm.xlu1 %12566, %v11502_v41   ;;  %v13484_v32 = vpop.eup %13483  ;;  %v11474_v6 = vmul.f32 %v13482_v21, %v20377_v39  ;;  %13503 = vrcp.f32 %v11238_v59  ;;  %v20392_v59 = vld [vmem:[#allocation19_spill] sm:$0xff] }
 0xcc4   :  { %11744 = vperm.xlu0 %12565, %v11486_v24   ;;  %v13486_v3 = vpop.eup %13485  ;;  %v11458_v54 = vmul.f32 %v13484_v32, %v20379_v52  ;;  %13505 = vrcp.f32 %v11270_v61  ;;  %v20393_v61 = vld [vmem:[#allocation90_spill] sm:$0xff] }
 0xcc5   :  { %v13488_v40 = vpop.eup %13487  ;;  %v11506_v17 = vmul.f32 %v13486_v3, %v20381_v63  ;;  %13507 = vrcp.f32 %v11302_v0 }
 0xcc6   :  { %v13490_v25 = vpop.eup %13489  ;;  %v11490_v41 = vmul.f32 %v13488_v40, %v20383_v11  ;;  %13509 = vrcp.f32 %v11334_v38 }
 0xcc7   :  { %11669 = vperm.xlu1 %12566, %v11456_v4   ;;  %v13492_v14 = vpop.eup %13491  ;;  %v11460_v60 = vmul.f32 %v13490_v25, %v20385_v28  ;;  %v20397_v28 = vld [vmem:[#allocation9_spill] sm:$0xff] }
 0xcc8   :  { %11824 = vperm.xlu0 %12565, %v11518_v33   ;;  %v13494_v5 = vpop.eup %13493 }
 0xcc9   :  { %v13496_v53 = vpop.eup %13495  ;;  %v11492_v12 = vmul.f32 %v13494_v5, %v20389_v7  ;;  %v20402_v7 = vld [vmem:[#allocation15_spill] sm:$0xff] }
 0xcca   :  { %v13498_v34 = vpop.eup %13497 }
 0xccb   :  { %11749 = vperm.xlu1 %12566, %v11488_v2   ;;  %v20387_v2 = vld [vmem:[#allocation116_spill] sm:$0xff]  ;;  %v13500_v21 = vpop.eup %13499 }
 0xccc   :  { %11709 = vperm.xlu0 %12565, %v11472_v30   ;;  %v11522_v20 = vmul.f32 %v13492_v14, %v20387_v2  ;;  %v20388_v30 = vld [vmem:[#allocation13_spill] sm:$0xff]  ;;  %v20395_v14 = vld [vmem:[#allocation11_spill] sm:$0xff] }
 0xccf   :  { %11829 = vperm.xlu1 %12566, %v11520_v26  }
 0xcd0   :  { %11789 = vperm.xlu0 %12565, %v11504_v27  }
 0xcd1   :  { %v11530_v57 = vpop.permute.xlu0 %11529 }
 0xcd2   :  { %v11535_v51 = vpop.permute.xlu1 %11534  ;;  %v11847_v16 = vmul.f32 %v11530_v57, %v20378_v8  ;;  %v13502_v57 = vpop.eup %13501 }
 0xcd3   :  { %v11848_v49 = vmul.f32 %v11535_v51, %v20380_v43  ;;  %11714 = vperm.xlu1 %12566, %v11474_v6   ;;  %v20390_v51 = vld [vmem:[#allocation20_spill] sm:$0xff]  ;;  %v13504_v43 = vpop.eup %13503 }
 0xcd4   :  { %v11911_v15 = vsel %vm204_vm1, %v11847_v16, 0.0  ;;  %11674 = vperm.xlu0 %12565, %v11458_v54   ;;  %v20391_v16 = vld [vmem:[#allocation108_spill] sm:$0xff]  ;;  %v13506_v0 = vpop.eup %13505 }
 0xcd5   :  { %v11918_v19 = vsel %vm204_vm1, %v11848_v49, 0.0  ;;  %v11912_v45 = vrot.slane %v11911_v15, 4  ;;  %v11545_v48 = vpop.permute.xlu0 %11544  ;;  %v11476_v52 = vmul.f32 %v13496_v53, %v20391_v16 }
 0xcd6   :  { %v11919_v37 = vrot.slane %v11918_v19, 4  ;;  %v11540_v10 = vpop.permute.xlu1 %11539  ;;  %v11850_v13 = vmul.f32 %v11545_v48, %v20382_v22  ;;  %v20394_v22 = vld [vmem:[#allocation96_spill] sm:$0xff] }
 0xcd7   :  { %v11913_v29 = vadd.f32 %v11912_v45, %v11911_v15  ;;  %v11849_v36 = vmul.f32 %v11540_v10, %v20384_v1  ;;  %11794 = vperm.xlu1 %12566, %v11506_v17   ;;  %v11524_v15 = vmul.f32 %v13500_v21, %v20393_v61  ;;  %v13508_v17 = vpop.eup %13507  ;;  %v20396_v1 = vld [vmem:[#allocation77_spill] sm:$0xff] }
 0xcd8   :  { %v11920_v24 = vadd.f32 %v11919_v37, %v11918_v19  ;;  %v11932_v23 = vsel %vm204_vm1, %v11850_v13, 0.0  ;;  %11754 = vperm.xlu0 %12565, %v11490_v41   ;;  %v11508_v13 = vmul.f32 %v13502_v57, %v20394_v22  ;;  %v13510_v11 = vpop.eup %13509  ;;  %v20403_v57 = vld [vmem:[#allocation14_spill] sm:$0xff] }
 0xcd9   :  { %v11914_v56 = vrot.slane %v11913_v29, 2  ;;  %v11925_v47 = vsel %vm204_vm1, %v11849_v36, 0.0  ;;  %v11933_v4 = vrot.slane %v11932_v23, 4  ;;  %v11555_v18 = vpop.permute.xlu0 %11554  ;;  %v11462_v36 = vmul.f32 %v13498_v34, %v20396_v1 }
 0xcda   :  { %v11921_v31 = vrot.slane %v11920_v24, 2  ;;  %v11926_v33 = vrot.slane %v11925_v47, 4  ;;  %v11550_v35 = vpop.permute.xlu1 %11549  ;;  %v11852_v58 = vmul.f32 %v11555_v18, %v20386_v46 }
 0xcdb   :  { %v11934_v50 = vadd.f32 %v11933_v4, %v11932_v23  ;;  %v11851_v62 = vmul.f32 %v11550_v35, %v20388_v30  ;;  %11679 = vperm.xlu1 %12566, %v11460_v60   ;;  %v11915_v42 = vadd.f32 %v11914_v56, %v11913_v29  ;;  %v20398_v56 = vld [vmem:[#allocation89_spill] sm:$0xff] }
 0xcdc   :  { %v11927_v26 = vadd.f32 %v11926_v33, %v11925_v47  ;;  %v11946_v44 = vsel %vm204_vm1, %v11852_v58, 0.0  ;;  %11834 = vperm.xlu0 %12565, %v11522_v20   ;;  %v11922_v55 = vadd.f32 %v11921_v31, %v11920_v24  ;;  %v11478_v47 = vmul.f32 %v13504_v43, %v20398_v56  ;;  %v20399_v20 = vld [vmem:[#allocation101_spill] sm:$0xff] }
 0xcdd   :  { %v11935_v27 = vrot.slane %v11934_v50, 2  ;;  %v11939_v9 = vsel %vm204_vm1, %v11851_v62, 0.0  ;;  %v11565_v32 = vpop.permute.xlu0 %11564  ;;  %v11947_v6 = vrot.slane %v11946_v44, 4  ;;  %v11916_v49 = vrot.slane %v11915_v42, 1  ;;  %v20400_v62 = vld [vmem:[#allocation88_spill] sm:$0xff]  ;;  %v20404_v43 = vld [vmem:[#allocation17_spill] sm:$0xff] }
 0xcde   :  { %v11940_v39 = vrot.slane %v11939_v9, 4  ;;  %v11560_v3 = vpop.permute.xlu1 %11559  ;;  %v11854_v8 = vmul.f32 %v11565_v32, %v20390_v51  ;;  %v11928_v54 = vrot.slane %v11927_v26, 2  ;;  %v11923_v25 = vrot.slane %v11922_v55, 1 }
 0xcdf   :  { %v11853_v40 = vmul.f32 %v11560_v3, %v20392_v59  ;;  %11759 = vperm.xlu1 %12566, %v11492_v12   ;;  %v11936_v19 = vadd.f32 %v11935_v27, %v11934_v50  ;;  %v11948_v37 = vadd.f32 %v11947_v6, %v11946_v44  ;;  %v11917_v18 = vadd.f32 %v11916_v49, %v11915_v42 }
 0xce0   :  { %11719 = vperm.xlu0 %12565, %v11476_v52   ;;  %v11960_v48 = vsel %vm204_vm1, %v11854_v8, 0.0  ;;  %v11941_v38 = vadd.f32 %v11940_v39, %v11939_v9  ;;  %v11929_v41 = vadd.f32 %v11928_v54, %v11927_v26  ;;  %v11924_v4 = vadd.f32 %v11923_v25, %v11922_v55  ;;  %v20401_v26 = vld [vmem:[#allocation87_spill] sm:$0xff] }
 0xce1   :  { %v11953_v45 = vsel %vm204_vm1, %v11853_v40, 0.0  ;;  %v11575_v63 = vpop.permute.xlu0 %11574  ;;  %v11961_v23 = vrot.slane %v11960_v48, 4  ;;  %v11937_v5 = vrot.slane %v11936_v19, 1  ;;  %v11949_v46 = vrot.slane %v11948_v37, 2 }
 0xce2   :  { %v11570_v10 = vpop.permute.xlu1 %11569  ;;  %v11954_v24 = vrot.slane %v11953_v45, 4  ;;  %v11856_v60 = vmul.f32 %v11575_v63, %v20397_v28  ;;  %v11942_v35 = vrot.slane %v11941_v38, 2  ;;  %v11494_v53 = vmul.f32 %v13506_v0, %v20399_v20  ;;  %v20405_v63 = vld [vmem:[#allocation16_spill] sm:$0xff] }
 0xce3   :  { %v11855_v29 = vmul.f32 %v11570_v10, %v20395_v14  ;;  %11839 = vperm.xlu1 %12566, %v11524_v15   ;;  %v11930_v50 = vrot.slane %v11929_v41, 1  ;;  %v11510_v34 = vmul.f32 %v13508_v17, %v20400_v62  ;;  %v11526_v44 = vmul.f32 %v13510_v11, %v20401_v26 }
 0xce4   :  { %11799 = vperm.xlu0 %12565, %v11508_v13   ;;  %v11974_v30 = vsel %vm204_vm1, %v11856_v60, 0.0  ;;  %v11955_v21 = vadd.f32 %v11954_v24, %v11953_v45  ;;  %v11962_v42 = vadd.f32 %v11961_v23, %v11960_v48  ;;  %v12423_v9 = vsel %vm1887_vm2, %v11924_v4, %v11917_v18 }
 0xce5   :  { %v11967_v31 = vsel %vm204_vm1, %v11855_v29, 0.0  ;;  %v11585_v33 = vpop.permute.xlu0 %11584  ;;  %v11975_v27 = vrot.slane %v11974_v30, 4  ;;  %v19039_v32 = vadd.f32 %v11937_v5, %v11936_v19  ;;  %v11943_v3 = vadd.f32 %v11942_v35, %v11941_v38  ;;  %v20406_v29 = vld [vmem:[#allocation21_spill] sm:$0xff] }
 0xce6   :  { %v11968_v58 = vrot.slane %v11967_v31, 4  ;;  %v11580_v2 = vpop.permute.xlu1 %11579  ;;  %v11858_v39 = vmul.f32 %v11585_v33, %v20403_v57  ;;  %v19043_v51 = vadd.f32 %v11949_v46, %v11948_v37  ;;  %v11931_v54 = vadd.f32 %v11930_v50, %v11929_v41 }
 0xce7   :  { %11724 = vperm.xlu1 %12566, %v11478_v47   ;;  %v11857_v12 = vmul.f32 %v11580_v2, %v20402_v7  ;;  %v11976_v16 = vadd.f32 %v11975_v27, %v11974_v30  ;;  %v11956_v61 = vrot.slane %v11955_v21, 2  ;;  %v11963_v15 = vrot.slane %v11962_v42, 2  ;;  %v20408_v30 = vld [vmem:[#allocation24_spill] sm:$0xff] }
 0xce8   :  { %v11969_v55 = vadd.f32 %v11968_v58, %v11967_v31  ;;  %11684 = vperm.xlu0 %12565, %v11462_v36   ;;  %v11988_v40 = vsel %vm204_vm1, %v11858_v39, 0.0  ;;  %v11944_v37 = vrot.slane %v11943_v3, 1  ;;  %v20407_v36 = vld [vmem:[#allocation23_spill] sm:$0xff]  ;;  %v11951_v20 = vrot.slane %v19043_v51, 1 }
 0xce9   :  { %v11595_v6 = vpop.permute.xlu0 %11594  ;;  %v11981_v59 = vsel %vm204_vm1, %v11857_v12, 0.0  ;;  %v11977_v0 = vrot.slane %v11976_v16, 2  ;;  %v11989_v45 = vrot.slane %v11988_v40, 4  ;;  %v11957_v23 = vadd.f32 %v11956_v61, %v11955_v21 }
 0xcea   :  { %v11970_v8 = vrot.slane %v11969_v55, 2  ;;  %v11590_v52 = vpop.permute.xlu1 %11589  ;;  %v11982_v25 = vrot.slane %v11981_v59, 4  ;;  %v11860_v17 = vmul.f32 %v11595_v6, %v20405_v63  ;;  %v11964_v28 = vadd.f32 %v11963_v15, %v11962_v42 }
 0xceb   :  { %v11859_v49 = vmul.f32 %v11590_v52, %v20404_v43  ;;  %11804 = vperm.xlu1 %12566, %v11510_v34   ;;  %v11978_v10 = vadd.f32 %v11977_v0, %v11976_v16  ;;  %v11990_v41 = vadd.f32 %v11989_v45, %v11988_v40  ;;  %v12424_v34 = vsel %vm1889_vm3, %v11931_v54, %v12423_v9  ;;  %v20409_v9 = vld [vmem:[#allocation18_spill] sm:$0xff] }
 0xcec   :  { %11764 = vperm.xlu0 %12565, %v11494_v53   ;;  %v11971_v19 = vadd.f32 %v11970_v8, %v11969_v55  ;;  %v11983_v22 = vadd.f32 %v11982_v25, %v11981_v59  ;;  %v12002_v14 = vsel %vm204_vm1, %v11860_v17, 0.0  ;;  %v11945_v26 = vadd.f32 %v11944_v37, %v11943_v3 }
 0xced   :  { %v11995_v48 = vsel %vm204_vm1, %v11859_v49, 0.0  ;;  %v11605_v38 = vpop.permute.xlu0 %11604  ;;  %v11991_v4 = vrot.slane %v11990_v41, 2  ;;  %v12003_v18 = vrot.slane %v12002_v14, 4  ;;  %v11979_v33 = vrot.slane %v11978_v10, 1 }
 0xcee   :  { %v11996_v13 = vrot.slane %v11995_v48, 4  ;;  %v11600_v11 = vpop.permute.xlu1 %11599  ;;  %v11862_v24 = vmul.f32 %v11605_v38, %v20407_v36  ;;  %v11984_v60 = vrot.slane %v11983_v22, 2  ;;  %v11972_v47 = vrot.slane %v11971_v19, 1 }
 0xcef   :  { %v11861_v1 = vmul.f32 %v11600_v11, %v20406_v29  ;;  %v11992_v53 = vadd.f32 %v11991_v4, %v11990_v41  ;;  %v12004_v21 = vadd.f32 %v12003_v18, %v12002_v14  ;;  %v11958_v42 = vrot.slane %v11957_v23, 1 }
 0xcf0   :  { %v11997_v56 = vadd.f32 %v11996_v13, %v11995_v48  ;;  %11844 = vperm.xlu0 %12565, %v11526_v44   ;;  %v11985_v35 = vadd.f32 %v11984_v60, %v11983_v22  ;;  %v12016_v58 = vsel %vm204_vm1, %v11862_v24, 0.0  ;;  %v11965_v44 = vrot.slane %v11964_v28, 1  ;;  %v20410_v22 = vld [vmem:[#allocation26_spill] sm:$0xff]  ;;  %v20411_v13 = vld [vmem:[#allocation25_spill] sm:$0xff]  ;;  %v20413_v60 = vld [vmem:[#allocation27_spill] sm:$0xff] }
 0xcf1   :  { %v12009_v5 = vsel %vm204_vm1, %v11861_v1, 0.0  ;;  %v11615_v31 = vpop.permute.xlu0 %11614  ;;  %v11973_v55 = vadd.f32 %v11972_v47, %v11971_v19  ;;  %v12017_v27 = vrot.slane %v12016_v58, 4  ;;  %v11980_v57 = vadd.f32 %v11979_v33, %v11978_v10  ;;  %v20412_v1 = vld [vmem:[#allocation28_spill] sm:$0xff] }
 0xcf2   :  { %v11998_v46 = vrot.slane %v11997_v56, 2  ;;  %v11610_v2 = vpop.permute.xlu1 %11609  ;;  %v12010_v50 = vrot.slane %v12009_v5, 4  ;;  %v11986_v39 = vrot.slane %v11985_v35, 1  ;;  %v12425_v52 = vsel %vm1891_vm4, %v19039_v32, %v12424_v34 }
 0xcf3   :  { %v11863_v62 = vmul.f32 %v11610_v2, %v20408_v30  ;;  %v11993_v59 = vrot.slane %v11992_v53, 1  ;;  %v11864_v3 = vmul.f32 %v11615_v31, %v20409_v9  ;;  %v12426_v54 = vsel %vm1893_vm5, %v11945_v26, %v12425_v52  ;;  %v20416_v52 = vld [vmem:[#allocation33_spill] sm:$0xff] }
 0xcf4   :  { %v11999_v6 = vadd.f32 %v11998_v46, %v11997_v56  ;;  %v12011_v40 = vadd.f32 %v12010_v50, %v12009_v5  ;;  %v11952_v43 = vadd.f32 %v11951_v20, %v19043_v51  ;;  %v12005_v49 = vrot.slane %v12004_v21, 2  ;;  %v20415_v20 = vld [vmem:[#allocation29_spill] sm:$0xff] }
 0xcf5   :  { %v12023_v7 = vsel %vm204_vm1, %v11863_v62, 0.0  ;;  %v11625_v12 = vpop.permute.xlu0 %11624  ;;  %v19064_v15 = vadd.f32 %v11958_v42, %v11957_v23  ;;  %v19066_v0 = vadd.f32 %v11965_v44, %v11964_v28  ;;  %v12018_v25 = vadd.f32 %v12017_v27, %v12016_v58  ;;  %v20414_v58 = vld [vmem:[#allocation30_spill] sm:$0xff] }
 0xcf6   :  { %v12024_v8 = vrot.slane %v12023_v7, 4  ;;  %v11620_v16 = vpop.permute.xlu1 %11619  ;;  %v12030_v19 = vsel %vm204_vm1, %v11864_v3, 0.0  ;;  %v12430_v32 = vsel %vm1887_vm2, %v11980_v57, %v11973_v55  ;;  %v11987_v48 = vadd.f32 %v11986_v39, %v11985_v35 }
 0xcf7   :  { %v12000_v63 = vrot.slane %v11999_v6, 1  ;;  %v12031_v17 = vrot.slane %v12030_v19, 4  ;;  %v11994_v37 = vadd.f32 %v11993_v59, %v11992_v53  ;;  %v12012_v10 = vrot.slane %v12011_v40, 2 }
 0xcf8   :  { %v12025_v61 = vadd.f32 %v12024_v8, %v12023_v7  ;;  %v11865_v51 = vmul.f32 %v11620_v16, %v20410_v22  ;;  %v11866_v11 = vmul.f32 %v11625_v12, %v20411_v13  ;;  %v12006_v41 = vadd.f32 %v12005_v49, %v12004_v21 }
 0xcf9   :  { %v11635_v45 = vpop.permute.xlu0 %11634  ;;  %v12032_v29 = vadd.f32 %v12031_v17, %v12030_v19  ;;  %v12019_v24 = vrot.slane %v12018_v25, 2  ;;  %v12431_v4 = vsel %vm1889_vm3, %v11987_v48, %v12430_v32  ;;  %v12013_v55 = vadd.f32 %v12012_v10, %v12011_v40 }
 0xcfa   :  { %v11630_v38 = vpop.permute.xlu1 %11629  ;;  %v12026_v14 = vrot.slane %v12025_v61, 2  ;;  %v12037_v23 = vsel %vm204_vm1, %v11865_v51, 0.0  ;;  %v12044_v28 = vsel %vm204_vm1, %v11866_v11, 0.0  ;;  %v11868_v56 = vmul.f32 %v11635_v45, %v20413_v60 }
 0xcfb   :  { %v11867_v36 = vmul.f32 %v11630_v38, %v20412_v1  ;;  %v12033_v18 = vrot.slane %v12032_v29, 2  ;;  %v12038_v5 = vrot.slane %v12037_v23, 4  ;;  %v12045_v31 = vrot.slane %v12044_v28, 4 }
 0xcfc   :  { %v12058_v46 = vsel %vm204_vm1, %v11868_v56, 0.0  ;;  %v12027_v50 = vadd.f32 %v12026_v14, %v12025_v61  ;;  %v12020_v27 = vadd.f32 %v12019_v24, %v12018_v25  ;;  %v12001_v9 = vadd.f32 %v12000_v63, %v11999_v6  ;;  %v20418_v56 = vld [vmem:[#allocation35_spill] sm:$0xff] }
 0xcfd   :  { %v11645_v47 = vpop.permute.xlu0 %11644  ;;  %v12051_v35 = vsel %vm204_vm1, %v11867_v36, 0.0  ;;  %v12034_v30 = vadd.f32 %v12033_v18, %v12032_v29  ;;  %v12039_v62 = vadd.f32 %v12038_v5, %v12037_v23  ;;  %v12046_v34 = vadd.f32 %v12045_v31, %v12044_v28 }
 0xcfe   :  { %v11640_v33 = vpop.permute.xlu1 %11639  ;;  %v11870_v53 = vmul.f32 %v11645_v47, %v20415_v20  ;;  %v12052_v26 = vrot.slane %v12051_v35, 4  ;;  %v12059_v44 = vrot.slane %v12058_v46, 4  ;;  %v12028_v3 = vrot.slane %v12027_v50, 1 }
 0xcff   :  { %v11869_v2 = vmul.f32 %v11640_v33, %v20414_v58  ;;  %v12040_v7 = vrot.slane %v12039_v62, 2  ;;  %v12047_v39 = vrot.slane %v12046_v34, 2  ;;  %v12427_v61 = vsel %vm1895_vm6, %v11952_v43, %v12426_v54  ;;  %v20417_v43 = vld [vmem:[#allocation31_spill] sm:$0xff] }
 0xd00   :  { %v12072_v42 = vsel %vm204_vm1, %v11870_v53, 0.0  ;;  %v12053_v8 = vadd.f32 %v12052_v26, %v12051_v35  ;;  %v12060_v49 = vadd.f32 %v12059_v44, %v12058_v46  ;;  %v12035_v19 = vrot.slane %v12034_v30, 1 }
 0xd01   :  { %v12065_v21 = vsel %vm204_vm1, %v11869_v2, 0.0  ;;  %v12073_v16 = vrot.slane %v12072_v42, 4  ;;  %v12041_v45 = vadd.f32 %v12040_v7, %v12039_v62  ;;  %v11655_v40 = vpop.permute.xlu0 %11654  ;;  %v12432_v25 = vsel %vm1891_vm4, %v11994_v37, %v12431_v4 }
 0xd02   :  { %v12066_v12 = vrot.slane %v12065_v21, 4  ;;  %v11650_v57 = vpop.permute.xlu1 %11649  ;;  %v12007_v17 = vrot.slane %v12006_v41, 1  ;;  %v12014_v38 = vrot.slane %v12013_v55, 1  ;;  %v12054_v10 = vrot.slane %v12053_v8, 2 }
 0xd03   :  { %v11871_v59 = vmul.f32 %v11650_v57, %v20416_v52  ;;  %v12021_v22 = vrot.slane %v12020_v27, 1  ;;  %v12048_v51 = vadd.f32 %v12047_v39, %v12046_v34  ;;  %v12074_v13 = vadd.f32 %v12073_v16, %v12072_v42 }
 0xd04   :  { %v12067_v32 = vadd.f32 %v12066_v12, %v12065_v21  ;;  %v12433_v63 = vsel %vm1893_vm5, %v12001_v9, %v12432_v25  ;;  %v12029_v14 = vadd.f32 %v12028_v3, %v12027_v50  ;;  %v12061_v54 = vrot.slane %v12060_v49, 2  ;;  %v20419_v3 = vld [vmem:[#allocation4_spill] sm:$0xff] }
 0xd05   :  { %v12079_v48 = vsel %vm204_vm1, %v11871_v59, 0.0  ;;  %v11872_v29 = vmul.f32 %v11655_v40, %v20417_v43  ;;  %v12036_v1 = vadd.f32 %v12035_v19, %v12034_v30  ;;  %v12042_v36 = vrot.slane %v12041_v45, 1 }
 0xd06   :  { %v12080_v11 = vrot.slane %v12079_v48, 4  ;;  %v11660_v6 = vpop.permute.xlu1 %11659  ;;  %v12068_v24 = vrot.slane %v12067_v32, 2  ;;  %v12008_v28 = vadd.f32 %v12007_v17, %v12006_v41  ;;  %v12055_v37 = vadd.f32 %v12054_v10, %v12053_v8 }
 0xd07   :  { %v12086_v60 = vsel %vm204_vm1, %v11872_v29, 0.0  ;;  %v11873_v47 = vmul.f32 %v11660_v6, %v20418_v56  ;;  %v12015_v4 = vadd.f32 %v12014_v38, %v12013_v55  ;;  %v12022_v18 = vadd.f32 %v12021_v22, %v12020_v27  ;;  %v11690_v29 = vpop.permute.xlu0 %11689  ;;  %v20423_v56 = vld [vmem:[#allocation7_spill] sm:$0xff] }
 0xd08   :  { %v12081_v23 = vadd.f32 %v12080_v11, %v12079_v48  ;;  %v12049_v5 = vrot.slane %v12048_v51, 1  ;;  %v12075_v31 = vrot.slane %v12074_v13, 2  ;;  %v12062_v33 = vadd.f32 %v12061_v54, %v12060_v49 }
 0xd09   :  { %v12087_v46 = vrot.slane %v12086_v60, 4  ;;  %v12093_v58 = vsel %vm204_vm1, %v11873_v47, 0.0  ;;  %v12437_v2 = vsel %vm1887_vm2, %v12036_v1, %v12029_v14  ;;  %v12043_v20 = vadd.f32 %v12042_v36, %v12041_v45  ;;  %v20421_v36 = vld [vmem:[#allocation40_spill] sm:$0xff] }
 0xd0a   :  { %v12082_v35 = vrot.slane %v12081_v23, 2  ;;  %v12069_v53 = vadd.f32 %v12068_v24, %v12067_v32  ;;  %v12094_v50 = vrot.slane %v12093_v58, 4  ;;  %v12056_v41 = vrot.slane %v12055_v37, 1 }
 0xd0b   :  { %v12088_v62 = vadd.f32 %v12087_v46, %v12086_v60  ;;  %v12434_v34 = vsel %vm1895_vm6, %v12008_v28, %v12433_v63  ;;  %v12076_v26 = vadd.f32 %v12075_v31, %v12074_v13  ;;  %v12428_v42 = vsel %vm1897_vm7, %v19064_v15, %v12427_v61  ;;  %v20420_v61 = vld [vmem:[#allocation2_spill] sm:$0xff]  ;;  %v11695_v63 = vpop.permute.xlu1 %11694 }
 0xd0c   :  { %v12083_v30 = vadd.f32 %v12082_v35, %v12081_v23  ;;  %v12095_v44 = vadd.f32 %v12094_v50, %v12093_v58  ;;  %v12435_v21 = vsel %vm1897_vm7, %v12015_v4, %v12434_v34  ;;  %v12050_v55 = vadd.f32 %v12049_v5, %v12048_v51  ;;  %v20424_v35 = vld [vmem:[#allocation50_spill] sm:$0xff] }
 0xd0d   :  { %v12063_v27 = vrot.slane %v12062_v33, 1  ;;  %v12089_v12 = vrot.slane %v12088_v62, 2  ;;  %v12438_v57 = vsel %vm1889_vm3, %v12043_v20, %v12437_v2  ;;  %v12436_v8 = vsel %vm1899_vm8, %v12022_v18, %v12435_v21  ;;  %v20425_v20 = vld [vmem:[#allocation51_spill] sm:$0xff] }
 0xd0e   :  { %v12084_v7 = vrot.slane %v12083_v30, 1  ;;  %v12096_v39 = vrot.slane %v12095_v44, 2  ;;  %v12429_v16 = vsel %vm1899_vm8, %v19066_v0, %v12428_v42  ;;  %v12057_v52 = vadd.f32 %v12056_v41, %v12055_v37  ;;  %v20422_v37 = vld [vmem:[#allocation41_spill] sm:$0xff] }
 0xd0f   :  { %v12070_v59 = vrot.slane %v12069_v53, 1  ;;  %v12090_v9 = vadd.f32 %v12089_v12, %v12088_v62  ;;  %v19102_v49 = vadd.f32 %v12436_v8, %v20419_v3  ;;  %v12077_v19 = vrot.slane %v12076_v26, 1 }
 0xd10   :  { %v12097_v15 = vadd.f32 %v12096_v39, %v12095_v44  ;;  %v19105_v45 = vadd.f32 %v12429_v16, %v20420_v61  ;;  %v12085_v32 = vadd.f32 %v12084_v7, %v12083_v30  ;;  %v12439_v25 = vsel %vm1891_vm4, %v12050_v55, %v12438_v57 }
 0xd11   :  { %v12091_v48 = vrot.slane %v12090_v9, 1  ;;  %v12496_v40 = vmul.f32 %v19102_v49, %v19102_v49  ;;  %v12064_v17 = vadd.f32 %v12063_v27, %v12062_v33  ;;  %v12440_v10 = vsel %vm1893_vm5, %v12057_v52, %v12439_v25  ;;  %v20427_v27 = vld [vmem:[#allocation60_spill] sm:$0xff] }
 0xd12   :  { %v12098_v0 = vrot.slane %v12097_v15, 1  ;;  %v12495_v38 = vmul.f32 %v19105_v45, %v19105_v45  ;;  %v12071_v22 = vadd.f32 %v12070_v59, %v12069_v53  ;;  %v12078_v11 = vadd.f32 %v12077_v19, %v12076_v26  ;;  %v11735_v4 = vpop.permute.xlu1 %11734  ;;  %v20426_v26 = vld [vmem:[#allocation58_spill] sm:$0xff] }
 0xd13   :  { %v12092_v51 = vadd.f32 %v12091_v48, %v12090_v9  ;;  %v12506_v13 = vsel %vm91_vm0, %v12496_v40, 0.0  ;;  %v12441_v1 = vsel %vm1895_vm6, %v12064_v17, %v12440_v10  ;;  %v11880_v24 = vmul.f32 %v11695_v63, %v20421_v36  ;;  %v11730_v31 = vpop.permute.xlu0 %11729  ;;  %v20428_v10 = vld [vmem:[#allocation67_spill] sm:$0xff] }
 0xd14   :  { %v12099_v6 = vadd.f32 %v12098_v0, %v12097_v15  ;;  %12507 = vadd.xlane.f32.xlu0 %v12506_v13  ;;  %v12503_v14 = vsel %vm91_vm0, %v12495_v38, 0.0  ;;  %v12442_v23 = vsel %vm1897_vm7, %v12071_v22, %v12441_v1  ;;  %v11879_v60 = vmul.f32 %v11690_v29, %v20422_v37 }
 0xd15   :  { %v12444_v54 = vsel %vm1887_vm2, %v12092_v51, %v12085_v32  ;;  %12504 = vadd.xlane.f32.xlu1 %v12503_v14  ;;  %v12443_v28 = vsel %vm1899_vm8, %v12078_v11, %v12442_v23  ;;  %v12142_v18 = vsel %vm204_vm1, %v11880_v24, 0.0  ;;  %v11888_v46 = vmul.f32 %v11735_v4, %v20424_v35  ;;  %v20429_v11 = vld [vmem:[#allocation68_spill] sm:$0xff] }
 0xd16   :  { %v19117_v43 = vsel %vm1889_vm3, %v12099_v6, %v12444_v54  ;;  %v19125_v47 = vadd.f32 %v12443_v28, %v20423_v56  ;;  %v12135_v33 = vsel %vm204_vm1, %v11879_v60, 0.0  ;;  %v12143_v2 = vrot.slane %v12142_v18, 4  ;;  %v20430_v60 = vld [vmem:[#allocation53_spill] sm:$0xff] }
 0xd17   :  { %v11887_v53 = vmul.f32 %v11730_v31, %v20425_v20  ;;  %v12136_v41 = vrot.slane %v12135_v33, 4  ;;  %v12198_v30 = vsel %vm204_vm1, %v11888_v46, 0.0  ;;  %v20431_v31 = vld [vmem:[#allocation44_spill] sm:$0xff] }
 0xd18   :  { %v12497_v5 = vmul.f32 %v19125_v47, %v19125_v47  ;;  %v12144_v34 = vadd.f32 %v12143_v2, %v12142_v18  ;;  %v12199_v55 = vrot.slane %v12198_v30, 4 }
 0xd19   :  { %v12191_v21 = vsel %vm204_vm1, %v11887_v53, 0.0  ;;  %v12137_v42 = vadd.f32 %v12136_v41, %v12135_v33 }
 0xd1a   :  { %v12509_v58 = vsel %vm91_vm0, %v12497_v5, 0.0  ;;  %v12145_v12 = vrot.slane %v12144_v34, 2  ;;  %v12192_v57 = vrot.slane %v12191_v21, 4  ;;  %v12200_v16 = vadd.f32 %v12199_v55, %v12198_v30 }
 0xd1b   :  { %12510 = vadd.xlane.f32.xlu0 %v12509_v58  ;;  %v12138_v8 = vrot.slane %v12137_v42, 2 }
 0xd1c   :  { %v12146_v9 = vadd.f32 %v12145_v12, %v12144_v34  ;;  %v12193_v3 = vadd.f32 %v12192_v57, %v12191_v21  ;;  %v12201_v61 = vrot.slane %v12200_v16, 2  ;;  %v20433_v12 = vld [vmem:[#allocation62_spill] sm:$0xff] }
 0xd1d   :  { %v12139_v15 = vadd.f32 %v12138_v8, %v12137_v42 }
 0xd1e   :  { %v12147_v48 = vrot.slane %v12146_v9, 1  ;;  %v12194_v40 = vrot.slane %v12193_v3, 2  ;;  %v12202_v38 = vadd.f32 %v12201_v61, %v12200_v16 }
 0xd1f   :  { %v12140_v0 = vrot.slane %v12139_v15, 1 }
 0xd20   :  { %v12148_v63 = vadd.f32 %v12147_v48, %v12146_v9  ;;  %v12195_v14 = vadd.f32 %v12194_v40, %v12193_v3  ;;  %v12203_v28 = vrot.slane %v12202_v38, 1  ;;  %v20434_v40 = vld [vmem:[#allocation43_spill] sm:$0xff] }
 0xd21   :  { %v12141_v23 = vadd.f32 %v12140_v0, %v12139_v15 }
 0xd22   :  { %v11775_v50 = vpop.permute.xlu1 %11774  ;;  %v12196_v46 = vrot.slane %v12195_v14, 1 }
 0xd23   :  { %v11770_v62 = vpop.permute.xlu0 %11769  ;;  %v11896_v44 = vmul.f32 %v11775_v50, %v20426_v26  ;;  %v19147_v35 = vsel %vm1887_vm2, %v12148_v63, %v12141_v23 }
 0xd24   :  { %v11895_v7 = vmul.f32 %v11770_v62, %v20427_v27  ;;  %v12204_v62 = vadd.f32 %v12203_v28, %v12202_v38 }
 0xd25   :  { %v12254_v39 = vsel %vm204_vm1, %v11896_v44, 0.0  ;;  %v20432_v44 = vld [vmem:[#allocation70_spill] sm:$0xff] }
 0xd26   :  { %v12247_v52 = vsel %vm204_vm1, %v11895_v7, 0.0  ;;  %v12255_v59 = vrot.slane %v12254_v39, 4 }
 0xd27   :  { %v12248_v19 = vrot.slane %v12247_v52, 4 }
 0xd28   :  { %v12256_v32 = vadd.f32 %v12255_v59, %v12254_v39  ;;  %v12197_v39 = vadd.f32 %v12196_v46, %v12195_v14 }
 0xd29   :  { %v12249_v25 = vadd.f32 %v12248_v19, %v12247_v52 }
 0xd2a   :  { %v12257_v13 = vrot.slane %v12256_v32, 2 }
 0xd2b   :  { %v12250_v29 = vrot.slane %v12249_v25, 2 }
 0xd2c   :  { %v12258_v18 = vadd.f32 %v12257_v13, %v12256_v32 }
 0xd2d   :  { %v12251_v20 = vadd.f32 %v12250_v29, %v12249_v25 }
 0xd2e   :  { %v12259_v55 = vrot.slane %v12258_v18, 1 }
 0xd2f   :  { %v12252_v59 = vrot.slane %v12251_v20, 1 }
 0xd30   :  { %v12260_v0 = vadd.f32 %v12259_v55, %v12258_v18 }
 0xd32   :  { %v11815_v17 = vpop.permute.xlu1 %11814 }
 0xd33   :  { %v11904_v22 = vmul.f32 %v11815_v17, %v20428_v10  ;;  %v11810_v51 = vpop.permute.xlu0 %11809 }
 0xd34   :  { %v11903_v6 = vmul.f32 %v11810_v51, %v20429_v11 }
 0xd35   :  { %v12310_v54 = vsel %vm204_vm1, %v11904_v22, 0.0  ;;  %v20435_v22 = vld [vmem:[#allocation34_spill] sm:$0xff] }
 0xd36   :  { %v12311_v1 = vrot.slane %v12310_v54, 4  ;;  %v12303_v36 = vsel %vm204_vm1, %v11903_v6, 0.0  ;;  %v11740_v24 = vpop.permute.xlu1 %11739 }
 0xd37   :  { %v12304_v37 = vrot.slane %v12303_v36, 4  ;;  %v11889_v56 = vmul.f32 %v11740_v24, %v20430_v60  ;;  %v11700_v4 = vpop.permute.xlu0 %11699  ;;  %v12253_v24 = vadd.f32 %v12252_v59, %v12251_v20 }
 0xd38   :  { %v12312_v5 = vadd.f32 %v12311_v1, %v12310_v54  ;;  %v11881_v33 = vmul.f32 %v11700_v4, %v20431_v31 }
 0xd39   :  { %v12305_v58 = vadd.f32 %v12304_v37, %v12303_v36  ;;  %v12205_v2 = vsel %vm204_vm1, %v11889_v56, 0.0 }
 0xd3a   :  { %v12313_v53 = vrot.slane %v12312_v5, 2  ;;  %v12206_v50 = vrot.slane %v12205_v2, 4  ;;  %v12149_v41 = vsel %vm204_vm1, %v11881_v33, 0.0  ;;  %v11820_v30 = vpop.permute.xlu1 %11819 }
 0xd3b   :  { %v12306_v34 = vrot.slane %v12305_v58, 2  ;;  %v12150_v26 = vrot.slane %v12149_v41, 4  ;;  %v11905_v21 = vmul.f32 %v11820_v30, %v20432_v44  ;;  %v11780_v42 = vpop.permute.xlu0 %11779  ;;  %v12465_v44 = vsel %vm1887_vm2, %v12260_v0, %v12253_v24 }
 0xd3c   :  { %v12314_v27 = vadd.f32 %v12313_v53, %v12312_v5  ;;  %v12207_v7 = vadd.f32 %v12206_v50, %v12205_v2  ;;  %v11897_v57 = vmul.f32 %v11780_v42, %v20433_v12  ;;  %v20436_v5 = vld [vmem:[#allocation61_spill] sm:$0xff]  ;;  %v20437_v2 = vld [vmem:[#allocation52_spill] sm:$0xff] }
 0xd3d   :  { %v12307_v8 = vadd.f32 %v12306_v34, %v12305_v58  ;;  %v12151_v16 = vadd.f32 %v12150_v26, %v12149_v41  ;;  %v12317_v52 = vsel %vm204_vm1, %v11905_v21, 0.0  ;;  %v12458_v26 = vsel %vm1887_vm2, %v12204_v62, %v12197_v39 }
 0xd3e   :  { %v12208_v9 = vrot.slane %v12207_v7, 2  ;;  %v12318_v3 = vrot.slane %v12317_v52, 4  ;;  %v12261_v19 = vsel %vm204_vm1, %v11897_v57, 0.0  ;;  %v11705_v15 = vpop.permute.xlu1 %11704  ;;  %v12315_v61 = vrot.slane %v12314_v27, 1  ;;  %v20438_v57 = vld [vmem:[#allocation37_spill] sm:$0xff] }
 0xd3f   :  { %v12152_v32 = vrot.slane %v12151_v16, 2  ;;  %v12262_v48 = vrot.slane %v12261_v19, 4  ;;  %v11882_v25 = vmul.f32 %v11705_v15, %v20434_v40  ;;  %v11665_v17 = vpop.permute.xlu0 %11664  ;;  %v12308_v13 = vrot.slane %v12307_v8, 1 }
 0xd40   :  { %v12209_v38 = vadd.f32 %v12208_v9, %v12207_v7  ;;  %v12319_v10 = vadd.f32 %v12318_v3, %v12317_v52  ;;  %v11874_v51 = vmul.f32 %v11665_v17, %v20435_v22  ;;  %v12316_v23 = vadd.f32 %v12315_v61, %v12314_v27  ;;  %v20440_v22 = vld [vmem:[#allocation55_spill] sm:$0xff] }
 0xd41   :  { %v12153_v11 = vadd.f32 %v12152_v32, %v12151_v16  ;;  %v12263_v6 = vadd.f32 %v12262_v48, %v12261_v19  ;;  %v12156_v63 = vsel %vm204_vm1, %v11882_v25, 0.0  ;;  %v12309_v33 = vadd.f32 %v12308_v13, %v12307_v8  ;;  %v20439_v19 = vld [vmem:[#allocation69_spill] sm:$0xff] }
 0xd42   :  { %v12210_v14 = vrot.slane %v12209_v38, 1  ;;  %v12320_v54 = vrot.slane %v12319_v10, 2  ;;  %v12157_v29 = vrot.slane %v12156_v63, 4  ;;  %v12100_v1 = vsel %vm204_vm1, %v11874_v51, 0.0  ;;  %v11785_v36 = vpop.permute.xlu1 %11784 }
 0xd43   :  { %v12264_v28 = vrot.slane %v12263_v6, 2  ;;  %v12101_v37 = vrot.slane %v12100_v1, 4  ;;  %v11745_v60 = vpop.permute.xlu0 %11744  ;;  %v12154_v56 = vrot.slane %v12153_v11, 1  ;;  %v11898_v31 = vmul.f32 %v11785_v36, %v20436_v5  ;;  %v20442_v5 = vld [vmem:[#allocation72_spill] sm:$0xff] }
 0xd44   :  { %v12321_v4 = vadd.f32 %v12320_v54, %v12319_v10  ;;  %v12158_v18 = vadd.f32 %v12157_v29, %v12156_v63  ;;  %v11890_v53 = vmul.f32 %v11745_v60, %v20437_v2  ;;  %v12211_v50 = vadd.f32 %v12210_v14, %v12209_v38 }
 0xd45   :  { %v12265_v46 = vadd.f32 %v12264_v28, %v12263_v6  ;;  %v12102_v58 = vadd.f32 %v12101_v37, %v12100_v1  ;;  %v12268_v34 = vsel %vm204_vm1, %v11898_v31, 0.0  ;;  %v12155_v27 = vadd.f32 %v12154_v56, %v12153_v11  ;;  %v20441_v1 = vld [vmem:[#allocation46_spill] sm:$0xff] }
 0xd46   :  { %v12322_v41 = vrot.slane %v12321_v4, 1  ;;  %v12159_v30 = vrot.slane %v12158_v18, 2  ;;  %v11670_v20 = vpop.permute.xlu1 %11669  ;;  %v12269_v42 = vrot.slane %v12268_v34, 4  ;;  %v12212_v12 = vsel %vm204_vm1, %v11890_v53, 0.0 }
 0xd47   :  { %v12103_v21 = vrot.slane %v12102_v58, 2  ;;  %v11825_v55 = vpop.permute.xlu0 %11824  ;;  %v11875_v8 = vmul.f32 %v11670_v20, %v20438_v57  ;;  %v12472_v16 = vsel %vm1887_vm2, %v12316_v23, %v12309_v33  ;;  %v12266_v52 = vrot.slane %v12265_v46, 1 }
 0xd48   :  { %v12160_v7 = vadd.f32 %v12159_v30, %v12158_v18  ;;  %v12270_v59 = vadd.f32 %v12269_v42, %v12268_v34  ;;  %v12213_v9 = vrot.slane %v12212_v12, 4  ;;  %v19168_v3 = vsel %vm1889_vm3, %v12211_v50, %v12458_v26  ;;  %v20443_v30 = vld [vmem:[#allocation64_spill] sm:$0xff] }
 0xd49   :  { %v12323_v62 = vadd.f32 %v12322_v41, %v12321_v4  ;;  %v12107_v39 = vsel %vm204_vm1, %v11875_v8, 0.0  ;;  %v11906_v15 = vmul.f32 %v11825_v55, %v20439_v19  ;;  %v12104_v48 = vadd.f32 %v12103_v21, %v12102_v58  ;;  %v20444_v19 = vld [vmem:[#allocation45_spill] sm:$0xff] }
 0xd4a   :  { %v11750_v61 = vpop.permute.xlu1 %11749  ;;  %v12161_v32 = vrot.slane %v12160_v7, 1  ;;  %v12271_v40 = vrot.slane %v12270_v59, 2  ;;  %v12214_v25 = vadd.f32 %v12213_v9, %v12212_v12  ;;  %v12452_v0 = vsel %vm1889_vm3, %v12155_v27, %v19147_v35 }
 0xd4b   :  { %v11710_v17 = vpop.permute.xlu0 %11709  ;;  %v12108_v38 = vrot.slane %v12107_v39, 4  ;;  %v12324_v10 = vsel %vm204_vm1, %v11906_v15, 0.0  ;;  %v11891_v51 = vmul.f32 %v11750_v61, %v20440_v22  ;;  %v12267_v13 = vadd.f32 %v12266_v52, %v12265_v46 }
 0xd4c   :  { %v12272_v11 = vadd.f32 %v12271_v40, %v12270_v59  ;;  %v12215_v6 = vrot.slane %v12214_v25, 2  ;;  %v12325_v63 = vrot.slane %v12324_v10, 4  ;;  %v19177_v14 = vsel %vm1889_vm3, %v12323_v62, %v12472_v16 }
 0xd4d   :  { %v12109_v54 = vadd.f32 %v12108_v38, %v12107_v39  ;;  %v12219_v29 = vsel %vm204_vm1, %v11891_v51, 0.0  ;;  %v11883_v36 = vmul.f32 %v11710_v17, %v20441_v1  ;;  %v12162_v23 = vadd.f32 %v12161_v32, %v12160_v7  ;;  %v20446_v1 = vld [vmem:[#allocation63_spill] sm:$0xff] }
 0xd4e   :  { %v11830_v24 = vpop.permute.xlu1 %11829  ;;  %v12105_v35 = vrot.slane %v12104_v48, 1  ;;  %v12216_v28 = vadd.f32 %v12215_v6, %v12214_v25  ;;  %v12326_v37 = vadd.f32 %v12325_v63, %v12324_v10  ;;  %v12220_v4 = vrot.slane %v12219_v29, 4  ;;  %v20445_v25 = vld [vmem:[#allocation36_spill] sm:$0xff] }
 0xd4f   :  { %v11790_v60 = vpop.permute.xlu0 %11789  ;;  %v12110_v56 = vrot.slane %v12109_v54, 2  ;;  %v12163_v18 = vsel %vm204_vm1, %v11883_v36, 0.0  ;;  %v11907_v31 = vmul.f32 %v11830_v24, %v20442_v5  ;;  %v12466_v33 = vsel %vm1889_vm3, %v12267_v13, %v12465_v44  ;;  %v20447_v5 = vld [vmem:[#allocation54_spill] sm:$0xff] }
 0xd50   :  { %v12273_v46 = vrot.slane %v12272_v11, 1  ;;  %v12327_v58 = vrot.slane %v12326_v37, 2  ;;  %v12164_v2 = vrot.slane %v12163_v18, 4  ;;  %v12221_v50 = vadd.f32 %v12220_v4, %v12219_v29 }
 0xd51   :  { %v12111_v53 = vadd.f32 %v12110_v56, %v12109_v54  ;;  %v12331_v41 = vsel %vm204_vm1, %v11907_v31, 0.0  ;;  %v11899_v34 = vmul.f32 %v11790_v60, %v20443_v30  ;;  %v19187_v26 = vsel %vm1891_vm4, %v12162_v23, %v12452_v0  ;;  %v20448_v30 = vld [vmem:[#allocation39_spill] sm:$0xff] }
 0xd52   :  { %v11715_v20 = vpop.permute.xlu1 %11714  ;;  %v12106_v21 = vadd.f32 %v12105_v35, %v12104_v48  ;;  %v12328_v42 = vadd.f32 %v12327_v58, %v12326_v37  ;;  %v12165_v55 = vadd.f32 %v12164_v2, %v12163_v18  ;;  %v12217_v7 = vrot.slane %v12216_v28, 1 }
 0xd53   :  { %v11675_v27 = vpop.permute.xlu0 %11674  ;;  %v12222_v12 = vrot.slane %v12221_v50, 2  ;;  %v12332_v44 = vrot.slane %v12331_v41, 4  ;;  %v12275_v57 = vsel %vm204_vm1, %v11899_v34, 0.0  ;;  %v12274_v8 = vadd.f32 %v12273_v46, %v12272_v11 }
 0xd54   :  { %v12112_v16 = vrot.slane %v12111_v53, 1  ;;  %v12166_v52 = vrot.slane %v12165_v55, 2  ;;  %v12276_v59 = vrot.slane %v12275_v57, 4  ;;  %v12329_v9 = vrot.slane %v12328_v42, 1 }
 0xd55   :  { %v12223_v62 = vadd.f32 %v12222_v12, %v12221_v50  ;;  %v12333_v39 = vadd.f32 %v12332_v44, %v12331_v41  ;;  %v11884_v15 = vmul.f32 %v11715_v20, %v20444_v19  ;;  %v12446_v32 = vsel %vm1891_vm4, %v12106_v21, %v19117_v43  ;;  %v20450_v19 = vld [vmem:[#allocation57_spill] sm:$0xff] }
 0xd56   :  { %v11795_v61 = vpop.permute.xlu1 %11794  ;;  %v12167_v48 = vadd.f32 %v12166_v52, %v12165_v55  ;;  %v12277_v40 = vadd.f32 %v12276_v59, %v12275_v57  ;;  %v11876_v17 = vmul.f32 %v11675_v27, %v20445_v25  ;;  %v12218_v38 = vadd.f32 %v12217_v7, %v12216_v28  ;;  %v20449_v57 = vld [vmem:[#allocation71_spill] sm:$0xff] }
 0xd57   :  { %v11755_v0 = vpop.permute.xlu0 %11754  ;;  %v12224_v10 = vrot.slane %v12223_v62, 1  ;;  %v12334_v22 = vrot.slane %v12333_v39, 2  ;;  %v12170_v51 = vsel %vm204_vm1, %v11884_v15, 0.0  ;;  %v19196_v13 = vsel %vm1891_vm4, %v12274_v8, %v12466_v33 }
 0xd58   :  { %v12113_v11 = vadd.f32 %v12112_v16, %v12111_v53  ;;  %v12278_v6 = vrot.slane %v12277_v40, 2  ;;  %v12171_v63 = vrot.slane %v12170_v51, 4  ;;  %v12330_v54 = vadd.f32 %v12329_v9, %v12328_v42 }
 0xd59   :  { %v12335_v29 = vadd.f32 %v12334_v22, %v12333_v39  ;;  %v12114_v43 = vsel %vm204_vm1, %v11876_v17, 0.0  ;;  %v11900_v36 = vmul.f32 %v11795_v61, %v20446_v1  ;;  %v12168_v23 = vrot.slane %v12167_v48, 1  ;;  %v20451_v22 = vld [vmem:[#allocation48_spill] sm:$0xff]  ;;  %v20452_v1 = vld [vmem:[#allocation74_spill] sm:$0xff] }
 0xd5a   :  { %v11680_v24 = vpop.permute.xlu1 %11679  ;;  %v12279_v35 = vadd.f32 %v12278_v6, %v12277_v40  ;;  %v12172_v28 = vadd.f32 %v12171_v63, %v12170_v51  ;;  %v12115_v37 = vrot.slane %v12114_v43, 4  ;;  %v12460_v56 = vsel %vm1891_vm4, %v12218_v38, %v19168_v3 }
 0xd5b   :  { %v11835_v60 = vpop.permute.xlu0 %11834  ;;  %v12225_v4 = vadd.f32 %v12224_v10, %v12223_v62  ;;  %v12282_v18 = vsel %vm204_vm1, %v11900_v36, 0.0  ;;  %v11892_v31 = vmul.f32 %v11755_v0, %v20447_v5  ;;  %v19205_v33 = vsel %vm1893_vm5, %v12113_v11, %v12446_v32  ;;  %v20453_v5 = vld [vmem:[#allocation66_spill] sm:$0xff] }
 0xd5c   :  { %v12336_v46 = vrot.slane %v12335_v29, 1  ;;  %v12173_v58 = vrot.slane %v12172_v28, 2  ;;  %v12116_v2 = vadd.f32 %v12115_v37, %v12114_v43  ;;  %v12474_v53 = vsel %vm1891_vm4, %v12330_v54, %v19177_v14 }
 0xd5d   :  { %v12283_v50 = vrot.slane %v12282_v18, 4  ;;  %v12226_v41 = vsel %vm204_vm1, %v11892_v31, 0.0  ;;  %v11877_v34 = vmul.f32 %v11680_v24, %v20448_v30  ;;  %v12169_v20 = vadd.f32 %v12168_v23, %v12167_v48 }
 0xd5e   :  { %v11760_v3 = vpop.permute.xlu1 %11759  ;;  %v12280_v21 = vrot.slane %v12279_v35, 1  ;;  %v12117_v42 = vrot.slane %v12116_v2, 2  ;;  %v12227_v55 = vrot.slane %v12226_v41, 4  ;;  %v19212_v7 = vsel %vm1893_vm5, %v12225_v4, %v12460_v56 }
 0xd5f   :  { %v11720_v27 = vpop.permute.xlu0 %11719  ;;  %v12284_v12 = vadd.f32 %v12283_v50, %v12282_v18  ;;  %v12121_v44 = vsel %vm204_vm1, %v11877_v34, 0.0  ;;  %v11908_v8 = vmul.f32 %v11835_v60, %v20449_v57  ;;  %v12337_v14 = vadd.f32 %v12336_v46, %v12335_v29  ;;  %v20454_v34 = vld [vmem:[#allocation47_spill] sm:$0xff] }
 0xd60   :  { %v12174_v16 = vadd.f32 %v12173_v58, %v12172_v28  ;;  %v12118_v52 = vadd.f32 %v12117_v42, %v12116_v2  ;;  %v12228_v59 = vadd.f32 %v12227_v55, %v12226_v41  ;;  %v12122_v62 = vrot.slane %v12121_v44, 4 }
 0xd61   :  { %v12285_v9 = vrot.slane %v12284_v12, 2  ;;  %v12338_v39 = vsel %vm204_vm1, %v11908_v8, 0.0  ;;  %v11893_v15 = vmul.f32 %v11760_v3, %v20450_v19  ;;  %v19220_v32 = vsel %vm1893_vm5, %v12169_v20, %v19187_v26  ;;  %v20455_v8 = vld [vmem:[#allocation38_spill] sm:$0xff] }
 0xd62   :  { %v11840_v61 = vpop.permute.xlu1 %11839  ;;  %v12281_v48 = vadd.f32 %v12280_v21, %v12279_v35  ;;  %v12229_v40 = vrot.slane %v12228_v59, 2  ;;  %v12339_v25 = vrot.slane %v12338_v39, 4  ;;  %v12123_v38 = vadd.f32 %v12122_v62, %v12121_v44 }
 0xd63   :  { %v11800_v17 = vpop.permute.xlu0 %11799  ;;  %v12286_v0 = vadd.f32 %v12285_v9, %v12284_v12  ;;  %v12233_v10 = vsel %vm204_vm1, %v11893_v15, 0.0  ;;  %v11885_v51 = vmul.f32 %v11720_v27, %v20451_v22  ;;  %v12175_v11 = vrot.slane %v12174_v16, 1  ;;  %v20456_v15 = vld [vmem:[#allocation65_spill] sm:$0xff] }
 0xd64   :  { %v12230_v6 = vadd.f32 %v12229_v40, %v12228_v59  ;;  %v12340_v63 = vadd.f32 %v12339_v25, %v12338_v39  ;;  %v12234_v54 = vrot.slane %v12233_v10, 4  ;;  %v19225_v29 = vsel %vm1893_vm5, %v12337_v14, %v12474_v53 }
 0xd65   :  { %v12119_v43 = vrot.slane %v12118_v52, 1  ;;  %v12177_v26 = vsel %vm204_vm1, %v11885_v51, 0.0  ;;  %v11909_v36 = vmul.f32 %v11840_v61, %v20452_v1  ;;  %v12124_v23 = vrot.slane %v12123_v38, 2  ;;  %v20457_v51 = vld [vmem:[#allocation56_spill] sm:$0xff] }
 0xd66   :  { %v11725_v24 = vpop.permute.xlu1 %11724  ;;  %v12341_v35 = vrot.slane %v12340_v63, 2  ;;  %v12235_v28 = vadd.f32 %v12234_v54, %v12233_v10  ;;  %v12178_v37 = vrot.slane %v12177_v26, 4  ;;  %v19231_v56 = vsel %vm1893_vm5, %v12281_v48, %v19196_v13 }
 0xd67   :  { %v11685_v60 = vpop.permute.xlu0 %11684  ;;  %v12287_v4 = vrot.slane %v12286_v0, 1  ;;  %v12345_v18 = vsel %vm204_vm1, %v11909_v36, 0.0  ;;  %v11901_v31 = vmul.f32 %v11800_v17, %v20453_v5  ;;  %v19235_v46 = vadd.f32 %v12175_v11, %v12174_v16 }
 0xd68   :  { %v12231_v58 = vrot.slane %v12230_v6, 1  ;;  %v12236_v2 = vrot.slane %v12235_v28, 2  ;;  %v12179_v53 = vadd.f32 %v12178_v37, %v12177_v26  ;;  %v19237_v50 = vadd.f32 %v12119_v43, %v12118_v52 }
 0xd69   :  { %v12346_v41 = vrot.slane %v12345_v18, 4  ;;  %v12289_v30 = vsel %vm204_vm1, %v11901_v31, 0.0  ;;  %v11886_v3 = vmul.f32 %v11725_v24, %v20454_v34  ;;  %v12125_v20 = vadd.f32 %v12124_v23, %v12123_v38  ;;  %v20458_v24 = vld [vmem:[#allocation73_spill] sm:$0xff] }
 0xd6a   :  { %v12342_v13 = vadd.f32 %v12341_v35, %v12340_v63  ;;  %v12180_v21 = vrot.slane %v12179_v53, 2  ;;  %v12290_v42 = vrot.slane %v12289_v30, 4  ;;  %v11805_v55 = vpop.permute.xlu1 %11804  ;;  %v12288_v12 = vadd.f32 %v12287_v4, %v12286_v0 }
 0xd6b   :  { %v11765_v27 = vpop.permute.xlu0 %11764  ;;  %v12347_v44 = vadd.f32 %v12346_v41, %v12345_v18  ;;  %v12184_v57 = vsel %vm204_vm1, %v11886_v3, 0.0  ;;  %v11878_v14 = vmul.f32 %v11685_v60, %v20455_v8  ;;  %v19243_v16 = vadd.f32 %v12231_v58, %v12230_v6 }
 0xd6c   :  { %v12237_v52 = vadd.f32 %v12236_v2, %v12235_v28  ;;  %v12181_v59 = vadd.f32 %v12180_v21, %v12179_v53  ;;  %v12291_v9 = vadd.f32 %v12290_v42, %v12289_v30  ;;  %v12185_v39 = vrot.slane %v12184_v57, 4 }
 0xd6d   :  { %v12348_v62 = vrot.slane %v12347_v44, 2  ;;  %v12128_v19 = vsel %vm204_vm1, %v11878_v14, 0.0  ;;  %v11902_v61 = vmul.f32 %v11805_v55, %v20456_v15  ;;  %v12126_v48 = vrot.slane %v12125_v20, 1 }
 0xd6e   :  { %v12343_v40 = vrot.slane %v12342_v13, 1  ;;  %v12292_v25 = vrot.slane %v12291_v9, 2  ;;  %v12129_v17 = vrot.slane %v12128_v19, 4  ;;  %v12182_v38 = vrot.slane %v12181_v59, 1 }
 0xd6f   :  { %v11845_v0 = vpop.permute.xlu0 %11844  ;;  %v12186_v10 = vadd.f32 %v12185_v39, %v12184_v57  ;;  %v12296_v22 = vsel %vm204_vm1, %v11902_v61, 0.0  ;;  %v11894_v11 = vmul.f32 %v11765_v27, %v20457_v51  ;;  %v12238_v6 = vrot.slane %v12237_v52, 1  ;;  %v20459_v61 = vld [vmem:[#allocation32_spill] sm:$0xff] }
 0xd70   :  { %v12293_v63 = vadd.f32 %v12292_v25, %v12291_v9  ;;  %v12130_v54 = vadd.f32 %v12129_v17, %v12128_v19  ;;  %v12297_v43 = vrot.slane %v12296_v22, 4  ;;  %v12349_v26 = vadd.f32 %v12348_v62, %v12347_v44 }
 0xd71   :  { %v12187_v1 = vrot.slane %v12186_v10, 2  ;;  %v12240_v36 = vsel %vm204_vm1, %v11894_v11, 0.0  ;;  %v11910_v23 = vmul.f32 %v11845_v0, %v20458_v24  ;;  %v12127_v35 = vadd.f32 %v12126_v48, %v12125_v20  ;;  %v20460_v0 = vld [vmem:[#allocation22_spill] sm:$0xff]  ;;  %v20461_v11 = vld [vmem:[#allocation49_spill] sm:$0xff] }
 0xd72   :  { %v12131_v28 = vrot.slane %v12130_v54, 2  ;;  %v12298_v37 = vadd.f32 %v12297_v43, %v12296_v22  ;;  %v12241_v60 = vrot.slane %v12240_v36, 4  ;;  %v12183_v4 = vadd.f32 %v12182_v38, %v12181_v59 }
 0xd73   :  { %v12294_v18 = vrot.slane %v12293_v63, 1  ;;  %v12188_v5 = vadd.f32 %v12187_v1, %v12186_v10  ;;  %v12352_v31 = vsel %vm204_vm1, %v11910_v23, 0.0  ;;  %v12344_v58 = vadd.f32 %v12343_v40, %v12342_v13 }
 0xd74   :  { %v12132_v2 = vadd.f32 %v12131_v28, %v12130_v54  ;;  %v12299_v53 = vrot.slane %v12298_v37, 2  ;;  %v12242_v41 = vadd.f32 %v12241_v60, %v12240_v36  ;;  %v12239_v30 = vadd.f32 %v12238_v6, %v12237_v52  ;;  %v20462_v36 = vld [vmem:[#allocation42_spill] sm:$0xff]  ;;  %v20463_v60 = vld [vmem:[#allocation59_spill] sm:$0xff] }
 0xd75   :  { %v12350_v34 = vrot.slane %v12349_v26, 1  ;;  %v12189_v3 = vrot.slane %v12188_v5, 1  ;;  %v12353_v21 = vrot.slane %v12352_v31, 4  ;;  %v12455_v20 = vsel %vm1895_vm6, %v19235_v46, %v19220_v32 }
 0xd76   :  { %v12133_v42 = vrot.slane %v12132_v2, 1  ;;  %v12300_v55 = vadd.f32 %v12299_v53, %v12298_v37  ;;  %v12243_v27 = vrot.slane %v12242_v41, 2  ;;  %v12295_v44 = vadd.f32 %v12294_v18, %v12293_v63 }
 0xd77   :  { %v12190_v57 = vadd.f32 %v12189_v3, %v12188_v5  ;;  %v12354_v8 = vadd.f32 %v12353_v21, %v12352_v31  ;;  %v12456_v14 = vsel %vm1897_vm7, %v12183_v4, %v12455_v20  ;;  %v12448_v52 = vsel %vm1895_vm6, %v19237_v50, %v19205_v33 }
 0xd78   :  { %v12134_v13 = vadd.f32 %v12133_v42, %v12132_v2  ;;  %v12301_v59 = vrot.slane %v12300_v55, 1  ;;  %v12244_v9 = vadd.f32 %v12243_v27, %v12242_v41  ;;  %v12449_v19 = vsel %vm1897_vm7, %v12127_v35, %v12448_v52 }
 0xd79   :  { %v12355_v62 = vrot.slane %v12354_v8, 2  ;;  %v12457_v39 = vsel %vm1899_vm8, %v12190_v57, %v12456_v14  ;;  %v12469_v32 = vsel %vm1895_vm6, %v12288_v12, %v19231_v56  ;;  %v12351_v25 = vadd.f32 %v12350_v34, %v12349_v26 }
 0xd7a   :  { %v12302_v46 = vadd.f32 %v12301_v59, %v12300_v55  ;;  %v12245_v15 = vrot.slane %v12244_v9, 1  ;;  %v19264_v48 = vadd.f32 %v12457_v39, %v20459_v61  ;;  %v12450_v40 = vsel %vm1899_vm8, %v12134_v13, %v12449_v19 }
 0xd7b   :  { %v12356_v17 = vadd.f32 %v12355_v62, %v12354_v8  ;;  %v19268_v38 = vadd.f32 %v12450_v40, %v20460_v0  ;;  %v12470_v33 = vsel %vm1897_vm7, %v12295_v44, %v12469_v32  ;;  %v12462_v12 = vsel %vm1895_vm6, %v19243_v16, %v19212_v7 }
 0xd7c   :  { %v12246_v50 = vadd.f32 %v12245_v15, %v12244_v9  ;;  %v12499_v10 = vmul.f32 %v19264_v48, %v19264_v48  ;;  %v12471_v56 = vsel %vm1899_vm8, %v12302_v46, %v12470_v33  ;;  %v12463_v63 = vsel %vm1897_vm7, %v12239_v30, %v12462_v12 }
 0xd7d   :  { %v12357_v22 = vrot.slane %v12356_v17, 1  ;;  %v12498_v51 = vmul.f32 %v19268_v38, %v19268_v38  ;;  %v19280_v6 = vadd.f32 %v12471_v56, %v20461_v11  ;;  %v12476_v26 = vsel %vm1895_vm6, %v12344_v58, %v19225_v29 }
 0xd7e   :  { %v12515_v54 = vsel %vm91_vm0, %v12499_v10, 0.0  ;;  %v12464_v43 = vsel %vm1899_vm8, %v12246_v50, %v12463_v63  ;;  %v12477_v23 = vsel %vm1897_vm7, %v12351_v25, %v12476_v26 }
 0xd7f   :  { %v12358_v1 = vadd.f32 %v12357_v22, %v12356_v17  ;;  %12516 = vadd.xlane.f32.xlu0 %v12515_v54  ;;  %v12512_v7 = vsel %vm91_vm0, %v12498_v51, 0.0  ;;  %v12501_v16 = vmul.f32 %v19280_v6, %v19280_v6  ;;  %v12492_v24 = vadd.f32 %v12464_v43, %v20462_v36 }
 0xd80   :  { %12513 = vadd.xlane.f32.xlu1 %v12512_v7 }
 0xd81   :  { %v12521_v35 = vsel %vm91_vm0, %v12501_v16, 0.0  ;;  %v12500_v28 = vmul.f32 %v12492_v24, %v12492_v24  ;;  %v12478_v37 = vsel %vm1899_vm8, %v12358_v1, %v12477_v23 }
 0xd82   :  { %v12494_v4 = vadd.f32 %v12478_v37, %v20463_v60 }
 0xd83   :  { %12522 = vadd.xlane.f32.xlu0 %v12521_v35  ;;  %v12518_v29 = vsel %vm91_vm0, %v12500_v28, 0.0 }
 0xd84   :  { %12519 = vadd.xlane.f32.xlu1 %v12518_v29  ;;  %v12502_v18 = vmul.f32 %v12494_v4, %v12494_v4 }
 0xd86   :  { %v12524_v5 = vsel %vm91_vm0, %v12502_v18, 0.0 }
 0xd88   :  { %12525 = vadd.xlane.f32.xlu1 %v12524_v5 }
 0xda1   :  { %v12508_v31 = vpop.xlane.xlu0 %12507 }
 0xda2   :  { %v12528_v58 = vmax.f32 %v12508_v31, 1e-24  ;;  %v12505_v2 = vpop.xlane.xlu1 %12504 }
 0xda3   :  { %v12527_v53 = vmax.f32 %v12505_v2, 1e-24 }
 0xda4   :  { %13511 = vrsqrt.f32 %v12528_v58 }
 0xda5   :  { %13513 = vrsqrt.f32 %v12527_v53 }
 0xda8   :  { %v12511_v41 = vpop.xlane.xlu0 %12510 }
 0xda9   :  { %v12529_v30 = vmax.f32 %v12511_v41, 1e-24 }
 0xdab   :  { %13515 = vrsqrt.f32 %v12529_v30 }
 0xdae   :  { %v13512_v34 = vpop.eup %13511 }
 0xdaf   :  { %v13514_v3 = vpop.eup %13513  ;;  %v12544_v21 = vmul.f32 %v13512_v34, %v19102_v49 }
 0xdb0   :  { %v12543_v42 = vmul.f32 %v13514_v3, %v19105_v45 }
 0xdb1   :  { %12552 = vst.msk [vmem:[%s19337_s2 + $0x8] sm:$0xff] %vm91_vm0, %v12544_v21 }
 0xdb2   :  { %12551 = vst.msk [vmem:[%s19337_s2] sm:$0xff] %vm91_vm0, %v12543_v42 }
 0xdb5   :  { %v13516_v55 = vpop.eup %13515 }
 0xdb6   :  { %v12545_v27 = vmul.f32 %v13516_v55, %v19125_v47 }
 0xdb8   :  { %12553 = vst.msk [vmem:[%s19337_s2 + $0x10] sm:$0xff] %vm91_vm0, %v12545_v27 }
 0xe0c   :  { %v12517_v49 = vpop.xlane.xlu0 %12516 }
 0xe0d   :  { %v12514_v45 = vpop.xlane.xlu1 %12513  ;;  %v12531_v20 = vmax.f32 %v12517_v49, 1e-24 }
 0xe0e   :  { %v12530_v44 = vmax.f32 %v12514_v45, 1e-24 }
 0xe0f   :  { %13517 = vrsqrt.f32 %v12531_v20 }
 0xe10   :  { %13519 = vrsqrt.f32 %v12530_v44  ;;  %v12523_v57 = vpop.xlane.xlu0 %12522 }
 0xe11   :  { %v12520_v8 = vpop.xlane.xlu1 %12519  ;;  %v12533_v14 = vmax.f32 %v12523_v57, 1e-24 }
 0xe12   :  { %v12532_v13 = vmax.f32 %v12520_v8, 1e-24 }
 0xe13   :  { %13521 = vrsqrt.f32 %v12533_v14 }
 0xe14   :  { %13523 = vrsqrt.f32 %v12532_v13 }
 0xe15   :  { %v12526_v59 = vpop.xlane.xlu1 %12525 }
 0xe16   :  { %v12534_v9 = vmax.f32 %v12526_v59, 1e-24 }
 0xe18   :  { %13525 = vrsqrt.f32 %v12534_v9 }
 0xe19   :  { %v13518_v47 = vpop.eup %13517 }
 0xe1a   :  { %v13520_v52 = vpop.eup %13519  ;;  %v12547_v62 = vmul.f32 %v13518_v47, %v19264_v48 }
 0xe1b   :  { %v12546_v39 = vmul.f32 %v13520_v52, %v19268_v38 }
 0xe1c   :  { %12555 = vst.msk [vmem:[%s19337_s2 + $0x20] sm:$0xff] %vm91_vm0, %v12547_v62 }
 0xe1d   :  { %v13522_v19 = vpop.eup %13521  ;;  %12554 = vst.msk [vmem:[%s19337_s2 + $0x18] sm:$0xff] %vm91_vm0, %v12546_v39 }
 0xe1e   :  { %v13524_v32 = vpop.eup %13523  ;;  %v12549_v46 = vmul.f32 %v13522_v19, %v19280_v6 }
 0xe1f   :  { %v12548_v15 = vmul.f32 %v13524_v32, %v12492_v24 }
 0xe20   :  { %12557 = vst.msk [vmem:[%s19337_s2 + $0x30] sm:$0xff] %vm91_vm0, %v12549_v46 }
 0xe21   :  { %12556 = vst.msk [vmem:[%s19337_s2 + $0x28] sm:$0xff] %vm91_vm0, %v12548_v15 }
 0xe22   :  { %v13526_v61 = vpop.eup %13525 }
 0xe23   :  { %v12550_v48 = vmul.f32 %v13526_v61, %v12494_v4 }
 0xe25   :  { %12558 = vst.msk [vmem:[%s19337_s2 + $0x38] sm:$0xff] %vm91_vm0, %v12550_v48 }

</bundles_post_ra>
